<compile_context>
chip_gen: v7x
topology: tpu7x:2x2x1
jax: 0.10.0
libtpu: 0.0.40
codegen_flags: <defaults>
</compile_context>

<pallas_src>
import jax
import jax.numpy as jnp
from jax.experimental import pallas as pl
from jax.experimental.pallas import tpu as pltpu


def _silu(x):
    return x * jax.nn.sigmoid(x)


def _zero_halo(pad_ref, H, W):
    """Zero only the halo strips (interior is fully overwritten afterwards).

    pad_ref layout: (H+2, W+4, C); the activated image lives at rows [1, H+1),
    cols [2, W+2).  The border strips start at even column offsets and are 2
    columns wide, so all stores are aligned to packed bf16 sublane pairs
    (no partial-pair read-modify-write stores).
    """
    C = pad_ref.shape[-1]
    dt = pad_ref.dtype
    z_row = jnp.zeros((1, W + 4, C), dt)
    pad_ref[0:1, :, :] = z_row                       # top halo row
    pad_ref[H + 1:H + 2, :, :] = z_row               # bottom halo row
    z_col = jnp.zeros((H + 2, 2, C), dt)
    pad_ref[:, 0:2, :] = z_col                       # left halo (+1 unused col)
    pad_ref[:, W + 2:W + 4, :] = z_col               # right halo (+1 unused col)


def _conv3x3(pad_ref, w_ref, b_ref, H, W, C):
    """3x3 'SAME' conv as 9 shifted MXU matmuls.

    pad_ref: (H+2, W+4, C) bf16 Ref (zero halo, SiLU'd interior at cols [2,W+2)).
    w_ref:   (3, 3, C, Cout) bf16 Ref.
    b_ref:   (1, Cout) f32 Ref.
    Returns (H*W, Cout) f32.
    """
    Cout = w_ref.shape[-1]
    # Bias-initialized accumulator: saves one full (H*W, Cout) VALU add per conv.
    acc = jnp.broadcast_to(b_ref[...], (H * W, Cout))
    # TODO(synk): at production channel counts (C % 128 == 0) build a single
    # (H*W, 9*C) bf16 im2col LHS in VMEM and issue 1-3 deep-K matmuls against a
    # (9*C, Cout)-reshaped weight (v7x MRB accumulates in place); at the demo's
    # tiny C the lane-unaligned concat buys nothing, so keep 9 taps.
    for dy in range(3):
        for dx in range(3):
            # Per-tap Ref slice (not one big value load) keeps live ranges short.
            patch = pad_ref[dy:dy + H, dx + 1:dx + 1 + W, :].reshape(H * W, C)
            acc = acc + jnp.dot(patch, w_ref[dy, dx],
                                preferred_element_type=jnp.float32)
    return acc


def _make_fused_kernel(H, W, Cin, Cout, identity_skip):
    def kernel(*refs):
        if identity_skip:
            (x_ref, w1_ref, b1_ref, w2_ref, b2_ref,
             o_ref, pad1_ref, pad2_ref) = refs
        else:
            (x_ref, w1_ref, b1_ref, w2_ref, b2_ref, wsk_ref, bsk_ref,
             o_ref, pad1_ref, pad2_ref) = refs

        # ---- in_conv: SiLU -> Conv3x3.  Zero halo + SiLU(0)=0 == 'SAME' pad of
        # the activated input.  Halo re-zeroed every step (grid steps may be
        # sharded across TensorCores, scratch is per-core and uninitialized).
        _zero_halo(pad1_ref, H, W)
        pad1_ref[1:H + 1, 2:W + 2, :] = (
            _silu(x_ref[0].astype(jnp.float32)).astype(jnp.bfloat16))
        h = _conv3x3(pad1_ref, w1_ref, b1_ref, H, W, Cin)     # (H*W, Cout) f32

        # ---- out_conv: SiLU -> Dropout(p=0) (identity) -> Conv3x3.
        _zero_halo(pad2_ref, H, W)
        pad2_ref[1:H + 1, 2:W + 2, :] = (
            _silu(h).reshape(H, W, Cout).astype(jnp.bfloat16))
        out = _conv3x3(pad2_ref, w2_ref, b2_ref, H, W, Cout)

        # ---- skip connection + residual add (x re-read late from the resident
        # VMEM input block so it is not live across the two conv loops).
        if identity_skip:
            out = out + x_ref[0].astype(jnp.float32).reshape(H * W, Cout)
        else:
            xs = x_ref[0].reshape(H * W, Cin).astype(jnp.bfloat16)
            out = out + (jnp.dot(xs, wsk_ref[...],
                                 preferred_element_type=jnp.float32)
                         + bsk_ref[...])

        # TODO(synk): with tiny Cout this store is lane-sparse (masked vst);
        # pack W into lanes (block (1, H, W*Cout)) for small-C deployments.
        # At production Cout >= 128 the current layout is already lane-dense.
        o_ref[...] = out.reshape(1, H, W, Cout).astype(o_ref.dtype)

    return kernel


def _vmem_bytes_estimate(H, W, Cin, Cout, identity_skip):
    blk = 2 * 4 * H * W * (Cin + Cout)               # x/out blocks, double-buffered f32
    pads = 2 * (H + 2) * (W + 4) * (Cin + Cout)      # bf16 halo scratch
    wts = 2 * (9 * Cin * Cout + 9 * Cout * Cout)     # bf16 weights, single-buffered
    if not identity_skip:
        wts += 2 * Cin * Cout
    live = 3 * 4 * H * W * Cout                      # f32 acc / h / out working set
    return blk + pads + wts + live + 8 * Cout * 4


def decode_resblock_forward_nhwc(x_nhwc, params):
    """Fused forward in NHWC (channels-last -> channels on lanes)."""
    w1, b1, w2, b2, wsk, bsk = params
    N, H, W, Cin = x_nhwc.shape
    Cout = w1.shape[-1]
    identity_skip = wsk is None

    # bf16 MXU operands (f32 accumulation); halves weight DMA / VMEM footprint.
    w1b = w1.astype(jnp.bfloat16)
    w2b = w2.astype(jnp.bfloat16)
    b1r = b1.reshape(1, Cout).astype(jnp.float32)
    b2r = b2.reshape(1, Cout).astype(jnp.float32)

    # Constant index_maps -> no per-step re-DMA; Buffered(1) drops the unused
    # second pipeline buffer for the resident weights / biases.
    resident = pl.Buffered(buffer_count=1)
    args = [x_nhwc, w1b, b1r, w2b, b2r]
    in_specs = [
        pl.BlockSpec((1, H, W, Cin), lambda n: (n, 0, 0, 0)),
        pl.BlockSpec((3, 3, Cin, Cout), lambda n: (0, 0, 0, 0),
                     pipeline_mode=resident),
        pl.BlockSpec((1, Cout), lambda n: (0, 0), pipeline_mode=resident),
        pl.BlockSpec((3, 3, Cout, Cout), lambda n: (0, 0, 0, 0),
                     pipeline_mode=resident),
        pl.BlockSpec((1, Cout), lambda n: (0, 0), pipeline_mode=resident),
    ]
    flops = 2 * N * H * W * 9 * Cout * (Cin + Cout)
    bytes_accessed = (4 * N * H * W * (Cin + Cout)
                      + 2 * 9 * Cout * (Cin + Cout))
    if not identity_skip:
        args += [wsk.astype(jnp.bfloat16),
                 bsk.reshape(1, Cout).astype(jnp.float32)]
        in_specs += [
            pl.BlockSpec((Cin, Cout), lambda n: (0, 0), pipeline_mode=resident),
            pl.BlockSpec((1, Cout), lambda n: (0, 0), pipeline_mode=resident),
        ]
        flops += 2 * N * H * W * Cin * Cout
        bytes_accessed += 2 * Cin * Cout

    kernel = _make_fused_kernel(H, W, Cin, Cout, identity_skip)
    vmem_limit = int(min(max(2 * _vmem_bytes_estimate(H, W, Cin, Cout,
                                                      identity_skip),
                             32 * 1024 * 1024),
                         64 * 1024 * 1024))

    # TODO(synk): at production H/W/C, tile spatially (grid=(N, H//TH) with a
    # TH+2-row halo per tile) so blocks + scratch fit v7x's 64 MiB VMEM and the
    # pipeline gets >1 step per core; whole-image blocks are fine at demo sizes.
    out = pl.pallas_call(
        kernel,
        out_shape=jax.ShapeDtypeStruct((N, H, W, Cout), x_nhwc.dtype),
        grid=(N,),
        in_specs=in_specs,
        out_specs=pl.BlockSpec((1, H, W, Cout), lambda n: (n, 0, 0, 0)),
        scratch_shapes=[
            pltpu.VMEM((H + 2, W + 4, Cin), jnp.bfloat16),    # SiLU(x)  + halo
            pltpu.VMEM((H + 2, W + 4, Cout), jnp.bfloat16),   # SiLU(h1) + halo
        ],
        compiler_params=pltpu.CompilerParams(
            # Megacore on v7x; note odd N leaves one core idle for a step.
            dimension_semantics=("parallel",),
            vmem_limit_bytes=vmem_limit),
        cost_estimate=pl.CostEstimate(
            flops=flops,
            transcendentals=N * H * W * (Cin + Cout),
            bytes_accessed=bytes_accessed),
    )(*args)
    return out


def decode_resblock_forward(x_nchw, params):
    """PyTorch-parity wrapper (NCHW in/out). Prefer the NHWC entry point in a
    channels-last pipeline to avoid the two boundary transposes."""
    x = jnp.transpose(x_nchw, (0, 2, 3, 1))
    y = decode_resblock_forward_nhwc(x, params)
    return jnp.transpose(y, (0, 3, 1, 2))


def init_params(key, in_chn, out_chn):
    """Deterministic synthetic parameters (shapes match the nn.Module, HWIO)."""
    k1, k2, k3, k4, k5, k6 = jax.random.split(key, 6)
    s1 = 1.0 / jnp.sqrt(9.0 * in_chn)
    s2 = 1.0 / jnp.sqrt(9.0 * out_chn)
    w1 = jax.random.normal(k1, (3, 3, in_chn, out_chn), jnp.float32) * s1
    b1 = jax.random.normal(k2, (out_chn,), jnp.float32) * s1
    w2 = jax.random.normal(k3, (3, 3, out_chn, out_chn), jnp.float32) * s2
    b2 = jax.random.normal(k4, (out_chn,), jnp.float32) * s2
    if in_chn != out_chn:
        ssk = 1.0 / jnp.sqrt(float(in_chn))
        wsk = jax.random.normal(k5, (in_chn, out_chn), jnp.float32) * ssk
        bsk = jax.random.normal(k6, (out_chn,), jnp.float32) * ssk
    else:
        wsk = None   # nn.Identity() skip -> added directly in-kernel, no matmul
        bsk = None
    # TODO(synk): use_conv_in_skip=True (3x3 skip conv) not wired; it would
    # reuse _conv3x3 on a non-activated padded copy of x.
    return (w1, b1, w2, b2, wsk, bsk)


def reference_forward(x_nchw, params, *, match_kernel_precision=False):
    """Pure-JAX reference (same math as the PyTorch module).

    With match_kernel_precision=True the conv / skip operands are rounded to
    bf16 exactly like the kernel (f32 accumulation), giving a tight
    bf16-roofline comparison."""
    w1, b1, w2, b2, wsk, bsk = params
    x = jnp.transpose(x_nchw, (0, 2, 3, 1)).astype(jnp.float32)
    dn = ('NHWC', 'HWIO', 'NHWC')

    def q(a):
        if match_kernel_precision:
            return a.astype(jnp.bfloat16).astype(jnp.float32)
        return a

    def conv3(inp, w, b):
        return jax.lax.conv_general_dilated(
            q(inp), q(w), (1, 1), 'SAME', dimension_numbers=dn,
            precision=jax.lax.Precision.HIGHEST) + b

    h = conv3(_silu(x), w1, b1)
    h = conv3(_silu(h), w2, b2)
    if wsk is None:
        skip = x
    else:
        skip = jnp.einsum('nhwc,cd->nhwd', q(x), q(wsk),
                          precision=jax.lax.Precision.HIGHEST) + bsk
    return jnp.transpose(h + skip, (0, 3, 1, 2))


if __name__ == "__main__":
    key = jax.random.PRNGKey(0)
    k1, k2 = jax.random.split(key)

    def run_case(subkey, N, Cin, Cout, H, W):
        kx, kp = jax.random.split(subkey)
        x = jax.random.normal(kx, (N, Cin, H, W), jnp.float32)
        params = init_params(kp, Cin, Cout)
        out = jax.block_until_ready(decode_resblock_forward(x, params))
        assert out.shape == (N, Cout, H, W)
        # Tight check: reference with bf16-rounded conv/skip operands + f32
        # accumulation (matches the kernel's numerics).  Bound covers bf16
        # double-rounding of SiLU values near rounding boundaries.
        ref_bf16 = reference_forward(x, params, match_kernel_precision=True)
        err_t = float(jnp.max(jnp.abs(out - ref_bf16)))
        assert jnp.allclose(out, ref_bf16, rtol=1e-2, atol=1e-2), err_t
        # Loose sanity check against the pure-f32 reference (bf16 roofline).
        ref_f32 = reference_forward(x, params, match_kernel_precision=False)
        err_l = float(jnp.max(jnp.abs(out - ref_f32)))
        assert jnp.allclose(out, ref_f32, rtol=3e-2, atol=3e-2), err_l

    run_case(k1, 2, 4, 8, 16, 16)   # Cin != Cout -> 1x1-conv skip path
    run_case(k2, 2, 8, 8, 16, 16)   # Cin == Cout -> identity skip (no matmul)
    print("KERNEL_OK")
</pallas_src>

<mosaic_0001>
module attributes {stable_mosaic.version = 11 : i64} {
  func.func @kernel(%arg0: i32, %arg1: memref<1x16x16x4xf32, #tpu.memory_space<vmem>>, %arg2: memref<3x3x4x8xbf16, #tpu.memory_space<vmem>>, %arg3: memref<1x8xf32, #tpu.memory_space<vmem>>, %arg4: memref<3x3x8x8xbf16, #tpu.memory_space<vmem>>, %arg5: memref<1x8xf32, #tpu.memory_space<vmem>>, %arg6: memref<4x8xbf16, #tpu.memory_space<vmem>>, %arg7: memref<1x8xf32, #tpu.memory_space<vmem>>, %arg8: memref<1x16x16x8xf32, #tpu.memory_space<vmem>>, %arg9: memref<18x20x4xbf16, #tpu.memory_space<vmem>>, %arg10: memref<18x20x8xbf16, #tpu.memory_space<vmem>>) attributes {dimension_semantics = [#tpu.dimension_semantics<parallel>], iteration_bounds = array<i64: 2>, scalar_prefetch = 0 : i64, scratch_operands = 2 : i64, tpu.core_type = #tpu.core_type<tc>, window_params = [{transform_indices = @transform_0, window_bounds = array<i64: 1, 16, 16, 4>}, {pipeline_mode = #tpu.pipeline_mode<synchronous>, transform_indices = @transform_1, window_bounds = array<i64: 3, 3, 4, 8>}, {pipeline_mode = #tpu.pipeline_mode<synchronous>, transform_indices = @transform_2, window_bounds = array<i64: 1, 8>}, {pipeline_mode = #tpu.pipeline_mode<synchronous>, transform_indices = @transform_3, window_bounds = array<i64: 3, 3, 8, 8>}, {pipeline_mode = #tpu.pipeline_mode<synchronous>, transform_indices = @transform_4, window_bounds = array<i64: 1, 8>}, {pipeline_mode = #tpu.pipeline_mode<synchronous>, transform_indices = @transform_5, window_bounds = array<i64: 4, 8>}, {pipeline_mode = #tpu.pipeline_mode<synchronous>, transform_indices = @transform_6, window_bounds = array<i64: 1, 8>}, {transform_indices = @transform_7, window_bounds = array<i64: 1, 16, 16, 8>}]} {
    %cst = arith.constant 0.000000e+00 : bf16
    %0 = vector.broadcast %cst : bf16 to vector<1x20x4xbf16>
    %c0 = arith.constant 0 : index
    %c0_0 = arith.constant 0 : index
    %c0_1 = arith.constant 0 : index
    %1 = vector.load %arg9[%c0, %c0_0, %c0_1] : memref<18x20x4xbf16, #tpu.memory_space<vmem>>, vector<1x20x4xbf16>
    tpu.vector_store %arg9[%c0, %c0_0, %c0_1], %0 {strides = array<i32>} : memref<18x20x4xbf16, #tpu.memory_space<vmem>>, vector<1x20x4xbf16>,
    %c17 = arith.constant 17 : index
    %c0_2 = arith.constant 0 : index
    %c0_3 = arith.constant 0 : index
    %2 = vector.load %arg9[%c17, %c0_2, %c0_3] : memref<18x20x4xbf16, #tpu.memory_space<vmem>>, vector<1x20x4xbf16>
    tpu.vector_store %arg9[%c17, %c0_2, %c0_3], %0 {strides = array<i32>} : memref<18x20x4xbf16, #tpu.memory_space<vmem>>, vector<1x20x4xbf16>,
    %cst_4 = arith.constant 0.000000e+00 : bf16
    %3 = vector.broadcast %cst_4 : bf16 to vector<18x2x4xbf16>
    %c0_5 = arith.constant 0 : index
    %c0_6 = arith.constant 0 : index
    %c0_7 = arith.constant 0 : index
    %4 = vector.load %arg9[%c0_5, %c0_6, %c0_7] : memref<18x20x4xbf16, #tpu.memory_space<vmem>>, vector<18x2x4xbf16>
    tpu.vector_store %arg9[%c0_5, %c0_6, %c0_7], %3 {strides = array<i32>} : memref<18x20x4xbf16, #tpu.memory_space<vmem>>, vector<18x2x4xbf16>,
    %c0_8 = arith.constant 0 : index
    %c18 = arith.constant 18 : index
    %c0_9 = arith.constant 0 : index
    %5 = vector.load %arg9[%c0_8, %c18, %c0_9] : memref<18x20x4xbf16, #tpu.memory_space<vmem>>, vector<18x2x4xbf16>
    tpu.vector_store %arg9[%c0_8, %c18, %c0_9], %3 {strides = array<i32>} : memref<18x20x4xbf16, #tpu.memory_space<vmem>>, vector<18x2x4xbf16>,
    %c0_10 = arith.constant 0 : index
    %c0_11 = arith.constant 0 : index
    %c0_12 = arith.constant 0 : index
    %c0_13 = arith.constant 0 : index
    %6 = vector.load %arg1[%c0_10, %c0_11, %c0_12, %c0_13] : memref<1x16x16x4xf32, #tpu.memory_space<vmem>>, vector<1x16x16x4xf32>
    %7 = vector.shape_cast %6 : vector<1x16x16x4xf32> to vector<16x16x4xf32>
    %8 = arith.negf %7 : vector<16x16x4xf32>
    %9 = math.exp %8 : vector<16x16x4xf32>
    %cst_14 = arith.constant 1.000000e+00 : f32
    %10 = vector.broadcast %cst_14 : f32 to vector<16x16x4xf32>
    %11 = arith.addf %10, %9 : vector<16x16x4xf32>
    %12 = arith.divf %10, %11 : vector<16x16x4xf32>
    %13 = arith.mulf %7, %12 : vector<16x16x4xf32>
    %14 = arith.truncf %13 : vector<16x16x4xf32> to vector<16x16x4xbf16>
    %c1 = arith.constant 1 : index
    %c2 = arith.constant 2 : index
    %c0_15 = arith.constant 0 : index
    %15 = vector.load %arg9[%c1, %c2, %c0_15] : memref<18x20x4xbf16, #tpu.memory_space<vmem>>, vector<16x16x4xbf16>
    tpu.vector_store %arg9[%c1, %c2, %c0_15], %14 {strides = array<i32>} : memref<18x20x4xbf16, #tpu.memory_space<vmem>>, vector<16x16x4xbf16>,
    %c0_16 = arith.constant 0 : index
    %c0_17 = arith.constant 0 : index
    %16 = vector.load %arg3[%c0_16, %c0_17] : memref<1x8xf32, #tpu.memory_space<vmem>>, vector<1x8xf32>
    %17 = vector.shape_cast %16 : vector<1x8xf32> to vector<1x8xf32>
    %18 = vector.broadcast %17 : vector<1x8xf32> to vector<256x8xf32>
    %c0_18 = arith.constant 0 : index
    %c1_19 = arith.constant 1 : index
    %c0_20 = arith.constant 0 : index
    %19 = vector.load %arg9[%c0_18, %c1_19, %c0_20] : memref<18x20x4xbf16, #tpu.memory_space<vmem>>, vector<16x16x4xbf16>
    %20 = vector.shape_cast %19 : vector<16x16x4xbf16> to vector<256x4xbf16>
    %c0_21 = arith.constant 0 : index
    %c0_22 = arith.constant 0 : index
    %c0_23 = arith.constant 0 : index
    %c0_24 = arith.constant 0 : index
    %21 = vector.load %arg2[%c0_21, %c0_22, %c0_23, %c0_24] : memref<3x3x4x8xbf16, #tpu.memory_space<vmem>>, vector<1x1x4x8xbf16>
    %22 = vector.shape_cast %21 : vector<1x1x4x8xbf16> to vector<4x8xbf16>
    %cst_25 = arith.constant dense<0.000000e+00> : vector<256x8xf32>
    %23 = tpu.matmul %20, %22, %cst_25 {dimension_numbers = #tpu.dot_dimension_numbers<[1], [0], [0], [1], [0, 0, 1, 1], [], []>} : vector<256x4xbf16>, vector<4x8xbf16>, vector<256x8xf32> -> vector<256x8xf32>
    %24 = arith.addf %18, %23 : vector<256x8xf32>
    %c0_26 = arith.constant 0 : index
    %c2_27 = arith.constant 2 : index
    %c0_28 = arith.constant 0 : index
    %25 = vector.load %arg9[%c0_26, %c2_27, %c0_28] : memref<18x20x4xbf16, #tpu.memory_space<vmem>>, vector<16x16x4xbf16>
    %26 = vector.shape_cast %25 : vector<16x16x4xbf16> to vector<256x4xbf16>
    %c0_29 = arith.constant 0 : index
    %c1_30 = arith.constant 1 : index
    %c0_31 = arith.constant 0 : index
    %c0_32 = arith.constant 0 : index
    %27 = vector.load %arg2[%c0_29, %c1_30, %c0_31, %c0_32] : memref<3x3x4x8xbf16, #tpu.memory_space<vmem>>, vector<1x1x4x8xbf16>
    %28 = vector.shape_cast %27 : vector<1x1x4x8xbf16> to vector<4x8xbf16>
    %cst_33 = arith.constant dense<0.000000e+00> : vector<256x8xf32>
    %29 = tpu.matmul %26, %28, %cst_33 {dimension_numbers = #tpu.dot_dimension_numbers<[1], [0], [0], [1], [0, 0, 1, 1], [], []>} : vector<256x4xbf16>, vector<4x8xbf16>, vector<256x8xf32> -> vector<256x8xf32>
    %30 = arith.addf %24, %29 : vector<256x8xf32>
    %c0_34 = arith.constant 0 : index
    %c3 = arith.constant 3 : index
    %c0_35 = arith.constant 0 : index
    %31 = vector.load %arg9[%c0_34, %c3, %c0_35] : memref<18x20x4xbf16, #tpu.memory_space<vmem>>, vector<16x16x4xbf16>
    %32 = vector.shape_cast %31 : vector<16x16x4xbf16> to vector<256x4xbf16>
    %c0_36 = arith.constant 0 : index
    %c2_37 = arith.constant 2 : index
    %c0_38 = arith.constant 0 : index
    %c0_39 = arith.constant 0 : index
    %33 = vector.load %arg2[%c0_36, %c2_37, %c0_38, %c0_39] : memref<3x3x4x8xbf16, #tpu.memory_space<vmem>>, vector<1x1x4x8xbf16>
    %34 = vector.shape_cast %33 : vector<1x1x4x8xbf16> to vector<4x8xbf16>
    %cst_40 = arith.constant dense<0.000000e+00> : vector<256x8xf32>
    %35 = tpu.matmul %32, %34, %cst_40 {dimension_numbers = #tpu.dot_dimension_numbers<[1], [0], [0], [1], [0, 0, 1, 1], [], []>} : vector<256x4xbf16>, vector<4x8xbf16>, vector<256x8xf32> -> vector<256x8xf32>
    %36 = arith.addf %30, %35 : vector<256x8xf32>
    %c1_41 = arith.constant 1 : index
    %c1_42 = arith.constant 1 : index
    %c0_43 = arith.constant 0 : index
    %37 = vector.load %arg9[%c1_41, %c1_42, %c0_43] : memref<18x20x4xbf16, #tpu.memory_space<vmem>>, vector<16x16x4xbf16>
    %38 = vector.shape_cast %37 : vector<16x16x4xbf16> to vector<256x4xbf16>
    %c1_44 = arith.constant 1 : index
    %c0_45 = arith.constant 0 : index
    %c0_46 = arith.constant 0 : index
    %c0_47 = arith.constant 0 : index
    %39 = vector.load %arg2[%c1_44, %c0_45, %c0_46, %c0_47] : memref<3x3x4x8xbf16, #tpu.memory_space<vmem>>, vector<1x1x4x8xbf16>
    %40 = vector.shape_cast %39 : vector<1x1x4x8xbf16> to vector<4x8xbf16>
    %cst_48 = arith.constant dense<0.000000e+00> : vector<256x8xf32>
    %41 = tpu.matmul %38, %40, %cst_48 {dimension_numbers = #tpu.dot_dimension_numbers<[1], [0], [0], [1], [0, 0, 1, 1], [], []>} : vector<256x4xbf16>, vector<4x8xbf16>, vector<256x8xf32> -> vector<256x8xf32>
    %42 = arith.addf %36, %41 : vector<256x8xf32>
    %c1_49 = arith.constant 1 : index
    %c2_50 = arith.constant 2 : index
    %c0_51 = arith.constant 0 : index
    %43 = vector.load %arg9[%c1_49, %c2_50, %c0_51] : memref<18x20x4xbf16, #tpu.memory_space<vmem>>, vector<16x16x4xbf16>
    %44 = vector.shape_cast %43 : vector<16x16x4xbf16> to vector<256x4xbf16>
    %c1_52 = arith.constant 1 : index
    %c1_53 = arith.constant 1 : index
    %c0_54 = arith.constant 0 : index
    %c0_55 = arith.constant 0 : index
    %45 = vector.load %arg2[%c1_52, %c1_53, %c0_54, %c0_55] : memref<3x3x4x8xbf16, #tpu.memory_space<vmem>>, vector<1x1x4x8xbf16>
    %46 = vector.shape_cast %45 : vector<1x1x4x8xbf16> to vector<4x8xbf16>
    %cst_56 = arith.constant dense<0.000000e+00> : vector<256x8xf32>
    %47 = tpu.matmul %44, %46, %cst_56 {dimension_numbers = #tpu.dot_dimension_numbers<[1], [0], [0], [1], [0, 0, 1, 1], [], []>} : vector<256x4xbf16>, vector<4x8xbf16>, vector<256x8xf32> -> vector<256x8xf32>
    %48 = arith.addf %42, %47 : vector<256x8xf32>
    %c1_57 = arith.constant 1 : index
    %c3_58 = arith.constant 3 : index
    %c0_59 = arith.constant 0 : index
    %49 = vector.load %arg9[%c1_57, %c3_58, %c0_59] : memref<18x20x4xbf16, #tpu.memory_space<vmem>>, vector<16x16x4xbf16>
    %50 = vector.shape_cast %49 : vector<16x16x4xbf16> to vector<256x4xbf16>
    %c1_60 = arith.constant 1 : index
    %c2_61 = arith.constant 2 : index
    %c0_62 = arith.constant 0 : index
    %c0_63 = arith.constant 0 : index
    %51 = vector.load %arg2[%c1_60, %c2_61, %c0_62, %c0_63] : memref<3x3x4x8xbf16, #tpu.memory_space<vmem>>, vector<1x1x4x8xbf16>
    %52 = vector.shape_cast %51 : vector<1x1x4x8xbf16> to vector<4x8xbf16>
    %cst_64 = arith.constant dense<0.000000e+00> : vector<256x8xf32>
    %53 = tpu.matmul %50, %52, %cst_64 {dimension_numbers = #tpu.dot_dimension_numbers<[1], [0], [0], [1], [0, 0, 1, 1], [], []>} : vector<256x4xbf16>, vector<4x8xbf16>, vector<256x8xf32> -> vector<256x8xf32>
    %54 = arith.addf %48, %53 : vector<256x8xf32>
    %c2_65 = arith.constant 2 : index
    %c1_66 = arith.constant 1 : index
    %c0_67 = arith.constant 0 : index
    %55 = vector.load %arg9[%c2_65, %c1_66, %c0_67] : memref<18x20x4xbf16, #tpu.memory_space<vmem>>, vector<16x16x4xbf16>
    %56 = vector.shape_cast %55 : vector<16x16x4xbf16> to vector<256x4xbf16>
    %c2_68 = arith.constant 2 : index
    %c0_69 = arith.constant 0 : index
    %c0_70 = arith.constant 0 : index
    %c0_71 = arith.constant 0 : index
    %57 = vector.load %arg2[%c2_68, %c0_69, %c0_70, %c0_71] : memref<3x3x4x8xbf16, #tpu.memory_space<vmem>>, vector<1x1x4x8xbf16>
    %58 = vector.shape_cast %57 : vector<1x1x4x8xbf16> to vector<4x8xbf16>
    %cst_72 = arith.constant dense<0.000000e+00> : vector<256x8xf32>
    %59 = tpu.matmul %56, %58, %cst_72 {dimension_numbers = #tpu.dot_dimension_numbers<[1], [0], [0], [1], [0, 0, 1, 1], [], []>} : vector<256x4xbf16>, vector<4x8xbf16>, vector<256x8xf32> -> vector<256x8xf32>
    %60 = arith.addf %54, %59 : vector<256x8xf32>
    %c2_73 = arith.constant 2 : index
    %c2_74 = arith.constant 2 : index
    %c0_75 = arith.constant 0 : index
    %61 = vector.load %arg9[%c2_73, %c2_74, %c0_75] : memref<18x20x4xbf16, #tpu.memory_space<vmem>>, vector<16x16x4xbf16>
    %62 = vector.shape_cast %61 : vector<16x16x4xbf16> to vector<256x4xbf16>
    %c2_76 = arith.constant 2 : index
    %c1_77 = arith.constant 1 : index
    %c0_78 = arith.constant 0 : index
    %c0_79 = arith.constant 0 : index
    %63 = vector.load %arg2[%c2_76, %c1_77, %c0_78, %c0_79] : memref<3x3x4x8xbf16, #tpu.memory_space<vmem>>, vector<1x1x4x8xbf16>
    %64 = vector.shape_cast %63 : vector<1x1x4x8xbf16> to vector<4x8xbf16>
    %cst_80 = arith.constant dense<0.000000e+00> : vector<256x8xf32>
    %65 = tpu.matmul %62, %64, %cst_80 {dimension_numbers = #tpu.dot_dimension_numbers<[1], [0], [0], [1], [0, 0, 1, 1], [], []>} : vector<256x4xbf16>, vector<4x8xbf16>, vector<256x8xf32> -> vector<256x8xf32>
    %66 = arith.addf %60, %65 : vector<256x8xf32>
    %c2_81 = arith.constant 2 : index
    %c3_82 = arith.constant 3 : index
    %c0_83 = arith.constant 0 : index
    %67 = vector.load %arg9[%c2_81, %c3_82, %c0_83] : memref<18x20x4xbf16, #tpu.memory_space<vmem>>, vector<16x16x4xbf16>
    %68 = vector.shape_cast %67 : vector<16x16x4xbf16> to vector<256x4xbf16>
    %c2_84 = arith.constant 2 : index
    %c2_85 = arith.constant 2 : index
    %c0_86 = arith.constant 0 : index
    %c0_87 = arith.constant 0 : index
    %69 = vector.load %arg2[%c2_84, %c2_85, %c0_86, %c0_87] : memref<3x3x4x8xbf16, #tpu.memory_space<vmem>>, vector<1x1x4x8xbf16>
    %70 = vector.shape_cast %69 : vector<1x1x4x8xbf16> to vector<4x8xbf16>
    %cst_88 = arith.constant dense<0.000000e+00> : vector<256x8xf32>
    %71 = tpu.matmul %68, %70, %cst_88 {dimension_numbers = #tpu.dot_dimension_numbers<[1], [0], [0], [1], [0, 0, 1, 1], [], []>} : vector<256x4xbf16>, vector<4x8xbf16>, vector<256x8xf32> -> vector<256x8xf32>
    %72 = arith.addf %66, %71 : vector<256x8xf32>
    %cst_89 = arith.constant 0.000000e+00 : bf16
    %73 = vector.broadcast %cst_89 : bf16 to vector<1x20x8xbf16>
    %c0_90 = arith.constant 0 : index
    %c0_91 = arith.constant 0 : index
    %c0_92 = arith.constant 0 : index
    %74 = vector.load %arg10[%c0_90, %c0_91, %c0_92] : memref<18x20x8xbf16, #tpu.memory_space<vmem>>, vector<1x20x8xbf16>
    tpu.vector_store %arg10[%c0_90, %c0_91, %c0_92], %73 {strides = array<i32>} : memref<18x20x8xbf16, #tpu.memory_space<vmem>>, vector<1x20x8xbf16>,
    %c17_93 = arith.constant 17 : index
    %c0_94 = arith.constant 0 : index
    %c0_95 = arith.constant 0 : index
    %75 = vector.load %arg10[%c17_93, %c0_94, %c0_95] : memref<18x20x8xbf16, #tpu.memory_space<vmem>>, vector<1x20x8xbf16>
    tpu.vector_store %arg10[%c17_93, %c0_94, %c0_95], %73 {strides = array<i32>} : memref<18x20x8xbf16, #tpu.memory_space<vmem>>, vector<1x20x8xbf16>,
    %cst_96 = arith.constant 0.000000e+00 : bf16
    %76 = vector.broadcast %cst_96 : bf16 to vector<18x2x8xbf16>
    %c0_97 = arith.constant 0 : index
    %c0_98 = arith.constant 0 : index
    %c0_99 = arith.constant 0 : index
    %77 = vector.load %arg10[%c0_97, %c0_98, %c0_99] : memref<18x20x8xbf16, #tpu.memory_space<vmem>>, vector<18x2x8xbf16>
    tpu.vector_store %arg10[%c0_97, %c0_98, %c0_99], %76 {strides = array<i32>} : memref<18x20x8xbf16, #tpu.memory_space<vmem>>, vector<18x2x8xbf16>,
    %c0_100 = arith.constant 0 : index
    %c18_101 = arith.constant 18 : index
    %c0_102 = arith.constant 0 : index
    %78 = vector.load %arg10[%c0_100, %c18_101, %c0_102] : memref<18x20x8xbf16, #tpu.memory_space<vmem>>, vector<18x2x8xbf16>
    tpu.vector_store %arg10[%c0_100, %c18_101, %c0_102], %76 {strides = array<i32>} : memref<18x20x8xbf16, #tpu.memory_space<vmem>>, vector<18x2x8xbf16>,
    %79 = arith.negf %72 : vector<256x8xf32>
    %80 = math.exp %79 : vector<256x8xf32>
    %cst_103 = arith.constant 1.000000e+00 : f32
    %81 = vector.broadcast %cst_103 : f32 to vector<256x8xf32>
    %82 = arith.addf %81, %80 : vector<256x8xf32>
    %83 = arith.divf %81, %82 : vector<256x8xf32>
    %84 = arith.mulf %72, %83 : vector<256x8xf32>
    %85 = vector.shape_cast %84 : vector<256x8xf32> to vector<16x16x8xf32>
    %86 = arith.truncf %85 : vector<16x16x8xf32> to vector<16x16x8xbf16>
    %c1_104 = arith.constant 1 : index
    %c2_105 = arith.constant 2 : index
    %c0_106 = arith.constant 0 : index
    %87 = vector.load %arg10[%c1_104, %c2_105, %c0_106] : memref<18x20x8xbf16, #tpu.memory_space<vmem>>, vector<16x16x8xbf16>
    tpu.vector_store %arg10[%c1_104, %c2_105, %c0_106], %86 {strides = array<i32>} : memref<18x20x8xbf16, #tpu.memory_space<vmem>>, vector<16x16x8xbf16>,
    %c0_107 = arith.constant 0 : index
    %c0_108 = arith.constant 0 : index
    %88 = vector.load %arg5[%c0_107, %c0_108] : memref<1x8xf32, #tpu.memory_space<vmem>>, vector<1x8xf32>
    %89 = vector.shape_cast %88 : vector<1x8xf32> to vector<1x8xf32>
    %90 = vector.broadcast %89 : vector<1x8xf32> to vector<256x8xf32>
    %c0_109 = arith.constant 0 : index
    %c1_110 = arith.constant 1 : index
    %c0_111 = arith.constant 0 : index
    %91 = vector.load %arg10[%c0_109, %c1_110, %c0_111] : memref<18x20x8xbf16, #tpu.memory_space<vmem>>, vector<16x16x8xbf16>
    %92 = vector.shape_cast %91 : vector<16x16x8xbf16> to vector<256x8xbf16>
    %c0_112 = arith.constant 0 : index
    %c0_113 = arith.constant 0 : index
    %c0_114 = arith.constant 0 : index
    %c0_115 = arith.constant 0 : index
    %93 = vector.load %arg4[%c0_112, %c0_113, %c0_114, %c0_115] : memref<3x3x8x8xbf16, #tpu.memory_space<vmem>>, vector<1x1x8x8xbf16>
    %94 = vector.shape_cast %93 : vector<1x1x8x8xbf16> to vector<8x8xbf16>
    %cst_116 = arith.constant dense<0.000000e+00> : vector<256x8xf32>
    %95 = tpu.matmul %92, %94, %cst_116 {dimension_numbers = #tpu.dot_dimension_numbers<[1], [0], [0], [1], [0, 0, 1, 1], [], []>} : vector<256x8xbf16>, vector<8x8xbf16>, vector<256x8xf32> -> vector<256x8xf32>
    %96 = arith.addf %90, %95 : vector<256x8xf32>
    %c0_117 = arith.constant 0 : index
    %c2_118 = arith.constant 2 : index
    %c0_119 = arith.constant 0 : index
    %97 = vector.load %arg10[%c0_117, %c2_118, %c0_119] : memref<18x20x8xbf16, #tpu.memory_space<vmem>>, vector<16x16x8xbf16>
    %98 = vector.shape_cast %97 : vector<16x16x8xbf16> to vector<256x8xbf16>
    %c0_120 = arith.constant 0 : index
    %c1_121 = arith.constant 1 : index
    %c0_122 = arith.constant 0 : index
    %c0_123 = arith.constant 0 : index
    %99 = vector.load %arg4[%c0_120, %c1_121, %c0_122, %c0_123] : memref<3x3x8x8xbf16, #tpu.memory_space<vmem>>, vector<1x1x8x8xbf16>
    %100 = vector.shape_cast %99 : vector<1x1x8x8xbf16> to vector<8x8xbf16>
    %cst_124 = arith.constant dense<0.000000e+00> : vector<256x8xf32>
    %101 = tpu.matmul %98, %100, %cst_124 {dimension_numbers = #tpu.dot_dimension_numbers<[1], [0], [0], [1], [0, 0, 1, 1], [], []>} : vector<256x8xbf16>, vector<8x8xbf16>, vector<256x8xf32> -> vector<256x8xf32>
    %102 = arith.addf %96, %101 : vector<256x8xf32>
    %c0_125 = arith.constant 0 : index
    %c3_126 = arith.constant 3 : index
    %c0_127 = arith.constant 0 : index
    %103 = vector.load %arg10[%c0_125, %c3_126, %c0_127] : memref<18x20x8xbf16, #tpu.memory_space<vmem>>, vector<16x16x8xbf16>
    %104 = vector.shape_cast %103 : vector<16x16x8xbf16> to vector<256x8xbf16>
    %c0_128 = arith.constant 0 : index
    %c2_129 = arith.constant 2 : index
    %c0_130 = arith.constant 0 : index
    %c0_131 = arith.constant 0 : index
    %105 = vector.load %arg4[%c0_128, %c2_129, %c0_130, %c0_131] : memref<3x3x8x8xbf16, #tpu.memory_space<vmem>>, vector<1x1x8x8xbf16>
    %106 = vector.shape_cast %105 : vector<1x1x8x8xbf16> to vector<8x8xbf16>
    %cst_132 = arith.constant dense<0.000000e+00> : vector<256x8xf32>
    %107 = tpu.matmul %104, %106, %cst_132 {dimension_numbers = #tpu.dot_dimension_numbers<[1], [0], [0], [1], [0, 0, 1, 1], [], []>} : vector<256x8xbf16>, vector<8x8xbf16>, vector<256x8xf32> -> vector<256x8xf32>
    %108 = arith.addf %102, %107 : vector<256x8xf32>
    %c1_133 = arith.constant 1 : index
    %c1_134 = arith.constant 1 : index
    %c0_135 = arith.constant 0 : index
    %109 = vector.load %arg10[%c1_133, %c1_134, %c0_135] : memref<18x20x8xbf16, #tpu.memory_space<vmem>>, vector<16x16x8xbf16>
    %110 = vector.shape_cast %109 : vector<16x16x8xbf16> to vector<256x8xbf16>
    %c1_136 = arith.constant 1 : index
    %c0_137 = arith.constant 0 : index
    %c0_138 = arith.constant 0 : index
    %c0_139 = arith.constant 0 : index
    %111 = vector.load %arg4[%c1_136, %c0_137, %c0_138, %c0_139] : memref<3x3x8x8xbf16, #tpu.memory_space<vmem>>, vector<1x1x8x8xbf16>
    %112 = vector.shape_cast %111 : vector<1x1x8x8xbf16> to vector<8x8xbf16>
    %cst_140 = arith.constant dense<0.000000e+00> : vector<256x8xf32>
    %113 = tpu.matmul %110, %112, %cst_140 {dimension_numbers = #tpu.dot_dimension_numbers<[1], [0], [0], [1], [0, 0, 1, 1], [], []>} : vector<256x8xbf16>, vector<8x8xbf16>, vector<256x8xf32> -> vector<256x8xf32>
    %114 = arith.addf %108, %113 : vector<256x8xf32>
    %c1_141 = arith.constant 1 : index
    %c2_142 = arith.constant 2 : index
    %c0_143 = arith.constant 0 : index
    %115 = vector.load %arg10[%c1_141, %c2_142, %c0_143] : memref<18x20x8xbf16, #tpu.memory_space<vmem>>, vector<16x16x8xbf16>
    %116 = vector.shape_cast %115 : vector<16x16x8xbf16> to vector<256x8xbf16>
    %c1_144 = arith.constant 1 : index
    %c1_145 = arith.constant 1 : index
    %c0_146 = arith.constant 0 : index
    %c0_147 = arith.constant 0 : index
    %117 = vector.load %arg4[%c1_144, %c1_145, %c0_146, %c0_147] : memref<3x3x8x8xbf16, #tpu.memory_space<vmem>>, vector<1x1x8x8xbf16>
    %118 = vector.shape_cast %117 : vector<1x1x8x8xbf16> to vector<8x8xbf16>
    %cst_148 = arith.constant dense<0.000000e+00> : vector<256x8xf32>
    %119 = tpu.matmul %116, %118, %cst_148 {dimension_numbers = #tpu.dot_dimension_numbers<[1], [0], [0], [1], [0, 0, 1, 1], [], []>} : vector<256x8xbf16>, vector<8x8xbf16>, vector<256x8xf32> -> vector<256x8xf32>
    %120 = arith.addf %114, %119 : vector<256x8xf32>
    %c1_149 = arith.constant 1 : index
    %c3_150 = arith.constant 3 : index
    %c0_151 = arith.constant 0 : index
    %121 = vector.load %arg10[%c1_149, %c3_150, %c0_151] : memref<18x20x8xbf16, #tpu.memory_space<vmem>>, vector<16x16x8xbf16>
    %122 = vector.shape_cast %121 : vector<16x16x8xbf16> to vector<256x8xbf16>
    %c1_152 = arith.constant 1 : index
    %c2_153 = arith.constant 2 : index
    %c0_154 = arith.constant 0 : index
    %c0_155 = arith.constant 0 : index
    %123 = vector.load %arg4[%c1_152, %c2_153, %c0_154, %c0_155] : memref<3x3x8x8xbf16, #tpu.memory_space<vmem>>, vector<1x1x8x8xbf16>
    %124 = vector.shape_cast %123 : vector<1x1x8x8xbf16> to vector<8x8xbf16>
    %cst_156 = arith.constant dense<0.000000e+00> : vector<256x8xf32>
    %125 = tpu.matmul %122, %124, %cst_156 {dimension_numbers = #tpu.dot_dimension_numbers<[1], [0], [0], [1], [0, 0, 1, 1], [], []>} : vector<256x8xbf16>, vector<8x8xbf16>, vector<256x8xf32> -> vector<256x8xf32>
    %126 = arith.addf %120, %125 : vector<256x8xf32>
    %c2_157 = arith.constant 2 : index
    %c1_158 = arith.constant 1 : index
    %c0_159 = arith.constant 0 : index
    %127 = vector.load %arg10[%c2_157, %c1_158, %c0_159] : memref<18x20x8xbf16, #tpu.memory_space<vmem>>, vector<16x16x8xbf16>
    %128 = vector.shape_cast %127 : vector<16x16x8xbf16> to vector<256x8xbf16>
    %c2_160 = arith.constant 2 : index
    %c0_161 = arith.constant 0 : index
    %c0_162 = arith.constant 0 : index
    %c0_163 = arith.constant 0 : index
    %129 = vector.load %arg4[%c2_160, %c0_161, %c0_162, %c0_163] : memref<3x3x8x8xbf16, #tpu.memory_space<vmem>>, vector<1x1x8x8xbf16>
    %130 = vector.shape_cast %129 : vector<1x1x8x8xbf16> to vector<8x8xbf16>
    %cst_164 = arith.constant dense<0.000000e+00> : vector<256x8xf32>
    %131 = tpu.matmul %128, %130, %cst_164 {dimension_numbers = #tpu.dot_dimension_numbers<[1], [0], [0], [1], [0, 0, 1, 1], [], []>} : vector<256x8xbf16>, vector<8x8xbf16>, vector<256x8xf32> -> vector<256x8xf32>
    %132 = arith.addf %126, %131 : vector<256x8xf32>
    %c2_165 = arith.constant 2 : index
    %c2_166 = arith.constant 2 : index
    %c0_167 = arith.constant 0 : index
    %133 = vector.load %arg10[%c2_165, %c2_166, %c0_167] : memref<18x20x8xbf16, #tpu.memory_space<vmem>>, vector<16x16x8xbf16>
    %134 = vector.shape_cast %133 : vector<16x16x8xbf16> to vector<256x8xbf16>
    %c2_168 = arith.constant 2 : index
    %c1_169 = arith.constant 1 : index
    %c0_170 = arith.constant 0 : index
    %c0_171 = arith.constant 0 : index
    %135 = vector.load %arg4[%c2_168, %c1_169, %c0_170, %c0_171] : memref<3x3x8x8xbf16, #tpu.memory_space<vmem>>, vector<1x1x8x8xbf16>
    %136 = vector.shape_cast %135 : vector<1x1x8x8xbf16> to vector<8x8xbf16>
    %cst_172 = arith.constant dense<0.000000e+00> : vector<256x8xf32>
    %137 = tpu.matmul %134, %136, %cst_172 {dimension_numbers = #tpu.dot_dimension_numbers<[1], [0], [0], [1], [0, 0, 1, 1], [], []>} : vector<256x8xbf16>, vector<8x8xbf16>, vector<256x8xf32> -> vector<256x8xf32>
    %138 = arith.addf %132, %137 : vector<256x8xf32>
    %c2_173 = arith.constant 2 : index
    %c3_174 = arith.constant 3 : index
    %c0_175 = arith.constant 0 : index
    %139 = vector.load %arg10[%c2_173, %c3_174, %c0_175] : memref<18x20x8xbf16, #tpu.memory_space<vmem>>, vector<16x16x8xbf16>
    %140 = vector.shape_cast %139 : vector<16x16x8xbf16> to vector<256x8xbf16>
    %c2_176 = arith.constant 2 : index
    %c2_177 = arith.constant 2 : index
    %c0_178 = arith.constant 0 : index
    %c0_179 = arith.constant 0 : index
    %141 = vector.load %arg4[%c2_176, %c2_177, %c0_178, %c0_179] : memref<3x3x8x8xbf16, #tpu.memory_space<vmem>>, vector<1x1x8x8xbf16>
    %142 = vector.shape_cast %141 : vector<1x1x8x8xbf16> to vector<8x8xbf16>
    %cst_180 = arith.constant dense<0.000000e+00> : vector<256x8xf32>
    %143 = tpu.matmul %140, %142, %cst_180 {dimension_numbers = #tpu.dot_dimension_numbers<[1], [0], [0], [1], [0, 0, 1, 1], [], []>} : vector<256x8xbf16>, vector<8x8xbf16>, vector<256x8xf32> -> vector<256x8xf32>
    %144 = arith.addf %138, %143 : vector<256x8xf32>
    %c0_181 = arith.constant 0 : index
    %c0_182 = arith.constant 0 : index
    %c0_183 = arith.constant 0 : index
    %c0_184 = arith.constant 0 : index
    %145 = vector.load %arg1[%c0_181, %c0_182, %c0_183, %c0_184] : memref<1x16x16x4xf32, #tpu.memory_space<vmem>>, vector<1x16x16x4xf32>
    %146 = vector.shape_cast %145 : vector<1x16x16x4xf32> to vector<16x16x4xf32>
    %147 = vector.shape_cast %146 : vector<16x16x4xf32> to vector<256x4xf32>
    %148 = arith.truncf %147 : vector<256x4xf32> to vector<256x4xbf16>
    %c0_185 = arith.constant 0 : index
    %c0_186 = arith.constant 0 : index
    %149 = vector.load %arg6[%c0_185, %c0_186] : memref<4x8xbf16, #tpu.memory_space<vmem>>, vector<4x8xbf16>
    %cst_187 = arith.constant dense<0.000000e+00> : vector<256x8xf32>
    %150 = tpu.matmul %148, %149, %cst_187 {dimension_numbers = #tpu.dot_dimension_numbers<[1], [0], [0], [1], [0, 0, 1, 1], [], []>} : vector<256x4xbf16>, vector<4x8xbf16>, vector<256x8xf32> -> vector<256x8xf32>
    %c0_188 = arith.constant 0 : index
    %c0_189 = arith.constant 0 : index
    %151 = vector.load %arg7[%c0_188, %c0_189] : memref<1x8xf32, #tpu.memory_space<vmem>>, vector<1x8xf32>
    %152 = vector.broadcast %151 : vector<1x8xf32> to vector<256x8xf32>
    %153 = arith.addf %150, %152 : vector<256x8xf32>
    %154 = arith.addf %144, %153 : vector<256x8xf32>
    %155 = vector.shape_cast %154 : vector<256x8xf32> to vector<1x16x16x8xf32>
    %c0_190 = arith.constant 0 : index
    %c0_191 = arith.constant 0 : index
    %c0_192 = arith.constant 0 : index
    %c0_193 = arith.constant 0 : index
    %156 = vector.load %arg8[%c0_190, %c0_191, %c0_192, %c0_193] : memref<1x16x16x8xf32, #tpu.memory_space<vmem>>, vector<1x16x16x8xf32>
    tpu.vector_store %arg8[%c0_190, %c0_191, %c0_192, %c0_193], %155 {strides = array<i32>} : memref<1x16x16x8xf32, #tpu.memory_space<vmem>>, vector<1x16x16x8xf32>,
    return
  }
  func.func @transform_0(%arg0: i32) -> (i32, i32, i32, i32) {
    %c0_i32 = arith.constant 0 : i32
    %c0_i32_0 = arith.constant 0 : i32
    %c0_i32_1 = arith.constant 0 : i32
    %c0_i32_2 = arith.constant 0 : i32
    return %arg0, %c0_i32, %c0_i32_0, %c0_i32_1 : i32, i32, i32, i32
  }
  func.func @transform_1(%arg0: i32) -> (i32, i32, i32, i32) {
    %c0_i32 = arith.constant 0 : i32
    %c0_i32_0 = arith.constant 0 : i32
    %c0_i32_1 = arith.constant 0 : i32
    %c0_i32_2 = arith.constant 0 : i32
    %c0_i32_3 = arith.constant 0 : i32
    return %c0_i32, %c0_i32_0, %c0_i32_1, %c0_i32_2 : i32, i32, i32, i32
  }
  func.func @transform_2(%arg0: i32) -> (i32, i32) {
    %c0_i32 = arith.constant 0 : i32
    %c0_i32_0 = arith.constant 0 : i32
    %c0_i32_1 = arith.constant 0 : i32
    return %c0_i32, %c0_i32_0 : i32, i32
  }
  func.func @transform_3(%arg0: i32) -> (i32, i32, i32, i32) {
    %c0_i32 = arith.constant 0 : i32
    %c0_i32_0 = arith.constant 0 : i32
    %c0_i32_1 = arith.constant 0 : i32
    %c0_i32_2 = arith.constant 0 : i32
    %c0_i32_3 = arith.constant 0 : i32
    return %c0_i32, %c0_i32_0, %c0_i32_1, %c0_i32_2 : i32, i32, i32, i32
  }
  func.func @transform_4(%arg0: i32) -> (i32, i32) {
    %c0_i32 = arith.constant 0 : i32
    %c0_i32_0 = arith.constant 0 : i32
    %c0_i32_1 = arith.constant 0 : i32
    return %c0_i32, %c0_i32_0 : i32, i32
  }
  func.func @transform_5(%arg0: i32) -> (i32, i32) {
    %c0_i32 = arith.constant 0 : i32
    %c0_i32_0 = arith.constant 0 : i32
    %c0_i32_1 = arith.constant 0 : i32
    return %c0_i32, %c0_i32_0 : i32, i32
  }
  func.func @transform_6(%arg0: i32) -> (i32, i32) {
    %c0_i32 = arith.constant 0 : i32
    %c0_i32_0 = arith.constant 0 : i32
    %c0_i32_1 = arith.constant 0 : i32
    return %c0_i32, %c0_i32_0 : i32, i32
  }
  func.func @transform_7(%arg0: i32) -> (i32, i32, i32, i32) {
    %c0_i32 = arith.constant 0 : i32
    %c0_i32_0 = arith.constant 0 : i32
    %c0_i32_1 = arith.constant 0 : i32
    %c0_i32_2 = arith.constant 0 : i32
    return %arg0, %c0_i32, %c0_i32_0, %c0_i32_1 : i32, i32, i32, i32
  }
}

</mosaic_0001>

<bundles_post_ra>
// kernel: tpu_custom_call.1
= control target key start
LH: loop header
LB: loop body
LE: loop exit
PB: predicated region body
PF: predicated region fallthrough
CT: control target
= control target key end

     0   :  { %s15931_s24 = smov 0   ;;  %s22687_s0 = inlined_call_operand.vmem [shape: f32[2,16,16,4], index: 0, kind: input, shape index: {}]   ;;  %s22688_s1 = inlined_call_operand.vmem [shape: bf16[3,3,4,8], index: 1, kind: input, shape index: {}]   ;;  %s22689_s2 = inlined_call_operand.vmem [shape: f32[1,8], index: 2, kind: input, shape index: {}]   ;;  %s22690_s3 = inlined_call_operand.vmem [shape: bf16[3,3,8,8], index: 3, kind: input, shape index: {}]   ;;  %s22691_s4 = inlined_call_operand.vmem [shape: f32[1,8], index: 4, kind: input, shape index: {}]   ;;  %s22692_s5 = inlined_call_operand.vmem [shape: bf16[4,8], index: 5, kind: input, shape index: {}]   ;;  %s22693_s6 = inlined_call_operand.vmem [shape: f32[1,8], index: 6, kind: input, shape index: {}]   ;;  %s22694_s7 = inlined_call_operand.vmem [shape: f32[2,16,16,8], index: 7, kind: output, shape index: {}]  }
   0x1 LB: > { %s13063_s25 = sadd.s32 4294967295, %s15888_s24   ;;  %p13067_p0 = scmp.ge.s32.totalorder %s15888_s24, 1  ;;  %s15888_s24 = sphi %s15931_s24, %s17_s24  }
   0x2   : > { %p237_p1 = scmp.lt.s32.totalorder %s15888_s24, 3 }
   0x4   : > { %p238_p2 = pnand %p13067_p0, %p237_p1 }
   0x6   : > { %241 = sbr.rel (%p238_p2) target bundleno = 1831 (0x727), region = 48 }
   0xd   : > { %v1302_v0 = vld [vmem:[%s22688_s1] sm:$0x3]  ;;  %vm1400_vm0 = vcmask 1041408   ;;  %vm280_vm1 = vcmask 27648   ;;  %vm283_vm2 = vcmask 25600   ;;  %v22695_v2 = vmov 0  }
   0xe   : > { %15586 = vmatprep.subr.msk.bf16.mxu0 %vm1400_vm0, %v1302_v0  ;;  %v1402_v1 = vsel %vm1400_vm0, %v1302_v0, 0  ;;  %281 = vst.msk [vmem:[#allocation2] sm:$0xf] %vm280_vm1, %v22695_v2  ;;  %282 = vst.msk [vmem:[#allocation2 + $0x4] sm:$0xf] %vm280_vm1, %v22695_v2  ;;  %vm289_vm3 = vcmask 24576  }
   0xf   : > { %284 = vst.msk [vmem:[#allocation2 + $0x8] sm:$0x3] %vm283_vm2, %v22695_v2  ;;  %288 = vst.msk [vmem:[#allocation2 + $0xd4] sm:$0x3] %vm283_vm2, %v22695_v2  ;;  %vm308_vm4 = vcmask 25601   ;;  %p15956_p3 = scmp.lt.s32.totalorder %s13063_s25, 1  ;;  %14299 = vmatpush3.bf16.msra.mxu0 %v1402_v1 }
  0x10   : > { %286 = vst.msk [vmem:[#allocation2 + $0xcc] sm:$0xf] %vm280_vm1, %v22695_v2  ;;  %287 = vst.msk [vmem:[#allocation2 + $0xd0] sm:$0xf] %vm280_vm1, %v22695_v2  ;;  %v16033_v3 = vld [vmem:[%s22688_s1 + $0x2] sm:$0x3] }
  0x11   : > { %290 = vst.msk [vmem:[#allocation2] sm:$0x1] %vm289_vm3, %v22695_v2  ;;  %291 = vst.msk [vmem:[#allocation2 + $0xc] sm:$0x1] %vm289_vm3, %v22695_v2  ;;  %15587 = vmatprep.subr.msk.bf16.mxu0 %vm1400_vm0, %v16033_v3  ;;  %s23902_s25 = smov (!%p15956_p3, %s13063_s25), 1  ;;  %v23169_v31 = vmov 0 }
  0x12   : > { %309 = vst.msk [vmem:[#allocation2 + $0x8] sm:$0x2] %vm308_vm4, %v22695_v2  ;;  %326 = vst.msk [vmem:[#allocation2 + $0xd4] sm:$0x2] %vm308_vm4, %v22695_v2  ;;  %s13909_s8 = sshll.u32 %s23902_s25, 8  ;;  %vm1351_vm8 = vcmask 31744  }
  0x13   : > { %292 = vst.msk [vmem:[#allocation2 + $0x18] sm:$0x1] %vm289_vm3, %v22695_v2  ;;  %293 = vst.msk [vmem:[#allocation2 + $0x24] sm:$0x1] %vm289_vm3, %v22695_v2  ;;  %s16051_s11 = scalar_lea.vmem %s22687_s0, %s13909_s8  ;;  %vm915_vm5 = vsmask.f32 3328  ;;  %s22577_s19 = scalar_lea.vmem %s22694_s7, %s13909_s8 }
  0x14   : > { %294 = vst.msk [vmem:[#allocation2 + $0x30] sm:$0x1] %vm289_vm3, %v22695_v2  ;;  %295 = vst.msk [vmem:[#allocation2 + $0x3c] sm:$0x1] %vm289_vm3, %v22695_v2  ;;  %v16054_v4 = vld [vmem:[%s16051_s11] sm:$0xff]  ;;  %v16057_v5 = vld [vmem:[%s16051_s11 + $0x8] sm:$0xff] }
  0x15   : > { %296 = vst.msk [vmem:[#allocation2 + $0x48] sm:$0x1] %vm289_vm3, %v22695_v2  ;;  %297 = vst.msk [vmem:[#allocation2 + $0x54] sm:$0x1] %vm289_vm3, %v22695_v2  ;;  %v16059_v6 = vld [vmem:[#allocation2 + $0x4] sm:$0xf] }
  0x16   : > { %298 = vst.msk [vmem:[#allocation2 + $0x60] sm:$0x1] %vm289_vm3, %v22695_v2  ;;  %299 = vst.msk [vmem:[#allocation2 + $0x6c] sm:$0x1] %vm289_vm3, %v22695_v2  ;;  %v869_v7 = vld [vmem:[#allocation2 + $0x8] sm:$0x1] }
  0x17   : > { %300 = vst.msk [vmem:[#allocation2 + $0x78] sm:$0x1] %vm289_vm3, %v22695_v2  ;;  %301 = vst.msk [vmem:[#allocation2 + $0x84] sm:$0x1] %vm289_vm3, %v22695_v2  ;;  %v13072_v8 = vmul.f32 -1.442695, %v16054_v4 }
  0x18   : > { %302 = vst.msk [vmem:[#allocation2 + $0x90] sm:$0x1] %vm289_vm3, %v22695_v2  ;;  %303 = vst.msk [vmem:[#allocation2 + $0x9c] sm:$0x1] %vm289_vm3, %v22695_v2  ;;  %v867_v9 = vld [vmem:[#allocation2] sm:$0xf] }
  0x19   : > { %304 = vst.msk [vmem:[#allocation2 + $0xa8] sm:$0x1] %vm289_vm3, %v22695_v2  ;;  %305 = vst.msk [vmem:[#allocation2 + $0xb4] sm:$0x1] %vm289_vm3, %v22695_v2  ;;  %v22698_v10 = vshll.u32 %v16059_v6, 16  ;;  %v22700_v11 = vshrl.u32 %v16059_v6, 16  ;;  %15615 = vpow2.f32 %v13072_v8 }
  0x1a   : > { %306 = vst.msk [vmem:[#allocation2 + $0xc0] sm:$0x1] %vm289_vm3, %v22695_v2  ;;  %307 = vst.msk [vmem:[#allocation2 + $0xcc] sm:$0x1] %vm289_vm3, %v22695_v2  ;;  %v938_v12 = vshll.u32 %v869_v7, 16  ;;  %v16065_v13 = vld [vmem:[%s16051_s11 + $0x10] sm:$0xff] }
  0x1b   : > { %310 = vst.msk [vmem:[#allocation2 + $0x14] sm:$0x2] %vm308_vm4, %v22695_v2  ;;  %311 = vst.msk [vmem:[#allocation2 + $0x20] sm:$0x2] %vm308_vm4, %v22695_v2  ;;  %v919_v14 = vshrl.u32 %v867_v9, 16  ;;  %v922_v15 = vshll.u32 %v867_v9, 16 }
  0x1c   : > { %312 = vst.msk [vmem:[#allocation2 + $0x2c] sm:$0x2] %vm308_vm4, %v22695_v2  ;;  %313 = vst.msk [vmem:[#allocation2 + $0x38] sm:$0x2] %vm308_vm4, %v22695_v2  ;;  %v13073_v16 = vmul.f32 -1.442695, %v16057_v5 }
  0x1d   : > { %314 = vst.msk [vmem:[#allocation2 + $0x44] sm:$0x2] %vm308_vm4, %v22695_v2  ;;  %315 = vst.msk [vmem:[#allocation2 + $0x50] sm:$0x2] %vm308_vm4, %v22695_v2  ;;  %v16069_v17 = vld [vmem:[%s16051_s11 + $0x18] sm:$0xff]  ;;  %v16072_v18 = vld [vmem:[%s16051_s11 + $0x20] sm:$0xff] }
  0x1e   : > { %316 = vst.msk [vmem:[#allocation2 + $0x5c] sm:$0x2] %vm308_vm4, %v22695_v2  ;;  %317 = vst.msk [vmem:[#allocation2 + $0x68] sm:$0x2] %vm308_vm4, %v22695_v2  ;;  %vm916_vm6 = vsmask.f32 7440  ;;  %15617 = vpow2.f32 %v13073_v16 }
  0x1f   : > { %318 = vst.msk [vmem:[#allocation2 + $0x74] sm:$0x2] %vm308_vm4, %v22695_v2  ;;  %319 = vst.msk [vmem:[#allocation2 + $0x80] sm:$0x2] %vm308_vm4, %v22695_v2  ;;  %v930_v19 = vrot.slane %v22698_v10, 5  ;;  %v934_v20 = vrot.slane %v22700_v11, 4 }
  0x20   : > { %320 = vst.msk [vmem:[#allocation2 + $0x8c] sm:$0x2] %vm308_vm4, %v22695_v2  ;;  %321 = vst.msk [vmem:[#allocation2 + $0x98] sm:$0x2] %vm308_vm4, %v22695_v2  ;;  %v16079_v21 = vld [vmem:[%s16051_s11 + $0x28] sm:$0xff]  ;;  %v921_v22 = vrot.slane %v919_v14, 4 }
  0x21   : > { %322 = vst.msk [vmem:[#allocation2 + $0xa4] sm:$0x2] %vm308_vm4, %v22695_v2  ;;  %323 = vst.msk [vmem:[#allocation2 + $0xb0] sm:$0x2] %vm308_vm4, %v22695_v2  ;;  %v924_v23 = vrot.slane %v922_v15, 5  ;;  %v940_v24 = vrot.slane %v938_v12, 5  ;;  %v935_v27 = vor.u32 %v934_v20, %v930_v19 }
  0x22   : > { %324 = vst.msk [vmem:[#allocation2 + $0xbc] sm:$0x2] %vm308_vm4, %v22695_v2  ;;  %325 = vst.msk [vmem:[#allocation2 + $0xc8] sm:$0x2] %vm308_vm4, %v22695_v2  ;;  %v16082_v25 = vld [vmem:[%s16051_s11 + $0x30] sm:$0xff]  ;;  %v16085_v26 = vld [vmem:[%s16051_s11 + $0x38] sm:$0xff] }
  0x23   : > { %v13074_v28 = vmul.f32 -1.442695, %v16065_v13  ;;  %v13075_v29 = vmul.f32 -1.442695, %v16069_v17  ;;  %v13076_v30 = vmul.f32 -1.442695, %v16072_v18  ;;  %vm16091_vm7 = vmor %vm915_vm5, %vm916_vm6  ;;  %v925_v32 = vor.u32 %v924_v23, %v921_v22  ;;  %v15616_v47 = vpop.eup %15615 }
  0x24   : > { %v23170_v31 = vsel %vm16091_vm7, 4294967295, %v23169_v31  ;;  %v13077_v33 = vmul.f32 -1.442695, %v16079_v21  ;;  %v16097_v34 = vld [vmem:[%s16051_s11 + $0x40] sm:$0xff]  ;;  %v936_v35 = vrot.slane %v935_v27, 4  ;;  %v16101_v37 = vld [vmem:[%s16051_s11 + $0x48] sm:$0xff] }
  0x25   : > { %23171 = vst [vmem:[#allocation4_spill] sm:$0xff] %v23170_v31  ;;  %15619 = vpow2.f32 %v13074_v28  ;;  %v13078_v36 = vmul.f32 -1.442695, %v16082_v25  ;;  %v926_v38 = vrot.slane %v925_v32, 4  ;;  %v13079_v39 = vmul.f32 -1.442695, %v16085_v26 }
  0x26   : > { %15621 = vpow2.f32 %v13075_v29  ;;  %v941_v40 = vsel %vm16091_vm7, %v936_v35, %v940_v24  ;;  %v13080_v41 = vmul.f32 -1.442695, %v16097_v34  ;;  %v16108_v42 = vld [vmem:[%s16051_s11 + $0x50] sm:$0xff]  ;;  %v13081_v44 = vmul.f32 -1.442695, %v16101_v37  ;;  %v16114_v46 = vld [vmem:[%s16051_s11 + $0x58] sm:$0xff] }
  0x27   : > { %15623 = vpow2.f32 %v13076_v30  ;;  %v931_v43 = vsel %vm16091_vm7, %v926_v38, %v930_v19  ;;  %v13082_v48 = vmul.f32 -1.442695, %v16108_v42  ;;  %v16118_v49 = vld [vmem:[%s16051_s11 + $0x60] sm:$0xff]  ;;  %v455_v50 = vadd.f32 1.0, %v15616_v47  ;;  %v16124_v7 = vld [vmem:[%s16051_s11 + $0x68] sm:$0xff]  ;;  %v16127_v12 = vld [vmem:[%s16051_s11 + $0x70] sm:$0xff] }
  0x28   : > { %15625 = vpow2.f32 %v13077_v33  ;;  %v13137_v45 = vcombine.low %v931_v43, %v941_v40  ;;  %v15618_v51 = vpop.eup %15617  ;;  %v13083_v52 = vmul.f32 -1.442695, %v16114_v46  ;;  %v13084_v54 = vmul.f32 -1.442695, %v16118_v49  ;;  %v16130_v14 = vld [vmem:[%s16051_s11 + $0x78] sm:$0xff]  ;;  %v16133_v19 = vld [vmem:[%s16051_s11 + $0x80] sm:$0xff] }
  0x29   : > { %15627 = vpow2.f32 %v13078_v36  ;;  %v456_v53 = vadd.f32 1.0, %v15618_v51  ;;  %vm679_vm9 = vcmask 1040384   ;;  %vm680_vm10 = vcmask 1044484   ;;  %v16136_v20 = vld [vmem:[%s16051_s11 + $0x88] sm:$0xff]  ;;  %v16140_v27 = vld [vmem:[%s16051_s11 + $0x90] sm:$0xff]  ;;  %v16143_v28 = vld [vmem:[%s16051_s11 + $0x98] sm:$0xff] }
  0x2a   : > { %15629 = vpow2.f32 %v13079_v39  ;;  %14300 = vmatprep.mubr.msk.bf16.mxu0 %vm1351_vm8, %v13137_v45  ;;  %vm811_vm11 = vcmask 27649   ;;  %v13085_v24 = vmul.f32 -1.442695, %v16124_v7  ;;  %v13086_v32 = vmul.f32 -1.442695, %v16127_v12  ;;  %v16151_v35 = vld [vmem:[%s16051_s11 + $0xa0] sm:$0xff]  ;;  %vm16197_vm12 = vmor %vm679_vm9, %vm680_vm10 }
  0x2b   : > { %15631 = vpow2.f32 %v13080_v41  ;;  %v16148_v33 = vmul.f32 -1.442695, %v16130_v14  ;;  %v16154_v36 = vld [vmem:[%s16051_s11 + $0xa8] sm:$0xff]  ;;  %v16157_v39 = vmul.f32 -1.442695, %v16133_v19  ;;  %v16166_v41 = vld [vmem:[%s16051_s11 + $0xb8] sm:$0xff] }
  0x2c   : > { %15633 = vpow2.f32 %v13081_v44  ;;  %v16160_v40 = vmul.f32 -1.442695, %v16136_v20  ;;  %v16170_v47 = vmul.f32 -1.442695, %v16140_v27  ;;  %v352_v51 = vld [vmem:[%s16051_s11 + $0xc8] sm:$0xff]  ;;  %vm1661_vm13 = vcmask 1042432  }
  0x2d   : > { %15635 = vrcp.f32 %v455_v50  ;;  %v16176_v50 = vld [vmem:[%s16051_s11 + $0xc0] sm:$0xff]  ;;  %vm1662_vm14 = vcmask 1046532   ;;  %vm2086_vm2 = vsmask.f32 2304  ;;  %vm2087_vm4 = vsmask.f32 6416 }
  0x2e   : > { %15637 = vpow2.f32 %v13082_v48  ;;  %v16173_v48 = vmul.f32 -1.442695, %v16143_v28  ;;  %23172 = vst [vmem:[#allocation5_spill] sm:$0xff] %v16176_v50  ;;  %vm16402_vm15 = vmor %vm1661_vm13, %vm1662_vm14  ;;  %vm6503_vm6 = vcmask 58368   ;;  %vm7582_vm9 = vcmask 1043456  }
  0x2f   : > { %v15620_v55 = vpop.eup %15619  ;;  %15639 = vrcp.f32 %v456_v53  ;;  %v16181_v53 = vsel %vm1400_vm0, %v16033_v3, 0  ;;  %v23173_v3 = vmov 0  ;;  %vm16922_vm5 = vmor %vm2086_vm2, %vm2087_vm4  ;;  %vm7533_vm10 = vcmask 64512  }
  0x30   : > { %v15622_v56 = vpop.eup %15621  ;;  %v457_v57 = vadd.f32 1.0, %v15620_v55  ;;  %15641 = vpow2.f32 %v13083_v52  ;;  %v16184_v55 = vmul.f32 -1.442695, %v16151_v35  ;;  %v23174_v3 = vsel %vm16197_vm12, 4294967295, %v23173_v3 }
  0x31   : > { %v15624_v58 = vpop.eup %15623  ;;  %v458_v59 = vadd.f32 1.0, %v15622_v56  ;;  %15643 = vpow2.f32 %v13084_v54  ;;  %23175 = vst [vmem:[#allocation6_spill] sm:$0xff] %v23174_v3  ;;  %vm6996_vm13 = vcmask 60417  }
  0x32   : > { %v15626_v60 = vpop.eup %15625  ;;  %15645 = vrcp.f32 %v457_v57  ;;  %v459_v61 = vadd.f32 1.0, %v15624_v58 }
  0x33   : > { %v15628_v62 = vpop.eup %15627  ;;  %15647 = vrcp.f32 %v458_v59  ;;  %v460_v63 = vadd.f32 1.0, %v15626_v60  ;;  %v16193_v60 = vmul.f32 -1.442695, %v16166_v41 }
  0x34   : > { %v15630_v0 = vpop.eup %15629  ;;  %15649 = vrcp.f32 %v459_v61  ;;  %v461_v1 = vadd.f32 1.0, %v15628_v62 }
  0x35   : > { %v15632_v8 = vpop.eup %15631  ;;  %15651 = vrcp.f32 %v460_v63  ;;  %v462_v9 = vadd.f32 1.0, %v15630_v0  ;;  %v16203_v63 = vmul.f32 -1.442695, %v16176_v50  ;;  %v16205_v0 = vmul.f32 -1.442695, %v352_v51 }
  0x36   : > { %v15634_v15 = vpop.eup %15633  ;;  %15653 = vrcp.f32 %v461_v1  ;;  %v463_v16 = vadd.f32 1.0, %v15632_v8 }
  0x37   : > { %v15636_v22 = vpop.eup %15635  ;;  %15655 = vrcp.f32 %v462_v9  ;;  %v464_v23 = vadd.f32 1.0, %v15634_v15 }
  0x38   : > { %v15638_v29 = vpop.eup %15637  ;;  %v551_v30 = vmul.f32 %v15636_v22, %v16054_v4  ;;  %15657 = vrcp.f32 %v463_v16  ;;  %v16163_v4 = vld [vmem:[%s16051_s11 + $0xb0] sm:$0xff] }
  0x39   : > { %v15640_v38 = vpop.eup %15639  ;;  %15659 = vrcp.f32 %v464_v23  ;;  %v465_v54 = vadd.f32 1.0, %v15638_v29  ;;  %v16190_v59 = vmul.f32 -1.442695, %v16163_v4 }
  0x3a   : > { %v15642_v43 = vpop.eup %15641  ;;  %v552_v44 = vmul.f32 %v15640_v38, %v16057_v5  ;;  %v13911_v45 = vpack.c.bf16 %v551_v30, %v551_v30  ;;  %v16187_v5 = vmul.f32 -1.442695, %v16154_v36  ;;  %15661 = vpow2.f32 %v13085_v24 }
  0x3b   : > { %v15644_v52 = vpop.eup %15643  ;;  %v466_v16 = vadd.f32 1.0, %v15642_v43  ;;  %15663 = vrcp.f32 %v465_v54 }
  0x3c   : > { %v15646_v56 = vpop.eup %15645  ;;  %v13912_v57 = vpack.c.bf16 %v552_v44, %v552_v44  ;;  %v682_v58 = vrot.slane %v13911_v45, 7  ;;  %15665 = vpow2.f32 %v13086_v32 }
  0x3d   : > { %v15648_v61 = vpop.eup %15647  ;;  %v553_v62 = vmul.f32 %v15646_v56, %v16065_v13  ;;  %v467_v13 = vadd.f32 1.0, %v15644_v52  ;;  %15667 = vrcp.f32 %v466_v16 }
  0x3e   : > { %v15650_v1 = vpop.eup %15649  ;;  %v683_v8 = vrot.slane %v682_v58, 4  ;;  %v684_v9 = vrot.slane %v13912_v57, 7  ;;  %812 = vst.msk [vmem:[#allocation2 + $0xc] sm:$0xe] %vm811_vm11, %v682_v58  ;;  %v554_v15 = vmul.f32 %v15648_v61, %v16069_v17 }
  0x3f   : > { %v15652_v22 = vpop.eup %15651  ;;  %v13913_v23 = vpack.c.bf16 %v553_v62, %v553_v62  ;;  %v555_v29 = vmul.f32 %v15650_v1, %v16072_v18  ;;  %15669 = vrcp.f32 %v467_v13 }
  0x40   : > { %v15654_v24 = vpop.eup %15653  ;;  %v685_v30 = vsel %vm16197_vm12, %v683_v8, %v684_v9  ;;  %v686_v38 = vrot.slane %v684_v9, 4  ;;  %v13914_v44 = vpack.c.bf16 %v554_v15, %v554_v15  ;;  %v556_v45 = vmul.f32 %v15652_v22, %v16079_v21 }
  0x41   : > { %v15656_v51 = vpop.eup %15655  ;;  %813 = vst.msk [vmem:[#allocation2 + $0x10] sm:$0xf] %vm280_vm1, %v685_v30  ;;  %v687_v56 = vrot.slane %v13913_v23, 7  ;;  %v13915_v17 = vpack.c.bf16 %v555_v29, %v555_v29  ;;  %v557_v43 = vmul.f32 %v15654_v24, %v16082_v25  ;;  %15671 = vpow2.f32 %v16148_v33 }
  0x42   : > { %v15658_v57 = vpop.eup %15657  ;;  %814 = vst.msk [vmem:[#allocation2 + $0x14] sm:$0x1] %vm289_vm3, %v686_v38  ;;  %v689_v18 = vrot.slane %v13914_v44, 7  ;;  %v13916_v52 = vpack.c.bf16 %v556_v45, %v556_v45  ;;  %v558_v54 = vmul.f32 %v15656_v51, %v16085_v26  ;;  %15673 = vpow2.f32 %v16157_v39 }
  0x43   : > { %v15660_v58 = vpop.eup %15659  ;;  %v688_v61 = vrot.slane %v687_v56, 4  ;;  %815 = vst.msk [vmem:[#allocation2 + $0x18] sm:$0xe] %vm811_vm11, %v687_v56  ;;  %v692_v21 = vrot.slane %v13915_v17, 7  ;;  %v13917_v62 = vpack.c.bf16 %v557_v43, %v557_v43  ;;  %v559_v1 = vmul.f32 %v15658_v57, %v16097_v34 }
  0x44   : > { %v691_v8 = vrot.slane %v689_v18, 4  ;;  %v694_v9 = vrot.slane %v13916_v52, 7  ;;  %v13918_v25 = vpack.c.bf16 %v558_v54, %v558_v54  ;;  %v16220_v32 = vmul.f32 %v15660_v58, %v16101_v37  ;;  %v16227_v38 = vpop.eup %15661 }
  0x45   : > { %v870_v15 = vld [vmem:[#allocation2 + $0xc] sm:$0xf]  ;;  %v690_v22 = vsel %vm16197_vm12, %v688_v61, %v689_v18  ;;  %v693_v26 = vrot.slane %v692_v21, 4  ;;  %818 = vst.msk [vmem:[#allocation2 + $0x24] sm:$0xe] %vm811_vm11, %v692_v21  ;;  %v697_v16 = vrot.slane %v13917_v62, 7  ;;  %v13919_v23 = vpack.c.bf16 %v559_v1, %v559_v1  ;;  %v15664_v57 = vpop.eup %15663 }
  0x46   : > { %v943_v29 = vshrl.u32 %v870_v15, 16  ;;  %v946_v24 = vshll.u32 %v870_v15, 16  ;;  %816 = vst.msk [vmem:[#allocation2 + $0x1c] sm:$0xf] %vm280_vm1, %v690_v22  ;;  %v696_v34 = vrot.slane %v694_v9, 4  ;;  %v699_v30 = vrot.slane %v13918_v25, 7  ;;  %v16254_v62 = vpop.eup %15665 }
  0x47   : > { %817 = vst.msk [vmem:[#allocation2 + $0x20] sm:$0x1] %vm289_vm3, %v691_v8  ;;  %v695_v37 = vsel %vm16197_vm12, %v693_v26, %v694_v9  ;;  %v698_v44 = vrot.slane %v697_v16, 4  ;;  %v16232_v45 = vrot.slane %v13919_v23, 7  ;;  %15675 = vpow2.f32 %v16160_v40  ;;  %v15668_v25 = vpop.eup %15667 }
  0x48   : > { %821 = vst.msk [vmem:[#allocation2 + $0x30] sm:$0xe] %vm811_vm11, %v697_v16  ;;  %v16234_v51 = vld [vmem:[#allocation2 + $0x10] sm:$0xf]  ;;  %v945_v56 = vrot.slane %v943_v29, 4  ;;  %v948_v17 = vrot.slane %v946_v24, 5 }
  0x49   : > { %819 = vst.msk [vmem:[#allocation2 + $0x28] sm:$0xf] %vm280_vm1, %v695_v37  ;;  %v701_v43 = vrot.slane %v699_v30, 4  ;;  %v16239_v18 = vld [vmem:[#allocation2 + $0x14] sm:$0x1]  ;;  %v952_v52 = vshll.u32 %v16234_v51, 16  ;;  %v700_v13 = vsel %vm16197_vm12, %v698_v44, %v699_v30  ;;  %v16262_v37 = vmul.f32 %v15664_v57, %v16108_v42 }
  0x4a   : > { %820 = vst.msk [vmem:[#allocation2 + $0x2c] sm:$0x1] %vm289_vm3, %v696_v34  ;;  %v956_v54 = vshrl.u32 %v16234_v51, 16  ;;  %v949_v58 = vor.u32 %v948_v17, %v945_v56  ;;  %v962_v61 = vshll.u32 %v16239_v18, 16  ;;  %v873_v21 = vld [vmem:[#allocation2 + $0x18] sm:$0xf] }
  0x4b   : > { %824 = vst.msk [vmem:[#allocation2 + $0x3c] sm:$0xe] %vm811_vm11, %v16232_v45  ;;  %v954_v1 = vrot.slane %v952_v52, 5  ;;  %v2122_v26 = vrot.slane %v952_v52, 6  ;;  %v967_v16 = vshrl.u32 %v873_v21, 16  ;;  %v970_v30 = vshll.u32 %v873_v21, 16 }
  0x4c   : > { %822 = vst.msk [vmem:[#allocation2 + $0x34] sm:$0xf] %vm280_vm1, %v700_v13  ;;  %v958_v8 = vrot.slane %v956_v54, 4  ;;  %v2121_v9 = vrot.slane %v956_v54, 5  ;;  %v950_v15 = vrot.slane %v949_v58, 4  ;;  %v964_v22 = vrot.slane %v962_v61, 5 }
  0x4d   : > { %823 = vst.msk [vmem:[#allocation2 + $0x38] sm:$0x1] %vm289_vm3, %v701_v43  ;;  %v876_v23 = vld [vmem:[#allocation2 + $0x24] sm:$0xf]  ;;  %v16257_v24 = vld [vmem:[#allocation2 + $0x1c] sm:$0xf] }
  0x4e   : > { %v959_v29 = vor.u32 %v958_v8, %v954_v1  ;;  %v16259_v34 = vld [vmem:[#allocation2 + $0x20] sm:$0x1]  ;;  %v991_v40 = vshrl.u32 %v876_v23, 16  ;;  %v955_v44 = vsel %vm16091_vm7, %v950_v15, %v954_v1  ;;  %v16266_v56 = vor.u32 %v2122_v26, %v2121_v9  ;;  %v16280_v15 = vpop.eup %15669 }
  0x4f   : > { %v969_v17 = vrot.slane %v967_v16, 4  ;;  %v22697_v43 = vshll.u32 %v16257_v24, 16  ;;  %v879_v52 = vld [vmem:[#allocation2 + $0x30] sm:$0xf]  ;;  %v972_v13 = vrot.slane %v970_v30, 5  ;;  %v22699_v58 = vshrl.u32 %v16257_v24, 16  ;;  %v16286_v2 = vpop.eup %15671 }
  0x50   : > { %23176 = vst [vmem:[#allocation7_spill] sm:$0xff] %v16266_v56  ;;  %v960_v54 = vrot.slane %v959_v29, 4  ;;  %v986_v61 = vshll.u32 %v16259_v34, 16  ;;  %v16271_v21 = vld [vmem:[#allocation2 + $0x28] sm:$0xf]  ;;  %v993_v1 = vrot.slane %v991_v40, 4  ;;  %v16278_v9 = vmul.f32 %v15668_v25, %v16114_v46  ;;  %v16293_v25 = vpop.eup %15673 }
  0x51   : > { %v978_v42 = vrot.slane %v22697_v43, 5  ;;  %v16275_v57 = vld [vmem:[#allocation2 + $0x2c] sm:$0x1]  ;;  %v994_v8 = vshll.u32 %v876_v23, 16  ;;  %v973_v16 = vor.u32 %v972_v13, %v969_v17  ;;  %v982_v29 = vrot.slane %v22699_v58, 4  ;;  %v16298_v58 = vpop.eup %15675 }
  0x52   : > { %23177 = vst [vmem:[#allocation8_spill] sm:$0xff] %v16275_v57  ;;  %v965_v26 = vsel %vm16091_vm7, %v960_v54, %v964_v22  ;;  %v988_v30 = vrot.slane %v986_v61, 5  ;;  %v22705_v40 = vshll.u32 %v16271_v21, 16  ;;  %v22716_v23 = vshrl.u32 %v16271_v21, 16  ;;  %v13218_v46 = vld [vmem:[%s22688_s1 + $0x4] sm:$0x3] }
  0x53   : > { %v13138_v43 = vcombine.low %v955_v44, %v965_v26  ;;  %v996_v10 = vrot.slane %v994_v8, 5  ;;  %v974_v22 = vrot.slane %v973_v16, 4  ;;  %v983_v17 = vor.u32 %v982_v29, %v978_v42  ;;  %v16296_v13 = vld [vmem:[#allocation2 + $0x34] sm:$0xf] }
  0x54   : > { %v1010_v54 = vshll.u32 %v16275_v57, 16  ;;  %v1015_v61 = vshrl.u32 %v879_v52, 16  ;;  %v1002_v8 = vrot.slane %v22705_v40, 5  ;;  %v1006_v26 = vrot.slane %v22716_v23, 4  ;;  %v881_v11 = vld [vmem:[#allocation2 + $0x38] sm:$0x1] }
  0x55   : > { %14301 = vmatmul.mubr.msk.bf16.vlgmr.msra.gmra.mrb[0].mxu0 %vm1351_vm8, %v13138_v43  ;;  %v997_v44 = vor.u32 %v996_v10, %v993_v1  ;;  %v1018_v39 = vshll.u32 %v879_v52, 16  ;;  %v979_v16 = vsel %vm16091_vm7, %v974_v22, %v978_v42  ;;  %v984_v29 = vrot.slane %v983_v17, 4  ;;  %v882_v22 = vld [vmem:[#allocation2 + $0x3c] sm:$0xf] }
  0x56   : > { %14333 = vmatpush3.bf16.msra.mxu0 %v16181_v53  ;;  %v1012_v33 = vrot.slane %v1010_v54, 5  ;;  %v1017_v56 = vrot.slane %v1015_v61, 4  ;;  %v1007_v57 = vor.u32 %v1006_v26, %v1002_v8  ;;  %v22714_v10 = vshll.u32 %v16296_v13, 16 }
  0x57   : > { %v998_v50 = vrot.slane %v997_v44, 4  ;;  %v1020_v43 = vrot.slane %v1018_v39, 5  ;;  %15588 = vmatprep.subr.msk.bf16.mxu0 %vm1400_vm0, %v13218_v46  ;;  %v989_v1 = vsel %vm16091_vm7, %v984_v29, %v988_v30  ;;  %v22715_v52 = vshrl.u32 %v16296_v13, 16 }
  0x58   : > { %v1034_v40 = vshll.u32 %v881_v11, 16  ;;  %v23178_v53 = vpack.c.bf16 %v16220_v32, %v16220_v32  ;;  %v13139_v17 = vcombine.low %v979_v16, %v989_v1  ;;  %v1008_v39 = vrot.slane %v1007_v57, 4 }
  0x59   : > { %v1003_v54 = vsel %vm16091_vm7, %v998_v50, %v1002_v8  ;;  %v1021_v61 = vor.u32 %v1020_v43, %v1017_v56  ;;  %v1026_v46 = vrot.slane %v22714_v10, 5  ;;  %v1030_v30 = vrot.slane %v22715_v52, 4 }
  0x5a   : > { %v704_v42 = vrot.slane %v23178_v53, 7  ;;  %v1036_v44 = vrot.slane %v1034_v40, 5  ;;  %v23179_v11 = vrot.slane %v16232_v45, 4  ;;  %14304 = vmatprep.mubr.msk.bf16.mxu0 %vm1351_vm8, %v13139_v17  ;;  %v1013_v26 = vsel %vm16091_vm7, %v1008_v39, %v1012_v33 }
  0x5b   : > { %v1022_v50 = vrot.slane %v1021_v61, 4  ;;  %v1039_v56 = vshrl.u32 %v882_v22, 16  ;;  %v13140_v8 = vcombine.low %v1003_v54, %v1013_v26  ;;  %v1031_v16 = vor.u32 %v1030_v30, %v1026_v46 }
  0x5c   : > { %v705_v32 = vsel %vm16197_vm12, %v23179_v11, %v704_v42  ;;  %v706_v57 = vrot.slane %v704_v42, 4  ;;  %v1042_v29 = vshll.u32 %v882_v22, 16  ;;  %v13921_v40 = vpack.c.bf16 %v16262_v37, %v16262_v37 }
  0x5d   : > { %825 = vst.msk [vmem:[#allocation2 + $0x40] sm:$0xf] %vm280_vm1, %v705_v32  ;;  %v1027_v45 = vsel %vm16091_vm7, %v1022_v50, %v1026_v46  ;;  %v1041_v43 = vrot.slane %v1039_v56, 4  ;;  %v13922_v33 = vpack.c.bf16 %v16278_v9, %v16278_v9  ;;  %v468_v1 = vadd.f32 1.0, %v16227_v38  ;;  %14305 = vmatmul.mubr.msk.bf16.gmra.mrb[4].mxu0 %vm1351_vm8, %v13140_v8 }
  0x5e   : > { %826 = vst.msk [vmem:[#allocation2 + $0x44] sm:$0x1] %vm289_vm3, %v706_v57  ;;  %v1032_v53 = vrot.slane %v1031_v16, 4  ;;  %v1044_v42 = vrot.slane %v1042_v29, 5  ;;  %v707_v22 = vrot.slane %v13921_v40, 7  ;;  %v563_v37 = vmul.f32 %v16280_v15, %v16118_v49  ;;  %v16348_v49 = vld [vmem:[%s16051_s11 + $0xd0] sm:$0xff] }
  0x5f   : > { %v709_v17 = vrot.slane %v13922_v33, 7  ;;  %15677 = vrcp.f32 %v468_v1  ;;  %v469_v54 = vadd.f32 1.0, %v16254_v62  ;;  %v470_v39 = vadd.f32 1.0, %v16286_v2 }
  0x60   : > { %v1037_v9 = vsel %vm16091_vm7, %v1032_v53, %v1036_v44  ;;  %v1045_v61 = vor.u32 %v1044_v42, %v1041_v43  ;;  %v708_v38 = vrot.slane %v707_v22, 4  ;;  %827 = vst.msk [vmem:[#allocation2 + $0x48] sm:$0xe] %vm811_vm11, %v707_v22  ;;  %v13923_v46 = vpack.c.bf16 %v563_v37, %v563_v37 }
  0x61   : > { %v13141_v30 = vcombine.low %v1027_v45, %v1037_v9  ;;  %v711_v11 = vrot.slane %v709_v17, 4  ;;  %15679 = vrcp.f32 %v469_v54  ;;  %v471_v32 = vadd.f32 1.0, %v16293_v25 }
  0x62   : > { %v1673_v15 = vrot.slane %v16234_v51, 5  ;;  %v710_v2 = vsel %vm16197_vm12, %v708_v38, %v709_v17  ;;  %v16355_v44 = vrot.slane %v13923_v46, 7  ;;  %15681 = vrcp.f32 %v470_v39 }
  0x63   : > { %14308 = vmatprep.mubr.msk.bf16.mxu0 %vm1351_vm8, %v13141_v30  ;;  %828 = vst.msk [vmem:[#allocation2 + $0x4c] sm:$0xf] %vm280_vm1, %v710_v2  ;;  %v472_v25 = vadd.f32 1.0, %v16298_v58  ;;  %15683 = vrcp.f32 %v471_v32  ;;  %v1046_v56 = vrot.slane %v1045_v61, 4  ;;  %v16367_v8 = vmul.f32 -1.442695, %v16348_v49 }
  0x64   : > { %v16351_v62 = vld [vmem:[#allocation2 + $0x40] sm:$0xf]  ;;  %829 = vst.msk [vmem:[#allocation2 + $0x50] sm:$0x1] %vm289_vm3, %v711_v11  ;;  %15685 = vpow2.f32 %v16170_v47  ;;  %v16375_v58 = vrot.slane %v1673_v15, 4  ;;  %v1676_v45 = vrot.slane %v16239_v18, 5 }
  0x65   : > { %v22710_v26 = vshll.u32 %v16351_v62, 16  ;;  %v22713_v50 = vshrl.u32 %v16351_v62, 16  ;;  %v884_v57 = vld [vmem:[#allocation2 + $0x44] sm:$0x1]  ;;  %830 = vst.msk [vmem:[#allocation2 + $0x54] sm:$0xe] %vm811_vm11, %v16355_v44  ;;  %15687 = vrcp.f32 %v472_v25 }
  0x66   : > { %v1058_v40 = vshll.u32 %v884_v57, 16  ;;  %v713_v43 = vrot.slane %v16355_v44, 4  ;;  %15689 = vpow2.f32 %v16173_v48  ;;  %v1598_v47 = vld [vmem:[#allocation2 + $0xc] sm:$0xe]  ;;  %v16470_v18 = vld [vmem:[#allocation2 + $0x18] sm:$0xe] }
  0x67   : > { %v1050_v16 = vrot.slane %v22710_v26, 5  ;;  %v1054_v29 = vrot.slane %v22713_v50, 4  ;;  %v885_v53 = vld [vmem:[#allocation2 + $0x48] sm:$0xf]  ;;  %15691 = vpow2.f32 %v16184_v55  ;;  %v13170_v48 = vrot.slane %v1598_v47, 9 }
  0x68   : > { %v1060_v1 = vrot.slane %v1058_v40, 5  ;;  %v1063_v42 = vshrl.u32 %v885_v53, 16  ;;  %v1066_v22 = vshll.u32 %v885_v53, 16  ;;  %15693 = vpow2.f32 %v16187_v5  ;;  %v15877_v31 = vld [vmem:[#allocation2 + $0x44] sm:$0x1] }
  0x69   : > { %v1055_v33 = vor.u32 %v1054_v29, %v1050_v16  ;;  %v15678_v37 = vpop.eup %15677  ;;  %v1051_v17 = vsel %vm16091_vm7, %v1046_v56, %v1050_v16  ;;  %15695 = vpow2.f32 %v16190_v59  ;;  %v23181_v47 = vmov 0 }
  0x6a   : > { %v16385_v39 = vld [vmem:[#allocation2 + $0x4c] sm:$0xf]  ;;  %v1065_v61 = vrot.slane %v1063_v42, 4  ;;  %v1068_v55 = vrot.slane %v1066_v22, 5  ;;  %v564_v38 = vmul.f32 %v15678_v37, %v16124_v7  ;;  %15697 = vpow2.f32 %v16193_v60 }
  0x6b   : > { %v1056_v54 = vrot.slane %v1055_v33, 4  ;;  %23180 = vst [vmem:[#allocation9_spill] sm:$0xff] %v16385_v39  ;;  %v16387_v9 = vld [vmem:[#allocation2 + $0x50] sm:$0x1]  ;;  %v15680_v5 = vpop.eup %15679  ;;  %v22708_v30 = vshll.u32 %v16385_v39, 16  ;;  %v22709_v11 = vshrl.u32 %v16385_v39, 16 }
  0x6c   : > { %v1082_v59 = vshll.u32 %v16387_v9, 16  ;;  %v888_v32 = vld [vmem:[#allocation2 + $0x54] sm:$0xf]  ;;  %v15682_v2 = vpop.eup %15681  ;;  %v1069_v25 = vor.u32 %v1068_v55, %v1065_v61  ;;  %v13924_v57 = vpack.c.bf16 %v564_v38, %v564_v38  ;;  %v23182_v47 = vsel %vm16402_vm15, 4294967295, %v23181_v47 }
  0x6d   : > { %v1061_v46 = vsel %vm16091_vm7, %v1056_v54, %v1060_v1  ;;  %v1087_v56 = vshrl.u32 %v888_v32, 16  ;;  %v15684_v16 = vpop.eup %15683  ;;  %v1074_v7 = vrot.slane %v22708_v30, 5  ;;  %v1078_v60 = vrot.slane %v22709_v11, 4  ;;  %23183 = vst [vmem:[#allocation10_spill] sm:$0xff] %v23182_v47 }
  0x6e   : > { %v13142_v44 = vcombine.low %v1051_v17, %v1061_v46  ;;  %v1084_v29 = vrot.slane %v1082_v59, 5  ;;  %v1090_v40 = vshll.u32 %v888_v32, 16  ;;  %v15686_v33 = vpop.eup %15685  ;;  %v1070_v1 = vrot.slane %v1069_v25, 4 }
  0x6f   : > { %v714_v53 = vrot.slane %v13924_v57, 7  ;;  %v16407_v42 = vrot.slane %v1087_v56, 4  ;;  %v565_v22 = vmul.f32 %v15680_v5, %v16127_v12  ;;  %v15688_v37 = vpop.eup %15687  ;;  %v1079_v17 = vor.u32 %v1078_v60, %v1074_v7 }
  0x70   : > { %14309 = vmatmul.mubr.msk.bf16.gmra.mrb[8].mxu0 %vm1351_vm8, %v13142_v44  ;;  %v16410_v54 = vrot.slane %v1090_v40, 5  ;;  %v566_v61 = vmul.f32 %v15682_v2, %v16130_v14  ;;  %v567_v55 = vmul.f32 %v15684_v16, %v16133_v19  ;;  %v15690_v38 = vpop.eup %15689  ;;  %v16420_v44 = vsel %vm16402_vm15, %v13170_v48, %v1673_v15 }
  0x71   : > { %v715_v46 = vsel %vm16197_vm12, %v713_v43, %v714_v53  ;;  %v716_v59 = vrot.slane %v714_v53, 4  ;;  %v13925_v32 = vpack.c.bf16 %v565_v22, %v565_v22  ;;  %v15692_v12 = vpop.eup %15691  ;;  %v1075_v5 = vsel %vm16091_vm7, %v1070_v1, %v1074_v7  ;;  %v16433_v22 = vld [vmem:[%s16051_s11 + $0xd8] sm:$0xff] }
  0x72   : > { %v1080_v25 = vrot.slane %v1079_v17, 4  ;;  %831 = vst.msk [vmem:[#allocation2 + $0x58] sm:$0xf] %vm280_vm1, %v715_v46  ;;  %v13926_v14 = vpack.c.bf16 %v566_v61, %v566_v61  ;;  %v568_v19 = vmul.f32 %v15688_v37, %v16136_v20  ;;  %v15694_v2 = vpop.eup %15693  ;;  %v13927_v51 = vpack.c.bf16 %v567_v55, %v567_v55 }
  0x73   : > { %832 = vst.msk [vmem:[#allocation2 + $0x5c] sm:$0x1] %vm289_vm3, %v716_v59  ;;  %v717_v43 = vrot.slane %v13925_v32, 7  ;;  %v473_v57 = vadd.f32 1.0, %v15686_v33  ;;  %v474_v56 = vadd.f32 1.0, %v15690_v38  ;;  %v15696_v15 = vpop.eup %15695  ;;  %v1093_v16 = vor.u32 %v16410_v54, %v16407_v42  ;;  %v16446_v32 = vld [vmem:[%s16051_s11 + $0xe8] sm:$0xff] }
  0x74   : > { %v1085_v48 = vsel %vm16091_vm7, %v1080_v25, %v1084_v29  ;;  %v719_v7 = vrot.slane %v13926_v14, 7  ;;  %v13928_v60 = vpack.c.bf16 %v568_v19, %v568_v19  ;;  %v15698_v40 = vpop.eup %15697  ;;  %v722_v53 = vrot.slane %v13927_v51, 7  ;;  %v16436_v29 = vld [vmem:[%s16051_s11 + $0xe0] sm:$0xff] }
  0x75   : > { %v13143_v20 = vcombine.low %v1075_v5, %v1085_v48  ;;  %v718_v1 = vrot.slane %v717_v43, 4  ;;  %833 = vst.msk [vmem:[#allocation2 + $0x60] sm:$0xe] %vm811_vm11, %v717_v43  ;;  %15699 = vrcp.f32 %v473_v57  ;;  %v475_v17 = vadd.f32 1.0, %v15692_v12 }
  0x76   : > { %v721_v33 = vrot.slane %v719_v7, 4  ;;  %v724_v37 = vrot.slane %v13928_v60, 7  ;;  %15701 = vrcp.f32 %v474_v56  ;;  %v723_v54 = vrot.slane %v722_v53, 4  ;;  %836 = vst.msk [vmem:[#allocation2 + $0x6c] sm:$0xe] %vm811_vm11, %v722_v53 }
  0x77   : > { %14312 = vmatprep.mubr.msk.bf16.mxu0 %vm1351_vm8, %v13143_v20  ;;  %v720_v42 = vsel %vm16197_vm12, %v718_v1, %v719_v7  ;;  %v476_v61 = vadd.f32 1.0, %v15694_v2  ;;  %v477_v55 = vadd.f32 1.0, %v15696_v15  ;;  %15703 = vrcp.f32 %v475_v17 }
  0x78   : > { %834 = vst.msk [vmem:[#allocation2 + $0x64] sm:$0xf] %vm280_vm1, %v720_v42  ;;  %v726_v38 = vrot.slane %v724_v37, 4  ;;  %v478_v46 = vadd.f32 1.0, %v15698_v40  ;;  %v13099_v59 = vmul.f32 -1.442695, %v16433_v22  ;;  %v725_v5 = vsel %vm16197_vm12, %v723_v54, %v724_v37 }
  0x79   : > { %835 = vst.msk [vmem:[#allocation2 + $0x68] sm:$0x1] %vm289_vm3, %v721_v33  ;;  %v16448_v12 = vld [vmem:[#allocation2 + $0x58] sm:$0xf]  ;;  %15705 = vrcp.f32 %v476_v61  ;;  %v16453_v25 = vmul.f32 -1.442695, %v16436_v29  ;;  %v16460_v14 = vsel %vm16402_vm15, %v16375_v58, %v1676_v45 }
  0x7a   : > { %23184 = vst [vmem:[#allocation11_spill] sm:$0xff] %v16448_v12  ;;  %v16462_v19 = vld [vmem:[#allocation2 + $0x5c] sm:$0x1]  ;;  %v22706_v2 = vshll.u32 %v16448_v12, 16  ;;  %v22707_v43 = vshrl.u32 %v16448_v12, 16  ;;  %15707 = vrcp.f32 %v477_v55  ;;  %v1094_v57 = vrot.slane %v1093_v16, 4 }
  0x7b   : > { %837 = vst.msk [vmem:[#allocation2 + $0x70] sm:$0xf] %vm280_vm1, %v725_v5  ;;  %v1106_v58 = vshll.u32 %v16462_v19, 16  ;;  %15709 = vrcp.f32 %v478_v46  ;;  %v16474_v45 = vmul.f32 -1.442695, %v16446_v32  ;;  %v13171_v16 = vrot.slane %v16470_v18, 9 }
  0x7c   : > { %838 = vst.msk [vmem:[#allocation2 + $0x74] sm:$0x1] %vm289_vm3, %v726_v38  ;;  %v1098_v56 = vrot.slane %v22706_v2, 5  ;;  %v1102_v15 = vrot.slane %v22707_v43, 4  ;;  %v891_v48 = vld [vmem:[#allocation2 + $0x60] sm:$0xf]  ;;  %15711 = vpow2.f32 %v16203_v63 }
  0x7d   : > { %v1111_v60 = vshrl.u32 %v891_v48, 16  ;;  %v1114_v40 = vshll.u32 %v891_v48, 16  ;;  %15713 = vpow2.f32 %v16205_v0  ;;  %v1108_v1 = vrot.slane %v1106_v58, 5  ;;  %v894_v53 = vld [vmem:[#allocation2 + $0x6c] sm:$0xf] }
  0x7e   : > { %v1103_v20 = vor.u32 %v1102_v15, %v1098_v56  ;;  %15715 = vpow2.f32 %v16367_v8  ;;  %v1680_v33 = vrot.slane %v16257_v24, 5  ;;  %v1099_v17 = vsel %vm16091_vm7, %v1094_v57, %v1098_v56 }
  0x7f   : > { %v15700_v37 = vpop.eup %15699  ;;  %v16488_v63 = vld [vmem:[#allocation2 + $0x64] sm:$0xf]  ;;  %v1113_v54 = vrot.slane %v1111_v60, 4  ;;  %v1116_v61 = vrot.slane %v1114_v40, 5  ;;  %15717 = vpow2.f32 %v13099_v59  ;;  %v1135_v57 = vshrl.u32 %v894_v53, 16 }
  0x80   : > { %v16490_v42 = vld [vmem:[#allocation2 + $0x68] sm:$0x1]  ;;  %v15702_v0 = vpop.eup %15701  ;;  %v1104_v55 = vrot.slane %v1103_v20, 4  ;;  %v22711_v38 = vshll.u32 %v16488_v63, 16  ;;  %v22712_v46 = vshrl.u32 %v16488_v63, 16  ;;  %v1138_v56 = vshll.u32 %v894_v53, 16 }
  0x81   : > { %v1130_v8 = vshll.u32 %v16490_v42, 16  ;;  %v1117_v5 = vor.u32 %v1116_v61, %v1113_v54  ;;  %v569_v48 = vmul.f32 %v15700_v37, %v16140_v27  ;;  %v15704_v60 = vpop.eup %15703  ;;  %v1137_v30 = vrot.slane %v1135_v57, 4 }
  0x82   : > { %v16495_v58 = vld [vmem:[#allocation2 + $0x70] sm:$0xf]  ;;  %v1109_v59 = vsel %vm16091_vm7, %v1104_v55, %v1108_v1  ;;  %v1122_v40 = vrot.slane %v22711_v38, 5  ;;  %v1126_v20 = vrot.slane %v22712_v46, 4  ;;  %v1140_v11 = vrot.slane %v1138_v56, 5 }
  0x83   : > { %v16497_v15 = vld [vmem:[#allocation2 + $0x74] sm:$0x1]  ;;  %v1132_v2 = vrot.slane %v1130_v8, 5  ;;  %v15706_v54 = vpop.eup %15705  ;;  %v13144_v61 = vcombine.low %v1099_v17, %v1109_v59  ;;  %v1118_v43 = vrot.slane %v1117_v5, 4  ;;  %v22719_v27 = vshll.u32 %v16495_v58, 16 }
  0x84   : > { %v15708_v26 = vpop.eup %15707  ;;  %v1127_v53 = vor.u32 %v1126_v20, %v1122_v40  ;;  %v22722_v37 = vshrl.u32 %v16495_v58, 16  ;;  %v1154_v1 = vshll.u32 %v16497_v15, 16  ;;  %v1141_v8 = vor.u32 %v1140_v11, %v1137_v30 }
  0x85   : > { %v15710_v55 = vpop.eup %15709  ;;  %14313 = vmatmul.mubr.msk.bf16.gmra.mrb[12].mxu0 %vm1351_vm8, %v13144_v61  ;;  %v1123_v38 = vsel %vm16091_vm7, %v1118_v43, %v1122_v40  ;;  %v570_v17 = vmul.f32 %v15702_v0, %v16143_v28  ;;  %v13929_v5 = vpack.c.bf16 %v569_v48, %v569_v48  ;;  %v1146_v59 = vrot.slane %v22719_v27, 5 }
  0x86   : > { %v15712_v57 = vpop.eup %15711  ;;  %v1128_v56 = vrot.slane %v1127_v53, 4  ;;  %v1150_v20 = vrot.slane %v22722_v37, 4  ;;  %v1156_v46 = vrot.slane %v1154_v1, 5  ;;  %v1142_v10 = vrot.slane %v1141_v8, 4 }
  0x87   : > { %v15714_v50 = vpop.eup %15713  ;;  %v13930_v52 = vpack.c.bf16 %v570_v17, %v570_v17  ;;  %v727_v61 = vrot.slane %v13929_v5, 7  ;;  %v571_v23 = vmul.f32 %v15704_v60, %v16151_v35  ;;  %v572_v11 = vmul.f32 %v15706_v54, %v16154_v36 }
  0x88   : > { %v15716_v43 = vpop.eup %15715  ;;  %v1133_v28 = vsel %vm16091_vm7, %v1128_v56, %v1132_v2  ;;  %v1151_v30 = vor.u32 %v1150_v20, %v1146_v59  ;;  %v573_v0 = vmul.f32 %v15708_v26, %v16163_v4  ;;  %v1147_v53 = vsel %vm16091_vm7, %v1142_v10, %v1146_v59 }
  0x89   : > { %v15718_v48 = vpop.eup %15717  ;;  %v13145_v40 = vcombine.low %v1123_v38, %v1133_v28  ;;  %v728_v1 = vrot.slane %v727_v61, 4  ;;  %v729_v8 = vrot.slane %v13930_v52, 7  ;;  %839 = vst.msk [vmem:[#allocation2 + $0x78] sm:$0xe] %vm811_vm11, %v727_v61  ;;  %v13931_v35 = vpack.c.bf16 %v571_v23, %v571_v23 }
  0x8a   : > { %v1152_v17 = vrot.slane %v1151_v30, 4  ;;  %v13932_v60 = vpack.c.bf16 %v572_v11, %v572_v11  ;;  %v574_v5 = vmul.f32 %v15710_v55, %v16166_v41  ;;  %v13933_v26 = vpack.c.bf16 %v573_v0, %v573_v0  ;;  %v16546_v30 = vld [vmem:[#allocation2 + $0x24] sm:$0xe] }
  0x8b   : > { %14316 = vmatprep.mubr.msk.bf16.mxu0 %vm1351_vm8, %v13145_v40  ;;  %v730_v36 = vsel %vm16197_vm12, %v728_v1, %v729_v8  ;;  %v731_v4 = vrot.slane %v729_v8, 4  ;;  %v479_v2 = vadd.f32 1.0, %v15712_v57  ;;  %v732_v52 = vrot.slane %v13931_v35, 7 }
  0x8c   : > { %v1157_v10 = vsel %vm16091_vm7, %v1152_v17, %v1156_v46  ;;  %840 = vst.msk [vmem:[#allocation2 + $0x7c] sm:$0xf] %vm280_vm1, %v730_v36  ;;  %v734_v38 = vrot.slane %v13932_v60, 7  ;;  %v13934_v54 = vpack.c.bf16 %v574_v5, %v574_v5  ;;  %v737_v41 = vrot.slane %v13933_v26, 7 }
  0x8d   : > { %v13146_v23 = vcombine.low %v1147_v53, %v1157_v10  ;;  %841 = vst.msk [vmem:[#allocation2 + $0x80] sm:$0x1] %vm289_vm3, %v731_v4  ;;  %v480_v55 = vadd.f32 1.0, %v15714_v50  ;;  %15719 = vrcp.f32 %v479_v2  ;;  %v733_v56 = vrot.slane %v732_v52, 4 }
  0x8e   : > { %v736_v59 = vrot.slane %v734_v38, 4  ;;  %842 = vst.msk [vmem:[#allocation2 + $0x84] sm:$0xe] %vm811_vm11, %v732_v52  ;;  %v739_v20 = vrot.slane %v13934_v54, 7  ;;  %v481_v57 = vadd.f32 1.0, %v15716_v43  ;;  %v738_v46 = vrot.slane %v737_v41, 4 }
  0x8f   : > { %14317 = vmatmul.mubr.msk.bf16.gmra.mrb[16].mxu0 %vm1351_vm8, %v13146_v23  ;;  %845 = vst.msk [vmem:[#allocation2 + $0x90] sm:$0xe] %vm811_vm11, %v737_v41  ;;  %v482_v61 = vadd.f32 1.0, %v15718_v48  ;;  %v16542_v50 = vsel %vm16402_vm15, %v13171_v16, %v1680_v33  ;;  %v1682_v28 = vrot.slane %v1680_v33, 4  ;;  %v735_v11 = vsel %vm16197_vm12, %v733_v56, %v734_v38  ;;  %v23185_v38 = vld [vmem:[#allocation8_spill] sm:$0xff] }
  0x90   : > { %v897_v43 = vld [vmem:[#allocation2 + $0x78] sm:$0xf]  ;;  %844 = vst.msk [vmem:[#allocation2 + $0x8c] sm:$0x1] %vm289_vm3, %v736_v59  ;;  %v741_v0 = vrot.slane %v739_v20, 4  ;;  %15721 = vrcp.f32 %v480_v55  ;;  %v1683_v48 = vrot.slane %v16259_v34, 5  ;;  %v740_v16 = vsel %vm16197_vm12, %v738_v46, %v739_v20 }
  0x91   : > { %v1159_v40 = vshrl.u32 %v897_v43, 16  ;;  %v1162_v53 = vshll.u32 %v897_v43, 16  ;;  %843 = vst.msk [vmem:[#allocation2 + $0x88] sm:$0xf] %vm280_vm1, %v735_v11  ;;  %15723 = vrcp.f32 %v481_v57  ;;  %846 = vst.msk [vmem:[#allocation2 + $0x94] sm:$0xf] %vm280_vm1, %v740_v16 }
  0x92   : > { %847 = vst.msk [vmem:[#allocation2 + $0x98] sm:$0x1] %vm289_vm3, %v741_v0  ;;  %15725 = vrcp.f32 %v482_v61  ;;  %v16559_v33 = vsel %vm16402_vm15, %v1682_v28, %v1683_v48  ;;  %v13172_v1 = vrot.slane %v16546_v30, 9  ;;  %v1687_v34 = vrot.slane %v16271_v21, 5 }
  0x93   : > { %v16563_v8 = vld [vmem:[#allocation2 + $0x7c] sm:$0xf]  ;;  %v1161_v17 = vrot.slane %v1159_v40, 4  ;;  %v1164_v35 = vrot.slane %v1162_v53, 5  ;;  %15727 = vpow2.f32 %v16453_v25  ;;  %v1690_v54 = vrot.slane %v23185_v38, 5 }
  0x94   : > { %v16568_v5 = vld [vmem:[#allocation2 + $0x80] sm:$0x1]  ;;  %v22717_v36 = vshll.u32 %v16563_v8, 16  ;;  %v22718_v4 = vshrl.u32 %v16563_v8, 16  ;;  %15729 = vpow2.f32 %v16474_v45  ;;  %v16575_v26 = vsel %vm16402_vm15, %v13172_v1, %v1687_v34 }
  0x95   : > { %v1165_v2 = vor.u32 %v1164_v35, %v1161_v17  ;;  %v1178_v10 = vshll.u32 %v16568_v5, 16  ;;  %v900_v52 = vld [vmem:[#allocation2 + $0x84] sm:$0xf]  ;;  %v16578_v25 = vrot.slane %v1687_v34, 4  ;;  %v23188_v35 = vld [vmem:[#allocation5_spill] sm:$0xff] }
  0x96   : > { %v1170_v23 = vrot.slane %v22717_v36, 5  ;;  %v1174_v41 = vrot.slane %v22718_v4, 4  ;;  %v1183_v55 = vshrl.u32 %v900_v52, 16  ;;  %v1186_v45 = vshll.u32 %v900_v52, 16  ;;  %v903_v56 = vld [vmem:[#allocation2 + $0x90] sm:$0xf] }
  0x97   : > { %v15720_v59 = vpop.eup %15719  ;;  %v1166_v20 = vrot.slane %v1165_v2, 4  ;;  %v1180_v57 = vrot.slane %v1178_v10, 5  ;;  %v16585_v46 = vld [vmem:[#allocation2 + $0x8c] sm:$0x1]  ;;  %v1207_v61 = vshrl.u32 %v903_v56, 16  ;;  %v1210_v28 = vshll.u32 %v903_v56, 16 }
  0x98   : > { %v1175_v43 = vor.u32 %v1174_v41, %v1170_v23  ;;  %v16587_v11 = vld [vmem:[#allocation2 + $0x88] sm:$0xf]  ;;  %v1185_v0 = vrot.slane %v1183_v55, 4  ;;  %v1188_v48 = vrot.slane %v1186_v45, 5  ;;  %v1202_v40 = vshll.u32 %v16585_v46, 16 }
  0x99   : > { %23186 = vst [vmem:[#allocation8_spill] sm:$0xff] %v16587_v11  ;;  %v1171_v53 = vsel %vm16091_vm7, %v1166_v20, %v1170_v23  ;;  %v22720_v16 = vshll.u32 %v16587_v11, 16  ;;  %v22721_v1 = vshrl.u32 %v16587_v11, 16  ;;  %v16594_v34 = vld [vmem:[#allocation2 + $0x94] sm:$0xf]  ;;  %v575_v2 = vmul.f32 %v15720_v59, %v23188_v35 }
  0x9a   : > { %23187 = vst [vmem:[#allocation12_spill] sm:$0xff] %v16594_v34  ;;  %v16596_v17 = vld [vmem:[#allocation2 + $0x98] sm:$0x1]  ;;  %v15722_v10 = vpop.eup %15721  ;;  %v1176_v52 = vrot.slane %v1175_v43, 4  ;;  %v1189_v41 = vor.u32 %v1188_v48, %v1185_v0  ;;  %v1204_v55 = vrot.slane %v1202_v40, 5  ;;  %v1209_v45 = vrot.slane %v1207_v61, 4 }
  0x9b   : > { %v15724_v56 = vpop.eup %15723  ;;  %v1194_v36 = vrot.slane %v22720_v16, 5  ;;  %v1198_v23 = vrot.slane %v22721_v1, 4  ;;  %v1212_v20 = vrot.slane %v1210_v28, 5  ;;  %v22723_v4 = vshll.u32 %v16594_v34, 16 }
  0x9c   : > { %v15726_v27 = vpop.eup %15725  ;;  %v1181_v59 = vsel %vm16091_vm7, %v1176_v52, %v1180_v57  ;;  %v1190_v35 = vrot.slane %v1189_v41, 4  ;;  %v22724_v43 = vshrl.u32 %v16594_v34, 16  ;;  %v1226_v61 = vshll.u32 %v16596_v17, 16  ;;  %v15871_v52 = vld [vmem:[%s16051_s11 + $0xc8] sm:$0xff] }
  0x9d   : > { %v15728_v0 = vpop.eup %15727  ;;  %v13147_v48 = vcombine.low %v1171_v53, %v1181_v59  ;;  %v1199_v40 = vor.u32 %v1198_v23, %v1194_v36  ;;  %v1213_v16 = vor.u32 %v1212_v20, %v1209_v45  ;;  %v1218_v1 = vrot.slane %v22723_v4, 5 }
  0x9e   : > { %v15730_v28 = vpop.eup %15729  ;;  %v1195_v37 = vsel %vm16091_vm7, %v1190_v35, %v1194_v36  ;;  %v1222_v60 = vrot.slane %v22724_v43, 4  ;;  %v1228_v57 = vrot.slane %v1226_v61, 5  ;;  %v576_v41 = vmul.f32 %v15871_v52, %v15722_v10 }
  0x9f   : > { %14320 = vmatprep.mubr.msk.bf16.mxu0 %vm1351_vm8, %v13147_v48  ;;  %v1200_v51 = vrot.slane %v1199_v40, 4  ;;  %v1214_v7 = vrot.slane %v1213_v16, 4  ;;  %v13935_v53 = vpack.c.bf16 %v575_v2, %v575_v2  ;;  %v577_v45 = vmul.f32 %v15724_v56, %v16348_v49  ;;  %v16638_v56 = vld [vmem:[#allocation2 + $0x48] sm:$0xe] }
  0xa0   : > { %v1223_v23 = vor.u32 %v1222_v60, %v1218_v1  ;;  %v13936_v20 = vpack.c.bf16 %v576_v41, %v576_v41  ;;  %v578_v59 = vmul.f32 %v15726_v27, %v16433_v22  ;;  %v483_v4 = vadd.f32 1.0, %v15728_v0 }
  0xa1   : > { %v1205_v36 = vsel %vm16091_vm7, %v1200_v51, %v1204_v55  ;;  %v1219_v35 = vsel %vm16091_vm7, %v1214_v7, %v1218_v1  ;;  %v742_v61 = vrot.slane %v13935_v53, 7  ;;  %v13937_v10 = vpack.c.bf16 %v577_v45, %v577_v45  ;;  %v16626_v7 = vld [vmem:[#allocation2] sm:$0xe] }
  0xa2   : > { %v13148_v52 = vcombine.low %v1195_v37, %v1205_v36  ;;  %v1224_v48 = vrot.slane %v1223_v23, 4  ;;  %v744_v40 = vrot.slane %v13936_v20, 7  ;;  %v13938_v16 = vpack.c.bf16 %v578_v59, %v578_v59 }
  0xa3   : > { %v743_v2 = vrot.slane %v742_v61, 4  ;;  %848 = vst.msk [vmem:[#allocation2 + $0x9c] sm:$0xe] %vm811_vm11, %v742_v61  ;;  %v747_v49 = vrot.slane %v13937_v10, 7  ;;  %v484_v60 = vadd.f32 1.0, %v15730_v28  ;;  %15731 = vrcp.f32 %v483_v4 }
  0xa4   : > { %14321 = vmatmul.mubr.msk.bf16.gmra.mrb[20].mxu0 %vm1351_vm8, %v13148_v52  ;;  %v1229_v22 = vsel %vm16091_vm7, %v1224_v48, %v1228_v57  ;;  %v746_v51 = vrot.slane %v744_v40, 4  ;;  %v749_v27 = vrot.slane %v13938_v16, 7  ;;  %v16633_v37 = vsel %vm16402_vm15, %v16578_v25, %v1690_v54  ;;  %v16644_v25 = vld [vmem:[#allocation2 + $0x54] sm:$0xe]  ;;  %v15872_v57 = vld [vmem:[#allocation2 + $0x8] sm:$0x1] }
  0xa5   : > { %v13149_v1 = vcombine.low %v1219_v35, %v1229_v22  ;;  %v745_v4 = vsel %vm16197_vm12, %v743_v2, %v744_v40  ;;  %v748_v55 = vrot.slane %v747_v49, 4  ;;  %851 = vst.msk [vmem:[#allocation2 + $0xa8] sm:$0xe] %vm811_vm11, %v747_v49  ;;  %15733 = vrcp.f32 %v484_v60  ;;  %23189 = vst [vmem:[#allocation5_spill] sm:$0xff] %v16644_v25 }
  0xa6   : > { %849 = vst.msk [vmem:[#allocation2 + $0xa0] sm:$0xf] %vm280_vm1, %v745_v4  ;;  %v751_v38 = vrot.slane %v749_v27, 4  ;;  %v13169_v28 = vrot.slane %v16626_v7, 9  ;;  %v1669_v41 = vrot.slane %v15872_v57, 5  ;;  %v23190_v53 = vrot.slane %v16059_v6, 5 }
  0xa7   : > { %850 = vst.msk [vmem:[#allocation2 + $0xa4] sm:$0x1] %vm289_vm3, %v746_v51  ;;  %14324 = vmatprep.mubr.msk.bf16.mxu0 %vm1351_vm8, %v13149_v1  ;;  %v750_v54 = vsel %vm16197_vm12, %v748_v55, %v749_v27  ;;  %v13175_v23 = vrot.slane %v16638_v56, 9  ;;  %v1708_v20 = vrot.slane %v16385_v39, 5  ;;  %v23191_v59 = vshrl.u32 %v16059_v6, 16 }
  0xa8   : > { %852 = vst.msk [vmem:[#allocation2 + $0xac] sm:$0xf] %vm280_vm1, %v750_v54  ;;  %v1668_v45 = vrot.slane %v23190_v53, 4  ;;  %v23192_v35 = vshll.u32 %v16059_v6, 16  ;;  %v1711_v10 = vrot.slane %v16387_v9, 5  ;;  %v13176_v52 = vrot.slane %v16644_v25, 9 }
  0xa9   : > { %853 = vst.msk [vmem:[#allocation2 + $0xb0] sm:$0x1] %vm289_vm3, %v751_v38  ;;  %v2098_v36 = vrot.slane %v23191_v59, 5  ;;  %v16664_v40 = vsel %vm16402_vm15, %v13175_v23, %v1708_v20  ;;  %v1710_v16 = vrot.slane %v1708_v20, 4  ;;  %v1715_v2 = vrot.slane %v16448_v12, 5 }
  0xaa   : > { %v2099_v61 = vrot.slane %v23192_v35, 6  ;;  %v906_v48 = vld [vmem:[#allocation2 + $0x9c] sm:$0xf]  ;;  %v23193_v22 = vmov %v23190_v53  ;;  %v16675_v9 = vsel %vm16402_vm15, %v1668_v45, %v1669_v41 }
  0xab   : > { %v1231_v49 = vshrl.u32 %v906_v48, 16  ;;  %v1234_v60 = vshll.u32 %v906_v48, 16  ;;  %v16671_v51 = vsel %vm16402_vm15, %v13169_v28, %v23193_v22  ;;  %v16679_v1 = vsel %vm16402_vm15, %v1710_v16, %v1711_v10 }
  0xac   : > { %v909_v27 = vld [vmem:[#allocation2 + $0xa8] sm:$0xf]  ;;  %v16683_v4 = vsel %vm16402_vm15, %v13176_v52, %v1715_v2  ;;  %v1717_v55 = vrot.slane %v1715_v2, 4  ;;  %v16691_v53 = vor.u32 %v2099_v61, %v2098_v36 }
  0xad   : > { %v15732_v38 = vpop.eup %15731  ;;  %v16685_v6 = vld [vmem:[#allocation2 + $0xa0] sm:$0xf]  ;;  %v1233_v28 = vrot.slane %v1231_v49, 4  ;;  %v1236_v57 = vrot.slane %v1234_v60, 5  ;;  %v1255_v59 = vshrl.u32 %v909_v27, 16  ;;  %v1258_v16 = vshll.u32 %v909_v27, 16 }
  0xae   : > { %23194 = vst [vmem:[#allocation13_spill] sm:$0xff] %v16685_v6  ;;  %v16687_v54 = vld [vmem:[#allocation2 + $0xa4] sm:$0x1]  ;;  %v22725_v45 = vshll.u32 %v16685_v6, 16  ;;  %v22726_v23 = vshrl.u32 %v16685_v6, 16  ;;  %v579_v2 = vmul.f32 %v15732_v38, %v16436_v29  ;;  %v1718_v49 = vrot.slane %v16462_v19, 5 }
  0xaf   : > { %v1250_v20 = vshll.u32 %v16687_v54, 16  ;;  %v15734_v35 = vpop.eup %15733  ;;  %v1237_v10 = vor.u32 %v1236_v57, %v1233_v28  ;;  %v16696_v52 = vld [vmem:[#allocation2 + $0xac] sm:$0xf]  ;;  %v1257_v22 = vrot.slane %v1255_v59, 4  ;;  %v1260_v41 = vrot.slane %v1258_v16, 5 }
  0xb0   : > { %23195 = vst [vmem:[#allocation14_spill] sm:$0xff] %v16696_v52  ;;  %v16698_v48 = vld [vmem:[#allocation2 + $0xb0] sm:$0x1]  ;;  %v1242_v36 = vrot.slane %v22725_v45, 5  ;;  %v1246_v61 = vrot.slane %v22726_v23, 4  ;;  %v22733_v28 = vshll.u32 %v16696_v52, 16  ;;  %v580_v29 = vmul.f32 %v15734_v35, %v16446_v32 }
  0xb1   : > { %v1252_v60 = vrot.slane %v1250_v20, 5  ;;  %v1238_v43 = vrot.slane %v1237_v10, 4  ;;  %v22734_v57 = vshrl.u32 %v16696_v52, 16  ;;  %v1274_v27 = vshll.u32 %v16698_v48, 16  ;;  %v16710_v38 = vld [vmem:[#allocation2 + $0x60] sm:$0xe] }
  0xb2   : > { %v1247_v0 = vor.u32 %v1246_v61, %v1242_v36  ;;  %v13939_v19 = vpack.c.bf16 %v579_v2, %v579_v2  ;;  %v1261_v23 = vor.u32 %v1260_v41, %v1257_v22  ;;  %v1266_v20 = vrot.slane %v22733_v28, 5 }
  0xb3   : > { %v1243_v45 = vsel %vm16091_vm7, %v1238_v43, %v1242_v36  ;;  %v1270_v59 = vrot.slane %v22734_v57, 4  ;;  %v1276_v16 = vrot.slane %v1274_v27, 5  ;;  %v13940_v61 = vpack.c.bf16 %v580_v29, %v580_v29  ;;  %v16723_v43 = vld [vmem:[#allocation2 + $0x6c] sm:$0xe]  ;;  %v16733_v27 = vld [vmem:[#allocation2 + $0x78] sm:$0xe] }
  0xb4   : > { %v1248_v10 = vrot.slane %v1247_v0, 4  ;;  %v752_v12 = vrot.slane %v13939_v19, 7  ;;  %v1262_v25 = vrot.slane %v1261_v23, 4  ;;  %v16720_v32 = vsel %vm16402_vm15, %v1717_v55, %v1718_v49  ;;  %v16809_v0 = vld [vmem:[#allocation2 + $0xa8] sm:$0xe] }
  0xb5   : > { %v1271_v39 = vor.u32 %v1270_v59, %v1266_v20  ;;  %v13177_v35 = vrot.slane %v16710_v38, 9  ;;  %v754_v36 = vrot.slane %v13940_v61, 7  ;;  %v1722_v49 = vrot.slane %v16488_v63, 5  ;;  %v16748_v59 = vld [vmem:[#allocation2 + $0x84] sm:$0xe]  ;;  %23199 = vst [vmem:[#allocation18_spill] sm:$0xff] %v16809_v0 }
  0xb6   : > { %v1253_v41 = vsel %vm16091_vm7, %v1248_v10, %v1252_v60  ;;  %v753_v2 = vrot.slane %v752_v12, 4  ;;  %854 = vst.msk [vmem:[#allocation2 + $0xb4] sm:$0xe] %vm811_vm11, %v752_v12  ;;  %v1267_v22 = vsel %vm16091_vm7, %v1262_v25, %v1266_v20  ;;  %v1725_v19 = vrot.slane %v16490_v42, 5 }
  0xb7   : > { %v13150_v23 = vcombine.low %v1243_v45, %v1253_v41  ;;  %v1272_v55 = vrot.slane %v1271_v39, 4  ;;  %v756_v60 = vrot.slane %v754_v36, 4  ;;  %v13178_v12 = vrot.slane %v16723_v43, 9  ;;  %v16754_v41 = vld [vmem:[#allocation2 + $0x90] sm:$0xe] }
  0xb8   : > { %v755_v29 = vsel %vm16197_vm12, %v753_v2, %v754_v36  ;;  %v16745_v39 = vsel %vm16402_vm15, %v13177_v35, %v1722_v49  ;;  %v1724_v25 = vrot.slane %v1722_v49, 4  ;;  %v1729_v20 = vrot.slane %v16495_v58, 5  ;;  %23196 = vst [vmem:[#allocation15_spill] sm:$0xff] %v16754_v41 }
  0xb9   : > { %14325 = vmatmul.mubr.msk.bf16.gmra.mrb[24].mxu0 %vm1351_vm8, %v13150_v23  ;;  %v1277_v45 = vsel %vm16091_vm7, %v1272_v55, %v1276_v16  ;;  %855 = vst.msk [vmem:[#allocation2 + $0xb8] sm:$0xf] %vm280_vm1, %v755_v29  ;;  %v1732_v42 = vrot.slane %v16497_v15, 5  ;;  %v13179_v61 = vrot.slane %v16733_v27, 9  ;;  %v1736_v16 = vrot.slane %v16563_v8, 5 }
  0xba   : > { %v13151_v10 = vcombine.low %v1267_v22, %v1277_v45  ;;  %856 = vst.msk [vmem:[#allocation2 + $0xbc] sm:$0x1] %vm289_vm3, %v756_v60  ;;  %v16758_v35 = vsel %vm16402_vm15, %v1724_v25, %v1725_v19  ;;  %v16762_v2 = vsel %vm16402_vm15, %v13178_v12, %v1729_v20  ;;  %v1731_v36 = vrot.slane %v1729_v20, 4  ;;  %v16773_v29 = vld [vmem:[#allocation2 + $0x9c] sm:$0xe] }
  0xbb   : > { %v1739_v23 = vrot.slane %v16568_v5, 5  ;;  %v16770_v22 = vsel %vm16402_vm15, %v13179_v61, %v1736_v16  ;;  %v1738_v55 = vrot.slane %v1736_v16, 4  ;;  %v13180_v49 = vrot.slane %v16748_v59, 9  ;;  %23197 = vst [vmem:[#allocation16_spill] sm:$0xff] %v16773_v29 }
  0xbc   : > { %14328 = vmatprep.mubr.msk.bf16.mxu0 %vm1351_vm8, %v13151_v10  ;;  %v16777_v19 = vsel %vm16402_vm15, %v1731_v36, %v1732_v42  ;;  %v1743_v5 = vrot.slane %v16587_v11, 5  ;;  %v1746_v12 = vrot.slane %v16585_v46, 5  ;;  %v13181_v45 = vrot.slane %v16754_v41, 9 }
  0xbd   : > { %v912_v60 = vld [vmem:[#allocation2 + $0xb4] sm:$0xf]  ;;  %v16786_v61 = vsel %vm16402_vm15, %v1738_v55, %v1739_v23  ;;  %v1750_v46 = vrot.slane %v16594_v34, 5  ;;  %v1753_v10 = vrot.slane %v16596_v17, 5  ;;  %v13182_v15 = vrot.slane %v16773_v29, 9 }
  0xbe   : > { %v1279_v25 = vshrl.u32 %v912_v60, 16  ;;  %v1282_v20 = vshll.u32 %v912_v60, 16  ;;  %v16792_v42 = vsel %vm16402_vm15, %v13180_v49, %v1743_v5  ;;  %v1745_v36 = vrot.slane %v1743_v5, 4 }
  0xbf   : > { %v16807_v5 = vsel %vm16402_vm15, %v13181_v45, %v1750_v46  ;;  %v1752_v3 = vrot.slane %v1750_v46, 4  ;;  %v16819_v45 = vld [vmem:[#allocation2 + $0xb4] sm:$0xe]  ;;  %v13183_v46 = vrot.slane %v16809_v0, 9 }
  0xc0   : > { %v16795_v28 = vld [vmem:[#allocation2 + $0xb8] sm:$0xf]  ;;  %v1281_v60 = vrot.slane %v1279_v25, 4  ;;  %v1284_v57 = vrot.slane %v1282_v20, 5  ;;  %v16803_v49 = vsel %vm16402_vm15, %v1745_v36, %v1746_v12  ;;  %v1757_v12 = vrot.slane %v16685_v6, 5  ;;  %23200 = vst [vmem:[#allocation19_spill] sm:$0xff] %v16819_v45 }
  0xc1   : > { %23198 = vst [vmem:[#allocation17_spill] sm:$0xff] %v16795_v28  ;;  %v914_v23 = vld [vmem:[#allocation2 + $0xbc] sm:$0x1]  ;;  %v22745_v55 = vshll.u32 %v16795_v28, 16  ;;  %v22746_v16 = vshrl.u32 %v16795_v28, 16  ;;  %v1760_v36 = vrot.slane %v16687_v54, 5 }
  0xc2   : > { %v1285_v25 = vor.u32 %v1284_v57, %v1281_v60  ;;  %v1298_v20 = vshll.u32 %v914_v23, 16  ;;  %v16823_v57 = vsel %vm16402_vm15, %v1752_v3, %v1753_v10  ;;  %v1759_v17 = vrot.slane %v1757_v12, 4 }
  0xc3   : > { %v1290_v29 = vrot.slane %v22745_v55, 5  ;;  %v1294_v34 = vrot.slane %v22746_v16, 4  ;;  %v16830_v16 = vsel %vm16402_vm15, %v13182_v15, %v1757_v12  ;;  %v13184_v3 = vrot.slane %v16819_v45, 9  ;;  %v15878_v45 = vld [vmem:[#allocation2 + $0xc] sm:$0xe] }
  0xc4   : > { %v1286_v41 = vrot.slane %v1285_v25, 4  ;;  %v1300_v11 = vrot.slane %v1298_v20, 5  ;;  %23201 = vst [vmem:[#allocation20_spill] sm:$0xff] %v16830_v16  ;;  %v1764_v25 = vrot.slane %v16696_v52, 5  ;;  %v1767_v20 = vrot.slane %v16698_v48, 5 }
  0xc5   : > { %v1295_v60 = vor.u32 %v1294_v34, %v1290_v29  ;;  %v16839_v34 = vsel %vm16402_vm15, %v1759_v17, %v1760_v36  ;;  %v1771_v55 = vrot.slane %v16795_v28, 5  ;;  %v1774_v6 = vrot.slane %v914_v23, 5 }
  0xc6   : > { %v1291_v54 = vsel %vm16091_vm7, %v1286_v41, %v1290_v29  ;;  %23202 = vst [vmem:[#allocation21_spill] sm:$0xff] %v16839_v34  ;;  %v16846_v41 = vsel %vm16402_vm15, %v13183_v46, %v1764_v25  ;;  %v1766_v29 = vrot.slane %v1764_v25, 4  ;;  %v13186_v12 = vcombine.low %v16671_v51, %v16675_v9  ;;  %v15873_v51 = vld [vmem:[#allocation2 + $0x34] sm:$0xf] }
  0xc7   : > { %v1296_v10 = vrot.slane %v1295_v60, 4  ;;  %23203 = vst [vmem:[#allocation22_spill] sm:$0xff] %v16846_v41  ;;  %v16854_v17 = vsel %vm16402_vm15, %v13184_v3, %v1771_v55  ;;  %v1773_v36 = vrot.slane %v1771_v55, 4  ;;  %v1694_v9 = vrot.slane %v15873_v51, 5  ;;  %v15874_v3 = vld [vmem:[#allocation2 + $0x40] sm:$0xf] }
  0xc8   : > { %23204 = vst [vmem:[#allocation23_spill] sm:$0xff] %v16854_v17  ;;  %v16858_v60 = vsel %vm16402_vm15, %v1766_v29, %v1767_v20  ;;  %v1701_v55 = vrot.slane %v15874_v3, 5  ;;  %v16872_v20 = vld [vmem:[#allocation2 + $0x3c] sm:$0xe]  ;;  %v2070_v29 = vld [vmem:[#allocation2 + $0x8] sm:$0x3] }
  0xc9   : > { %v1301_v48 = vsel %vm16091_vm7, %v1296_v10, %v1300_v11  ;;  %23205 = vst [vmem:[#allocation24_spill] sm:$0xff] %v16858_v60  ;;  %v16864_v25 = vsel %vm16402_vm15, %v1773_v36, %v1774_v6  ;;  %v16867_v11 = vld [vmem:[#allocation2 + $0x30] sm:$0xe]  ;;  %v2090_v10 = vshrl.u32 %v16626_v7, 16  ;;  %v2093_v6 = vshll.u32 %v16626_v7, 16 }
  0xca   : > { %v13152_v23 = vcombine.low %v1291_v54, %v1301_v48  ;;  %23206 = vst [vmem:[#allocation25_spill] sm:$0xff] %v16864_v25  ;;  %v15875_v48 = vld [vmem:[%s22688_s1 + $0x4] sm:$0x3]  ;;  %v15876_v51 = vld [vmem:[#allocation2 + $0x38] sm:$0x1]  ;;  %v1696_v46 = vrot.slane %v1694_v9, 4 }
  0xcb   : > { %v2556_v36 = vsel %vm1400_vm0, %v15875_v48, 0  ;;  %v1697_v3 = vrot.slane %v15876_v51, 5  ;;  %v2071_v54 = vld [vmem:[#allocation2 + $0x14] sm:$0x3]  ;;  %v1703_v15 = vrot.slane %v1701_v55, 4  ;;  %v1704_v28 = vrot.slane %v15877_v31, 5 }
  0xcc   : > { %14329 = vmatmul.mubr.msk.bf16.gmra.mrb[28].mxu0 %vm1351_vm8, %v13152_v23  ;;  %v13173_v23 = vrot.slane %v16867_v11, 9  ;;  %v2092_v52 = vrot.slane %v2090_v10, 5  ;;  %v2095_v7 = vrot.slane %v2093_v6, 6  ;;  %v2104_v25 = vshrl.u32 %v2070_v29, 16  ;;  %v13251_v51 = vld [vmem:[%s22688_s1 + $0x6] sm:$0x3] }
  0xcd   : > { %14334 = vmatprep.mubr.msk.bf16.mxu0 %vm1351_vm8, %v13186_v12  ;;  %v13174_v12 = vrot.slane %v16872_v20, 9  ;;  %v2107_v17 = vshll.u32 %v2070_v29, 16  ;;  %v2113_v0 = vshrl.u32 %v15878_v45, 16  ;;  %v2116_v60 = vshll.u32 %v15878_v45, 16 }
  0xce   : > { %v2127_v41 = vshrl.u32 %v2071_v54, 16  ;;  %v2130_v48 = vshll.u32 %v2071_v54, 16  ;;  %v1695_v34 = vsel %vm16402_vm15, %v13173_v23, %v1694_v9  ;;  %v2136_v16 = vshrl.u32 %v16470_v18, 16 }
  0xcf   : > { %v2139_v31 = vshll.u32 %v16470_v18, 16  ;;  %v23207_v10 = vcombine.low %v16420_v44, %v16460_v14  ;;  %v1698_v45 = vsel %vm16402_vm15, %v1696_v46, %v1697_v3  ;;  %v16897_v54 = vsel %vm16402_vm15, %v13174_v12, %v1701_v55  ;;  %v2072_v46 = vld [vmem:[#allocation2 + $0x20] sm:$0x3] }
  0xd0   : > { %v16901_v9 = vsel %vm16402_vm15, %v1703_v15, %v1704_v28  ;;  %v23208_v18 = vcombine.low %v16542_v50, %v16559_v33  ;;  %v2096_v44 = vor.u32 %v2095_v7, %v2092_v52  ;;  %v2106_v14 = vrot.slane %v2104_v25, 5  ;;  %v23211_v25 = vld [vmem:[#allocation7_spill] sm:$0xff] }
  0xd1   : > { %v2109_v6 = vrot.slane %v2107_v17, 6  ;;  %v2115_v55 = vrot.slane %v2113_v0, 5  ;;  %v2118_v29 = vrot.slane %v2116_v60, 6  ;;  %v2129_v23 = vrot.slane %v2127_v41, 5 }
  0xd2   : > { %v2132_v3 = vrot.slane %v2130_v48, 6  ;;  %v2138_v28 = vrot.slane %v2136_v16, 5  ;;  %v2141_v15 = vrot.slane %v2139_v31, 6  ;;  %v23210_v50 = vshll.u32 %v16257_v24, 16  ;;  %v2073_v31 = vld [vmem:[#allocation2 + $0x2c] sm:$0x3] }
  0xd3   : > { %v2159_v52 = vshrl.u32 %v16546_v30, 16  ;;  %v2162_v17 = vshll.u32 %v16546_v30, 16  ;;  %v2125_v7 = vrot.slane %v23211_v25, 4  ;;  %v13190_v0 = vcombine.low %v1695_v34, %v1698_v45 }
  0xd4   : > { %14335 = vmatmul.mubr.msk.bf16.vlgmr.msra.gmra.mrb[0].mxu0 %vm1351_vm8, %v23207_v10  ;;  %v2145_v33 = vrot.slane %v23210_v50, 6  ;;  %v2150_v10 = vshrl.u32 %v2072_v46, 16  ;;  %v13191_v41 = vcombine.low %v16897_v54, %v16901_v9  ;;  %v16917_v16 = vrot.slane %v2096_v44, 4 }
  0xd5   : > { %14367 = vmatpush3.bf16.msra.mxu0 %v2556_v36  ;;  %14338 = vmatprep.mubr.msk.bf16.mxu0 %vm1351_vm8, %v23208_v18  ;;  %v23209_v36 = vshrl.u32 %v16257_v24, 16  ;;  %v2153_v18 = vshll.u32 %v2072_v46, 16  ;;  %v2102_v60 = vrot.slane %v16691_v53, 4  ;;  %v2110_v48 = vor.u32 %v2109_v6, %v2106_v14 }
  0xd6   : > { %15589 = vmatprep.subr.msk.bf16.mxu0 %vm1400_vm0, %v13251_v51  ;;  %v23212_v24 = vmov 0  ;;  %v2119_v46 = vor.u32 %v2118_v29, %v2115_v55  ;;  %v2133_v30 = vor.u32 %v2132_v3, %v2129_v23  ;;  %v23215_v34 = vcombine.low %v16575_v26, %v16633_v37 }
  0xd7   : > { %v2144_v12 = vrot.slane %v23209_v36, 5  ;;  %v23213_v24 = vsel %vm16922_vm5, 4294967295, %v23212_v24  ;;  %v2142_v36 = vor.u32 %v2141_v15, %v2138_v28  ;;  %v2152_v45 = vrot.slane %v2150_v10, 5 }
  0xd8   : > { %23214 = vst [vmem:[#allocation7_spill] sm:$0xff] %v23213_v24  ;;  %v2155_v54 = vrot.slane %v2153_v18, 6  ;;  %v2161_v9 = vrot.slane %v2159_v52, 5  ;;  %v2164_v44 = vrot.slane %v2162_v17, 6  ;;  %v23216_v14 = vshrl.u32 %v16271_v21, 16 }
  0xd9   : > { %v16926_v50 = vor.u32 %v2145_v33, %v2144_v12  ;;  %v23217_v55 = vshll.u32 %v16271_v21, 16  ;;  %v2173_v23 = vshrl.u32 %v2073_v31, 16  ;;  %v2176_v3 = vshll.u32 %v2073_v31, 16 }
  0xda   : > { %v2167_v6 = vrot.slane %v23216_v14, 5  ;;  %v16942_v37 = vsel %vm1400_vm0, %v13251_v51, 0  ;;  %v2182_v28 = vshrl.u32 %v16867_v11, 16  ;;  %v2185_v15 = vshll.u32 %v16867_v11, 16 }
  0xdb   : > { %v2168_v29 = vrot.slane %v23217_v55, 6  ;;  %23218 = vst [vmem:[#allocation26_spill] sm:$0xff] %v16942_v37  ;;  %v16948_v12 = vsel %vm16922_vm5, %v2102_v60, %v2110_v48  ;;  %v16950_v21 = vrot.slane %v2119_v46, 4  ;;  %v2205_v33 = vshrl.u32 %v16872_v20, 16  ;;  %v2075_v46 = vld [vmem:[#allocation2 + $0x44] sm:$0x3] }
  0xdc   : > { %14339 = vmatmul.mubr.msk.bf16.gmra.mrb[4].mxu0 %vm1351_vm8, %v23215_v34  ;;  %v2208_v10 = vshll.u32 %v16872_v20, 16  ;;  %v2134_v18 = vsel %vm16922_vm5, %v2125_v7, %v2133_v30  ;;  %v16956_v52 = vrot.slane %v2142_v36, 4  ;;  %v2148_v51 = vrot.slane %v16926_v50, 4 }
  0xdd   : > { %14342 = vmatprep.mubr.msk.bf16.mxu0 %vm1351_vm8, %v13190_v0  ;;  %v2156_v17 = vor.u32 %v2155_v54, %v2152_v45  ;;  %v2074_v0 = vld [vmem:[#allocation2 + $0x38] sm:$0x3]  ;;  %v2165_v11 = vor.u32 %v2164_v44, %v2161_v9  ;;  %v16959_v31 = vor.u32 %v2168_v29, %v2167_v6  ;;  %v2175_v60 = vrot.slane %v2173_v23, 5 }
  0xde   : > { %v2178_v48 = vrot.slane %v2176_v3, 6  ;;  %v2184_v34 = vrot.slane %v2182_v28, 5  ;;  %v2187_v14 = vrot.slane %v2185_v15, 6  ;;  %v23219_v55 = vshrl.u32 %v16296_v13, 16 }
  0xdf   : > { %v23220_v26 = vshll.u32 %v16296_v13, 16  ;;  %v2196_v30 = vshrl.u32 %v2074_v0, 16  ;;  %v2199_v36 = vshll.u32 %v2074_v0, 16  ;;  %v2207_v47 = vrot.slane %v2205_v33, 5 }
  0xe0   : > { %v2190_v20 = vrot.slane %v23219_v55, 5  ;;  %v2210_v37 = vrot.slane %v2208_v10, 6  ;;  %v23221_v45 = vshrl.u32 %v16351_v62, 16  ;;  %v23222_v9 = vshll.u32 %v16351_v62, 16  ;;  %v2076_v10 = vld [vmem:[#allocation2 + $0x50] sm:$0x3] }
  0xe1   : > { %v2191_v7 = vrot.slane %v23220_v26, 6  ;;  %v2219_v6 = vshrl.u32 %v2075_v46, 16  ;;  %v2222_v29 = vshll.u32 %v2075_v46, 16  ;;  %v23223_v23 = vcombine.low %v16664_v40, %v16679_v1 }
  0xe2   : > { %v2213_v54 = vrot.slane %v23221_v45, 5  ;;  %v2214_v44 = vrot.slane %v23222_v9, 6  ;;  %v2124_v13 = vsel %vm16922_vm5, %v16950_v21, %v23211_v25  ;;  %v2228_v62 = vshrl.u32 %v16638_v56, 16 }
  0xe3   : > { %v2231_v3 = vshll.u32 %v16638_v56, 16  ;;  %v2157_v26 = vsel %vm16922_vm5, %v2148_v51, %v2156_v17  ;;  %v2166_v40 = vrot.slane %v2165_v11, 4  ;;  %v2171_v1 = vrot.slane %v16959_v31, 4  ;;  %v23224_v56 = vld [vmem:[#allocation9_spill] sm:$0xff] }
  0xe4   : > { %14343 = vmatmul.mubr.msk.bf16.gmra.mrb[8].mxu0 %vm1351_vm8, %v13191_v41  ;;  %v2147_v41 = vsel %vm16922_vm5, %v16956_v52, %v16926_v50  ;;  %v2179_v28 = vor.u32 %v2178_v48, %v2175_v60  ;;  %v2188_v15 = vor.u32 %v2187_v14, %v2184_v34  ;;  %v16987_v33 = vor.u32 %v2191_v7, %v2190_v20  ;;  %v23227_v48 = vld [vmem:[#allocation5_spill] sm:$0xff] }
  0xe5   : > { %14346 = vmatprep.mubr.msk.bf16.mxu0 %vm1351_vm8, %v23223_v23  ;;  %v2198_v25 = vrot.slane %v2196_v30, 5  ;;  %v2201_v21 = vrot.slane %v2199_v36, 6  ;;  %v2211_v0 = vor.u32 %v2210_v37, %v2207_v47  ;;  %v2215_v46 = vor.u32 %v2214_v44, %v2213_v54 }
  0xe6   : > { %v2221_v50 = vrot.slane %v2219_v6, 5  ;;  %v2224_v52 = vrot.slane %v2222_v29, 6  ;;  %v2230_v55 = vrot.slane %v2228_v62, 5  ;;  %v2233_v45 = vrot.slane %v2231_v3, 6 }
  0xe7   : > { %v23225_v9 = vshrl.u32 %v23224_v56, 16  ;;  %v23226_v51 = vshll.u32 %v23224_v56, 16  ;;  %v2242_v11 = vshrl.u32 %v2076_v10, 16  ;;  %v2245_v60 = vshll.u32 %v2076_v10, 16 }
  0xe8   : > { %v2251_v34 = vshrl.u32 %v23227_v48, 16  ;;  %v2254_v14 = vshll.u32 %v23227_v48, 16  ;;  %v2170_v47 = vsel %vm16922_vm5, %v2166_v40, %v16959_v31  ;;  %v2180_v37 = vsel %vm16922_vm5, %v2171_v1, %v2179_v28 }
  0xe9   : > { %v2236_v23 = vrot.slane %v23225_v9, 5  ;;  %v2237_v17 = vrot.slane %v23226_v51, 6  ;;  %v2189_v20 = vrot.slane %v2188_v15, 4  ;;  %v2194_v7 = vrot.slane %v16987_v33, 4 }
  0xea   : > { %v23228_v30 = vcombine.low %v16683_v4, %v16720_v32  ;;  %v2202_v36 = vor.u32 %v2201_v21, %v2198_v25  ;;  %v2212_v54 = vrot.slane %v2211_v0, 4  ;;  %v2217_v44 = vrot.slane %v2215_v46, 4 }
  0xeb   : > { %v2225_v6 = vor.u32 %v2224_v52, %v2221_v50  ;;  %v23229_v29 = vcombine.low %v16745_v39, %v16758_v35  ;;  %v23230_v31 = vsel %vm16922_vm5, %v16917_v16, %v16691_v53  ;;  %v17017_v4 = vcombine.low %v2124_v13, %v2134_v18  ;;  %v2077_v35 = vld [vmem:[#allocation2 + $0x5c] sm:$0x3] }
  0xec   : > { %14347 = vmatmul.mubr.msk.bf16.gmra.mrb[12].mxu0 %vm1351_vm8, %v23228_v30  ;;  %v17015_v62 = vcombine.low %v23230_v31, %v16948_v12  ;;  %v2234_v32 = vor.u32 %v2233_v45, %v2230_v55  ;;  %v2238_v3 = vor.u32 %v2237_v17, %v2236_v23  ;;  %v2244_v40 = vrot.slane %v2242_v11, 5  ;;  %v2078_v55 = vld [vmem:[#allocation2 + $0x68] sm:$0x3] }
  0xed   : > { %14350 = vmatprep.mubr.msk.bf16.mxu0 %vm1351_vm8, %v23229_v29  ;;  %v2247_v1 = vrot.slane %v2245_v60, 6  ;;  %v2253_v28 = vrot.slane %v2251_v34, 5  ;;  %v2256_v15 = vrot.slane %v2254_v14, 6  ;;  %v17019_v25 = vcombine.low %v2147_v41, %v2157_v26  ;;  %v23231_v26 = vld [vmem:[#allocation11_spill] sm:$0xff] }
  0xee   : > { %v17021_v39 = vcombine.low %v2170_v47, %v2180_v37  ;;  %v2274_v21 = vshrl.u32 %v16710_v38, 16  ;;  %v2277_v10 = vshll.u32 %v16710_v38, 16  ;;  %v2193_v53 = vsel %vm16922_vm5, %v2189_v20, %v16987_v33 }
  0xef   : > { %v2203_v16 = vsel %vm16922_vm5, %v2194_v7, %v2202_v36  ;;  %v2216_v12 = vsel %vm16922_vm5, %v2212_v54, %v2215_v46  ;;  %v2226_v18 = vsel %vm16922_vm5, %v2217_v44, %v2225_v6  ;;  %v2235_v13 = vrot.slane %v2234_v32, 4  ;;  %v2079_v54 = vld [vmem:[#allocation2 + $0x74] sm:$0x3] }
  0xf0   : > { %v2240_v41 = vrot.slane %v2238_v3, 4  ;;  %v23232_v0 = vshrl.u32 %v23231_v26, 16  ;;  %v23233_v38 = vshll.u32 %v23231_v26, 16  ;;  %v2248_v45 = vor.u32 %v2247_v1, %v2244_v40 }
  0xf1   : > { %v2257_v33 = vor.u32 %v2256_v15, %v2253_v28  ;;  %v2265_v56 = vshrl.u32 %v2077_v35, 16  ;;  %v2268_v9 = vshll.u32 %v2077_v35, 16  ;;  %v2276_v23 = vrot.slane %v2274_v21, 5 }
  0xf2   : > { %v2259_v50 = vrot.slane %v23232_v0, 5  ;;  %v2260_v52 = vrot.slane %v23233_v38, 6  ;;  %v2279_v51 = vrot.slane %v2277_v10, 6  ;;  %v23234_v46 = vshrl.u32 %v16488_v63, 16 }
  0xf3   : > { %v23235_v11 = vshll.u32 %v16488_v63, 16  ;;  %v23236_v48 = vcombine.low %v16762_v2, %v16777_v19  ;;  %v2288_v34 = vshrl.u32 %v2078_v55, 16  ;;  %v2291_v14 = vshll.u32 %v2078_v55, 16 }
  0xf4   : > { %v2282_v17 = vrot.slane %v23234_v46, 5  ;;  %v2297_v47 = vshrl.u32 %v16723_v43, 16  ;;  %v2300_v37 = vshll.u32 %v16723_v43, 16  ;;  %v23237_v20 = vcombine.low %v16770_v22, %v16786_v61 }
  0xf5   : > { %v2283_v60 = vrot.slane %v23235_v11, 6  ;;  %14351 = vmatmul.mubr.msk.bf16.gmra.mrb[16].mxu0 %vm1351_vm8, %v23236_v48  ;;  %v17052_v7 = vcombine.low %v2193_v53, %v2203_v16  ;;  %v17054_v63 = vcombine.low %v2216_v12, %v2226_v18  ;;  %v2239_v2 = vsel %vm16922_vm5, %v2235_v13, %v2238_v3 }
  0xf6   : > { %14354 = vmatprep.mubr.msk.bf16.mxu0 %vm1351_vm8, %v23237_v20  ;;  %v17058_v19 = vor.u32 %v2260_v52, %v2259_v50  ;;  %v2249_v30 = vsel %vm16922_vm5, %v2240_v41, %v2248_v45  ;;  %v2267_v36 = vrot.slane %v2265_v56, 5  ;;  %v2320_v43 = vshrl.u32 %v16733_v27, 16  ;;  %v2080_v41 = vld [vmem:[#allocation2 + $0x80] sm:$0x3] }
  0xf7   : > { %v2323_v22 = vshll.u32 %v16733_v27, 16  ;;  %v17064_v61 = vrot.slane %v2257_v33, 4  ;;  %v2270_v44 = vrot.slane %v2268_v9, 6  ;;  %v2280_v6 = vor.u32 %v2279_v51, %v2276_v23 }
  0xf8   : > { %v17066_v29 = vor.u32 %v2283_v60, %v2282_v17  ;;  %v2290_v31 = vrot.slane %v2288_v34, 5  ;;  %v2293_v32 = vrot.slane %v2291_v14, 6  ;;  %v2299_v3 = vrot.slane %v2297_v47, 5  ;;  %v23244_v34 = vld [vmem:[#allocation8_spill] sm:$0xff] }
  0xf9   : > { %v2302_v40 = vrot.slane %v2300_v37, 6  ;;  %v23238_v1 = vshrl.u32 %v16495_v58, 16  ;;  %v23239_v15 = vshll.u32 %v16495_v58, 16  ;;  %v2311_v21 = vshrl.u32 %v2079_v54, 16 }
  0xfa   : > { %v2314_v10 = vshll.u32 %v2079_v54, 16  ;;  %v17072_v53 = vcombine.low %v2239_v2, %v2249_v30  ;;  %v2263_v27 = vrot.slane %v17058_v19, 4  ;;  %v2322_v16 = vrot.slane %v2320_v43, 5  ;;  %v23247_v30 = vld [vmem:[#allocation15_spill] sm:$0xff] }
  0xfb   : > { %v2305_v28 = vrot.slane %v23238_v1, 5  ;;  %v2306_v35 = vrot.slane %v23239_v15, 6  ;;  %v2325_v12 = vrot.slane %v2323_v22, 6  ;;  %v2271_v13 = vor.u32 %v2270_v44, %v2267_v36  ;;  %v23248_v15 = vld [vmem:[#allocation20_spill] sm:$0xff] }
  0xfc   : > { %v2343_v26 = vshrl.u32 %v16748_v59, 16  ;;  %v2346_v58 = vshll.u32 %v16748_v59, 16  ;;  %v23240_v0 = vcombine.low %v16792_v42, %v16803_v49  ;;  %v17085_v50 = vrot.slane %v2280_v6, 4  ;;  %v2081_v49 = vld [vmem:[#allocation2 + $0x8c] sm:$0x3] }
  0xfd   : > { %v2286_v38 = vrot.slane %v17066_v29, 4  ;;  %v2294_v52 = vor.u32 %v2293_v32, %v2290_v31  ;;  %v2303_v55 = vor.u32 %v2302_v40, %v2299_v3  ;;  %v23241_v45 = vcombine.low %v16807_v5, %v16823_v57 }
  0xfe   : > { %14355 = vmatmul.mubr.msk.bf16.gmra.mrb[20].mxu0 %vm1351_vm8, %v23240_v0  ;;  %v17092_v33 = vor.u32 %v2306_v35, %v2305_v28  ;;  %v2313_v56 = vrot.slane %v2311_v21, 5  ;;  %v2316_v59 = vrot.slane %v2314_v10, 6  ;;  %v23242_v9 = vshrl.u32 %v16563_v8, 16  ;;  %v23249_v35 = vld [vmem:[#allocation21_spill] sm:$0xff] }
  0xff   : > { %14358 = vmatprep.mubr.msk.bf16.mxu0 %vm1351_vm8, %v23241_v45  ;;  %v2326_v23 = vor.u32 %v2325_v12, %v2322_v16  ;;  %v23243_v51 = vshll.u32 %v16563_v8, 16  ;;  %v2334_v17 = vshrl.u32 %v2080_v41, 16  ;;  %v2337_v11 = vshll.u32 %v2080_v41, 16  ;;  %v23251_v12 = vld [vmem:[#allocation12_spill] sm:$0xff]  ;;  %v2751_v8 = vld [vmem:[#allocation2 + $0xc] sm:$0xf] }
 0x100   : > { %v2328_v42 = vrot.slane %v23242_v9, 5  ;;  %v2345_v60 = vrot.slane %v2343_v26, 5  ;;  %v2348_v48 = vrot.slane %v2346_v58, 6  ;;  %v23245_v5 = vshrl.u32 %v23244_v34, 16  ;;  %v23253_v26 = vld [vmem:[#allocation22_spill] sm:$0xff]  ;;  %v23254_v58 = vld [vmem:[#allocation24_spill] sm:$0xff] }
 0x101   : > { %v2329_v46 = vrot.slane %v23243_v51, 6  ;;  %v23246_v14 = vshll.u32 %v23244_v34, 16  ;;  %v17104_v37 = vsel %vm16922_vm5, %v2263_v27, %v2271_v13  ;;  %v2357_v20 = vshrl.u32 %v2081_v49, 16 }
 0x102   : > { %v2351_v57 = vrot.slane %v23245_v5, 5  ;;  %v2360_v2 = vshll.u32 %v2081_v49, 16  ;;  %v2366_v36 = vshrl.u32 %v23247_v30, 16  ;;  %v17113_v54 = vsel %vm16922_vm5, %v2286_v38, %v2294_v52  ;;  %v2082_v38 = vld [vmem:[#allocation2 + $0x98] sm:$0x3] }
 0x103   : > { %v2352_v47 = vrot.slane %v23246_v14, 6  ;;  %v17115_v43 = vrot.slane %v2303_v55, 4  ;;  %v2369_v22 = vshll.u32 %v23247_v30, 16  ;;  %v2309_v44 = vrot.slane %v17092_v33, 4  ;;  %v17193_v5 = vld [vmem:[#allocation2 + $0x10] sm:$0xf] }
 0x104   : > { %v2317_v6 = vor.u32 %v2316_v59, %v2313_v56  ;;  %v17119_v31 = vrot.slane %v2326_v23, 4  ;;  %v17121_v32 = vor.u32 %v2329_v46, %v2328_v42  ;;  %v17123_v3 = vrot.slane %v2334_v17, 5  ;;  %v23257_v56 = vld [vmem:[#allocation16_spill] sm:$0xff] }
 0x105   : > { %v17125_v40 = vrot.slane %v2337_v11, 6  ;;  %v2349_v1 = vor.u32 %v2348_v48, %v2345_v60  ;;  %v17127_v28 = vor.u32 %v2352_v47, %v2351_v57  ;;  %v23250_v21 = vcombine.low %v23248_v15, %v23249_v35  ;;  %v23258_v11 = vld [vmem:[#allocation18_spill] sm:$0xff] }
 0x106   : > { %v17133_v10 = vrot.slane %v2357_v20, 5  ;;  %v17135_v27 = vrot.slane %v2360_v2, 6  ;;  %v2368_v16 = vrot.slane %v2366_v36, 5  ;;  %v23252_v13 = vshrl.u32 %v23251_v12, 16  ;;  %v2083_v47 = vld [vmem:[#allocation2 + $0xa4] sm:$0x3] }
 0x107   : > { %14359 = vmatmul.mubr.msk.bf16.gmra.mrb[24].mxu0 %vm1351_vm8, %v23250_v21  ;;  %v23255_v0 = vcombine.low %v23253_v26, %v23254_v58  ;;  %v2371_v52 = vrot.slane %v2369_v22, 6  ;;  %v23256_v55 = vshll.u32 %v23251_v12, 16  ;;  %v2389_v59 = vshrl.u32 %v23257_v56, 16  ;;  %v2084_v22 = vld [vmem:[#allocation2 + $0xb0] sm:$0x3]  ;;  %v23262_v21 = vld [vmem:[#allocation19_spill] sm:$0xff] }
 0x108   : > { %v2374_v41 = vrot.slane %v23252_v13, 5  ;;  %v2392_v9 = vshll.u32 %v23257_v56, 16  ;;  %v17153_v49 = vsel %vm16922_vm5, %v2309_v44, %v2317_v6  ;;  %v17162_v17 = vrot.slane %v2349_v1, 4  ;;  %v23259_v44 = vld [vmem:[#allocation13_spill] sm:$0xff] }
 0x109   : > { %14362 = vmatprep.mubr.msk.bf16.mxu0 %vm1351_vm8, %v23255_v0  ;;  %v2375_v45 = vrot.slane %v23256_v55, 6  ;;  %v2412_v60 = vshrl.u32 %v23258_v11, 16  ;;  %v2415_v48 = vshll.u32 %v23258_v11, 16  ;;  %v2380_v57 = vshrl.u32 %v2082_v38, 16 }
 0x10a   : > { %v2383_v14 = vshll.u32 %v2082_v38, 16  ;;  %v2372_v20 = vor.u32 %v2371_v52, %v2368_v16  ;;  %v2391_v30 = vrot.slane %v2389_v59, 5  ;;  %v2394_v36 = vrot.slane %v2392_v9, 6  ;;  %v2085_v16 = vld [vmem:[#allocation2 + $0xbc] sm:$0x3] }
 0x10b   : > { %v17169_v2 = vor.u32 %v2375_v45, %v2374_v41  ;;  %v23260_v6 = vshrl.u32 %v23259_v44, 16  ;;  %v23261_v15 = vshll.u32 %v23259_v44, 16  ;;  %v2435_v12 = vshrl.u32 %v23262_v21, 16  ;;  %v23263_v41 = vld [vmem:[#allocation23_spill] sm:$0xff]  ;;  %v23264_v52 = vld [vmem:[#allocation25_spill] sm:$0xff]  ;;  %v23266_v45 = vld [vmem:[#allocation14_spill] sm:$0xff] }
 0x10c   : > { %v2438_v13 = vshll.u32 %v23262_v21, 16  ;;  %v2403_v26 = vshrl.u32 %v2083_v47, 16  ;;  %v2406_v58 = vshll.u32 %v2083_v47, 16  ;;  %v2414_v0 = vrot.slane %v2412_v60, 5  ;;  %v23269_v21 = vld [vmem:[#allocation17_spill] sm:$0xff] }
 0x10d   : > { %v2397_v1 = vrot.slane %v23260_v6, 5  ;;  %v2398_v35 = vrot.slane %v23261_v15, 6  ;;  %v2417_v38 = vrot.slane %v2415_v48, 6  ;;  %v23265_v55 = vcombine.low %v23263_v41, %v23264_v52 }
 0x10e   : > { %v23267_v56 = vshrl.u32 %v23266_v45, 16  ;;  %v23268_v9 = vshll.u32 %v23266_v45, 16  ;;  %v2426_v44 = vshrl.u32 %v2084_v22, 16  ;;  %v2429_v6 = vshll.u32 %v2084_v22, 16 }
 0x10f   : > { %14363 = vmatmul.mubr.msk.bf16.gmra.mrb[28].mxu0 %vm1351_vm8, %v23265_v55  ;;  %v2382_v47 = vrot.slane %v2380_v57, 5  ;;  %v2385_v60 = vrot.slane %v2383_v14, 6  ;;  %v2437_v48 = vrot.slane %v2435_v12, 5  ;;  %v2440_v15 = vrot.slane %v2438_v13, 6 }
 0x110   : > { %v2420_v59 = vrot.slane %v23267_v56, 5  ;;  %v2421_v11 = vrot.slane %v23268_v9, 6  ;;  %14368 = vmatprep.mubr.msk.bf16.mxu0 %vm1351_vm8, %v17015_v62  ;;  %v23270_v23 = vshrl.u32 %v23269_v21, 16  ;;  %v23271_v52 = vshll.u32 %v23269_v21, 16 }
 0x111   : > { %v2449_v42 = vshrl.u32 %v2085_v16, 16  ;;  %v2452_v56 = vshll.u32 %v2085_v16, 16  ;;  %v2395_v45 = vor.u32 %v2394_v36, %v2391_v30  ;;  %v17191_v9 = vor.u32 %v2398_v35, %v2397_v1 }
 0x112   : > { %v2443_v41 = vrot.slane %v23270_v23, 5  ;;  %v2444_v55 = vrot.slane %v23271_v52, 6  ;;  %v2405_v22 = vrot.slane %v2403_v26, 5  ;;  %v2408_v18 = vrot.slane %v2406_v58, 6  ;;  %v17200_v26 = vld [vmem:[%s22688_s1 + $0x8] sm:$0x3] }
 0x113   : > { %v2418_v34 = vor.u32 %v2417_v38, %v2414_v0  ;;  %v2422_v62 = vor.u32 %v2421_v11, %v2420_v59  ;;  %v2428_v57 = vrot.slane %v2426_v44, 5  ;;  %v2431_v14 = vrot.slane %v2429_v6, 6 }
 0x114   : > { %v2373_v12 = vrot.slane %v2372_v20, 4  ;;  %v2441_v13 = vor.u32 %v2440_v15, %v2437_v48  ;;  %v2800_v23 = vshrl.u32 %v2751_v8, 16  ;;  %v2803_v51 = vshll.u32 %v2751_v8, 16 }
 0x115   : > { %v2378_v21 = vrot.slane %v17169_v2, 4  ;;  %v2445_v52 = vor.u32 %v2444_v55, %v2443_v41  ;;  %v2451_v16 = vrot.slane %v2449_v42, 5  ;;  %v2454_v46 = vrot.slane %v2452_v56, 6  ;;  %v23272_v42 = vld [vmem:[#allocation26_spill] sm:$0xff]  ;;  %v17239_v41 = vld [vmem:[#allocation2 + $0x1c] sm:$0xf] }
 0x116   : > { %v2386_v30 = vor.u32 %v2385_v60, %v2382_v47  ;;  %v2396_v36 = vrot.slane %v2395_v45, 4  ;;  %v2401_v1 = vrot.slane %v17191_v9, 4  ;;  %v2409_v35 = vor.u32 %v2408_v18, %v2405_v22  ;;  %v17219_v60 = vld [vmem:[#allocation2 + $0x14] sm:$0x1]  ;;  %23277 = vst [vmem:[#allocation9_spill] sm:$0xff] %v17239_v41 }
 0x117   : > { %14369 = vmatmul.mubr.msk.bf16.vlgmr.msra.gmra.mrb[0].mxu0 %vm1351_vm8, %v17017_v4  ;;  %v2419_v20 = vrot.slane %v2418_v34, 4  ;;  %v2424_v8 = vrot.slane %v2422_v62, 4  ;;  %v2432_v58 = vor.u32 %v2431_v14, %v2428_v57  ;;  %v22783_v0 = vshll.u32 %v17193_v5, 16 }
 0x118   : > { %14401 = vmatpush3.bf16.msra.mxu0 %v23272_v42  ;;  %14372 = vmatprep.mubr.msk.bf16.mxu0 %vm1351_vm8, %v17019_v25  ;;  %v23273_v18 = vor.u32 %v17125_v40, %v17123_v3  ;;  %v23274_v38 = vrot.slane %v17121_v32, 4  ;;  %v2442_v11 = vrot.slane %v2441_v13, 4  ;;  %v2802_v4 = vrot.slane %v2800_v23, 4  ;;  %v2754_v3 = vld [vmem:[#allocation2 + $0x18] sm:$0xf] }
 0x119   : > { %v2805_v34 = vrot.slane %v2803_v51, 5  ;;  %v2354_v44 = vsel %vm16922_vm5, %v17162_v17, %v17127_v28  ;;  %v2447_v6 = vrot.slane %v2445_v52, 4  ;;  %v2455_v47 = vor.u32 %v2454_v46, %v2451_v16  ;;  %15590 = vmatprep.subr.msk.bf16.mxu0 %vm1400_vm0, %v17200_v26  ;;  %v2763_v42 = vld [vmem:[#allocation2 + $0x3c] sm:$0xf] }
 0x11a   : > { %v2341_v59 = vsel %vm16922_vm5, %v23274_v38, %v23273_v18  ;;  %v22786_v25 = vshrl.u32 %v17193_v5, 16  ;;  %v23275_v40 = vor.u32 %v17135_v27, %v17133_v10  ;;  %v23276_v51 = vrot.slane %v17127_v28, 4 }
 0x11b   : > { %v2377_v46 = vsel %vm16922_vm5, %v2373_v12, %v17169_v2  ;;  %v2387_v17 = vsel %vm16922_vm5, %v2378_v21, %v2386_v30  ;;  %v2400_v15 = vsel %vm16922_vm5, %v2396_v36, %v17191_v9  ;;  %v2410_v10 = vsel %vm16922_vm5, %v2401_v1, %v2409_v35  ;;  %v2760_v30 = vld [vmem:[#allocation2 + $0x30] sm:$0xf]  ;;  %v17312_v1 = vld [vmem:[#allocation2 + $0x34] sm:$0xf] }
 0x11c   : > { %v2364_v48 = vsel %vm16922_vm5, %v23276_v51, %v23275_v40  ;;  %v2423_v28 = vsel %vm16922_vm5, %v2419_v20, %v2422_v62  ;;  %v2433_v27 = vsel %vm16922_vm5, %v2424_v8, %v2432_v58  ;;  %v17249_v2 = vrot.slane %v22783_v0, 5  ;;  %23283 = vst [vmem:[#allocation11_spill] sm:$0xff] %v17312_v1 }
 0x11d   : > { %v2446_v55 = vsel %vm16922_vm5, %v2442_v11, %v2445_v52  ;;  %v2806_v56 = vor.u32 %v2805_v34, %v2802_v4  ;;  %v2819_v45 = vshll.u32 %v17219_v60, 16  ;;  %v2824_v9 = vshrl.u32 %v2754_v3, 16  ;;  %v17322_v11 = vld [vmem:[#allocation2 + $0x40] sm:$0xf] }
 0x11e   : > { %v2456_v22 = vsel %vm16922_vm5, %v2447_v6, %v2455_v47  ;;  %v2815_v62 = vrot.slane %v22786_v25, 4  ;;  %v2827_v57 = vshll.u32 %v2754_v3, 16  ;;  %v22773_v14 = vshll.u32 %v17239_v41, 16  ;;  %23284 = vst [vmem:[#allocation8_spill] sm:$0xff] %v17322_v11 }
 0x11f   : > { %v23278_v12 = vsel %vm16922_vm5, %v17064_v61, %v17058_v19  ;;  %v23279_v23 = vsel %vm16922_vm5, %v17085_v50, %v17066_v29  ;;  %v23280_v52 = vsel %vm16922_vm5, %v17115_v43, %v17092_v33  ;;  %v23281_v19 = vsel %vm16922_vm5, %v17119_v31, %v17121_v32  ;;  %14373 = vmatmul.mubr.msk.bf16.gmra.mrb[4].mxu0 %vm1351_vm8, %v17021_v39  ;;  %v17300_v33 = vld [vmem:[#allocation2 + $0x20] sm:$0x1]  ;;  %v2757_v43 = vld [vmem:[#allocation2 + $0x24] sm:$0xf] }
 0x120   : > { %v17265_v13 = vcombine.low %v23278_v12, %v17104_v37  ;;  %v17273_v21 = vcombine.low %v23279_v23, %v17113_v54  ;;  %v17281_v16 = vcombine.low %v23280_v52, %v17153_v49  ;;  %v17288_v61 = vcombine.low %v23281_v19, %v2341_v59  ;;  %v17302_v49 = vld [vmem:[#allocation2 + $0x28] sm:$0xf]  ;;  %14376 = vmatprep.mubr.msk.bf16.mxu0 %vm1351_vm8, %v17052_v7  ;;  %v17351_v23 = vld [vmem:[#allocation2 + $0x4c] sm:$0xf]  ;;  %v17355_v52 = vld [vmem:[#allocation2 + $0x38] sm:$0x1] }
 0x121   : > { %v17292_v29 = vcombine.low %v2354_v44, %v2364_v48  ;;  %v17294_v50 = vcombine.low %v2377_v46, %v2387_v17  ;;  %v17296_v37 = vcombine.low %v2400_v15, %v2410_v10  ;;  %v17298_v54 = vcombine.low %v2423_v28, %v2433_v27  ;;  %23282 = vst [vmem:[#allocation5_spill] sm:$0xff] %v17302_v49  ;;  %v2766_v28 = vld [vmem:[#allocation2 + $0x48] sm:$0xf]  ;;  %v17335_v27 = vld [vmem:[#allocation2 + $0x2c] sm:$0x1] }
 0x122   : > { %v17306_v31 = vcombine.low %v2446_v55, %v2456_v22  ;;  %v17308_v39 = vrot.slane %v2806_v56, 4  ;;  %v17310_v32 = vrot.slane %v2819_v45, 5  ;;  %v2826_v36 = vrot.slane %v2824_v9, 4  ;;  %23286 = vst [vmem:[#allocation15_spill] sm:$0xff] %v17351_v23 }
 0x123   : > { %v2816_v35 = vor.u32 %v2815_v62, %v17249_v2  ;;  %v2829_v20 = vrot.slane %v2827_v57, 5  ;;  %v17317_v8 = vrot.slane %v22773_v14, 5  ;;  %v22774_v58 = vshrl.u32 %v17239_v41, 16 }
 0x124   : > { %v2848_v7 = vshrl.u32 %v2757_v43, 16  ;;  %v2851_v18 = vshll.u32 %v2757_v43, 16  ;;  %v22771_v38 = vshll.u32 %v17302_v49, 16  ;;  %v22772_v59 = vshrl.u32 %v17302_v49, 16 }
 0x125   : > { %v2872_v4 = vshrl.u32 %v2760_v30, 16  ;;  %v2875_v34 = vshll.u32 %v2760_v30, 16  ;;  %v22768_v44 = vshll.u32 %v17312_v1, 16  ;;  %v22770_v6 = vshrl.u32 %v17312_v1, 16 }
 0x126   : > { %v2812_v3 = vsel %vm16091_vm7, %v17308_v39, %v17249_v2  ;;  %v2843_v40 = vshll.u32 %v17300_v33, 16  ;;  %v2896_v51 = vshrl.u32 %v2763_v42, 16  ;;  %v2899_v48 = vshll.u32 %v2763_v42, 16 }
 0x127   : > { %v2830_v46 = vor.u32 %v2829_v20, %v2826_v36  ;;  %v2839_v17 = vrot.slane %v22774_v58, 4  ;;  %v22767_v15 = vshll.u32 %v17322_v11, 16  ;;  %v22769_v10 = vshrl.u32 %v17322_v11, 16  ;;  %14377 = vmatmul.mubr.msk.bf16.gmra.mrb[8].mxu0 %vm1351_vm8, %v17054_v63 }
 0x128   : > { %v2850_v55 = vrot.slane %v2848_v7, 4  ;;  %v2853_v56 = vrot.slane %v2851_v18, 5  ;;  %v17339_v45 = vrot.slane %v22771_v38, 5  ;;  %v2863_v9 = vrot.slane %v22772_v59, 4  ;;  %14380 = vmatprep.mubr.msk.bf16.mxu0 %vm1351_vm8, %v17072_v53 }
 0x129   : > { %v2874_v22 = vrot.slane %v2872_v4, 4  ;;  %v2877_v62 = vrot.slane %v2875_v34, 5  ;;  %v17347_v57 = vrot.slane %v22768_v44, 5  ;;  %v2887_v12 = vrot.slane %v22770_v6, 4  ;;  %v17369_v4 = vld [vmem:[#allocation2 + $0x44] sm:$0x1] }
 0x12a   : > { %v2898_v19 = vrot.slane %v2896_v51, 4  ;;  %v2901_v43 = vrot.slane %v2899_v48, 5  ;;  %v2920_v30 = vshrl.u32 %v2766_v28, 16  ;;  %v2923_v63 = vshll.u32 %v2766_v28, 16 }
 0x12b   : > { %v17357_v36 = vrot.slane %v2816_v35, 4  ;;  %v2840_v20 = vor.u32 %v2839_v17, %v17317_v8  ;;  %v17362_v42 = vrot.slane %v22767_v15, 5  ;;  %v2911_v7 = vrot.slane %v22769_v10, 4  ;;  %v2769_v15 = vld [vmem:[#allocation2 + $0x54] sm:$0xf] }
 0x12c   : > { %v17366_v18 = vrot.slane %v2843_v40, 5  ;;  %v2867_v53 = vshll.u32 %v17335_v27, 16  ;;  %v22779_v34 = vshll.u32 %v17351_v23, 16  ;;  %v22782_v35 = vshrl.u32 %v17351_v23, 16 }
 0x12d   : > { %v2854_v51 = vor.u32 %v2853_v56, %v2850_v55  ;;  %v2864_v48 = vor.u32 %v2863_v9, %v17339_v45  ;;  %v2878_v17 = vor.u32 %v2877_v62, %v2874_v22  ;;  %v2891_v28 = vshll.u32 %v17355_v52, 16 }
 0x12e   : > { %v2888_v44 = vor.u32 %v2887_v12, %v17347_v57  ;;  %v2902_v10 = vor.u32 %v2901_v43, %v2898_v19  ;;  %v2922_v40 = vrot.slane %v2920_v30, 4  ;;  %v2925_v6 = vrot.slane %v2923_v63, 5  ;;  %v17386_v43 = vld [vmem:[#allocation2 + $0x50] sm:$0x1] }
 0x12f   : > { %v2831_v38 = vrot.slane %v2830_v46, 4  ;;  %v2841_v59 = vrot.slane %v2840_v20, 4  ;;  %v2912_v14 = vor.u32 %v2911_v7, %v17362_v42  ;;  %v2915_v58 = vshll.u32 %v17369_v4, 16  ;;  %14381 = vmatmul.mubr.msk.bf16.gmra.mrb[12].mxu0 %vm1351_vm8, %v17265_v13 }
 0x130   : > { %v17380_v55 = vrot.slane %v22779_v34, 5  ;;  %v2935_v56 = vrot.slane %v22782_v35, 4  ;;  %v2944_v9 = vshrl.u32 %v2769_v15, 16  ;;  %v2947_v22 = vshll.u32 %v2769_v15, 16  ;;  %14384 = vmatprep.mubr.msk.bf16.mxu0 %vm1351_vm8, %v17273_v21  ;;  %v2784_v35 = vld [vmem:[#allocation2 + $0x90] sm:$0xf] }
 0x131   : > { %v2855_v62 = vrot.slane %v2854_v51, 4  ;;  %v2865_v12 = vrot.slane %v2864_v48, 4  ;;  %v2869_v46 = vrot.slane %v2867_v53, 5  ;;  %v2879_v19 = vrot.slane %v2878_v17, 4  ;;  %v17397_v48 = vld [vmem:[#allocation2 + $0x58] sm:$0xf] }
 0x132   : > { %v2889_v30 = vrot.slane %v2888_v44, 4  ;;  %v2893_v63 = vrot.slane %v2891_v28, 5  ;;  %v2903_v20 = vrot.slane %v2902_v10, 4  ;;  %v2926_v7 = vor.u32 %v2925_v6, %v2922_v40  ;;  %23287 = vst [vmem:[#allocation20_spill] sm:$0xff] %v17397_v48  ;;  %v2772_v17 = vld [vmem:[#allocation2 + $0x60] sm:$0xf] }
 0x133   : > { %v2822_v15 = vsel %vm16091_vm7, %v17357_v36, %v17310_v32  ;;  %v2836_v13 = vsel %vm16091_vm7, %v2831_v38, %v17317_v8  ;;  %v2913_v53 = vrot.slane %v2912_v14, 4  ;;  %v2917_v51 = vrot.slane %v2915_v58, 5  ;;  %v17401_v10 = vld [vmem:[#allocation2 + $0x5c] sm:$0x1] }
 0x134   : > { %v2936_v21 = vor.u32 %v2935_v56, %v17380_v55  ;;  %v2939_v44 = vshll.u32 %v17386_v43, 16  ;;  %v2946_v6 = vrot.slane %v2944_v9, 4  ;;  %v2949_v28 = vrot.slane %v2947_v22, 5 }
 0x135   : > { %v2846_v32 = vsel %vm16091_vm7, %v2841_v59, %v17366_v18  ;;  %v2860_v14 = vsel %vm16091_vm7, %v2855_v62, %v17339_v45  ;;  %v2870_v8 = vsel %vm16091_vm7, %v2865_v12, %v2869_v46  ;;  %v2884_v58 = vsel %vm16091_vm7, %v2879_v19, %v17347_v57  ;;  %v17424_v12 = vld [vmem:[#allocation2 + $0x64] sm:$0xf] }
 0x136   : > { %v2894_v38 = vsel %vm16091_vm7, %v2889_v30, %v2893_v63  ;;  %v2908_v36 = vsel %vm16091_vm7, %v2903_v20, %v17362_v42  ;;  %v2927_v40 = vrot.slane %v2926_v7, 4  ;;  %v22775_v59 = vshll.u32 %v17397_v48, 16  ;;  %23288 = vst [vmem:[#allocation21_spill] sm:$0xff] %v17424_v12  ;;  %v2775_v20 = vld [vmem:[#allocation2 + $0x6c] sm:$0xf] }
 0x137   : > { %v2918_v45 = vsel %vm16091_vm7, %v2913_v53, %v2917_v51  ;;  %v22778_v18 = vshrl.u32 %v17397_v48, 16  ;;  %v2963_v56 = vshll.u32 %v17401_v10, 16  ;;  %v2968_v9 = vshrl.u32 %v2772_v17, 16  ;;  %14385 = vmatmul.mubr.msk.bf16.gmra.mrb[16].mxu0 %vm1351_vm8, %v17281_v16  ;;  %v17463_v51 = vld [vmem:[#allocation2 + $0x7c] sm:$0xf] }
 0x138   : > { %v2937_v22 = vrot.slane %v2936_v21, 4  ;;  %v2941_v57 = vrot.slane %v2939_v44, 5  ;;  %v2950_v62 = vor.u32 %v2949_v28, %v2946_v6  ;;  %v2971_v46 = vshll.u32 %v2772_v17, 16  ;;  %14388 = vmatprep.mubr.msk.bf16.mxu0 %vm1351_vm8, %v17288_v61  ;;  %23290 = vst [vmem:[#allocation22_spill] sm:$0xff] %v17463_v51  ;;  %v2781_v6 = vld [vmem:[#allocation2 + $0x84] sm:$0xf] }
 0x139   : > { %v17433_v42 = vcombine.low %v2812_v3, %v2822_v15  ;;  %v17435_v19 = vcombine.low %v2836_v13, %v2846_v32  ;;  %v17439_v30 = vsel %vm1400_vm0, %v17200_v26, 0  ;;  %v17441_v63 = vcombine.low %v2860_v14, %v2870_v8  ;;  %v17456_v26 = vld [vmem:[#allocation2 + $0x70] sm:$0xf]  ;;  %v2778_v3 = vld [vmem:[#allocation2 + $0x78] sm:$0xf] }
 0x13a   : > { %v17445_v16 = vcombine.low %v2884_v58, %v2894_v38  ;;  %v17447_v7 = vcombine.low %v2908_v36, %v2918_v45  ;;  %v2932_v2 = vsel %vm16091_vm7, %v2927_v40, %v17380_v55  ;;  %v17454_v39 = vrot.slane %v22775_v59, 5  ;;  %23289 = vst [vmem:[#allocation12_spill] sm:$0xff] %v17456_v26  ;;  %v17472_v58 = vld [vmem:[#allocation2 + $0x88] sm:$0xf] }
 0x13b   : > { %v2959_v15 = vrot.slane %v22778_v18, 4  ;;  %v17460_v13 = vrot.slane %v2963_v56, 5  ;;  %v2970_v61 = vrot.slane %v2968_v9, 4  ;;  %v22776_v53 = vshll.u32 %v17424_v12, 16  ;;  %23291 = vst [vmem:[#allocation24_spill] sm:$0xff] %v17472_v58 }
 0x13c   : > { %v2942_v55 = vsel %vm16091_vm7, %v2937_v22, %v2941_v57  ;;  %v17467_v17 = vrot.slane %v2950_v62, 4  ;;  %v2973_v21 = vrot.slane %v2971_v46, 5  ;;  %v22777_v44 = vshrl.u32 %v17424_v12, 16  ;;  %v17483_v46 = vld [vmem:[#allocation2 + $0x68] sm:$0x1] }
 0x13d   : > { %v2992_v28 = vshrl.u32 %v2775_v20, 16  ;;  %v2995_v32 = vshll.u32 %v2775_v20, 16  ;;  %v22780_v14 = vshll.u32 %v17456_v26, 16  ;;  %v22781_v8 = vshrl.u32 %v17456_v26, 16 }
 0x13e   : > { %v3016_v38 = vshrl.u32 %v2778_v3, 16  ;;  %v3019_v36 = vshll.u32 %v2778_v3, 16  ;;  %v22784_v40 = vshll.u32 %v17463_v51, 16  ;;  %v22785_v45 = vshrl.u32 %v17463_v51, 16  ;;  %v17539_v51 = vld [vmem:[#allocation2 + $0x98] sm:$0x1] }
 0x13f   : > { %v17476_v56 = vcombine.low %v2932_v2, %v2942_v55  ;;  %v17480_v9 = vrot.slane %v22776_v53, 5  ;;  %v3040_v22 = vshrl.u32 %v2781_v6, 16  ;;  %v3043_v57 = vshll.u32 %v2781_v6, 16  ;;  %14389 = vmatmul.mubr.msk.bf16.gmra.mrb[20].mxu0 %vm1351_vm8, %v17292_v29  ;;  %v17491_v2 = vld [vmem:[#allocation2 + $0x74] sm:$0x1] }
 0x140   : > { %v2960_v62 = vor.u32 %v2959_v15, %v17454_v39  ;;  %v2983_v20 = vrot.slane %v22777_v44, 4  ;;  %v22789_v3 = vshll.u32 %v17472_v58, 16  ;;  %v22792_v59 = vshrl.u32 %v17472_v58, 16  ;;  %23293 = vst [vmem:[#allocation18_spill] sm:$0xff] %v17491_v2  ;;  %14392 = vmatprep.mubr.msk.bf16.mxu0 %vm1351_vm8, %v17294_v50  ;;  %v17501_v44 = vld [vmem:[#allocation2 + $0x80] sm:$0x1] }
 0x141   : > { %23292 = vst [vmem:[#allocation16_spill] sm:$0xff] %v17476_v56  ;;  %v2994_v55 = vrot.slane %v2992_v28, 4  ;;  %v2997_v53 = vrot.slane %v2995_v32, 5  ;;  %v17495_v6 = vrot.slane %v22780_v14, 5  ;;  %v3007_v15 = vrot.slane %v22781_v8, 4  ;;  %23294 = vst [vmem:[#allocation13_spill] sm:$0xff] %v17501_v44 }
 0x142   : > { %v3018_v18 = vrot.slane %v3016_v38, 4  ;;  %v3021_v34 = vrot.slane %v3019_v36, 5  ;;  %v17505_v29 = vrot.slane %v22784_v40, 5  ;;  %v3031_v28 = vrot.slane %v22785_v45, 4  ;;  %v17522_v45 = vld [vmem:[#allocation2 + $0x94] sm:$0xf] }
 0x143   : > { %v2987_v14 = vshll.u32 %v17483_v46, 16  ;;  %v3042_v8 = vrot.slane %v3040_v22, 4  ;;  %v3045_v50 = vrot.slane %v3043_v57, 5  ;;  %v17514_v0 = vrot.slane %v2960_v62, 4  ;;  %23295 = vst [vmem:[#allocation19_spill] sm:$0xff] %v17522_v45 }
 0x144   : > { %v2974_v38 = vor.u32 %v2973_v21, %v2970_v61  ;;  %v17518_v36 = vrot.slane %v22789_v3, 5  ;;  %v3055_v40 = vrot.slane %v22792_v59, 4  ;;  %v2984_v25 = vor.u32 %v2983_v20, %v17480_v9  ;;  %v17527_v57 = vld [vmem:[#allocation2 + $0x8c] sm:$0x1] }
 0x145   : > { %v2998_v32 = vor.u32 %v2997_v53, %v2994_v55  ;;  %v3008_v24 = vor.u32 %v3007_v15, %v17495_v6  ;;  %v3011_v22 = vshll.u32 %v17491_v2, 16  ;;  %23296 = vst [vmem:[#allocation23_spill] sm:$0xff] %v17527_v57  ;;  %v3022_v62 = vor.u32 %v3021_v34, %v3018_v18  ;;  %v2787_v2 = vld [vmem:[#allocation2 + $0x9c] sm:$0xf] }
 0x146   : > { %v3032_v61 = vor.u32 %v3031_v28, %v17505_v29  ;;  %v3035_v21 = vshll.u32 %v17501_v44, 16  ;;  %v3064_v3 = vshrl.u32 %v2784_v35, 16  ;;  %v3046_v56 = vor.u32 %v3045_v50, %v3042_v8 }
 0x147   : > { %v3067_v58 = vshll.u32 %v2784_v35, 16  ;;  %v22800_v59 = vshll.u32 %v17522_v45, 16  ;;  %v2975_v20 = vrot.slane %v2974_v38, 4  ;;  %v2989_v53 = vrot.slane %v2987_v14, 5  ;;  %14393 = vmatmul.mubr.msk.bf16.gmra.mrb[24].mxu0 %vm1351_vm8, %v17296_v37 }
 0x148   : > { %v3056_v55 = vor.u32 %v3055_v40, %v17518_v36  ;;  %v3059_v15 = vshll.u32 %v17527_v57, 16  ;;  %v2985_v34 = vrot.slane %v2984_v25, 4  ;;  %v2999_v18 = vrot.slane %v2998_v32, 4  ;;  %14396 = vmatprep.mubr.msk.bf16.mxu0 %vm1351_vm8, %v17298_v54 }
 0x149   : > { %v3009_v28 = vrot.slane %v3008_v24, 4  ;;  %v3013_v44 = vrot.slane %v3011_v22, 5  ;;  %v3023_v35 = vrot.slane %v3022_v62, 4  ;;  %v3033_v8 = vrot.slane %v3032_v61, 4  ;;  %v17547_v22 = vld [vmem:[#allocation2 + $0xa0] sm:$0xf] }
 0x14a   : > { %v3037_v50 = vrot.slane %v3035_v21, 5  ;;  %v3066_v38 = vrot.slane %v3064_v3, 4  ;;  %v3047_v14 = vrot.slane %v3046_v56, 4  ;;  %v3069_v40 = vrot.slane %v3067_v58, 5  ;;  %23298 = vst [vmem:[#allocation25_spill] sm:$0xff] %v17547_v22 }
 0x14b   : > { %v17543_v57 = vrot.slane %v22800_v59, 5  ;;  %v23297_v25 = vshrl.u32 %v17522_v45, 16  ;;  %v3057_v37 = vrot.slane %v3056_v55, 4  ;;  %v3061_v32 = vrot.slane %v3059_v15, 5  ;;  %v2790_v55 = vld [vmem:[#allocation2 + $0xa8] sm:$0xf] }
 0x14c   : > { %v3088_v54 = vshrl.u32 %v2787_v2, 16  ;;  %v3091_v62 = vshll.u32 %v2787_v2, 16  ;;  %v2966_v56 = vsel %vm16091_vm7, %v17514_v0, %v17460_v13  ;;  %v2980_v58 = vsel %vm16091_vm7, %v2975_v20, %v17480_v9  ;;  %v17569_v9 = vld [vmem:[#allocation2 + $0xa4] sm:$0x1]  ;;  %v17659_v59 = vld [vmem:[#allocation2 + $0x30] sm:$0xe] }
 0x14d   : > { %v3079_v24 = vrot.slane %v23297_v25, 4  ;;  %v2990_v3 = vsel %vm16091_vm7, %v2985_v34, %v2989_v53  ;;  %v3004_v61 = vsel %vm16091_vm7, %v2999_v18, %v17495_v6  ;;  %v3014_v21 = vsel %vm16091_vm7, %v3009_v28, %v3013_v44  ;;  %23303 = vst [vmem:[#allocation26_spill] sm:$0xff] %v17659_v59 }
 0x14e   : > { %v3028_v2 = vsel %vm16091_vm7, %v3023_v35, %v17505_v29  ;;  %v3038_v0 = vsel %vm16091_vm7, %v3033_v8, %v3037_v50  ;;  %v3083_v13 = vshll.u32 %v17539_v51, 16  ;;  %v3052_v20 = vsel %vm16091_vm7, %v3047_v14, %v17518_v36  ;;  %v17596_v14 = vld [vmem:[%s16051_s11 + $0xf0] sm:$0xff] }
 0x14f   : > { %v3070_v6 = vor.u32 %v3069_v40, %v3066_v38  ;;  %v3080_v44 = vor.u32 %v3079_v24, %v17543_v57  ;;  %v22798_v53 = vshll.u32 %v17547_v22, 16  ;;  %v3062_v29 = vsel %vm16091_vm7, %v3057_v37, %v3061_v32  ;;  %14397 = vmatmul.mubr.msk.bf16.gmra.mrb[28].mxu0 %vm1351_vm8, %v17306_v31  ;;  %v17593_v38 = vld [vmem:[#allocation2 + $0xac] sm:$0xf]  ;;  %v17599_v40 = vld [vmem:[%s16051_s11 + $0xf8] sm:$0xff] }
 0x150   : > { %v3090_v15 = vrot.slane %v3088_v54, 4  ;;  %v3093_v34 = vrot.slane %v3091_v62, 5  ;;  %v22799_v18 = vshrl.u32 %v17547_v22, 16  ;;  %v23299_v36 = vsel %vm16091_vm7, %v17467_v17, %v17454_v39  ;;  %23300 = vst [vmem:[#allocation14_spill] sm:$0xff] %v17593_v38  ;;  %14402 = vmatprep.mubr.msk.bf16.mxu0 %vm1351_vm8, %v17433_v42  ;;  %v17607_v24 = vld [vmem:[#allocation2 + $0xc] sm:$0xe] }
 0x151   : > { %v17586_v28 = vcombine.low %v23299_v36, %v2966_v56  ;;  %v17588_v35 = vcombine.low %v2980_v58, %v2990_v3  ;;  %v17590_v8 = vcombine.low %v3004_v61, %v3014_v21  ;;  %v3107_v50 = vshll.u32 %v17569_v9, 16  ;;  %v17623_v58 = vld [vmem:[#allocation2 + $0xb4] sm:$0xf] }
 0x152   : > { %v17603_v31 = vcombine.low %v3028_v2, %v3038_v0  ;;  %v17605_v39 = vrot.slane %v3083_v13, 5  ;;  %v3112_v17 = vshrl.u32 %v2790_v55, 16  ;;  %v3115_v25 = vshll.u32 %v2790_v55, 16  ;;  %v17688_v55 = vld [vmem:[#allocation2 + $0x48] sm:$0xe] }
 0x153   : > { %v17609_v37 = vcombine.low %v3052_v20, %v3062_v29  ;;  %v17611_v32 = vrot.slane %v3070_v6, 4  ;;  %v17613_v54 = vrot.slane %v3080_v44, 4  ;;  %v17617_v62 = vrot.slane %v22798_v53, 5  ;;  %v17632_v20 = vld [vmem:[#allocation2 + $0x18] sm:$0xe]  ;;  %23305 = vst [vmem:[#allocation28_spill] sm:$0xff] %v17688_v55 }
 0x154   : > { %v3094_v56 = vor.u32 %v3093_v34, %v3090_v15  ;;  %v17621_v42 = vrot.slane %v22799_v18, 4  ;;  %v13102_v3 = vmul.f32 -1.442695, %v17596_v14  ;;  %v13103_v61 = vmul.f32 -1.442695, %v17599_v40 }
 0x155   : > { %v17627_v21 = vrot.slane %v3107_v50, 5  ;;  %v13284_v0 = vrot.slane %v17607_v24, 9  ;;  %v3543_v13 = vrot.slane %v17193_v5, 5  ;;  %v17634_v6 = vrot.slane %v3112_v17, 4  ;;  %v17639_v29 = vld [vmem:[#allocation2 + $0x24] sm:$0xe] }
 0x156   : > { %v17636_v44 = vrot.slane %v3115_v25, 5  ;;  %15735 = vpow2.f32 %v13102_v3  ;;  %v17641_v15 = vld [vmem:[#allocation2 + $0xb8] sm:$0xf]  ;;  %v3546_v53 = vrot.slane %v17219_v60, 5  ;;  %v17651_v17 = vld [vmem:[%s22688_s1 + $0xa] sm:$0x3] }
 0x157   : > { %23301 = vst [vmem:[#allocation17_spill] sm:$0xff] %v17641_v15  ;;  %15737 = vpow2.f32 %v13103_v61  ;;  %v17645_v36 = vsel %vm16402_vm15, %v13284_v0, %v3543_v13  ;;  %v3545_v50 = vrot.slane %v3543_v13, 4  ;;  %v17653_v25 = vrot.slane %v3094_v56, 4  ;;  %14403 = vmatmul.mubr.msk.bf16.vlgmr.msra.gmra.mrb[0].mxu0 %vm1351_vm8, %v17435_v19  ;;  %v17670_v3 = vld [vmem:[#allocation2 + $0x3c] sm:$0xe] }
 0x158   : > { %v13285_v18 = vrot.slane %v17632_v20, 9  ;;  %v3550_v61 = vrot.slane %v17239_v41, 5  ;;  %v3553_v56 = vrot.slane %v17300_v33, 5  ;;  %v13286_v13 = vrot.slane %v17639_v29, 9  ;;  %23304 = vst [vmem:[#allocation27_spill] sm:$0xff] %v17670_v3  ;;  %14435 = vmatpush3.bf16.msra.mxu0 %v17439_v30  ;;  %14406 = vmatprep.mubr.msk.bf16.mxu0 %vm1351_vm8, %v17441_v63 }
 0x159   : > { %v17666_v0 = vsel %vm16402_vm15, %v3545_v50, %v3546_v53  ;;  %15591 = vmatprep.subr.msk.bf16.mxu0 %vm1400_vm0, %v17651_v17  ;;  %v3557_v30 = vrot.slane %v17302_v49, 5  ;;  %v3560_v60 = vrot.slane %v17335_v27, 5  ;;  %v13287_v63 = vrot.slane %v17659_v59, 9  ;;  %v17704_v41 = vld [vmem:[#allocation2 + $0x54] sm:$0xe] }
 0x15a   : > { %v17680_v53 = vsel %vm16402_vm15, %v13285_v18, %v3550_v61  ;;  %v3552_v50 = vrot.slane %v3550_v61, 4  ;;  %v3564_v18 = vrot.slane %v17312_v1, 5  ;;  %v3567_v61 = vrot.slane %v17355_v52, 5  ;;  %23306 = vst [vmem:[#allocation29_spill] sm:$0xff] %v17704_v41 }
 0x15b   : > { %v13288_v33 = vrot.slane %v17670_v3, 9  ;;  %v17701_v27 = vsel %vm16402_vm15, %v13286_v13, %v3557_v30  ;;  %v3559_v49 = vrot.slane %v3557_v30, 4  ;;  %v3571_v59 = vrot.slane %v17322_v11, 5 }
 0x15c   : > { %v17692_v19 = vsel %vm16402_vm15, %v3552_v50, %v3553_v56  ;;  %v17708_v56 = vsel %vm16402_vm15, %v13287_v63, %v3564_v18  ;;  %v3566_v50 = vrot.slane %v3564_v18, 4  ;;  %v3574_v52 = vrot.slane %v17369_v4, 5 }
 0x15d   : > { %v13289_v3 = vrot.slane %v17688_v55, 9  ;;  %v17714_v2 = vsel %vm16402_vm15, %v3559_v49, %v3560_v60  ;;  %v17718_v13 = vsel %vm16402_vm15, %v13288_v33, %v3571_v59  ;;  %v3573_v30 = vrot.slane %v3571_v59, 4  ;;  %v17729_v60 = vld [vmem:[#allocation2 + $0x60] sm:$0xe] }
 0x15e   : > { %v3578_v11 = vrot.slane %v17351_v23, 5  ;;  %v17725_v4 = vsel %vm16402_vm15, %v3566_v50, %v3567_v61  ;;  %v3581_v18 = vrot.slane %v17386_v43, 5  ;;  %v13290_v49 = vrot.slane %v17704_v41, 9  ;;  %23307 = vst [vmem:[#allocation30_spill] sm:$0xff] %v17729_v60  ;;  %v17751_v23 = vld [vmem:[#allocation2 + $0x6c] sm:$0xe] }
 0x15f   : > { %14407 = vmatmul.mubr.msk.bf16.gmra.mrb[4].mxu0 %vm1351_vm8, %v17445_v16  ;;  %v17737_v63 = vsel %vm16402_vm15, %v3573_v30, %v3574_v52  ;;  %v3588_v33 = vrot.slane %v17401_v10, 5  ;;  %v13291_v52 = vrot.slane %v17729_v60, 9  ;;  %v3592_v30 = vrot.slane %v17424_v12, 5  ;;  %23308 = vst [vmem:[#allocation31_spill] sm:$0xff] %v17751_v23  ;;  %v17777_v60 = vld [vmem:[#allocation2 + $0x84] sm:$0xe] }
 0x160   : > { %v15736_v1 = vpop.eup %15735  ;;  %v17741_v61 = vsel %vm16402_vm15, %v13289_v3, %v3578_v11  ;;  %14410 = vmatprep.mubr.msk.bf16.mxu0 %vm1351_vm8, %v17447_v7  ;;  %v3580_v16 = vrot.slane %v3578_v11, 4  ;;  %v17761_v3 = vld [vmem:[#allocation2 + $0x78] sm:$0xe]  ;;  %v23316_v41 = vld [vmem:[#allocation16_spill] sm:$0xff] }
 0x161   : > { %v15738_v55 = vpop.eup %15737  ;;  %v485_v59 = vadd.f32 1.0, %v15736_v1  ;;  %v3585_v1 = vrot.slane %v17397_v48, 5  ;;  %23309 = vst [vmem:[#allocation32_spill] sm:$0xff] %v17761_v3  ;;  %v3594_v50 = vrot.slane %v3592_v30, 4  ;;  %v23315_v48 = vld [vmem:[#allocation13_spill] sm:$0xff] }
 0x162   : > { %v486_v43 = vadd.f32 1.0, %v15738_v55  ;;  %v17755_v7 = vsel %vm16402_vm15, %v3580_v16, %v3581_v18  ;;  %v3599_v16 = vrot.slane %v17456_v26, 5  ;;  %v3609_v10 = vrot.slane %v23315_v48, 5  ;;  %v23319_v48 = vld [vmem:[#allocation23_spill] sm:$0xff] }
 0x163   : > { %15739 = vrcp.f32 %v485_v59  ;;  %v17759_v55 = vsel %vm16402_vm15, %v13290_v49, %v3585_v1  ;;  %v3587_v11 = vrot.slane %v3585_v1, 4  ;;  %v17767_v59 = vsel %vm16402_vm15, %v13291_v52, %v3592_v30  ;;  %v23311_v1 = vld [vmem:[#allocation18_spill] sm:$0xff] }
 0x164   : > { %15741 = vrcp.f32 %v486_v43  ;;  %v3595_v43 = vrot.slane %v17483_v46, 5  ;;  %v13292_v49 = vrot.slane %v17751_v23, 9  ;;  %v3602_v12 = vrot.slane %v23311_v1, 5  ;;  %23312 = vst [vmem:[#allocation18_spill] sm:$0xff] %v17777_v60  ;;  %v23313_v30 = vld [vmem:[#allocation22_spill] sm:$0xff] }
 0x165   : > { %v17772_v18 = vsel %vm16402_vm15, %v3587_v11, %v3588_v33  ;;  %v13293_v46 = vrot.slane %v17761_v3, 9  ;;  %v3606_v33 = vrot.slane %v23313_v30, 5  ;;  %v17787_v11 = vld [vmem:[#allocation2 + $0x90] sm:$0xe]  ;;  %v3601_v23 = vrot.slane %v3599_v16, 4 }
 0x166   : > { %23310 = vst [vmem:[#allocation33_spill] sm:$0xff] %v17772_v18  ;;  %v17783_v52 = vsel %vm16402_vm15, %v3594_v50, %v3595_v43  ;;  %23314 = vst [vmem:[#allocation34_spill] sm:$0xff] %v17787_v11  ;;  %v17793_v1 = vsel %vm16402_vm15, %v13292_v49, %v3599_v16  ;;  %v13294_v30 = vrot.slane %v17777_v60, 9  ;;  %v23317_v3 = vld [vmem:[#allocation24_spill] sm:$0xff]  ;;  %v3616_v16 = vrot.slane %v23319_v48, 5 }
 0x167   : > { %14411 = vmatmul.mubr.msk.bf16.gmra.mrb[8].mxu0 %vm1351_vm8, %v23316_v41  ;;  %v17800_v50 = vsel %vm16402_vm15, %v13293_v46, %v3606_v33  ;;  %v3608_v43 = vrot.slane %v3606_v33, 4  ;;  %v3613_v18 = vrot.slane %v23317_v3, 5  ;;  %v17808_v49 = vsel %vm16402_vm15, %v3601_v23, %v3602_v12  ;;  %v17813_v46 = vld [vmem:[#allocation2 + $0x9c] sm:$0xe]  ;;  %v17825_v12 = vld [vmem:[#allocation2 + $0xa8] sm:$0xe] }
 0x168   : > { %14414 = vmatprep.mubr.msk.bf16.mxu0 %vm1351_vm8, %v17586_v28  ;;  %23318 = vst [vmem:[#allocation13_spill] sm:$0xff] %v17808_v49  ;;  %v13295_v41 = vrot.slane %v17787_v11, 9  ;;  %v3620_v26 = vrot.slane %v17522_v45, 5  ;;  %23320 = vst [vmem:[#allocation16_spill] sm:$0xff] %v17813_v46  ;;  %v3623_v33 = vrot.slane %v17539_v51, 5 }
 0x169   : > { %v17819_v3 = vsel %vm16402_vm15, %v3608_v43, %v3609_v10  ;;  %v17823_v28 = vsel %vm16402_vm15, %v13294_v30, %v3613_v18  ;;  %v3615_v23 = vrot.slane %v3613_v18, 4  ;;  %23322 = vst [vmem:[#allocation35_spill] sm:$0xff] %v17825_v12  ;;  %v13296_v30 = vrot.slane %v17813_v46, 9  ;;  %v17841_v49 = vld [vmem:[#allocation2 + $0xb4] sm:$0xe] }
 0x16a   : > { %23321 = vst [vmem:[#allocation23_spill] sm:$0xff] %v17819_v3  ;;  %v17831_v45 = vsel %vm16402_vm15, %v13295_v41, %v3620_v26  ;;  %v3622_v11 = vrot.slane %v3620_v26, 4  ;;  %v3627_v18 = vrot.slane %v17547_v22, 5  ;;  %v3630_v43 = vrot.slane %v17569_v9, 5  ;;  %23324 = vst [vmem:[#allocation37_spill] sm:$0xff] %v17841_v49 }
 0x16b   : > { %v17836_v10 = vsel %vm16402_vm15, %v3615_v23, %v3616_v16  ;;  %v13297_v16 = vrot.slane %v17825_v12, 9  ;;  %v2792_v23 = vld [vmem:[#allocation2 + $0xb0] sm:$0x1]  ;;  %v3634_v26 = vrot.slane %v17593_v38, 5  ;;  %v23327_v12 = vshll.u32 %v17593_v38, 16 }
 0x16c   : > { %23323 = vst [vmem:[#allocation36_spill] sm:$0xff] %v17836_v10  ;;  %v17848_v51 = vsel %vm16402_vm15, %v3622_v11, %v3623_v33  ;;  %v17856_v22 = vsel %vm16402_vm15, %v13296_v30, %v3627_v18  ;;  %v3637_v10 = vrot.slane %v2792_v23, 5  ;;  %v13298_v11 = vrot.slane %v17841_v49, 9 }
 0x16d   : > { %v15740_v60 = vpop.eup %15739  ;;  %23325 = vst [vmem:[#allocation38_spill] sm:$0xff] %v17856_v22  ;;  %v17873_v9 = vsel %vm16402_vm15, %v13297_v16, %v3634_v26  ;;  %v23330_v16 = vor.u32 %v17621_v42, %v17617_v62 }
 0x16e   : > { %v15742_v48 = vpop.eup %15741  ;;  %v581_v41 = vmul.f32 %v15740_v60, %v17596_v14  ;;  %v3629_v14 = vrot.slane %v3627_v18, 4  ;;  %v2795_v60 = vld [vmem:[#allocation2 + $0xbc] sm:$0x1] }
 0x16f   : > { %v582_v46 = vmul.f32 %v15742_v48, %v17599_v40  ;;  %14415 = vmatmul.mubr.msk.bf16.gmra.mrb[12].mxu0 %vm1351_vm8, %v17588_v35  ;;  %v3641_v48 = vrot.slane %v17641_v15, 5  ;;  %v3644_v30 = vrot.slane %v2795_v60, 5  ;;  %v3636_v35 = vrot.slane %v3634_v26, 4 }
 0x170   : > { %v13941_v3 = vpack.c.bf16 %v581_v41, %v581_v41  ;;  %v17864_v40 = vsel %vm16402_vm15, %v3629_v14, %v3630_v43  ;;  %14418 = vmatprep.mubr.msk.bf16.mxu0 %vm1351_vm8, %v17590_v8  ;;  %v17882_v8 = vrot.slane %v23327_v12, 5 }
 0x171   : > { %v13942_v33 = vpack.c.bf16 %v582_v46, %v582_v46  ;;  %23326 = vst [vmem:[#allocation39_spill] sm:$0xff] %v17864_v40  ;;  %v17878_v43 = vsel %vm16402_vm15, %v13298_v11, %v3641_v48  ;;  %v3643_v14 = vrot.slane %v3641_v48, 4  ;;  %v17889_v26 = vsel %vm16402_vm15, %v3636_v35, %v3637_v10 }
 0x172   : > { %v757_v18 = vrot.slane %v13941_v3, 7  ;;  %v23328_v3 = vshrl.u32 %v17593_v38, 16  ;;  %23329 = vst [vmem:[#allocation40_spill] sm:$0xff] %v17889_v26  ;;  %v3105_v11 = vrot.slane %v23330_v16, 4  ;;  %v23334_v16 = vshll.u32 %v17641_v15, 16 }
 0x173   : > { %v759_v49 = vrot.slane %v13942_v33, 7  ;;  %v17898_v12 = vsel %vm16402_vm15, %v3643_v14, %v3644_v30  ;;  %v23335_v48 = vshrl.u32 %v17641_v15, 16  ;;  %v3131_v14 = vshll.u32 %v2792_v23, 16 }
 0x174   : > { %v3127_v41 = vrot.slane %v23328_v3, 4  ;;  %v758_v40 = vrot.slane %v757_v18, 4  ;;  %857 = vst.msk [vmem:[#allocation2 + $0xc0] sm:$0xe] %vm811_vm11, %v757_v18  ;;  %v23331_v3 = vshrl.u32 %v17623_v58, 16  ;;  %v23332_v18 = vshll.u32 %v17623_v58, 16 }
 0x175   : > { %v761_v33 = vrot.slane %v759_v49, 4  ;;  %v3147_v22 = vrot.slane %v23334_v16, 5  ;;  %v3151_v26 = vrot.slane %v23335_v48, 4  ;;  %v3076_v58 = vsel %vm16091_vm7, %v17611_v32, %v17543_v57 }
 0x176   : > { %v3138_v46 = vrot.slane %v23331_v3, 4  ;;  %v3141_v38 = vrot.slane %v23332_v18, 5  ;;  %v760_v35 = vsel %vm16197_vm12, %v758_v40, %v759_v49  ;;  %v3118_v49 = vor.u32 %v17636_v44, %v17634_v6 }
 0x177   : > { %858 = vst.msk [vmem:[#allocation2 + $0xc4] sm:$0xf] %vm280_vm1, %v760_v35  ;;  %14419 = vmatmul.mubr.msk.bf16.gmra.mrb[16].mxu0 %vm1351_vm8, %v17603_v31  ;;  %v3086_v40 = vsel %vm16091_vm7, %v17613_v54, %v17605_v39  ;;  %v3128_v30 = vor.u32 %v3127_v41, %v17882_v8  ;;  %v3100_v57 = vsel %vm16091_vm7, %v17653_v25, %v17617_v62  ;;  %v3133_v3 = vrot.slane %v3131_v14, 5 }
 0x178   : > { %859 = vst.msk [vmem:[#allocation2 + $0xc8] sm:$0x1] %vm289_vm3, %v761_v33  ;;  %v3155_v33 = vshll.u32 %v2795_v60, 16  ;;  %14422 = vmatprep.mubr.msk.bf16.mxu0 %vm1351_vm8, %v17609_v37  ;;  %v3110_v31 = vsel %vm16091_vm7, %v3105_v11, %v17627_v21  ;;  %v3142_v32 = vor.u32 %v3141_v38, %v3138_v46  ;;  %v3152_v6 = vor.u32 %v3151_v26, %v3147_v22 }
 0x179   : > { %v13263_v54 = vcombine.low %v3076_v58, %v3086_v40  ;;  %v3119_v23 = vrot.slane %v3118_v49, 4  ;;  %v13264_v48 = vcombine.low %v3100_v57, %v3110_v31  ;;  %v3129_v37 = vrot.slane %v3128_v30, 4 }
 0x17a   : > { %v3157_v18 = vrot.slane %v3155_v33, 5  ;;  %v3143_v35 = vrot.slane %v3142_v32, 4  ;;  %v3153_v38 = vrot.slane %v3152_v6, 4  ;;  %vm6509_vm1 = vcmask 57344  }
 0x17b   : > { %v2796_v44 = vld [vmem:[#allocation2 + $0xc0] sm:$0xf]  ;;  %v3124_v40 = vsel %vm16091_vm7, %v3119_v23, %v17882_v8  ;;  %v3134_v30 = vsel %vm16091_vm7, %v3129_v37, %v3133_v3  ;;  %vm6500_vm3 = vcmask 60416   ;;  %vm6528_vm11 = vcmask 58369  }
 0x17c   : > { %v17936_v39 = vld [vmem:[#allocation2 + $0xc0] sm:$0xe]  ;;  %v3160_v60 = vshrl.u32 %v2796_v44, 16  ;;  %v3163_v41 = vshll.u32 %v2796_v44, 16  ;;  %v3148_v8 = vsel %vm16091_vm7, %v3143_v35, %v3147_v22  ;;  %v3158_v44 = vsel %vm16091_vm7, %v3153_v38, %v3157_v18 }
 0x17d   : > { %23336 = vst [vmem:[#allocation41_spill] sm:$0xff] %v17936_v39  ;;  %v13299_v21 = vrot.slane %v17936_v39, 9  ;;  %v4430_v38 = vsel %vm1400_vm0, %v17651_v17, 0  ;;  %v23339_v17 = vcombine.low %v17701_v27, %v17714_v2  ;;  %v23342_v2 = vld [vmem:[#allocation9_spill] sm:$0xff] }
 0x17e   : > { %v17938_v16 = vld [vmem:[#allocation2 + $0xc4] sm:$0xf]  ;;  %v3162_v62 = vrot.slane %v3160_v60, 4  ;;  %v3165_v25 = vrot.slane %v3163_v41, 5  ;;  %v13265_v60 = vcombine.low %v3124_v40, %v3134_v30  ;;  %v3947_v40 = vld [vmem:[#allocation2 + $0x14] sm:$0x3] }
 0x17f   : > { %v2798_v46 = vld [vmem:[#allocation2 + $0xc8] sm:$0x1]  ;;  %v22854_v26 = vshll.u32 %v17938_v16, 16  ;;  %v22855_v11 = vshrl.u32 %v17938_v16, 16  ;;  %v3648_v58 = vrot.slane %v17938_v16, 5  ;;  %14423 = vmatmul.mubr.msk.bf16.gmra.mrb[20].mxu0 %vm1351_vm8, %v13263_v54  ;;  %v23340_v30 = vshrl.u32 %v17193_v5, 16 }
 0x180   : > { %v3651_v49 = vrot.slane %v2798_v46, 5  ;;  %14426 = vmatprep.mubr.msk.bf16.mxu0 %vm1351_vm8, %v13264_v48  ;;  %v3166_v57 = vor.u32 %v3165_v25, %v3162_v62  ;;  %v3179_v31 = vshll.u32 %v2798_v46, 16  ;;  %v13266_v48 = vcombine.low %v3148_v8, %v3158_v44 }
 0x181   : > { %v3171_v14 = vrot.slane %v22854_v26, 5  ;;  %v3175_v33 = vrot.slane %v22855_v11, 4  ;;  %v17957_v32 = vsel %vm16402_vm15, %v13299_v21, %v3648_v58  ;;  %v3650_v6 = vrot.slane %v3648_v58, 4  ;;  %v13366_v58 = vld [vmem:[%s22688_s1 + $0xc] sm:$0x3] }
 0x182   : > { %v3167_v37 = vrot.slane %v3166_v57, 4  ;;  %v3181_v62 = vrot.slane %v3179_v31, 5  ;;  %v23337_v25 = vcombine.low %v17645_v36, %v17666_v0  ;;  %v3964_v21 = vshrl.u32 %v17607_v24, 16 }
 0x183   : > { %v3176_v54 = vor.u32 %v3175_v33, %v3171_v14  ;;  %v17965_v23 = vsel %vm16402_vm15, %v3650_v6, %v3651_v49  ;;  %v3967_v46 = vshll.u32 %v17607_v24, 16  ;;  %v23338_v49 = vcombine.low %v17680_v53, %v17692_v19  ;;  %v3948_v33 = vld [vmem:[#allocation2 + $0x20] sm:$0x3] }
 0x184   : > { %v3172_v22 = vsel %vm16091_vm7, %v3167_v37, %v3171_v14  ;;  %v3987_v36 = vshrl.u32 %v17632_v20, 16  ;;  %v3990_v0 = vshll.u32 %v17632_v20, 16  ;;  %v3966_v24 = vrot.slane %v3964_v21, 5 }
 0x185   : > { %v3177_v3 = vrot.slane %v3176_v54, 4  ;;  %v3972_v14 = vrot.slane %v23340_v30, 5  ;;  %v3969_v57 = vrot.slane %v3967_v46, 6  ;;  %v23341_v19 = vshll.u32 %v17193_v5, 16 }
 0x186   : > { %v4010_v31 = vshrl.u32 %v17639_v29, 16  ;;  %v4013_v20 = vshll.u32 %v17639_v29, 16  ;;  %v3978_v6 = vshrl.u32 %v3947_v40, 16  ;;  %v3981_v8 = vshll.u32 %v3947_v40, 16 }
 0x187   : > { %14427 = vmatmul.mubr.msk.bf16.gmra.mrb[24].mxu0 %vm1351_vm8, %v13265_v60  ;;  %v3182_v18 = vsel %vm16091_vm7, %v3177_v3, %v3181_v62  ;;  %v3973_v53 = vrot.slane %v23341_v19, 6  ;;  %v23343_v27 = vshrl.u32 %v23342_v2, 16  ;;  %v23344_v54 = vshll.u32 %v23342_v2, 16  ;;  %v3950_v2 = vld [vmem:[#allocation2 + $0x38] sm:$0x3] }
 0x188   : > { %14430 = vmatprep.mubr.msk.bf16.mxu0 %vm1351_vm8, %v13266_v48  ;;  %v13267_v35 = vcombine.low %v3172_v22, %v3182_v18  ;;  %v3989_v48 = vrot.slane %v3987_v36, 5  ;;  %v3992_v37 = vrot.slane %v3990_v0, 6  ;;  %v4001_v3 = vshrl.u32 %v3948_v33, 16  ;;  %v3949_v22 = vld [vmem:[#allocation2 + $0x2c] sm:$0x3]  ;;  %v23346_v36 = vld [vmem:[#allocation26_spill] sm:$0xff] }
 0x189   : > { %v3995_v44 = vrot.slane %v23343_v27, 5  ;;  %v3996_v60 = vrot.slane %v23344_v54, 6  ;;  %v4004_v62 = vshll.u32 %v3948_v33, 16  ;;  %v3970_v5 = vor.u32 %v3969_v57, %v3966_v24 }
 0x18a   : > { %v4012_v18 = vrot.slane %v4010_v31, 5  ;;  %v3980_v21 = vrot.slane %v3978_v6, 5  ;;  %v3983_v29 = vrot.slane %v3981_v8, 6  ;;  %v23345_v46 = vcombine.low %v17708_v56, %v17725_v4 }
 0x18b   : > { %v4003_v40 = vrot.slane %v4001_v3, 5  ;;  %v4033_v0 = vshrl.u32 %v23346_v36, 16  ;;  %v23347_v24 = vcombine.low %v17718_v13, %v17737_v63  ;;  %v4006_v30 = vrot.slane %v4004_v62, 6 }
 0x18c   : > { %v4024_v4 = vshrl.u32 %v3949_v22, 16  ;;  %v4027_v31 = vshll.u32 %v3949_v22, 16  ;;  %v3984_v8 = vor.u32 %v3983_v29, %v3980_v21  ;;  %v4047_v21 = vshrl.u32 %v3950_v2, 16  ;;  %v4650_v29 = vld [vmem:[#allocation2 + $0x78] sm:$0xf] }
 0x18d   : > { %v4035_v63 = vrot.slane %v4033_v0, 5  ;;  %v4007_v54 = vor.u32 %v4006_v30, %v4003_v40  ;;  %v4050_v40 = vshll.u32 %v3950_v2, 16 }
 0x18e   : > { %v18040_v22 = vrot.slane %v4027_v31, 6 }
 0x18f   : > { %14431 = vmatmul.mubr.msk.bf16.gmra.mrb[28].mxu0 %vm1351_vm8, %v13267_v35  ;;  %v4015_v35 = vrot.slane %v4013_v20, 6  ;;  %v18026_v20 = vrot.slane %v3970_v5, 4  ;;  %v4052_v2 = vrot.slane %v4050_v40, 6  ;;  %v3953_v40 = vld [vmem:[#allocation2 + $0x5c] sm:$0x3] }
 0x190   : > { %14436 = vmatprep.mubr.msk.bf16.mxu0 %vm1351_vm8, %v23337_v25  ;;  %v18008_v25 = vor.u32 %v3973_v53, %v3972_v14  ;;  %v23348_v14 = vld [vmem:[#allocation5_spill] sm:$0xff] }
 0x191   : > { %v23349_v33 = vshrl.u32 %v23348_v14, 16  ;;  %v23350_v19 = vshll.u32 %v23348_v14, 16  ;;  %v4016_v53 = vor.u32 %v4015_v35, %v4012_v18 }
 0x192   : > { %v3976_v6 = vrot.slane %v18008_v25, 4 }
 0x193   : > { %v4018_v57 = vrot.slane %v23349_v33, 5  ;;  %v4019_v56 = vrot.slane %v23350_v19, 6  ;;  %v18038_v5 = vrot.slane %v4016_v53, 4  ;;  %v23358_v33 = vld [vmem:[#allocation33_spill] sm:$0xff]  ;;  %v23360_v19 = vld [vmem:[#allocation28_spill] sm:$0xff] }
 0x194   : > { %v23368_v53 = vld [vmem:[#allocation20_spill] sm:$0xff] }
 0x197   : > { %14437 = vmatmul.mubr.msk.bf16.vlgmr.msra.gmra.mrb[0].mxu0 %vm1351_vm8, %v23338_v49  ;;  %v3993_v49 = vor.u32 %v3992_v37, %v3989_v48  ;;  %v18034_v48 = vrot.slane %v4024_v4, 5  ;;  %v23351_v37 = vld [vmem:[#allocation11_spill] sm:$0xff]  ;;  %v4082_v4 = vshll.u32 %v23360_v19, 16 }
 0x198   : > { %14469 = vmatpush3.bf16.msra.mxu0 %v4430_v38  ;;  %14440 = vmatprep.mubr.msk.bf16.mxu0 %vm1351_vm8, %v23339_v17  ;;  %v18010_v38 = vor.u32 %v3996_v60, %v3995_v44  ;;  %v4036_v17 = vshll.u32 %v23346_v36, 16  ;;  %v18032_v60 = vor.u32 %v4019_v56, %v4018_v57  ;;  %v23352_v3 = vshrl.u32 %v23351_v37, 16  ;;  %v23356_v36 = vld [vmem:[#allocation27_spill] sm:$0xff] }
 0x199   : > { %15592 = vmatprep.subr.msk.bf16.mxu0 %vm1400_vm0, %v13366_v58  ;;  %v18029_v27 = vrot.slane %v3993_v49, 4  ;;  %v23353_v18 = vshll.u32 %v23351_v37, 16  ;;  %v18049_v49 = vsel %vm1400_vm0, %v13366_v58, 0  ;;  %v4056_v0 = vshrl.u32 %v23356_v36, 16 }
 0x19a   : > { %v3999_v13 = vrot.slane %v18010_v38, 4  ;;  %v4038_v44 = vrot.slane %v4036_v17, 6  ;;  %v4041_v62 = vrot.slane %v23352_v3, 5  ;;  %23355 = vst [vmem:[#allocation9_spill] sm:$0xff] %v18049_v49  ;;  %v23357_v17 = vcombine.low %v17741_v61, %v17755_v7 }
 0x19b   : > { %v4042_v35 = vrot.slane %v23353_v18, 6  ;;  %v4059_v58 = vshll.u32 %v23356_v36, 16  ;;  %v23359_v57 = vcombine.low %v17759_v55, %v23358_v33  ;;  %v4022_v7 = vrot.slane %v18032_v60, 4  ;;  %v23362_v36 = vld [vmem:[#allocation8_spill] sm:$0xff] }
 0x19c   : > { %v4039_v14 = vor.u32 %v4038_v44, %v4035_v63  ;;  %v18071_v61 = vsel %vm16922_vm5, %v3999_v13, %v4007_v54  ;;  %v4079_v56 = vshrl.u32 %v23360_v19, 16  ;;  %v4030_v55 = vor.u32 %v18040_v22, %v18034_v48  ;;  %v3952_v63 = vld [vmem:[#allocation2 + $0x50] sm:$0x3]  ;;  %v23361_v44 = vld [vmem:[#allocation29_spill] sm:$0xff] }
 0x19d   : > { %v18082_v31 = vor.u32 %v4042_v35, %v4041_v62  ;;  %v4058_v13 = vrot.slane %v4056_v0, 5  ;;  %v4102_v54 = vshrl.u32 %v23361_v44, 16  ;;  %v4105_v37 = vshll.u32 %v23361_v44, 16  ;;  %v23365_v0 = vld [vmem:[#allocation15_spill] sm:$0xff] }
 0x19e   : > { %v18086_v3 = vrot.slane %v4039_v14, 4  ;;  %v4061_v18 = vrot.slane %v4059_v58, 6  ;;  %v4081_v35 = vrot.slane %v4079_v56, 5  ;;  %v23366_v19 = vshrl.u32 %v23365_v0, 16 }
 0x19f   : > { %14441 = vmatmul.mubr.msk.bf16.gmra.mrb[4].mxu0 %vm1351_vm8, %v23345_v46  ;;  %v23367_v42 = vshll.u32 %v23365_v0, 16  ;;  %v4093_v14 = vshrl.u32 %v3952_v63, 16  ;;  %v4096_v26 = vshll.u32 %v3952_v63, 16  ;;  %v4104_v58 = vrot.slane %v4102_v54, 5  ;;  %v23373_v63 = vld [vmem:[#allocation13_spill] sm:$0xff] }
 0x1a0   : > { %14444 = vmatprep.mubr.msk.bf16.mxu0 %vm1351_vm8, %v23347_v24  ;;  %v18058_v24 = vsel %vm16922_vm5, %v3976_v6, %v3984_v8  ;;  %v4049_v6 = vrot.slane %v4047_v21, 5  ;;  %v3951_v8 = vld [vmem:[#allocation2 + $0x44] sm:$0x3]  ;;  %v4084_v21 = vrot.slane %v4082_v4, 6  ;;  %v4087_v41 = vrot.slane %v23366_v19, 5 }
 0x1a1   : > { %v4070_v62 = vshrl.u32 %v3951_v8, 16  ;;  %v4073_v22 = vshll.u32 %v3951_v8, 16  ;;  %v4088_v44 = vrot.slane %v23367_v42, 6  ;;  %v4107_v11 = vrot.slane %v4105_v37, 6  ;;  %v23372_v19 = vld [vmem:[#allocation30_spill] sm:$0xff] }
 0x1a2   : > { %v23371_v56 = vcombine.low %v17767_v59, %v17783_v52  ;;  %v4116_v4 = vshrl.u32 %v3953_v40, 16  ;;  %v4119_v8 = vshll.u32 %v3953_v40, 16  ;;  %v4125_v0 = vshrl.u32 %v23372_v19, 16 }
 0x1a3   : > { %v4128_v42 = vshll.u32 %v23372_v19, 16  ;;  %v23374_v54 = vcombine.low %v17793_v1, %v23373_v63  ;;  %v4045_v37 = vrot.slane %v18082_v31, 4  ;;  %v4072_v46 = vrot.slane %v4070_v62, 5 }
 0x1a4   : > { %v4075_v59 = vrot.slane %v4073_v22, 6  ;;  %v4085_v52 = vor.u32 %v4084_v21, %v4081_v35  ;;  %v4095_v10 = vrot.slane %v4093_v14, 5  ;;  %v4098_v40 = vrot.slane %v4096_v26, 6  ;;  %v23375_v22 = vld [vmem:[#allocation21_spill] sm:$0xff] }
 0x1a5   : > { %v4108_v34 = vor.u32 %v4107_v11, %v4104_v58  ;;  %v4118_v15 = vrot.slane %v4116_v4, 5  ;;  %v4121_v19 = vrot.slane %v4119_v8, 6  ;;  %v4127_v49 = vrot.slane %v4125_v0, 5 }
 0x1a6   : > { %v4130_v39 = vrot.slane %v4128_v42, 6  ;;  %v4031_v1 = vsel %vm16922_vm5, %v4022_v7, %v4030_v55  ;;  %v4076_v11 = vor.u32 %v4075_v59, %v4072_v46  ;;  %v23376_v35 = vshrl.u32 %v23375_v22, 16  ;;  %v23377_v55 = vld [vmem:[#allocation23_spill] sm:$0xff]  ;;  %v23380_v46 = vld [vmem:[#allocation36_spill] sm:$0xff] }
 0x1a7   : > { %14445 = vmatmul.mubr.msk.bf16.gmra.mrb[8].mxu0 %vm1351_vm8, %v23357_v17  ;;  %v23363_v17 = vshrl.u32 %v23362_v36, 16  ;;  %v23378_v21 = vcombine.low %v17800_v50, %v23377_v55 }
 0x1a8   : > { %14448 = vmatprep.mubr.msk.bf16.mxu0 %vm1351_vm8, %v23359_v57  ;;  %v23364_v57 = vshll.u32 %v23362_v36, 16  ;;  %v23370_v36 = vshll.u32 %v23368_v53, 16  ;;  %v4133_v7 = vrot.slane %v23376_v35, 5  ;;  %v23394_v35 = vld [vmem:[#allocation38_spill] sm:$0xff] }
 0x1a9   : > { %v4064_v33 = vrot.slane %v23363_v17, 5  ;;  %v23369_v17 = vshrl.u32 %v23368_v53, 16  ;;  %v4053_v53 = vor.u32 %v4052_v2, %v4049_v6  ;;  %v4044_v6 = vsel %vm16922_vm5, %v18086_v3, %v18082_v31 }
 0x1aa   : > { %v4065_v48 = vrot.slane %v23364_v57, 6  ;;  %v4111_v57 = vrot.slane %v23370_v36, 6  ;;  %v4122_v31 = vor.u32 %v4121_v19, %v4118_v15  ;;  %v4131_v3 = vor.u32 %v4130_v39, %v4127_v49  ;;  %v23383_v15 = vld [vmem:[#allocation31_spill] sm:$0xff] }
 0x1ab   : > { %v4110_v30 = vrot.slane %v23369_v17, 5  ;;  %v4062_v17 = vor.u32 %v4061_v18, %v4058_v13  ;;  %v4054_v2 = vsel %vm16922_vm5, %v4045_v37, %v4053_v53  ;;  %v3954_v13 = vld [vmem:[#allocation2 + $0x68] sm:$0x3]  ;;  %v4148_v39 = vshrl.u32 %v23383_v15, 16 }
 0x1ac   : > { %v4066_v36 = vor.u32 %v4065_v48, %v4064_v33  ;;  %v4099_v33 = vor.u32 %v4098_v40, %v4095_v10  ;;  %v4109_v48 = vrot.slane %v4108_v34, 4  ;;  %v4139_v58 = vshrl.u32 %v3954_v13, 16 }
 0x1ad   : > { %v4112_v47 = vor.u32 %v4111_v57, %v4110_v30  ;;  %v4086_v30 = vrot.slane %v4085_v52, 4  ;;  %v23381_v57 = vcombine.low %v17823_v28, %v23380_v46  ;;  %v23382_v34 = vsel %vm16922_vm5, %v18026_v20, %v18008_v25  ;;  %v23397_v46 = vld [vmem:[#allocation22_spill] sm:$0xff] }
 0x1ae   : > { %v4068_v26 = vrot.slane %v4066_v36, 4  ;;  %v18137_v50 = vcombine.low %v23382_v34, %v18058_v24  ;;  %v4142_v10 = vshll.u32 %v3954_v13, 16  ;;  %v4151_v49 = vshll.u32 %v23383_v15, 16 }
 0x1af   : > { %14449 = vmatmul.mubr.msk.bf16.gmra.mrb[12].mxu0 %vm1351_vm8, %v23371_v56  ;;  %v4089_v56 = vor.u32 %v4088_v44, %v4087_v41  ;;  %v4063_v41 = vrot.slane %v4062_v17, 4  ;;  %v4114_v62 = vrot.slane %v4112_v47, 4  ;;  %v23379_v44 = vshll.u32 %v23375_v22, 16 }
 0x1b0   : > { %14452 = vmatprep.mubr.msk.bf16.mxu0 %vm1351_vm8, %v23374_v54  ;;  %v23384_v28 = vsel %vm16922_vm5, %v18029_v27, %v18010_v38  ;;  %v23385_v25 = vsel %vm16922_vm5, %v18038_v5, %v18032_v60  ;;  %v18156_v24 = vcombine.low %v4044_v6, %v4054_v2  ;;  %v4077_v0 = vsel %vm16922_vm5, %v4068_v26, %v4076_v11  ;;  %v3955_v60 = vld [vmem:[#allocation2 + $0x74] sm:$0x3] }
 0x1b1   : > { %v4091_v18 = vrot.slane %v4089_v56, 4  ;;  %v4134_v14 = vrot.slane %v23379_v44, 6  ;;  %v18147_v4 = vcombine.low %v23384_v28, %v18071_v61  ;;  %v18154_v20 = vcombine.low %v23385_v25, %v4031_v1  ;;  %v23391_v26 = vld [vmem:[#allocation32_spill] sm:$0xff] }
 0x1b2   : > { %v4067_v8 = vsel %vm16922_vm5, %v4063_v41, %v4066_v36  ;;  %v4090_v38 = vsel %vm16922_vm5, %v4086_v30, %v4089_v56  ;;  %v4113_v61 = vsel %vm16922_vm5, %v4109_v48, %v4112_v47  ;;  %v4123_v5 = vsel %vm16922_vm5, %v4114_v62, %v4122_v31  ;;  %v23386_v36 = vld [vmem:[#allocation12_spill] sm:$0xff]  ;;  %v23393_v62 = vld [vmem:[#allocation18_spill] sm:$0xff] }
 0x1b3   : > { %v4100_v27 = vsel %vm16922_vm5, %v4091_v18, %v4099_v33  ;;  %v18170_v42 = vrot.slane %v4131_v3, 4  ;;  %v18172_v63 = vor.u32 %v4134_v14, %v4133_v7  ;;  %v4141_v54 = vrot.slane %v4139_v58, 5  ;;  %v23395_v7 = vld [vmem:[#allocation39_spill] sm:$0xff]  ;;  %v3956_v31 = vld [vmem:[#allocation2 + $0x80] sm:$0x3] }
 0x1b4   : > { %v4144_v37 = vrot.slane %v4142_v10, 6  ;;  %v4150_v53 = vrot.slane %v4148_v39, 5  ;;  %v4153_v17 = vrot.slane %v4151_v49, 6  ;;  %v23387_v59 = vshrl.u32 %v23386_v36, 16  ;;  %v3957_v10 = vld [vmem:[#allocation2 + $0x8c] sm:$0x3] }
 0x1b5   : > { %v23388_v56 = vshll.u32 %v23386_v36, 16  ;;  %v4162_v19 = vshrl.u32 %v3955_v60, 16  ;;  %v23389_v47 = vshrl.u32 %v17938_v16, 16  ;;  %v23390_v6 = vshll.u32 %v17938_v16, 16 }
 0x1b6   : > { %v4156_v52 = vrot.slane %v23387_v59, 5  ;;  %v18182_v41 = vcombine.low %v4067_v8, %v4077_v0  ;;  %v4165_v13 = vshll.u32 %v3955_v60, 16  ;;  %v4171_v11 = vshrl.u32 %v23391_v26, 16 }
 0x1b7   : > { %14453 = vmatmul.mubr.msk.bf16.gmra.mrb[16].mxu0 %vm1351_vm8, %v23378_v21  ;;  %v4157_v40 = vrot.slane %v23388_v56, 6  ;;  %v4317_v1 = vrot.slane %v23389_v47, 5  ;;  %v4318_v2 = vrot.slane %v23390_v6, 6  ;;  %v4174_v30 = vshll.u32 %v23391_v26, 16 }
 0x1b8   : > { %14456 = vmatprep.mubr.msk.bf16.mxu0 %vm1351_vm8, %v23381_v57  ;;  %v23392_v18 = vcombine.low %v17831_v45, %v17848_v51  ;;  %v18190_v33 = vcombine.low %v4090_v38, %v4100_v27  ;;  %v18192_v48 = vcombine.low %v4113_v61, %v4123_v5  ;;  %v4194_v22 = vshrl.u32 %v23393_v62, 16  ;;  %v23400_v27 = vld [vmem:[#allocation24_spill] sm:$0xff] }
 0x1b9   : > { %v18195_v16 = vor.u32 %v4318_v2, %v4317_v1  ;;  %v23396_v55 = vcombine.low %v23394_v35, %v23395_v7  ;;  %v4136_v45 = vsel %vm16922_vm5, %v18170_v42, %v18172_v63  ;;  %v4137_v51 = vrot.slane %v18172_v63, 4  ;;  %v23404_v1 = vld [vmem:[#allocation16_spill] sm:$0xff]  ;;  %v18313_v63 = vld [vmem:[%s22688_s1 + $0xe] sm:$0x3] }
 0x1ba   : > { %v4145_v21 = vor.u32 %v4144_v37, %v4141_v54  ;;  %v4197_v3 = vshll.u32 %v23393_v62, 16  ;;  %v4154_v44 = vor.u32 %v4153_v17, %v4150_v53  ;;  %v18207_v14 = vor.u32 %v4157_v40, %v4156_v52  ;;  %v23403_v52 = vld [vmem:[#allocation34_spill] sm:$0xff] }
 0x1bb   : > { %v18209_v58 = vrot.slane %v4162_v19, 5  ;;  %v23398_v57 = vshrl.u32 %v23397_v46, 16  ;;  %v18213_v15 = vrot.slane %v4165_v13, 6  ;;  %v4173_v39 = vrot.slane %v4171_v11, 5  ;;  %v23405_v13 = vld [vmem:[#allocation40_spill] sm:$0xff] }
 0x1bc   : > { %v4176_v49 = vrot.slane %v4174_v30, 6  ;;  %v23399_v28 = vshll.u32 %v23397_v46, 16  ;;  %v4185_v8 = vshrl.u32 %v3956_v31, 16  ;;  %v4188_v0 = vshll.u32 %v3956_v31, 16  ;;  %v3959_v31 = vld [vmem:[#allocation2 + $0xa4] sm:$0x3] }
 0x1bd   : > { %v4179_v34 = vrot.slane %v23398_v57, 5  ;;  %v4196_v38 = vrot.slane %v4194_v22, 5  ;;  %v23401_v61 = vshrl.u32 %v23400_v27, 16  ;;  %v4199_v5 = vrot.slane %v4197_v3, 6  ;;  %v3958_v22 = vld [vmem:[#allocation2 + $0x98] sm:$0x3] }
 0x1be   : > { %v4180_v25 = vrot.slane %v23399_v28, 6  ;;  %v23402_v54 = vshll.u32 %v23400_v27, 16  ;;  %v4208_v53 = vshrl.u32 %v3957_v10, 16  ;;  %v4211_v17 = vshll.u32 %v3957_v10, 16 }
 0x1bf   : > { %14457 = vmatmul.mubr.msk.bf16.gmra.mrb[20].mxu0 %vm1351_vm8, %v23392_v18  ;;  %v4202_v60 = vrot.slane %v23401_v61, 5  ;;  %v18223_v36 = vsel %vm16922_vm5, %v4137_v51, %v4145_v21  ;;  %v18225_v59 = vrot.slane %v4154_v44, 4  ;;  %v4217_v56 = vshrl.u32 %v23403_v52, 16  ;;  %v23408_v44 = vld [vmem:[#allocation19_spill] sm:$0xff] }
 0x1c0   : > { %14460 = vmatprep.mubr.msk.bf16.mxu0 %vm1351_vm8, %v23396_v55  ;;  %v4203_v37 = vrot.slane %v23402_v54, 6  ;;  %v4220_v40 = vshll.u32 %v23403_v52, 16  ;;  %v4160_v19 = vrot.slane %v18207_v14, 4  ;;  %v4168_v47 = vor.u32 %v18213_v15, %v18209_v58 }
 0x1c1   : > { %v4240_v6 = vshrl.u32 %v23404_v1, 16  ;;  %v4243_v2 = vshll.u32 %v23404_v1, 16  ;;  %v23406_v26 = vcombine.low %v17873_v9, %v23405_v13  ;;  %v4177_v11 = vor.u32 %v4176_v49, %v4173_v39 }
 0x1c2   : > { %v18238_v30 = vor.u32 %v4180_v25, %v4179_v34  ;;  %v4187_v18 = vrot.slane %v4185_v8, 5  ;;  %v4190_v62 = vrot.slane %v4188_v0, 6  ;;  %v23407_v35 = vcombine.low %v17878_v43, %v17898_v12  ;;  %v23411_v43 = vld [vmem:[#allocation25_spill] sm:$0xff] }
 0x1c3   : > { %v4200_v7 = vor.u32 %v4199_v5, %v4196_v38  ;;  %v4204_v55 = vor.u32 %v4203_v37, %v4202_v60  ;;  %v4210_v51 = vrot.slane %v4208_v53, 5  ;;  %v4213_v21 = vrot.slane %v4211_v17, 6  ;;  %v23414_v60 = vld [vmem:[#allocation35_spill] sm:$0xff] }
 0x1c4   : > { %v4219_v3 = vrot.slane %v4217_v56, 5  ;;  %v4222_v9 = vrot.slane %v4220_v40, 6  ;;  %v23409_v58 = vshrl.u32 %v23408_v44, 16  ;;  %v23410_v57 = vshll.u32 %v23408_v44, 16 }
 0x1c5   : > { %v4231_v10 = vshrl.u32 %v3958_v22, 16  ;;  %v4234_v15 = vshll.u32 %v3958_v22, 16  ;;  %v4242_v39 = vrot.slane %v4240_v6, 5  ;;  %v4245_v49 = vrot.slane %v4243_v2, 6 }
 0x1c6   : > { %v4225_v46 = vrot.slane %v23409_v58, 5  ;;  %v4226_v34 = vrot.slane %v23410_v57, 6  ;;  %v23412_v12 = vshrl.u32 %v23411_v43, 16  ;;  %v23413_v25 = vshll.u32 %v23411_v43, 16 }
 0x1c7   : > { %14461 = vmatmul.mubr.msk.bf16.gmra.mrb[24].mxu0 %vm1351_vm8, %v23406_v26  ;;  %v4254_v0 = vshrl.u32 %v3959_v31, 16  ;;  %v4257_v38 = vshll.u32 %v3959_v31, 16  ;;  %v4178_v27 = vrot.slane %v4177_v11, 4  ;;  %v4183_v61 = vrot.slane %v18238_v30, 4 }
 0x1c8   : > { %14464 = vmatprep.mubr.msk.bf16.mxu0 %vm1351_vm8, %v23407_v35  ;;  %v4248_v28 = vrot.slane %v23412_v12, 5  ;;  %v4249_v8 = vrot.slane %v23413_v25, 6  ;;  %v4263_v5 = vshrl.u32 %v23414_v60, 16  ;;  %v4266_v54 = vshll.u32 %v23414_v60, 16  ;;  %v4626_v60 = vld [vmem:[#allocation2 + $0x18] sm:$0xf] }
 0x1c9   : > { %v4191_v37 = vor.u32 %v4190_v62, %v4187_v18  ;;  %v4201_v53 = vrot.slane %v4200_v7, 4  ;;  %v4206_v17 = vrot.slane %v4204_v55, 4  ;;  %v4214_v52 = vor.u32 %v4213_v21, %v4210_v51  ;;  %v3960_v51 = vld [vmem:[#allocation2 + $0xb0] sm:$0x3]  ;;  %v23416_v21 = vld [vmem:[#allocation14_spill] sm:$0xff] }
 0x1ca   : > { %v4223_v56 = vor.u32 %v4222_v9, %v4219_v3  ;;  %v18255_v40 = vor.u32 %v4226_v34, %v4225_v46  ;;  %v4233_v1 = vrot.slane %v4231_v10, 5  ;;  %v4236_v6 = vrot.slane %v4234_v15, 6 }
 0x1cb   : > { %v23415_v2 = vcombine.low %v17957_v32, %v17965_v23  ;;  %v4246_v13 = vor.u32 %v4245_v49, %v4242_v39  ;;  %v18261_v26 = vor.u32 %v4249_v8, %v4248_v28  ;;  %v4256_v11 = vrot.slane %v4254_v0, 5  ;;  %v23419_v49 = vld [vmem:[#allocation37_spill] sm:$0xff] }
 0x1cc   : > { %v4259_v22 = vrot.slane %v4257_v38, 6  ;;  %v4159_v18 = vsel %vm16922_vm5, %v18225_v59, %v18207_v14  ;;  %v4169_v62 = vsel %vm16922_vm5, %v4160_v19, %v4168_v47  ;;  %v4265_v35 = vrot.slane %v4263_v5, 5  ;;  %v23420_v8 = vld [vmem:[#allocation41_spill] sm:$0xff] }
 0x1cd   : > { %v4268_v32 = vrot.slane %v4266_v54, 6  ;;  %v4182_v23 = vsel %vm16922_vm5, %v4178_v27, %v18238_v30  ;;  %v4192_v7 = vsel %vm16922_vm5, %v4183_v61, %v4191_v37  ;;  %v23418_v3 = vshll.u32 %v23416_v21, 16  ;;  %v3961_v61 = vld [vmem:[#allocation2 + $0xbc] sm:$0x3] }
 0x1ce   : > { %v4205_v14 = vsel %vm16922_vm5, %v4201_v53, %v4204_v55  ;;  %v4215_v59 = vsel %vm16922_vm5, %v4206_v17, %v4214_v52  ;;  %v18284_v19 = vrot.slane %v4223_v56, 4  ;;  %v4229_v47 = vrot.slane %v18255_v40, 4  ;;  %v23421_v5 = vld [vmem:[#allocation9_spill] sm:$0xff] }
 0x1cf   : > { %14465 = vmatmul.mubr.msk.bf16.gmra.mrb[28].mxu0 %vm1351_vm8, %v23415_v2  ;;  %v4272_v9 = vrot.slane %v23418_v3, 6  ;;  %v4237_v30 = vor.u32 %v4236_v6, %v4233_v1  ;;  %v18287_v44 = vrot.slane %v4246_v13, 4  ;;  %v4252_v58 = vrot.slane %v18261_v26, 4  ;;  %v23422_v17 = vld [vmem:[#allocation17_spill] sm:$0xff] }
 0x1d0   : > { %14470 = vmatprep.mubr.msk.bf16.mxu0 %vm1351_vm8, %v18137_v50  ;;  %v23417_v50 = vshrl.u32 %v23416_v21, 16  ;;  %v4260_v46 = vor.u32 %v4259_v22, %v4256_v11  ;;  %v18296_v55 = vcombine.low %v4136_v45, %v18223_v36  ;;  %v4269_v57 = vor.u32 %v4268_v32, %v4265_v35  ;;  %v18344_v1 = vld [vmem:[#allocation2 + $0x1c] sm:$0xf] }
 0x1d1   : > { %v4277_v34 = vshrl.u32 %v3960_v51, 16  ;;  %v4280_v10 = vshll.u32 %v3960_v51, 16  ;;  %v18298_v15 = vcombine.low %v4159_v18, %v4169_v62  ;;  %v4286_v43 = vshrl.u32 %v23419_v49, 16  ;;  %23424 = vst [vmem:[#allocation26_spill] sm:$0xff] %v18344_v1 }
 0x1d2   : > { %v4271_v31 = vrot.slane %v23417_v50, 5  ;;  %v4289_v12 = vshll.u32 %v23419_v49, 16  ;;  %v18304_v28 = vcombine.low %v4182_v23, %v4192_v7  ;;  %v18306_v25 = vcombine.low %v4205_v14, %v4215_v59  ;;  %v18351_v23 = vld [vmem:[#allocation2 + $0x28] sm:$0xf]  ;;  %v4632_v49 = vld [vmem:[#allocation2 + $0x30] sm:$0xf] }
 0x1d3   : > { %v4309_v0 = vshrl.u32 %v23420_v8, 16  ;;  %v4312_v42 = vshll.u32 %v23420_v8, 16  ;;  %v4228_v45 = vsel %vm16922_vm5, %v18284_v19, %v18255_v40  ;;  %v18323_v36 = vsel %vm16922_vm5, %v4229_v47, %v4237_v30  ;;  %23426 = vst [vmem:[#allocation5_spill] sm:$0xff] %v18351_v23  ;;  %v4638_v19 = vld [vmem:[#allocation2 + $0x48] sm:$0xf] }
 0x1d4   : > { %v18300_v39 = vor.u32 %v4272_v9, %v4271_v31  ;;  %v4251_v38 = vsel %vm16922_vm5, %v18287_v44, %v18261_v26  ;;  %v18331_v27 = vsel %vm16922_vm5, %v4252_v58, %v4260_v46  ;;  %v18336_v54 = vrot.slane %v4269_v57, 4 }
 0x1d5   : > { %v18338_v37 = vrot.slane %v4277_v34, 5  ;;  %v18340_v53 = vrot.slane %v4280_v10, 6  ;;  %v23423_v52 = vshrl.u32 %v23422_v17, 16  ;;  %v4288_v2 = vrot.slane %v4286_v43, 5 }
 0x1d6   : > { %v4275_v6 = vrot.slane %v18300_v39, 4  ;;  %v4291_v13 = vrot.slane %v4289_v12, 6  ;;  %v23425_v11 = vshll.u32 %v23422_v17, 16  ;;  %v4300_v18 = vshrl.u32 %v3961_v61, 16 }
 0x1d7   : > { %14471 = vmatmul.mubr.msk.bf16.vlgmr.msra.gmra.mrb[0].mxu0 %vm1351_vm8, %v18147_v4  ;;  %v3962_v4 = vld [vmem:[#allocation2 + $0xc8] sm:$0x3]  ;;  %v4294_v56 = vrot.slane %v23423_v52, 5  ;;  %v4303_v62 = vshll.u32 %v3961_v61, 16  ;;  %v4311_v35 = vrot.slane %v4309_v0, 5  ;;  %v4314_v32 = vrot.slane %v4312_v42, 6 }
 0x1d8   : > { %14503 = vmatpush3.bf16.msra.mxu0 %v23421_v5  ;;  %14474 = vmatprep.mubr.msk.bf16.mxu0 %vm1351_vm8, %v18154_v20  ;;  %v4295_v22 = vrot.slane %v23425_v11, 6  ;;  %v4629_v20 = vld [vmem:[#allocation2 + $0x24] sm:$0xf]  ;;  %v4323_v7 = vshrl.u32 %v3962_v4, 16  ;;  %v4326_v51 = vshll.u32 %v3962_v4, 16  ;;  %v4675_v21 = vshrl.u32 %v4626_v60, 16 }
 0x1d9   : > { %15593 = vmatprep.subr.msk.bf16.mxu0 %vm1400_vm0, %v18313_v63  ;;  %v4678_v50 = vshll.u32 %v4626_v60, 16  ;;  %v22866_v31 = vshll.u32 %v18344_v1, 16  ;;  %v22867_v3 = vshrl.u32 %v18344_v1, 16  ;;  %v4699_v9 = vshrl.u32 %v4629_v20, 16  ;;  %v18363_v42 = vld [vmem:[#allocation2 + $0x34] sm:$0xf] }
 0x1da   : > { %v4702_v14 = vshll.u32 %v4629_v20, 16  ;;  %v4283_v59 = vor.u32 %v18340_v53, %v18338_v37  ;;  %v4292_v47 = vor.u32 %v4291_v13, %v4288_v2  ;;  %v22864_v30 = vshll.u32 %v18351_v23, 16  ;;  %23427 = vst [vmem:[#allocation11_spill] sm:$0xff] %v18363_v42  ;;  %v18373_v37 = vld [vmem:[#allocation2 + $0x20] sm:$0x1] }
 0x1db   : > { %v22865_v58 = vshrl.u32 %v18351_v23, 16  ;;  %v18359_v46 = vor.u32 %v4295_v22, %v4294_v56  ;;  %v4302_v57 = vrot.slane %v4300_v18, 5  ;;  %v4305_v34 = vrot.slane %v4303_v62, 6  ;;  %23428 = vst [vmem:[#allocation27_spill] sm:$0xff] %v18373_v37  ;;  %v18382_v2 = vld [vmem:[#allocation2 + $0x2c] sm:$0x1] }
 0x1dc   : > { %v4315_v10 = vor.u32 %v4314_v32, %v4311_v35  ;;  %v4325_v43 = vrot.slane %v4323_v7, 5  ;;  %v4328_v12 = vrot.slane %v4326_v51, 6  ;;  %v4677_v8 = vrot.slane %v4675_v21, 4  ;;  %23429 = vst [vmem:[#allocation33_spill] sm:$0xff] %v18382_v2 }
 0x1dd   : > { %v4680_v0 = vrot.slane %v4678_v50, 5  ;;  %v18369_v61 = vrot.slane %v22866_v31, 5  ;;  %v4690_v4 = vrot.slane %v22867_v3, 4  ;;  %v4701_v60 = vrot.slane %v4699_v9, 4  ;;  %v18524_v31 = vld [vmem:[#allocation2 + $0x70] sm:$0xf] }
 0x1de   : > { %v4704_v5 = vrot.slane %v4702_v14, 5  ;;  %v4714_v53 = vrot.slane %v22865_v58, 4  ;;  %v4723_v17 = vshrl.u32 %v4632_v49, 16  ;;  %v4293_v52 = vrot.slane %v4292_v47, 4  ;;  %23436 = vst [vmem:[#allocation30_spill] sm:$0xff] %v18524_v31 }
 0x1df   : > { %14475 = vmatmul.mubr.msk.bf16.gmra.mrb[4].mxu0 %vm1351_vm8, %v18156_v24  ;;  %v18377_v24 = vrot.slane %v22864_v30, 5  ;;  %v4298_v56 = vrot.slane %v18359_v46, 4  ;;  %v22862_v13 = vshll.u32 %v18363_v42, 16  ;;  %v22863_v11 = vshrl.u32 %v18363_v42, 16  ;;  %v18526_v3 = vld [vmem:[#allocation2 + $0x50] sm:$0x1] }
 0x1e0   : > { %14478 = vmatprep.mubr.msk.bf16.mxu0 %vm1351_vm8, %v18182_v41  ;;  %v4726_v41 = vshll.u32 %v4632_v49, 16  ;;  %v4306_v22 = vor.u32 %v4305_v34, %v4302_v57  ;;  %v4316_v20 = vrot.slane %v4315_v10, 4  ;;  %v4321_v18 = vrot.slane %v18195_v16, 4  ;;  %v18399_v34 = vld [vmem:[#allocation2 + $0x38] sm:$0x1] }
 0x1e1   : > { %v4329_v62 = vor.u32 %v4328_v12, %v4325_v43  ;;  %v4681_v35 = vor.u32 %v4680_v0, %v4677_v8  ;;  %v4691_v32 = vor.u32 %v4690_v4, %v18369_v61  ;;  %v4694_v7 = vshll.u32 %v18373_v37, 16  ;;  %v4635_v43 = vld [vmem:[#allocation2 + $0x3c] sm:$0xf] }
 0x1e2   : > { %v4705_v51 = vor.u32 %v4704_v5, %v4701_v60  ;;  %v4715_v21 = vor.u32 %v4714_v53, %v18377_v24  ;;  %v4718_v50 = vshll.u32 %v18382_v2, 16  ;;  %v4725_v9 = vrot.slane %v4723_v17, 4  ;;  %v18443_v53 = vld [vmem:[#allocation2 + $0x40] sm:$0xf] }
 0x1e3   : > { %v4728_v14 = vrot.slane %v4726_v41, 5  ;;  %v4274_v47 = vsel %vm16922_vm5, %v18336_v54, %v18300_v39  ;;  %v4284_v57 = vsel %vm16922_vm5, %v4275_v6, %v4283_v59  ;;  %v18403_v10 = vrot.slane %v22862_v13, 5  ;;  %23430 = vst [vmem:[#allocation28_spill] sm:$0xff] %v18443_v53  ;;  %v4647_v13 = vld [vmem:[#allocation2 + $0x6c] sm:$0xf] }
 0x1e4   : > { %v4738_v49 = vrot.slane %v22863_v11, 4  ;;  %v4297_v54 = vsel %vm16922_vm5, %v4293_v52, %v18359_v46  ;;  %v4307_v39 = vsel %vm16922_vm5, %v4298_v56, %v4306_v22  ;;  %v4320_v6 = vsel %vm16922_vm5, %v4316_v20, %v18195_v16 }
 0x1e5   : > { %v4330_v59 = vsel %vm16922_vm5, %v4321_v18, %v4329_v62  ;;  %v18421_v12 = vrot.slane %v4681_v35, 4  ;;  %v18425_v8 = vrot.slane %v4694_v7, 5  ;;  %v18427_v46 = vrot.slane %v4705_v51, 4  ;;  %v18477_v18 = vld [vmem:[#allocation2 + $0x58] sm:$0xf] }
 0x1e6   : > { %v18429_v0 = vrot.slane %v4715_v21, 4  ;;  %v18431_v4 = vrot.slane %v4718_v50, 5  ;;  %v4729_v16 = vor.u32 %v4728_v14, %v4725_v9  ;;  %v4742_v60 = vshll.u32 %v18399_v34, 16  ;;  %23434 = vst [vmem:[#allocation15_spill] sm:$0xff] %v18477_v18  ;;  %v4644_v51 = vld [vmem:[#allocation2 + $0x60] sm:$0xf] }
 0x1e7   : > { %14479 = vmatmul.mubr.msk.bf16.gmra.mrb[8].mxu0 %vm1351_vm8, %v18190_v33  ;;  %v18423_v33 = vrot.slane %v4691_v32, 4  ;;  %v4739_v5 = vor.u32 %v4738_v49, %v18403_v10  ;;  %v4747_v17 = vshrl.u32 %v4635_v43, 16  ;;  %v4750_v41 = vshll.u32 %v4635_v43, 16  ;;  %v18493_v14 = vld [vmem:[#allocation2 + $0x64] sm:$0xf] }
 0x1e8   : > { %14482 = vmatprep.mubr.msk.bf16.mxu0 %vm1351_vm8, %v18192_v48  ;;  %v18440_v48 = vcombine.low %v4228_v45, %v18323_v36  ;;  %v18451_v52 = vcombine.low %v4251_v38, %v18331_v27  ;;  %v18453_v56 = vcombine.low %v4274_v47, %v4284_v57  ;;  %v18455_v22 = vcombine.low %v4297_v54, %v4307_v39  ;;  %v18459_v45 = vld [vmem:[#allocation2 + $0x4c] sm:$0xf]  ;;  %v4641_v27 = vld [vmem:[#allocation2 + $0x54] sm:$0xf]  ;;  %v18497_v47 = vld [vmem:[#allocation2 + $0x44] sm:$0x1] }
 0x1e9   : > { %v18457_v40 = vcombine.low %v4320_v6, %v4330_v59  ;;  %23431 = vst [vmem:[#allocation29_spill] sm:$0xff] %v18459_v45  ;;  %v18475_v38 = vsel %vm1400_vm0, %v18313_v63, 0  ;;  %v18483_v35 = vrot.slane %v4729_v16, 4  ;;  %v18485_v32 = vrot.slane %v4742_v60, 5  ;;  %23435 = vst [vmem:[#allocation20_spill] sm:$0xff] %v18493_v14 }
 0x1ea   : > { %23433 = vst [vmem:[#allocation8_spill] sm:$0xff] %v18475_v38  ;;  %v22868_v7 = vshll.u32 %v18443_v53, 16  ;;  %v18488_v21 = vrot.slane %v4739_v5, 4  ;;  %v18490_v50 = vrot.slane %v4747_v17, 4  ;;  %v4752_v63 = vrot.slane %v4750_v41, 5 }
 0x1eb   : > { %v22869_v9 = vshrl.u32 %v18443_v53, 16  ;;  %v4771_v57 = vshrl.u32 %v4638_v19, 16  ;;  %v4774_v49 = vshll.u32 %v4638_v19, 16  ;;  %v22870_v54 = vshll.u32 %v18459_v45, 16  ;;  %v18568_v38 = vld [vmem:[#allocation2 + $0x7c] sm:$0xf] }
 0x1ec   : > { %v22871_v39 = vshrl.u32 %v18459_v45, 16  ;;  %v4795_v6 = vshrl.u32 %v4641_v27, 16  ;;  %v4798_v59 = vshll.u32 %v4641_v27, 16  ;;  %v22872_v43 = vshll.u32 %v18477_v18, 16  ;;  %23441 = vst [vmem:[#allocation23_spill] sm:$0xff] %v18568_v38 }
 0x1ed   : > { %v22874_v16 = vshrl.u32 %v18477_v18, 16  ;;  %v4819_v60 = vshrl.u32 %v4644_v51, 16  ;;  %v4822_v5 = vshll.u32 %v4644_v51, 16  ;;  %v22875_v17 = vshrl.u32 %v18493_v14, 16 }
 0x1ee   : > { %v4762_v19 = vrot.slane %v22869_v9, 4  ;;  %v4766_v27 = vshll.u32 %v18497_v47, 16  ;;  %v4773_v51 = vrot.slane %v4771_v57, 4  ;;  %v4776_v11 = vrot.slane %v4774_v49, 5  ;;  %v18534_v49 = vld [vmem:[#allocation2 + $0x5c] sm:$0x1] }
 0x1ef   : > { %14483 = vmatmul.mubr.msk.bf16.gmra.mrb[12].mxu0 %vm1351_vm8, %v18296_v55  ;;  %v22873_v55 = vshll.u32 %v18493_v14, 16  ;;  %v18520_v30 = vrot.slane %v22870_v54, 5  ;;  %v4786_v58 = vrot.slane %v22871_v39, 4  ;;  %v4800_v41 = vrot.slane %v4798_v59, 5  ;;  %23437 = vst [vmem:[#allocation13_spill] sm:$0xff] %v18534_v49 }
 0x1f0   : > { %14486 = vmatprep.mubr.msk.bf16.mxu0 %vm1351_vm8, %v18298_v15  ;;  %v18513_v15 = vrot.slane %v22868_v7, 5  ;;  %v4797_v7 = vrot.slane %v4795_v6, 4  ;;  %v18530_v9 = vrot.slane %v22872_v43, 5  ;;  %v4810_v57 = vrot.slane %v22874_v16, 4  ;;  %v18542_v6 = vld [vmem:[#allocation2 + $0x68] sm:$0x1] }
 0x1f1   : > { %v4821_v54 = vrot.slane %v4819_v60, 4  ;;  %v4824_v44 = vrot.slane %v4822_v5, 5  ;;  %v18538_v39 = vrot.slane %v22873_v55, 5  ;;  %v4834_v62 = vrot.slane %v22875_v17, 4  ;;  %23438 = vst [vmem:[#allocation21_spill] sm:$0xff] %v18542_v6 }
 0x1f2   : > { %v4843_v59 = vshrl.u32 %v4647_v13, 16  ;;  %v4846_v20 = vshll.u32 %v4647_v13, 16  ;;  %v4753_v60 = vor.u32 %v4752_v63, %v18490_v50  ;;  %v4763_v5 = vor.u32 %v4762_v19, %v18513_v15 }
 0x1f3   : > { %v18550_v55 = vrot.slane %v4766_v27, 5  ;;  %v4790_v16 = vshll.u32 %v18526_v3, 16  ;;  %v4777_v17 = vor.u32 %v4776_v11, %v4773_v51  ;;  %v4787_v13 = vor.u32 %v4786_v58, %v18520_v30 }
 0x1f4   : > { %v4801_v43 = vor.u32 %v4800_v41, %v4797_v7  ;;  %v4814_v26 = vshll.u32 %v18534_v49, 16  ;;  %v4825_v2 = vor.u32 %v4824_v44, %v4821_v54  ;;  %v4835_v50 = vor.u32 %v4834_v62, %v18538_v39  ;;  %v18566_v41 = vld [vmem:[#allocation2 + $0x74] sm:$0x1] }
 0x1f5   : > { %v4838_v63 = vshll.u32 %v18542_v6, 16  ;;  %v4845_v19 = vrot.slane %v4843_v59, 4  ;;  %v4848_v27 = vrot.slane %v4846_v20, 5  ;;  %v23439_v23 = vshll.u32 %v18524_v31, 16 }
 0x1f6   : > { %v4754_v11 = vrot.slane %v4753_v60, 4  ;;  %v4764_v7 = vrot.slane %v4763_v5, 4  ;;  %v4867_v51 = vshrl.u32 %v4650_v29, 16  ;;  %v4778_v44 = vrot.slane %v4777_v17, 4 }
 0x1f7   : > { %14487 = vmatmul.mubr.msk.bf16.gmra.mrb[16].mxu0 %vm1351_vm8, %v18304_v28  ;;  %v4811_v28 = vor.u32 %v4810_v57, %v18530_v9  ;;  %v18562_v37 = vrot.slane %v23439_v23, 5  ;;  %v4870_v57 = vshll.u32 %v4650_v29, 16  ;;  %v4788_v54 = vrot.slane %v4787_v13, 4  ;;  %v4653_v13 = vld [vmem:[#allocation2 + $0x84] sm:$0xf] }
 0x1f8   : > { %14490 = vmatprep.mubr.msk.bf16.mxu0 %vm1351_vm8, %v18306_v25  ;;  %v23440_v25 = vshrl.u32 %v18524_v31, 16  ;;  %v4792_v62 = vrot.slane %v4790_v16, 5  ;;  %v4802_v1 = vrot.slane %v4801_v43, 4  ;;  %v4816_v59 = vrot.slane %v4814_v26, 5 }
 0x1f9   : > { %v4812_v20 = vrot.slane %v4811_v28, 4  ;;  %v4826_v6 = vrot.slane %v4825_v2, 4  ;;  %v4840_v23 = vrot.slane %v4838_v63, 5  ;;  %v4836_v14 = vrot.slane %v4835_v50, 4 }
 0x1fa   : > { %v4858_v58 = vrot.slane %v23440_v25, 4  ;;  %v4849_v49 = vor.u32 %v4848_v27, %v4845_v19  ;;  %v4862_v60 = vshll.u32 %v18566_v41, 16  ;;  %v4869_v29 = vrot.slane %v4867_v51, 4  ;;  %v18611_v19 = vld [vmem:[#allocation2 + $0x80] sm:$0x1] }
 0x1fb   : > { %v4872_v17 = vrot.slane %v4870_v57, 5  ;;  %v22889_v16 = vshll.u32 %v18568_v38, 16  ;;  %v22890_v43 = vshrl.u32 %v18568_v38, 16  ;;  %v4745_v2 = vsel %vm16091_vm7, %v18488_v21, %v18485_v32  ;;  %v18657_v57 = vld [vmem:[#allocation2 + $0x8c] sm:$0x1] }
 0x1fc   : > { %v4859_v25 = vor.u32 %v4858_v58, %v18562_v37  ;;  %v4759_v26 = vsel %vm16091_vm7, %v4754_v11, %v18513_v15  ;;  %v4783_v5 = vsel %vm16091_vm7, %v4778_v44, %v18520_v30  ;;  %v4807_v32 = vsel %vm16091_vm7, %v4802_v1, %v18530_v9  ;;  %v23457_v44 = vld [vmem:[#allocation20_spill] sm:$0xff] }
 0x1fd   : > { %v4817_v21 = vsel %vm16091_vm7, %v4812_v20, %v4816_v59  ;;  %v4831_v15 = vsel %vm16091_vm7, %v4826_v6, %v18538_v39  ;;  %v4841_v30 = vsel %vm16091_vm7, %v4836_v14, %v4840_v23  ;;  %v18605_v28 = vrot.slane %v4849_v49, 4  ;;  %v23458_v20 = vld [vmem:[#allocation21_spill] sm:$0xff] }
 0x1fe   : > { %v18607_v50 = vrot.slane %v4859_v25, 4  ;;  %v18609_v63 = vrot.slane %v4862_v60, 5  ;;  %v4873_v1 = vor.u32 %v4872_v17, %v4869_v29  ;;  %v18615_v9 = vrot.slane %v22889_v16, 5  ;;  %v18694_v17 = vld [vmem:[#allocation2 + $0x94] sm:$0xf] }
 0x1ff   : > { %14491 = vmatmul.mubr.msk.bf16.gmra.mrb[20].mxu0 %vm1351_vm8, %v18440_v48  ;;  %v4769_v48 = vsel %vm16091_vm7, %v4764_v7, %v18550_v55  ;;  %v18601_v55 = vld [vmem:[#allocation2 + $0x88] sm:$0xf]  ;;  %v18619_v39 = vrot.slane %v22890_v43, 4  ;;  %v4891_v6 = vshrl.u32 %v4653_v13, 16  ;;  %v23443_v14 = vsel %vm16091_vm7, %v18423_v33, %v18425_v8  ;;  %23450 = vst [vmem:[#allocation32_spill] sm:$0xff] %v18694_v17 }
 0x200   : > { %14494 = vmatprep.mubr.msk.bf16.mxu0 %vm1351_vm8, %v18451_v52  ;;  %v4793_v52 = vsel %vm16091_vm7, %v4788_v54, %v4792_v62  ;;  %23442 = vst [vmem:[#allocation36_spill] sm:$0xff] %v18601_v55  ;;  %v23444_v49 = vsel %vm16091_vm7, %v18421_v12, %v18369_v61  ;;  %v23445_v58 = vsel %vm16091_vm7, %v18429_v0, %v18431_v4  ;;  %v4894_v51 = vshll.u32 %v4653_v13, 16  ;;  %v18669_v54 = vld [vmem:[#allocation2 + $0x30] sm:$0xe]  ;;  %v18671_v62 = vld [vmem:[#allocation2 + $0x3c] sm:$0xe] }
 0x201   : > { %v13367_v27 = vcombine.low %v23444_v49, %v23443_v14  ;;  %v23446_v11 = vsel %vm16091_vm7, %v18427_v46, %v18377_v24  ;;  %v22887_v33 = vshll.u32 %v18601_v55, 16  ;;  %v23447_v61 = vsel %vm16091_vm7, %v18483_v35, %v18403_v10  ;;  %v18659_v24 = vld [vmem:[#allocation2 + $0x90] sm:$0xf]  ;;  %23448 = vst [vmem:[#allocation31_spill] sm:$0xff] %v18669_v54  ;;  %23449 = vst [vmem:[#allocation12_spill] sm:$0xff] %v18671_v62 }
 0x202   : > { %v18641_v7 = vcombine.low %v23446_v11, %v23445_v58  ;;  %v18649_v12 = vcombine.low %v23447_v61, %v4745_v2  ;;  %v18651_v8 = vcombine.low %v4759_v26, %v4769_v48  ;;  %v18653_v0 = vcombine.low %v4783_v5, %v4793_v52  ;;  %v18701_v13 = vld [vmem:[#allocation2 + $0x48] sm:$0xe]  ;;  %v18796_v10 = vld [vmem:[#allocation2 + $0xa0] sm:$0xf]  ;;  %v18808_v23 = vld [vmem:[#allocation2 + $0x9c] sm:$0xe] }
 0x203   : > { %v18655_v4 = vcombine.low %v4807_v32, %v4817_v21  ;;  %v18661_v46 = vcombine.low %v4831_v15, %v4841_v30  ;;  %v22888_v35 = vshrl.u32 %v18601_v55, 16  ;;  %v18679_v59 = vrot.slane %v4873_v1, 4  ;;  %23451 = vst [vmem:[#allocation18_spill] sm:$0xff] %v18701_v13  ;;  %v18710_v30 = vld [vmem:[#allocation2 + $0x54] sm:$0xe]  ;;  %23462 = vst [vmem:[#allocation40_spill] sm:$0xff] %v18808_v23 }
 0x204   : > { %v18683_v25 = vrot.slane %v4891_v6, 4  ;;  %v18687_v60 = vrot.slane %v4894_v51, 5  ;;  %v13401_v26 = vrot.slane %v18669_v54, 9  ;;  %v5432_v48 = vrot.slane %v18363_v42, 5  ;;  %23452 = vst [vmem:[#allocation38_spill] sm:$0xff] %v18710_v30 }
 0x205   : > { %v5435_v5 = vrot.slane %v18399_v34, 5  ;;  %v18705_v52 = vrot.slane %v22888_v35, 4  ;;  %v5439_v21 = vrot.slane %v18443_v53, 5  ;;  %v5442_v15 = vrot.slane %v18497_v47, 5  ;;  %v18896_v42 = vld [vmem:[#allocation2 + $0xc8] sm:$0x1] }
 0x206   : > { %v18716_v14 = vsel %vm16402_vm15, %v13401_v26, %v5432_v48  ;;  %v5434_v49 = vrot.slane %v5432_v48, 4  ;;  %v13403_v51 = vrot.slane %v18701_v13, 9  ;;  %v5446_v47 = vrot.slane %v18459_v45, 5  ;;  %v18731_v48 = vld [vmem:[#allocation2 + $0x60] sm:$0xe] }
 0x207   : > { %14495 = vmatmul.mubr.msk.bf16.gmra.mrb[24].mxu0 %vm1351_vm8, %v18453_v56  ;;  %v18691_v56 = vrot.slane %v22887_v33, 5  ;;  %v5441_v11 = vrot.slane %v5439_v21, 4  ;;  %v5449_v33 = vrot.slane %v18526_v3, 5  ;;  %v13404_v35 = vrot.slane %v18710_v30, 9  ;;  %23454 = vst [vmem:[#allocation39_spill] sm:$0xff] %v18731_v48 }
 0x208   : > { %14498 = vmatprep.mubr.msk.bf16.mxu0 %vm1351_vm8, %v18455_v22  ;;  %v13402_v22 = vrot.slane %v18671_v62, 9  ;;  %v18726_v61 = vsel %vm16402_vm15, %v5434_v49, %v5435_v5  ;;  %v5453_v26 = vrot.slane %v18477_v18, 5  ;;  %v18741_v16 = vsel %vm16402_vm15, %v13403_v51, %v5446_v47  ;;  %v18743_v49 = vld [vmem:[#allocation2 + $0x6c] sm:$0xe]  ;;  %v18762_v3 = vld [vmem:[#allocation2 + $0x78] sm:$0xe] }
 0x209   : > { %v5448_v5 = vrot.slane %v5446_v47, 4  ;;  %23455 = vst [vmem:[#allocation22_spill] sm:$0xff] %v18743_v49  ;;  %v13405_v47 = vrot.slane %v18731_v48, 9  ;;  %v5463_v29 = vrot.slane %v23458_v20, 5  ;;  %23459 = vst [vmem:[#allocation24_spill] sm:$0xff] %v18762_v3  ;;  %v13407_v1 = vrot.slane %v18762_v3, 9 }
 0x20a   : > { %v18720_v58 = vsel %vm16402_vm15, %v13402_v22, %v5439_v21  ;;  %v18737_v21 = vsel %vm16402_vm15, %v5441_v11, %v5442_v15  ;;  %v18751_v43 = vsel %vm16402_vm15, %v13404_v35, %v5453_v26  ;;  %v5455_v22 = vrot.slane %v5453_v26, 4  ;;  %v23456_v15 = vld [vmem:[#allocation13_spill] sm:$0xff]  ;;  %v18878_v13 = vld [vmem:[#allocation2 + $0xc0] sm:$0xe] }
 0x20b   : > { %v5456_v11 = vrot.slane %v23456_v15, 5  ;;  %v18757_v51 = vsel %vm16402_vm15, %v5448_v5, %v5449_v33  ;;  %v5467_v33 = vrot.slane %v18524_v31, 5  ;;  %v18772_v5 = vld [vmem:[#allocation2 + $0x84] sm:$0xe]  ;;  %v5470_v35 = vrot.slane %v18566_v41, 5  ;;  %23470 = vst [vmem:[#allocation9_spill] sm:$0xff] %v18878_v13 }
 0x20c   : > { %23460 = vst [vmem:[#allocation34_spill] sm:$0xff] %v18772_v5  ;;  %v5474_v32 = vrot.slane %v18568_v38, 5  ;;  %v5477_v15 = vrot.slane %v18611_v19, 5  ;;  %v18794_v41 = vld [vmem:[#allocation2 + $0x90] sm:$0xe]  ;;  %v5488_v3 = vrot.slane %v18694_v17, 5 }
 0x20d   : > { %v18768_v26 = vsel %vm16402_vm15, %v5455_v22, %v5456_v11  ;;  %v5469_v11 = vrot.slane %v5467_v33, 4  ;;  %23461 = vst [vmem:[#allocation16_spill] sm:$0xff] %v18794_v41  ;;  %v13409_v38 = vrot.slane %v18794_v41, 9  ;;  %v18833_v31 = vld [vmem:[#allocation2 + $0xa8] sm:$0xe]  ;;  %v5495_v41 = vrot.slane %v18796_v10, 5 }
 0x20e   : > { %23463 = vst [vmem:[#allocation19_spill] sm:$0xff] %v18833_v31  ;;  %v13411_v30 = vrot.slane %v18833_v31, 9  ;;  %v18880_v62 = vld [vmem:[#allocation2 + $0xbc] sm:$0x1]  ;;  %v18892_v31 = vld [vmem:[#allocation2 + $0xcc] sm:$0xe] }
 0x20f   : > { %14499 = vmatmul.mubr.msk.bf16.gmra.mrb[28].mxu0 %vm1351_vm8, %v18457_v40  ;;  %v5460_v40 = vrot.slane %v23457_v44, 5  ;;  %v18848_v44 = vld [vmem:[#allocation2 + $0xb4] sm:$0xe]  ;;  %v5497_v18 = vrot.slane %v5495_v41, 4  ;;  %23473 = vst [vmem:[#allocation21_spill] sm:$0xff] %v18892_v31 }
 0x210   : > { %14504 = vmatprep.mubr.msk.bf16.mxu0 %vm1351_vm8, %v13367_v27  ;;  %v13406_v27 = vrot.slane %v18743_v49, 9  ;;  %23466 = vst [vmem:[#allocation35_spill] sm:$0xff] %v18848_v44  ;;  %v18850_v49 = vld [vmem:[#allocation2 + $0xac] sm:$0xf] }
 0x211   : > { %v18778_v20 = vsel %vm16402_vm15, %v13405_v47, %v5460_v40  ;;  %v5462_v34 = vrot.slane %v5460_v40, 4  ;;  %v13408_v47 = vrot.slane %v18772_v5, 9  ;;  %v5481_v40 = vrot.slane %v18601_v55, 5  ;;  %v18810_v5 = vld [vmem:[#allocation2 + $0x98] sm:$0x1] }
 0x212   : > { %v18783_v22 = vsel %vm16402_vm15, %v13406_v27, %v5467_v33  ;;  %v18802_v33 = vsel %vm16402_vm15, %v5469_v11, %v5470_v35  ;;  %v18815_v55 = vld [vmem:[%s22688_s1 + $0x10] sm:$0x3]  ;;  %v5491_v27 = vrot.slane %v18810_v5, 5  ;;  %v5502_v45 = vrot.slane %v18850_v49, 5 }
 0x213   : > { %v18789_v2 = vsel %vm16402_vm15, %v5462_v34, %v5463_v29  ;;  %v18806_v29 = vsel %vm16402_vm15, %v13407_v1, %v5474_v32  ;;  %v5476_v34 = vrot.slane %v5474_v32, 4  ;;  %v18821_v35 = vsel %vm16402_vm15, %v13408_v47, %v5481_v40  ;;  %v23464_v47 = vld [vmem:[#allocation8_spill] sm:$0xff] }
 0x214   : > { %v5483_v11 = vrot.slane %v5481_v40, 4  ;;  %v5484_v1 = vrot.slane %v18657_v57, 5  ;;  %v18838_v40 = vld [vmem:[#allocation2 + $0xa4] sm:$0x1] }
 0x215   : > { %v18828_v32 = vsel %vm16402_vm15, %v5476_v34, %v5477_v15  ;;  %v13410_v34 = vrot.slane %v18808_v23, 9  ;;  %v18863_v23 = vld [vmem:[#allocation2 + $0xb0] sm:$0x1] }
 0x216   : > { %v18844_v15 = vsel %vm16402_vm15, %v5483_v11, %v5484_v1  ;;  %v18860_v11 = vsel %vm16402_vm15, %v13409_v38, %v5488_v3  ;;  %v5490_v1 = vrot.slane %v5488_v3, 4  ;;  %v5505_v38 = vrot.slane %v18863_v23, 5 }
 0x217   : > { %14505 = vmatmul.mubr.msk.bf16.vlgmr.msra.gmra.mrb[0].mxu0 %vm1351_vm8, %v18641_v7  ;;  %23465 = vst [vmem:[#allocation25_spill] sm:$0xff] %v18844_v15  ;;  %23467 = vst [vmem:[#allocation14_spill] sm:$0xff] %v18860_v11  ;;  %v5498_v7 = vrot.slane %v18838_v40, 5  ;;  %v18867_v48 = vsel %vm16402_vm15, %v13410_v34, %v5495_v41  ;;  %v13412_v3 = vrot.slane %v18848_v44, 9  ;;  %v18894_v44 = vld [vmem:[#allocation2 + $0xc4] sm:$0xf] }
 0x218   : > { %14537 = vmatpush3.bf16.msra.mxu0 %v23464_v47  ;;  %14508 = vmatprep.mubr.msk.bf16.mxu0 %vm1351_vm8, %v18649_v12  ;;  %v18852_v47 = vld [vmem:[#allocation2 + $0xb8] sm:$0xf]  ;;  %23468 = vst [vmem:[#allocation37_spill] sm:$0xff] %v18867_v48  ;;  %v18873_v12 = vsel %vm16402_vm15, %v5490_v1, %v5491_v27  ;;  %v18890_v27 = vsel %vm16402_vm15, %v13411_v30, %v5502_v45  ;;  %v5504_v1 = vrot.slane %v5502_v45, 4  ;;  %v13413_v30 = vrot.slane %v18878_v13, 9 }
 0x219   : > { %15594 = vmatprep.subr.msk.bf16.mxu0 %vm1400_vm0, %v18815_v55  ;;  %23469 = vst [vmem:[#allocation41_spill] sm:$0xff] %v18873_v12  ;;  %v5509_v53 = vrot.slane %v18852_v47, 5  ;;  %v18886_v34 = vsel %vm16402_vm15, %v5497_v18, %v5498_v7  ;;  %23472 = vst [vmem:[#allocation13_spill] sm:$0xff] %v18890_v27  ;;  %v5512_v7 = vrot.slane %v18880_v62, 5  ;;  %v18905_v12 = vld [vmem:[#allocation2 + $0xd0] sm:$0xf]  ;;  %v23477_v13 = vor.u32 %v18619_v39, %v18615_v9 }
 0x21a   : > { %23471 = vst [vmem:[#allocation17_spill] sm:$0xff] %v18886_v34  ;;  %v18909_v45 = vsel %vm16402_vm15, %v5504_v1, %v5505_v38  ;;  %v5516_v11 = vrot.slane %v18894_v44, 5  ;;  %v5519_v15 = vrot.slane %v18896_v42, 5  ;;  %v13414_v38 = vrot.slane %v18892_v31, 9  ;;  %v4659_v31 = vld [vmem:[#allocation2 + $0x9c] sm:$0xf] }
 0x21b   : > { %v18902_v41 = vsel %vm16402_vm15, %v13412_v3, %v5509_v53  ;;  %v5511_v18 = vrot.slane %v5509_v53, 4  ;;  %23475 = vst [vmem:[#allocation42_spill] sm:$0xff] %v18909_v45  ;;  %v18916_v3 = vld [vmem:[#allocation2 + $0xd4] sm:$0x1]  ;;  %v5523_v1 = vrot.slane %v18905_v12, 5  ;;  %v23484_v39 = vshll.u32 %v18657_v57, 16 }
 0x21c   : > { %23474 = vst [vmem:[#allocation8_spill] sm:$0xff] %v18902_v41  ;;  %v5518_v34 = vrot.slane %v5516_v11, 4  ;;  %v5526_v53 = vrot.slane %v18916_v3, 5  ;;  %v23479_v41 = vshrl.u32 %v18659_v24, 16  ;;  %v4662_v48 = vld [vmem:[#allocation2 + $0xa8] sm:$0xf] }
 0x21d   : > { %v18922_v54 = vsel %vm16402_vm15, %v5511_v18, %v5512_v7  ;;  %v4897_v18 = vor.u32 %v18687_v60, %v18683_v25  ;;  %v4907_v7 = vor.u32 %v18705_v52, %v18691_v56  ;;  %v5525_v45 = vrot.slane %v5523_v1, 4 }
 0x21e   : > { %23476 = vst [vmem:[#allocation43_spill] sm:$0xff] %v18922_v54  ;;  %v4917_v27 = vrot.slane %v23479_v41, 4  ;;  %v18952_v25 = vsel %vm16402_vm15, %v5518_v34, %v5519_v15  ;;  %v23481_v60 = vshll.u32 %v18659_v24, 16  ;;  %v4939_v15 = vshrl.u32 %v4659_v31, 16 }
 0x21f   : > { %14509 = vmatmul.mubr.msk.bf16.gmra.mrb[4].mxu0 %vm1351_vm8, %v18651_v8  ;;  %v18932_v8 = vsel %vm16402_vm15, %v13413_v30, %v5516_v11  ;;  %v4884_v30 = vrot.slane %v23477_v13, 4  ;;  %v23478_v11 = vshll.u32 %v18611_v19, 16  ;;  %23480 = vst [vmem:[#allocation44_spill] sm:$0xff] %v18952_v25  ;;  %v18964_v19 = vsel %vm16402_vm15, %v5525_v45, %v5526_v53 }
 0x220   : > { %14512 = vmatprep.mubr.msk.bf16.mxu0 %vm1351_vm8, %v18653_v0  ;;  %v18941_v0 = vsel %vm16402_vm15, %v13414_v38, %v5523_v1  ;;  %v4920_v52 = vrot.slane %v23481_v60, 5  ;;  %v23482_v38 = vshll.u32 %v18694_v17, 16  ;;  %v23483_v13 = vshrl.u32 %v18694_v17, 16 }
 0x221   : > { %v4888_v54 = vrot.slane %v23478_v11, 5  ;;  %v4942_v34 = vshll.u32 %v4659_v31, 16  ;;  %v4879_v11 = vsel %vm16091_vm7, %v18679_v59, %v18615_v9  ;;  %v4898_v60 = vrot.slane %v4897_v18, 4 }
 0x222   : > { %v18958_v1 = vrot.slane %v23482_v38, 5  ;;  %v4930_v41 = vrot.slane %v23483_v13, 4  ;;  %v4908_v38 = vrot.slane %v4907_v7, 4  ;;  %v4912_v25 = vrot.slane %v23484_v39, 5 }
 0x223   : > { %v4948_v45 = vshll.u32 %v18796_v10, 16  ;;  %v4952_v53 = vshrl.u32 %v18796_v10, 16  ;;  %v4963_v13 = vshrl.u32 %v4662_v48, 16  ;;  %v4966_v17 = vshll.u32 %v4662_v48, 16 }
 0x224   : > { %v4889_v31 = vsel %vm16091_vm7, %v4884_v30, %v4888_v54  ;;  %v4934_v24 = vshll.u32 %v18810_v5, 16  ;;  %v22945_v9 = vshll.u32 %v18850_v49, 16  ;;  %v4976_v59 = vshrl.u32 %v18850_v49, 16 }
 0x225   : > { %v4921_v57 = vor.u32 %v4920_v52, %v4917_v27  ;;  %v4931_v18 = vor.u32 %v4930_v41, %v18958_v1  ;;  %v4941_v7 = vrot.slane %v4939_v15, 4  ;;  %v4944_v48 = vrot.slane %v4942_v34, 5 }
 0x226   : > { %v23486_v54 = vsel %vm16091_vm7, %v18605_v28, %v18562_v37  ;;  %v4913_v27 = vsel %vm16091_vm7, %v4908_v38, %v4912_v25  ;;  %v19005_v30 = vrot.slane %v4948_v45, 5  ;;  %v4968_v52 = vrot.slane %v4966_v17, 5 }
 0x227   : > { %14513 = vmatmul.mubr.msk.bf16.gmra.mrb[8].mxu0 %vm1351_vm8, %v18655_v4  ;;  %v23485_v4 = vsel %vm16091_vm7, %v18607_v50, %v18609_v63  ;;  %v4954_v50 = vrot.slane %v4952_v53, 4  ;;  %v4965_v63 = vrot.slane %v4963_v13, 4  ;;  %v13375_v39 = vcombine.low %v4879_v11, %v4889_v31 }
 0x228   : > { %14516 = vmatprep.mubr.msk.bf16.mxu0 %vm1351_vm8, %v18661_v46  ;;  %v13374_v5 = vcombine.low %v23486_v54, %v23485_v4  ;;  %v4903_v46 = vsel %vm16091_vm7, %v4898_v60, %v18691_v56  ;;  %v4936_v41 = vrot.slane %v4934_v24, 5  ;;  %v4974_v37 = vrot.slane %v22945_v9, 5  ;;  %v4665_v56 = vld [vmem:[#allocation2 + $0xb4] sm:$0xf]  ;;  %v4668_v24 = vld [vmem:[#allocation2 + $0xc0] sm:$0xf] }
 0x229   : > { %v4978_v28 = vrot.slane %v4976_v59, 4  ;;  %v4922_v15 = vrot.slane %v4921_v57, 4  ;;  %v4932_v25 = vrot.slane %v4931_v18, 4  ;;  %v4945_v34 = vor.u32 %v4944_v48, %v4941_v7 }
 0x22a   : > { %v4958_v60 = vshll.u32 %v18838_v40, 16  ;;  %v13376_v38 = vcombine.low %v4903_v46, %v4913_v27  ;;  %v4955_v4 = vor.u32 %v4954_v50, %v19005_v30  ;;  %v4969_v54 = vor.u32 %v4968_v52, %v4965_v63 }
 0x22b   : > { %v4982_v17 = vshll.u32 %v18863_v23, 16  ;;  %v4987_v11 = vshrl.u32 %v4665_v56, 16  ;;  %v4979_v13 = vor.u32 %v4978_v28, %v4974_v37  ;;  %v4990_v31 = vshll.u32 %v4665_v56, 16 }
 0x22c   : > { %v4996_v9 = vshll.u32 %v18852_v47, 16  ;;  %v5000_v57 = vshrl.u32 %v18852_v47, 16  ;;  %v4927_v40 = vsel %vm16091_vm7, %v4922_v15, %v18958_v1  ;;  %v4937_v18 = vsel %vm16091_vm7, %v4932_v25, %v4936_v41 }
 0x22d   : > { %v4946_v23 = vrot.slane %v4945_v34, 4  ;;  %v4960_v7 = vrot.slane %v4958_v60, 5  ;;  %v5011_v48 = vshrl.u32 %v4668_v24, 16  ;;  %v5014_v46 = vshll.u32 %v4668_v24, 16 }
 0x22e   : > { %v22947_v27 = vshrl.u32 %v18894_v44, 16  ;;  %v4956_v50 = vrot.slane %v4955_v4, 4  ;;  %v4970_v63 = vrot.slane %v4969_v54, 4  ;;  %v4984_v52 = vrot.slane %v4982_v17, 5  ;;  %v4671_v54 = vld [vmem:[#allocation2 + $0xcc] sm:$0xf] }
 0x22f   : > { %14517 = vmatmul.mubr.msk.bf16.gmra.mrb[12].mxu0 %vm1351_vm8, %v13374_v5  ;;  %v22946_v5 = vshll.u32 %v18894_v44, 16  ;;  %v4989_v28 = vrot.slane %v4987_v11, 4  ;;  %v4992_v56 = vrot.slane %v4990_v31, 5  ;;  %v4998_v1 = vrot.slane %v4996_v9, 5 }
 0x230   : > { %14520 = vmatprep.mubr.msk.bf16.mxu0 %vm1351_vm8, %v13375_v39  ;;  %v4980_v39 = vrot.slane %v4979_v13, 4  ;;  %v5002_v41 = vrot.slane %v5000_v57, 4  ;;  %v13377_v15 = vcombine.low %v4927_v40, %v4937_v18  ;;  %v5013_v25 = vrot.slane %v5011_v48, 4 }
 0x231   : > { %v5016_v34 = vrot.slane %v5014_v46, 5  ;;  %v5022_v60 = vrot.slane %v22946_v5, 5  ;;  %v5026_v4 = vrot.slane %v22947_v27, 4  ;;  %v4951_v17 = vsel %vm16091_vm7, %v4946_v23, %v19005_v30 }
 0x232   : > { %v4961_v11 = vsel %vm16091_vm7, %v4956_v50, %v4960_v7  ;;  %v5006_v24 = vshll.u32 %v18880_v62, 16  ;;  %v4975_v13 = vsel %vm16091_vm7, %v4970_v63, %v4974_v37  ;;  %v4985_v31 = vsel %vm16091_vm7, %v4980_v39, %v4984_v52 }
 0x233   : > { %v4993_v40 = vor.u32 %v4992_v56, %v4989_v28  ;;  %v5003_v18 = vor.u32 %v5002_v41, %v4998_v1  ;;  %v5035_v48 = vshrl.u32 %v4671_v54, 16  ;;  %v5038_v46 = vshll.u32 %v4671_v54, 16 }
 0x234   : > { %v5044_v30 = vshll.u32 %v18905_v12, 16  ;;  %v5048_v23 = vshrl.u32 %v18905_v12, 16  ;;  %v5017_v7 = vor.u32 %v5016_v34, %v5013_v25  ;;  %v5027_v62 = vor.u32 %v5026_v4, %v5022_v60 }
 0x235   : > { %v13378_v50 = vcombine.low %v4951_v17, %v4961_v11  ;;  %v13379_v5 = vcombine.low %v4975_v13, %v4985_v31  ;;  %v4994_v37 = vrot.slane %v4993_v40, 4  ;;  %v5004_v63 = vrot.slane %v5003_v18, 4  ;;  %v23487_v13 = vld [vmem:[#allocation26_spill] sm:$0xff]  ;;  %v5352_v40 = vld [vmem:[#allocation2 + $0x18] sm:$0xe] }
 0x236   : > { %v5008_v27 = vrot.slane %v5006_v24, 5  ;;  %v5037_v52 = vrot.slane %v5035_v48, 4  ;;  %v5040_v28 = vrot.slane %v5038_v46, 5  ;;  %v5046_v39 = vrot.slane %v5044_v30, 5 }
 0x237   : > { %14521 = vmatmul.mubr.msk.bf16.gmra.mrb[16].mxu0 %vm1351_vm8, %v13376_v38  ;;  %v5030_v38 = vshll.u32 %v18896_v42, 16  ;;  %v5050_v56 = vrot.slane %v5048_v23, 4  ;;  %v5018_v41 = vrot.slane %v5017_v7, 4  ;;  %v4999_v42 = vsel %vm16091_vm7, %v4994_v37, %v4998_v1 }
 0x238   : > { %14524 = vmatprep.mubr.msk.bf16.mxu0 %vm1351_vm8, %v13377_v15  ;;  %v5028_v15 = vrot.slane %v5027_v62, 4  ;;  %v5009_v25 = vsel %vm16091_vm7, %v5004_v63, %v5008_v27  ;;  %v5041_v34 = vor.u32 %v5040_v28, %v5037_v52  ;;  %v5054_v17 = vshll.u32 %v18916_v3, 16  ;;  %v23488_v62 = vld [vmem:[#allocation27_spill] sm:$0xff]  ;;  %v5353_v28 = vld [vmem:[#allocation2 + $0x24] sm:$0xe] }
 0x239   : > { %v5032_v54 = vrot.slane %v5030_v38, 5  ;;  %v5051_v4 = vor.u32 %v5050_v56, %v5046_v39  ;;  %v5023_v11 = vsel %vm16091_vm7, %v5018_v41, %v5022_v60  ;;  %v5418_v31 = vrot.slane %v23487_v13, 5 }
 0x23a   : > { %v13380_v18 = vcombine.low %v4999_v42, %v5009_v25  ;;  %v5042_v48 = vrot.slane %v5041_v34, 4  ;;  %v5056_v46 = vrot.slane %v5054_v17, 5  ;;  %v13399_v7 = vrot.slane %v5352_v40, 9  ;;  %v23490_v42 = vld [vmem:[#allocation33_spill] sm:$0xff] }
 0x23b   : > { %v5033_v24 = vsel %vm16091_vm7, %v5028_v15, %v5032_v54  ;;  %v5420_v27 = vrot.slane %v5418_v31, 4  ;;  %v5421_v38 = vrot.slane %v23488_v62, 5  ;;  %v13400_v15 = vrot.slane %v5353_v28, 9  ;;  %v23503_v62 = vld [vmem:[#allocation14_spill] sm:$0xff] }
 0x23c   : > { %v13381_v1 = vcombine.low %v5023_v11, %v5033_v24  ;;  %v5047_v3 = vsel %vm16091_vm7, %v5042_v48, %v5046_v39  ;;  %v5419_v63 = vsel %vm16402_vm15, %v13399_v7, %v5418_v31  ;;  %v5428_v25 = vrot.slane %v23490_v42, 5 }
 0x23d   : > { %v5422_v52 = vsel %vm16402_vm15, %v5420_v27, %v5421_v38  ;;  %v6305_v17 = vsel %vm1400_vm0, %v18815_v55, 0  ;;  %v23491_v11 = vcombine.low %v18716_v14, %v18726_v61  ;;  %v23492_v24 = vcombine.low %v18720_v58, %v18737_v21  ;;  %v23504_v38 = vld [vmem:[#allocation41_spill] sm:$0xff] }
 0x23e   : > { %v13416_v41 = vcombine.low %v5419_v63, %v5422_v52  ;;  %v23493_v31 = vcombine.low %v18741_v16, %v18757_v51  ;;  %v23494_v55 = vcombine.low %v18751_v43, %v18768_v26  ;;  %v23495_v14 = vcombine.low %v18778_v20, %v18789_v2  ;;  %v5822_v43 = vld [vmem:[#allocation2 + $0x20] sm:$0x3] }
 0x23f   : > { %14525 = vmatmul.mubr.msk.bf16.gmra.mrb[20].mxu0 %vm1351_vm8, %v13378_v50  ;;  %v23489_v50 = vld [vmem:[#allocation5_spill] sm:$0xff]  ;;  %v23496_v58 = vcombine.low %v18783_v22, %v18802_v33  ;;  %v23497_v16 = vcombine.low %v18806_v29, %v18828_v32  ;;  %v5839_v61 = vshrl.u32 %v5352_v40, 16  ;;  %v5842_v21 = vshll.u32 %v5352_v40, 16  ;;  %v5823_v29 = vld [vmem:[#allocation2 + $0x2c] sm:$0x3] }
 0x240   : > { %14528 = vmatprep.mubr.msk.bf16.mxu0 %vm1351_vm8, %v13379_v5  ;;  %v5052_v5 = vrot.slane %v5051_v4, 4  ;;  %v5425_v37 = vrot.slane %v23489_v50, 5  ;;  %v23498_v51 = vshrl.u32 %v23487_v13, 16  ;;  %v23499_v20 = vshll.u32 %v23487_v13, 16  ;;  %v23502_v40 = vld [vmem:[#allocation31_spill] sm:$0xff] }
 0x241   : > { %v5844_v2 = vrot.slane %v5842_v21, 6  ;;  %v5853_v48 = vshrl.u32 %v5822_v43, 16  ;;  %v5856_v22 = vshll.u32 %v5822_v43, 16  ;;  %v5862_v33 = vshrl.u32 %v5353_v28, 16 }
 0x242   : > { %v5057_v60 = vsel %vm16091_vm7, %v5052_v5, %v5056_v46  ;;  %v5427_v54 = vrot.slane %v5425_v37, 4  ;;  %v5426_v39 = vsel %vm16402_vm15, %v13400_v15, %v5425_v37  ;;  %v5847_v26 = vrot.slane %v23498_v51, 5  ;;  %v23500_v5 = vld [vmem:[#allocation25_spill] sm:$0xff] }
 0x243   : > { %v13382_v56 = vcombine.low %v5047_v3, %v5057_v60  ;;  %v23501_v46 = vcombine.low %v18821_v35, %v23500_v5  ;;  %v5865_v32 = vshll.u32 %v5353_v28, 16  ;;  %v5885_v7 = vshrl.u32 %v23502_v40, 16  ;;  %v5824_v35 = vld [vmem:[#allocation2 + $0x38] sm:$0x3]  ;;  %v23516_v5 = vld [vmem:[#allocation42_spill] sm:$0xff] }
 0x244   : > { %v5429_v34 = vsel %vm16402_vm15, %v5427_v54, %v5428_v25  ;;  %v5888_v27 = vshll.u32 %v23502_v40, 16  ;;  %v23505_v3 = vcombine.low %v23503_v62, %v23504_v38  ;;  %v5855_v37 = vrot.slane %v5853_v48, 5  ;;  %v23518_v38 = vld [vmem:[#allocation18_spill] sm:$0xff] }
 0x245   : > { %v13417_v4 = vcombine.low %v5426_v39, %v5429_v34  ;;  %v23506_v63 = vshrl.u32 %v23489_v50, 16  ;;  %v23507_v28 = vshll.u32 %v23489_v50, 16  ;;  %v5876_v54 = vshrl.u32 %v5823_v29, 16 }
 0x246   : > { %v5867_v42 = vrot.slane %v5865_v32, 6  ;;  %v5879_v25 = vshll.u32 %v5823_v29, 16  ;;  %v5887_v39 = vrot.slane %v5885_v7, 5  ;;  %v5890_v34 = vrot.slane %v5888_v27, 6  ;;  %v5825_v7 = vld [vmem:[#allocation2 + $0x44] sm:$0x3] }
 0x247   : > { %14529 = vmatmul.mubr.msk.bf16.gmra.mrb[24].mxu0 %vm1351_vm8, %v13380_v18  ;;  %v5841_v18 = vrot.slane %v5839_v61, 5  ;;  %v5870_v52 = vrot.slane %v23506_v63, 5  ;;  %v5871_v15 = vrot.slane %v23507_v28, 6 }
 0x248   : > { %14532 = vmatprep.mubr.msk.bf16.mxu0 %vm1351_vm8, %v13381_v1  ;;  %v5848_v1 = vrot.slane %v23499_v20, 6  ;;  %v5881_v48 = vrot.slane %v5879_v25, 6  ;;  %v5826_v25 = vld [vmem:[#allocation2 + $0x50] sm:$0x3] }
 0x249   : > { %v5845_v13 = vor.u32 %v5844_v2, %v5841_v18  ;;  %v5872_v51 = vor.u32 %v5871_v15, %v5870_v52  ;;  %v23513_v18 = vld [vmem:[#allocation17_spill] sm:$0xff]  ;;  %v23520_v15 = vld [vmem:[#allocation28_spill] sm:$0xff] }
 0x24a   : > { %v5849_v60 = vor.u32 %v5848_v1, %v5847_v26  ;;  %v23512_v26 = vld [vmem:[#allocation37_spill] sm:$0xff]  ;;  %v5878_v1 = vrot.slane %v5876_v54, 5  ;;  %v23521_v54 = vshrl.u32 %v23520_v15, 16 }
 0x24b   : > { %v5846_v21 = vrot.slane %v5845_v13, 4  ;;  %v23514_v2 = vcombine.low %v23512_v26, %v23513_v18  ;;  %v5934_v13 = vshll.u32 %v23518_v38, 16  ;;  %v23526_v26 = vld [vmem:[#allocation8_spill] sm:$0xff]  ;;  %v23527_v18 = vld [vmem:[#allocation43_spill] sm:$0xff] }
 0x24c   : > { %v5851_v50 = vrot.slane %v5849_v60, 4 }
 0x24d   : > { %v5850_v63 = vsel %vm16922_vm5, %v5846_v21, %v5849_v60 }
 0x24f   : > { %14533 = vmatmul.mubr.msk.bf16.gmra.mrb[28].mxu0 %vm1351_vm8, %v13382_v56  ;;  %v5858_v56 = vrot.slane %v5856_v22, 6  ;;  %v5891_v22 = vor.u32 %v5890_v34, %v5887_v39 }
 0x250   : > { %14538 = vmatprep.mubr.msk.bf16.mxu0 %vm1351_vm8, %v13416_v41  ;;  %v5864_v41 = vrot.slane %v5862_v33, 5  ;;  %v23515_v33 = vld [vmem:[#allocation13_spill] sm:$0xff] }
 0x251   : > { %v5859_v43 = vor.u32 %v5858_v56, %v5855_v37  ;;  %v5892_v28 = vrot.slane %v5891_v22, 4 }
 0x252   : > { %v5868_v20 = vor.u32 %v5867_v42, %v5864_v41  ;;  %v5882_v41 = vor.u32 %v5881_v48, %v5878_v1  ;;  %v5916_v42 = vrot.slane %v23521_v54, 5  ;;  %v23529_v1 = vld [vmem:[#allocation38_spill] sm:$0xff] }
 0x253   : > { %v5860_v52 = vsel %vm16922_vm5, %v5851_v50, %v5859_v43  ;;  %v5945_v50 = vshrl.u32 %v5826_v25, 16  ;;  %v5948_v43 = vshll.u32 %v5826_v25, 16  ;;  %v5954_v48 = vshrl.u32 %v23529_v1, 16 }
 0x254   : > { %v5869_v56 = vrot.slane %v5868_v20, 4  ;;  %v13449_v20 = vcombine.low %v5850_v63, %v5860_v52  ;;  %v5957_v22 = vshll.u32 %v23529_v1, 16 }
 0x255   : > { %v5950_v52 = vrot.slane %v5948_v43, 6 }
 0x257   : > { %14539 = vmatmul.mubr.msk.bf16.vlgmr.msra.gmra.mrb[0].mxu0 %vm1351_vm8, %v13417_v4  ;;  %v23508_v4 = vld [vmem:[#allocation11_spill] sm:$0xff] }
 0x258   : > { %14571 = vmatpush3.bf16.msra.mxu0 %v6305_v17  ;;  %14542 = vmatprep.mubr.msk.bf16.mxu0 %vm1351_vm8, %v23491_v11  ;;  %v23509_v17 = vshrl.u32 %v23508_v4, 16 }
 0x25a   : > { %v5893_v11 = vrot.slane %v23509_v17, 5 }
 0x25f   : > { %14543 = vmatmul.mubr.msk.bf16.gmra.mrb[4].mxu0 %vm1351_vm8, %v23492_v24  ;;  %v23510_v24 = vshll.u32 %v23508_v4, 16  ;;  %v23522_v4 = vshll.u32 %v23520_v15, 16 }
 0x260   : > { %14546 = vmatprep.mubr.msk.bf16.mxu0 %vm1351_vm8, %v23493_v31 }
 0x261   : > { %v5894_v31 = vrot.slane %v23510_v24, 6  ;;  %v5917_v17 = vrot.slane %v23522_v4, 6 }
 0x263   : > { %v5895_v29 = vor.u32 %v5894_v31, %v5893_v11  ;;  %v5922_v11 = vshrl.u32 %v5825_v7, 16  ;;  %v5925_v31 = vshll.u32 %v5825_v7, 16 }
 0x265   : > { %v5897_v39 = vrot.slane %v5895_v29, 4 }
 0x267   : > { %14547 = vmatmul.mubr.msk.bf16.gmra.mrb[8].mxu0 %vm1351_vm8, %v23494_v55  ;;  %v5899_v55 = vshrl.u32 %v5824_v35, 16 }
 0x268   : > { %14550 = vmatprep.mubr.msk.bf16.mxu0 %vm1351_vm8, %v23495_v14  ;;  %v5902_v14 = vshll.u32 %v5824_v35, 16  ;;  %v5874_v35 = vrot.slane %v5872_v51, 4 }
 0x269   : > { %v5901_v32 = vrot.slane %v5899_v55, 5  ;;  %v5936_v55 = vrot.slane %v5934_v13, 6 }
 0x26a   : > { %v5904_v40 = vrot.slane %v5902_v14, 6  ;;  %v23523_v14 = vld [vmem:[#allocation29_spill] sm:$0xff] }
 0x26c   : > { %v5905_v34 = vor.u32 %v5904_v40, %v5901_v32  ;;  %v5883_v32 = vsel %vm16922_vm5, %v5874_v35, %v5882_v41  ;;  %v5896_v40 = vsel %vm16922_vm5, %v5892_v28, %v5895_v29  ;;  %v5959_v35 = vrot.slane %v5957_v22, 6  ;;  %v23532_v41 = vld [vmem:[#allocation15_spill] sm:$0xff] }
 0x26d   : > { %v23533_v15 = vshrl.u32 %v23532_v41, 16  ;;  %v23534_v28 = vshll.u32 %v23532_v41, 16 }
 0x26e   : > { %v5906_v7 = vsel %vm16922_vm5, %v5897_v39, %v5905_v34 }
 0x26f   : > { %14551 = vmatmul.mubr.msk.bf16.gmra.mrb[12].mxu0 %vm1351_vm8, %v23496_v58  ;;  %v23511_v58 = vld [vmem:[#allocation12_spill] sm:$0xff]  ;;  %v5962_v29 = vrot.slane %v23533_v15, 5  ;;  %v5963_v54 = vrot.slane %v23534_v28, 6 }
 0x270   : > { %14554 = vmatprep.mubr.msk.bf16.mxu0 %vm1351_vm8, %v23497_v16  ;;  %v5908_v16 = vshrl.u32 %v23511_v58, 16  ;;  %v5911_v61 = vshll.u32 %v23511_v58, 16  ;;  %v23524_v58 = vshrl.u32 %v23523_v14, 16 }
 0x272   : > { %v5910_v27 = vrot.slane %v5908_v16, 5  ;;  %v5913_v62 = vrot.slane %v5911_v61, 6  ;;  %v5939_v16 = vrot.slane %v23524_v58, 5  ;;  %v23525_v61 = vshll.u32 %v23523_v14, 16  ;;  %v5828_v14 = vld [vmem:[#allocation2 + $0x68] sm:$0x3] }
 0x273   : > { %v23536_v58 = vld [vmem:[#allocation22_spill] sm:$0xff] }
 0x274   : > { %v5914_v24 = vor.u32 %v5913_v62, %v5910_v27  ;;  %v5940_v21 = vrot.slane %v23525_v61, 6  ;;  %v19182_v62 = vor.u32 %v5917_v17, %v5916_v42  ;;  %v23535_v42 = vld [vmem:[#allocation39_spill] sm:$0xff]  ;;  %v6003_v61 = vshll.u32 %v23536_v58, 16 }
 0x275   : > { %v5977_v34 = vshrl.u32 %v23535_v42, 16  ;;  %v5980_v4 = vshll.u32 %v23535_v42, 16 }
 0x276   : > { %v19180_v27 = vrot.slane %v5914_v24, 4  ;;  %v19184_v63 = vor.u32 %v5940_v21, %v5939_v16  ;;  %v6000_v16 = vshrl.u32 %v23536_v58, 16  ;;  %v23537_v21 = vcombine.low %v18941_v0, %v18964_v19 }
 0x277   : > { %14555 = vmatmul.mubr.msk.bf16.gmra.mrb[16].mxu0 %vm1351_vm8, %v23501_v46  ;;  %v23517_v46 = vcombine.low %v23515_v33, %v23516_v5  ;;  %v23530_v33 = vld [vmem:[#allocation44_spill] sm:$0xff]  ;;  %v5982_v22 = vrot.slane %v5980_v4, 6  ;;  %v5991_v19 = vshrl.u32 %v5828_v14, 16  ;;  %v5830_v4 = vld [vmem:[#allocation2 + $0x80] sm:$0x3] }
 0x278   : > { %14558 = vmatprep.mubr.msk.bf16.mxu0 %vm1351_vm8, %v23505_v3  ;;  %v5931_v3 = vshrl.u32 %v23518_v38, 16  ;;  %v23531_v5 = vcombine.low %v18932_v8, %v23530_v33  ;;  %v5924_v38 = vrot.slane %v5922_v11, 5  ;;  %v5927_v8 = vrot.slane %v5925_v31, 6  ;;  %v5829_v33 = vld [vmem:[#allocation2 + $0x74] sm:$0x3] }
 0x279   : > { %v13451_v11 = vcombine.low %v5896_v40, %v5906_v7  ;;  %v5919_v24 = vsel %vm16922_vm5, %v19180_v27, %v19182_v62  ;;  %v5920_v31 = vrot.slane %v19182_v62, 4  ;;  %v5994_v7 = vshll.u32 %v5828_v14, 16 }
 0x27a   : > { %v5933_v60 = vrot.slane %v5931_v3, 5  ;;  %v5827_v3 = vld [vmem:[#allocation2 + $0x5c] sm:$0x3]  ;;  %v6002_v27 = vrot.slane %v6000_v16, 5  ;;  %v6005_v62 = vrot.slane %v6003_v61, 6 }
 0x27b   : > { %v5968_v25 = vshrl.u32 %v5827_v3, 16  ;;  %v5971_v39 = vshll.u32 %v5827_v3, 16 }
 0x27c   : > { %v5937_v13 = vor.u32 %v5936_v55, %v5933_v60  ;;  %v5928_v60 = vor.u32 %v5927_v8, %v5924_v38  ;;  %v23541_v38 = vld [vmem:[#allocation30_spill] sm:$0xff]  ;;  %v6006_v14 = vor.u32 %v6005_v62, %v6002_v27 }
 0x27d   : > { %v5973_v1 = vrot.slane %v5971_v39, 6  ;;  %v23542_v8 = vshrl.u32 %v23541_v38, 16 }
 0x27e   : > { %v5938_v55 = vrot.slane %v5937_v13, 4 }
 0x27f   : > { %14559 = vmatmul.mubr.msk.bf16.gmra.mrb[20].mxu0 %vm1351_vm8, %v23514_v2  ;;  %v23528_v2 = vcombine.low %v23526_v26, %v23527_v18  ;;  %v5964_v18 = vor.u32 %v5963_v54, %v5962_v29  ;;  %v6008_v3 = vrot.slane %v23542_v8, 5 }
 0x280   : > { %14562 = vmatprep.mubr.msk.bf16.mxu0 %vm1351_vm8, %v23517_v46  ;;  %v5873_v46 = vsel %vm16922_vm5, %v5869_v56, %v5872_v51  ;;  %v5947_v51 = vrot.slane %v5945_v50, 5  ;;  %v5956_v56 = vrot.slane %v5954_v48, 5  ;;  %v5943_v50 = vrot.slane %v19184_v63, 4 }
 0x281   : > { %v13450_v17 = vcombine.low %v5873_v46, %v5883_v32  ;;  %v5979_v48 = vrot.slane %v5977_v34, 5  ;;  %v5942_v15 = vsel %vm16922_vm5, %v5938_v55, %v19184_v63  ;;  %v23545_v55 = vld [vmem:[#allocation23_spill] sm:$0xff] }
 0x282   : > { %v5951_v43 = vor.u32 %v5950_v52, %v5947_v51  ;;  %v5960_v26 = vor.u32 %v5959_v35, %v5956_v56  ;;  %v5929_v51 = vsel %vm16922_vm5, %v5920_v31, %v5928_v60  ;;  %v6014_v52 = vshrl.u32 %v5829_v33, 16  ;;  %v23544_v35 = vld [vmem:[#allocation24_spill] sm:$0xff] }
 0x283   : > { %v6017_v56 = vshll.u32 %v5829_v33, 16  ;;  %v6023_v41 = vshrl.u32 %v23544_v35, 16  ;;  %v6026_v54 = vshll.u32 %v23544_v35, 16  ;;  %v5983_v42 = vor.u32 %v5982_v22, %v5979_v48 }
 0x284   : > { %v5952_v29 = vsel %vm16922_vm5, %v5943_v50, %v5951_v43  ;;  %v5961_v28 = vrot.slane %v5960_v26, 4  ;;  %v5993_v31 = vrot.slane %v5991_v19, 5  ;;  %v5996_v60 = vrot.slane %v5994_v7, 6 }
 0x285   : > { %v6016_v16 = vrot.slane %v6014_v52, 5  ;;  %v6019_v61 = vrot.slane %v6017_v56, 6  ;;  %v6025_v63 = vrot.slane %v6023_v41, 5  ;;  %v6028_v43 = vrot.slane %v6026_v54, 6  ;;  %v5831_v52 = vld [vmem:[#allocation2 + $0x8c] sm:$0x3] }
 0x286   : > { %v23547_v26 = vshll.u32 %v23545_v55, 16  ;;  %v6040_v48 = vshll.u32 %v5830_v4, 16  ;;  %v13452_v22 = vcombine.low %v5919_v24, %v5929_v51  ;;  %v13453_v33 = vcombine.low %v5942_v15, %v5952_v29  ;;  %v23549_v56 = vld [vmem:[#allocation16_spill] sm:$0xff] }
 0x287   : > { %14563 = vmatmul.mubr.msk.bf16.gmra.mrb[24].mxu0 %vm1351_vm8, %v23528_v2  ;;  %v5970_v2 = vrot.slane %v5968_v25, 5  ;;  %v5966_v25 = vrot.slane %v5964_v18, 4  ;;  %v5997_v19 = vor.u32 %v5996_v60, %v5993_v31  ;;  %v6007_v7 = vrot.slane %v6006_v14, 4  ;;  %v5832_v60 = vld [vmem:[#allocation2 + $0x98] sm:$0x3] }
 0x288   : > { %14566 = vmatprep.mubr.msk.bf16.mxu0 %vm1351_vm8, %v23531_v5  ;;  %v23538_v5 = vld [vmem:[#allocation20_spill] sm:$0xff]  ;;  %v6020_v62 = vor.u32 %v6019_v61, %v6016_v16  ;;  %v6072_v35 = vshll.u32 %v23549_v56, 16  ;;  %v6060_v61 = vshrl.u32 %v5831_v52, 16 }
 0x289   : > { %v23539_v46 = vshrl.u32 %v23538_v5, 16  ;;  %v23540_v40 = vshll.u32 %v23538_v5, 16  ;;  %v5974_v39 = vor.u32 %v5973_v1, %v5970_v2  ;;  %v6032_v2 = vrot.slane %v23547_v26, 6  ;;  %v23548_v5 = vld [vmem:[#allocation34_spill] sm:$0xff] }
 0x28a   : > { %v6037_v1 = vshrl.u32 %v5830_v4, 16 }
 0x28b   : > { %v5985_v32 = vrot.slane %v23539_v46, 5  ;;  %v5986_v0 = vrot.slane %v23540_v40, 6  ;;  %v6046_v46 = vshrl.u32 %v23548_v5, 16  ;;  %v5975_v40 = vsel %vm16922_vm5, %v5966_v25, %v5974_v39 }
 0x28c   : > { %v6039_v24 = vrot.slane %v6037_v1, 5  ;;  %v6083_v1 = vshrl.u32 %v5832_v60, 16 }
 0x28d   : > { %v5987_v34 = vor.u32 %v5986_v0, %v5985_v32  ;;  %v5965_v32 = vsel %vm16922_vm5, %v5961_v28, %v5964_v18  ;;  %v5984_v0 = vrot.slane %v5983_v42, 4  ;;  %v6069_v18 = vshrl.u32 %v23549_v56, 16  ;;  %v23550_v42 = vld [vmem:[#allocation36_spill] sm:$0xff] }
 0x28e   : > { %v13454_v51 = vcombine.low %v5965_v32, %v5975_v40  ;;  %v23551_v4 = vshrl.u32 %v23550_v42, 16  ;;  %v23552_v14 = vshll.u32 %v23550_v42, 16 }
 0x28f   : > { %14567 = vmatmul.mubr.msk.bf16.gmra.mrb[28].mxu0 %vm1351_vm8, %v23537_v21  ;;  %v23546_v21 = vshrl.u32 %v23545_v55, 16  ;;  %v5988_v41 = vsel %vm16922_vm5, %v5984_v0, %v5987_v34  ;;  %v6074_v55 = vrot.slane %v6072_v35, 6  ;;  %v6100_v35 = vrot.slane %v4952_v53, 5 }
 0x290   : > { %14572 = vmatprep.mubr.msk.bf16.mxu0 %vm1351_vm8, %v13449_v20  ;;  %v23543_v20 = vshll.u32 %v23541_v38, 16  ;;  %v6029_v38 = vor.u32 %v6028_v43, %v6025_v63  ;;  %v6054_v31 = vrot.slane %v23551_v4, 5  ;;  %v6055_v16 = vrot.slane %v23552_v14, 6 }
 0x291   : > { %v6031_v50 = vrot.slane %v23546_v21, 5  ;;  %v6063_v63 = vshll.u32 %v5831_v52, 16  ;;  %v23553_v21 = vld [vmem:[#allocation32_spill] sm:$0xff] }
 0x292   : > { %v6009_v13 = vrot.slane %v23543_v20, 6  ;;  %v6048_v20 = vrot.slane %v6046_v46, 5  ;;  %v6030_v54 = vrot.slane %v6029_v38, 4  ;;  %v23555_v26 = vshll.u32 %v23553_v21, 16 }
 0x293   : > { %v19234_v8 = vor.u32 %v6032_v2, %v6031_v50  ;;  %v23554_v50 = vshrl.u32 %v23553_v21, 16  ;;  %v19264_v0 = vor.u32 %v6055_v16, %v6054_v31 }
 0x294   : > { %v6010_v58 = vor.u32 %v6009_v13, %v6008_v3  ;;  %v6042_v3 = vrot.slane %v6040_v48, 6  ;;  %v6078_v2 = vrot.slane %v23555_v26, 6  ;;  %v6086_v48 = vshll.u32 %v5832_v60, 16 }
 0x295   : > { %v6035_v25 = vrot.slane %v19234_v8, 4  ;;  %v6077_v43 = vrot.slane %v23554_v50, 5  ;;  %v6034_v32 = vsel %vm16922_vm5, %v6030_v54, %v19234_v8  ;;  %v6058_v42 = vrot.slane %v19264_v0, 4  ;;  %v23559_v50 = vld [vmem:[#allocation35_spill] sm:$0xff] }
 0x296   : > { %v6012_v27 = vrot.slane %v6010_v58, 4  ;;  %v6011_v29 = vsel %vm16922_vm5, %v6007_v7, %v6010_v58  ;;  %v6043_v39 = vor.u32 %v6042_v3, %v6039_v24  ;;  %v6071_v58 = vrot.slane %v6069_v18, 5  ;;  %v23557_v7 = vld [vmem:[#allocation19_spill] sm:$0xff]  ;;  %v5834_v18 = vld [vmem:[#allocation2 + $0xb0] sm:$0x3] }
 0x297   : > { %14573 = vmatmul.mubr.msk.bf16.vlgmr.msra.gmra.mrb[0].mxu0 %vm1351_vm8, %v13450_v17  ;;  %v6049_v17 = vshll.u32 %v23548_v5, 16  ;;  %v6065_v24 = vrot.slane %v6063_v63, 6  ;;  %v6088_v52 = vrot.slane %v6086_v48, 6  ;;  %v6129_v31 = vshrl.u32 %v5834_v18, 16 }
 0x298   : > { %14576 = vmatprep.mubr.msk.bf16.mxu0 %vm1351_vm8, %v13451_v11  ;;  %v5989_v11 = vrot.slane %v5987_v34, 4  ;;  %v6021_v28 = vsel %vm16922_vm5, %v6012_v27, %v6020_v62  ;;  %v6044_v40 = vsel %vm16922_vm5, %v6035_v25, %v6043_v39  ;;  %v6115_v27 = vshrl.u32 %v23557_v7, 16 }
 0x299   : > { %v6051_v13 = vrot.slane %v6049_v17, 6  ;;  %v13456_v17 = vcombine.low %v6011_v29, %v6021_v28  ;;  %v6118_v62 = vshll.u32 %v23557_v7, 16  ;;  %v6075_v3 = vor.u32 %v6074_v55, %v6071_v58 }
 0x29a   : > { %v5998_v15 = vsel %vm16922_vm5, %v5989_v11, %v5997_v19  ;;  %v6062_v11 = vrot.slane %v6060_v61, 5  ;;  %v5833_v19 = vld [vmem:[#allocation2 + $0xa4] sm:$0x3]  ;;  %v6117_v28 = vrot.slane %v6115_v27, 5  ;;  %v23558_v25 = vshll.u32 %v18850_v49, 16 }
 0x29b   : > { %v6052_v34 = vor.u32 %v6051_v13, %v6048_v20  ;;  %v13455_v46 = vcombine.low %v5988_v41, %v5998_v15  ;;  %v6079_v20 = vor.u32 %v6078_v2, %v6077_v43  ;;  %v6085_v13 = vrot.slane %v6083_v1, 5 }
 0x29c   : > { %v6101_v41 = vrot.slane %v4948_v45, 6  ;;  %v6106_v15 = vshrl.u32 %v5833_v19, 16  ;;  %v6109_v29 = vshll.u32 %v5833_v19, 16  ;;  %v6120_v54 = vrot.slane %v6118_v62, 6 }
 0x29d   : > { %v6053_v38 = vrot.slane %v6052_v34, 4  ;;  %v6124_v39 = vrot.slane %v23558_v25, 6  ;;  %v6066_v4 = vor.u32 %v6065_v24, %v6062_v11  ;;  %v6132_v60 = vshll.u32 %v5834_v18, 16  ;;  %v5836_v24 = vld [vmem:[#allocation2 + $0xc8] sm:$0x3] }
 0x29e   : > { %v6076_v34 = vrot.slane %v6075_v3, 4  ;;  %v6081_v53 = vrot.slane %v6079_v20, 4  ;;  %v6089_v14 = vor.u32 %v6088_v52, %v6085_v13  ;;  %v13457_v45 = vcombine.low %v6034_v32, %v6044_v40  ;;  %v23560_v32 = vld [vmem:[#allocation9_spill] sm:$0xff] }
 0x29f   : > { %14577 = vmatmul.mubr.msk.bf16.gmra.mrb[4].mxu0 %vm1351_vm8, %v13452_v22  ;;  %v23556_v22 = vld [vmem:[#allocation40_spill] sm:$0xff]  ;;  %v6102_v16 = vor.u32 %v6101_v41, %v6100_v35  ;;  %v6108_v61 = vrot.slane %v6106_v15, 5  ;;  %v6111_v63 = vrot.slane %v6109_v29, 6  ;;  %v6121_v58 = vor.u32 %v6120_v54, %v6117_v28 }
 0x2a0   : > { %14580 = vmatprep.mubr.msk.bf16.mxu0 %vm1351_vm8, %v13453_v33  ;;  %v6092_v33 = vshrl.u32 %v23556_v22, 16  ;;  %v6095_v5 = vshll.u32 %v23556_v22, 16  ;;  %v6131_v55 = vrot.slane %v6129_v31, 5  ;;  %v6134_v21 = vrot.slane %v6132_v60, 6 }
 0x2a1   : > { %v6138_v43 = vshrl.u32 %v23559_v50, 16  ;;  %v6141_v26 = vshll.u32 %v23559_v50, 16  ;;  %v6067_v2 = vsel %vm16922_vm5, %v6058_v42, %v6066_v4  ;;  %v6080_v1 = vsel %vm16922_vm5, %v6076_v34, %v6079_v20  ;;  %v23563_v4 = vld [vmem:[#allocation21_spill] sm:$0xff] }
 0x2a2   : > { %v6094_v8 = vrot.slane %v6092_v33, 5  ;;  %v6097_v56 = vrot.slane %v6095_v5, 6  ;;  %v6090_v48 = vsel %vm16922_vm5, %v6081_v53, %v6089_v14  ;;  %v6104_v33 = vrot.slane %v6102_v16, 4 }
 0x2a3   : > { %v6112_v5 = vor.u32 %v6111_v63, %v6108_v61  ;;  %v6161_v40 = vshrl.u32 %v23560_v32, 16  ;;  %v6146_v19 = vrot.slane %v5000_v57, 5  ;;  %v6135_v7 = vor.u32 %v6134_v21, %v6131_v55 }
 0x2a4   : > { %v6098_v10 = vor.u32 %v6097_v56, %v6094_v8  ;;  %v6140_v27 = vrot.slane %v6138_v43, 5  ;;  %v6143_v62 = vrot.slane %v6141_v26, 6  ;;  %v13459_v20 = vcombine.low %v6080_v1, %v6090_v48 }
 0x2a5   : > { %v6113_v56 = vsel %vm16922_vm5, %v6104_v33, %v6112_v5  ;;  %v6163_v18 = vrot.slane %v6161_v40, 5  ;;  %v23561_v57 = vshrl.u32 %v18894_v44, 16  ;;  %v23562_v15 = vshll.u32 %v18894_v44, 16 }
 0x2a6   : > { %v6099_v22 = vrot.slane %v6098_v10, 4  ;;  %v6178_v29 = vshll.u32 %v5836_v24, 16  ;;  %v6184_v31 = vshrl.u32 %v23563_v4, 16  ;;  %v6187_v60 = vshll.u32 %v23563_v4, 16  ;;  %v5837_v10 = vld [vmem:[#allocation2 + $0xd4] sm:$0x3] }
 0x2a7   : > { %14581 = vmatmul.mubr.msk.bf16.gmra.mrb[8].mxu0 %vm1351_vm8, %v13454_v51  ;;  %v6123_v51 = vrot.slane %v4976_v59, 5  ;;  %v6057_v59 = vsel %vm16922_vm5, %v6053_v38, %v19264_v0  ;;  %v6164_v0 = vshll.u32 %v23560_v32, 16  ;;  %v6147_v38 = vrot.slane %v4996_v9, 6  ;;  %v19403_v4 = vld [vmem:[%s22689_s2] ss:$0 sm:$0xff] }
 0x2a8   : > { %14584 = vmatprep.mubr.msk.bf16.mxu0 %vm1351_vm8, %v13455_v46  ;;  %v5835_v46 = vld [vmem:[#allocation2 + $0xbc] sm:$0x3]  ;;  %v13458_v3 = vcombine.low %v6057_v59, %v6067_v2  ;;  %v6103_v8 = vsel %vm16922_vm5, %v6099_v22, %v6102_v16  ;;  %v6169_v41 = vrot.slane %v23561_v57, 5  ;;  %v6170_v47 = vrot.slane %v23562_v15, 6 }
 0x2a9   : > { %v6125_v49 = vor.u32 %v6124_v39, %v6123_v51  ;;  %v6152_v13 = vshrl.u32 %v5835_v46, 16  ;;  %v6155_v52 = vshll.u32 %v5835_v46, 16  ;;  %v6166_v35 = vrot.slane %v6164_v0, 6 }
 0x2aa   : > { %v6175_v9 = vshrl.u32 %v5836_v24, 16  ;;  %v6144_v51 = vor.u32 %v6143_v62, %v6140_v27  ;;  %v6148_v25 = vor.u32 %v6147_v38, %v6146_v19  ;;  %v6171_v34 = vor.u32 %v6170_v47, %v6169_v41 }
 0x2ab   : > { %v6127_v11 = vrot.slane %v6125_v49, 4  ;;  %v6154_v39 = vrot.slane %v6152_v13, 5  ;;  %v6157_v42 = vrot.slane %v6155_v52, 6  ;;  %v6167_v44 = vor.u32 %v6166_v35, %v6163_v18 }
 0x2ac   : > { %v6177_v53 = vrot.slane %v6175_v9, 5  ;;  %v6180_v14 = vrot.slane %v6178_v29, 6  ;;  %v6145_v61 = vrot.slane %v6144_v51, 4  ;;  %v6150_v63 = vrot.slane %v6148_v25, 4 }
 0x2ad   : > { %v6136_v54 = vsel %vm16922_vm5, %v6127_v11, %v6135_v7  ;;  %v6158_v59 = vor.u32 %v6157_v42, %v6154_v39  ;;  %v6192_v55 = vrot.slane %v5048_v23, 5  ;;  %v6193_v21 = vrot.slane %v5044_v30, 6 }
 0x2ae   : > { %v6198_v50 = vshrl.u32 %v5837_v10, 16  ;;  %v6201_v43 = vshll.u32 %v5837_v10, 16  ;;  %v6168_v26 = vrot.slane %v6167_v44, 4  ;;  %v6173_v2 = vrot.slane %v6171_v34, 4 }
 0x2af   : > { %14585 = vmatmul.mubr.msk.bf16.gmra.mrb[12].mxu0 %vm1351_vm8, %v13456_v17  ;;  %v6122_v17 = vrot.slane %v6121_v58, 4  ;;  %v6186_v58 = vrot.slane %v6184_v31, 5  ;;  %v6181_v1 = vor.u32 %v6180_v14, %v6177_v53  ;;  %v6149_v48 = vsel %vm16922_vm5, %v6145_v61, %v6148_v25 }
 0x2b0   : > { %14588 = vmatprep.mubr.msk.bf16.mxu0 %vm1351_vm8, %v13457_v45  ;;  %v13460_v45 = vcombine.low %v6103_v8, %v6113_v56  ;;  %v6159_v22 = vsel %vm16922_vm5, %v6150_v63, %v6158_v59  ;;  %v6194_v23 = vor.u32 %v6193_v21, %v6192_v55  ;;  %v6200_v5 = vrot.slane %v6198_v50, 5  ;;  %v13594_v59 = vld [vmem:[%s22690_s3 + $0x4] sm:$0xf] }
 0x2b1   : > { %v6126_v28 = vsel %vm16922_vm5, %v6122_v17, %v6125_v49  ;;  %v6189_v49 = vrot.slane %v6187_v60, 6  ;;  %v6203_v12 = vrot.slane %v6201_v43, 6  ;;  %v6172_v30 = vsel %vm16922_vm5, %v6168_v26, %v6171_v34 }
 0x2b2   : > { %v13461_v16 = vcombine.low %v6126_v28, %v6136_v54  ;;  %v6182_v46 = vsel %vm16922_vm5, %v6173_v2, %v6181_v1  ;;  %v13462_v32 = vcombine.low %v6149_v48, %v6159_v22  ;;  %v6196_v17 = vrot.slane %v6194_v23, 4  ;;  %v7484_v54 = vld [vmem:[%s22690_s3] sm:$0xf] }
 0x2b3   : > { %v6190_v33 = vor.u32 %v6189_v49, %v6186_v58  ;;  %v13463_v40 = vcombine.low %v6172_v30, %v6182_v46  ;;  %v6204_v11 = vor.u32 %v6203_v12, %v6200_v5  ;;  %v23564_v62 = vmov 0   ;;  %15595 = vmatprep.subr.msk.bf16.mxu0 %vm7582_vm9, %v7484_v54  ;;  %15596 = vmatprep.subr.msk.bf16.mxu1 %vm7582_vm9, %v7484_v54 }
 0x2b4   : > { %6511 = vst.msk [vmem:[#allocation3 + $0xc] sm:$0x1] %vm6509_vm1, %v23564_v62  ;;  %6512 = vst.msk [vmem:[#allocation3 + $0x18] sm:$0x1] %vm6509_vm1, %v23564_v62  ;;  %v7584_v51 = vsel %vm7582_vm9, %v7484_v54, 0 }
 0x2b5   : > { %v6191_v0 = vrot.slane %v6190_v33, 4  ;;  %v6205_v7 = vsel %vm16922_vm5, %v6196_v17, %v6204_v11  ;;  %6513 = vst.msk [vmem:[#allocation3 + $0x24] sm:$0x1] %vm6509_vm1, %v23564_v62  ;;  %6514 = vst.msk [vmem:[#allocation3 + $0x30] sm:$0x1] %vm6509_vm1, %v23564_v62  ;;  %14605 = vmatpush3.bf16.msra.mxu0 %v7584_v51  ;;  %14945 = vmatpush3.bf16.msra.mxu1 %v7584_v51 }
 0x2b6   : > { %6515 = vst.msk [vmem:[#allocation3 + $0x3c] sm:$0x1] %vm6509_vm1, %v23564_v62  ;;  %6516 = vst.msk [vmem:[#allocation3 + $0x48] sm:$0x1] %vm6509_vm1, %v23564_v62  ;;  %15597 = vmatprep.subr.msk.bf16.mxu1 %vm7582_vm9, %v13594_v59 }
 0x2b7   : > { %14589 = vmatmul.mubr.msk.bf16.gmra.mrb[16].mxu0 %vm1351_vm8, %v13458_v3  ;;  %v6195_v19 = vsel %vm16922_vm5, %v6191_v0, %v6194_v23  ;;  %6517 = vst.msk [vmem:[#allocation3 + $0x54] sm:$0x1] %vm6509_vm1, %v23564_v62  ;;  %6518 = vst.msk [vmem:[#allocation3 + $0x60] sm:$0x1] %vm6509_vm1, %v23564_v62 }
 0x2b8   : > { %14592 = vmatprep.mubr.msk.bf16.mxu0 %vm1351_vm8, %v13459_v20  ;;  %v13464_v27 = vcombine.low %v6195_v19, %v6205_v7  ;;  %6519 = vst.msk [vmem:[#allocation3 + $0x6c] sm:$0x1] %vm6509_vm1, %v23564_v62  ;;  %6520 = vst.msk [vmem:[#allocation3 + $0x78] sm:$0x1] %vm6509_vm1, %v23564_v62 }
 0x2b9   : > { %6521 = vst.msk [vmem:[#allocation3 + $0x84] sm:$0x1] %vm6509_vm1, %v23564_v62  ;;  %6522 = vst.msk [vmem:[#allocation3 + $0x90] sm:$0x1] %vm6509_vm1, %v23564_v62 }
 0x2ba   : > { %6523 = vst.msk [vmem:[#allocation3 + $0x9c] sm:$0x1] %vm6509_vm1, %v23564_v62  ;;  %6524 = vst.msk [vmem:[#allocation3 + $0xa8] sm:$0x1] %vm6509_vm1, %v23564_v62 }
 0x2bb   : > { %6525 = vst.msk [vmem:[#allocation3 + $0xb4] sm:$0x1] %vm6509_vm1, %v23564_v62  ;;  %6526 = vst.msk [vmem:[#allocation3 + $0xc0] sm:$0x1] %vm6509_vm1, %v23564_v62 }
 0x2bc   : > { %6501 = vst.msk [vmem:[#allocation3] sm:$0xf] %vm6500_vm3, %v23564_v62  ;;  %6502 = vst.msk [vmem:[#allocation3 + $0x4] sm:$0xf] %vm6500_vm3, %v23564_v62 }
 0x2bd   : > { %6506 = vst.msk [vmem:[#allocation3 + $0xcc] sm:$0xf] %vm6500_vm3, %v23564_v62  ;;  %6507 = vst.msk [vmem:[#allocation3 + $0xd0] sm:$0xf] %vm6500_vm3, %v23564_v62 }
 0x2be   : > { %6510 = vst.msk [vmem:[#allocation3] sm:$0x1] %vm6509_vm1, %v23564_v62  ;;  %6527 = vst.msk [vmem:[#allocation3 + $0xcc] sm:$0x1] %vm6509_vm1, %v23564_v62 }
 0x2bf   : > { %14593 = vmatmul.mubr.msk.bf16.gmra.mrb[20].mxu0 %vm1351_vm8, %v13460_v45  ;;  %6504 = vst.msk [vmem:[#allocation3 + $0x8] sm:$0x3] %vm6503_vm6, %v23564_v62  ;;  %6508 = vst.msk [vmem:[#allocation3 + $0xd4] sm:$0x3] %vm6503_vm6, %v23564_v62 }
 0x2c0   : > { %14596 = vmatprep.mubr.msk.bf16.mxu0 %vm1351_vm8, %v13461_v16  ;;  %6529 = vst.msk [vmem:[#allocation3 + $0x8] sm:$0x2] %vm6528_vm11, %v23564_v62  ;;  %6530 = vst.msk [vmem:[#allocation3 + $0x14] sm:$0x2] %vm6528_vm11, %v23564_v62 }
 0x2c1   : > { %6531 = vst.msk [vmem:[#allocation3 + $0x20] sm:$0x2] %vm6528_vm11, %v23564_v62  ;;  %6532 = vst.msk [vmem:[#allocation3 + $0x2c] sm:$0x2] %vm6528_vm11, %v23564_v62 }
 0x2c2   : > { %6533 = vst.msk [vmem:[#allocation3 + $0x38] sm:$0x2] %vm6528_vm11, %v23564_v62  ;;  %6534 = vst.msk [vmem:[#allocation3 + $0x44] sm:$0x2] %vm6528_vm11, %v23564_v62 }
 0x2c3   : > { %v19381_v24 = vld [vmem:[#allocation3 + $0x4] sm:$0xf]  ;;  %6535 = vst.msk [vmem:[#allocation3 + $0x50] sm:$0x2] %vm6528_vm11, %v23564_v62  ;;  %6536 = vst.msk [vmem:[#allocation3 + $0x5c] sm:$0x2] %vm6528_vm11, %v23564_v62 }
 0x2c4   : > { %v22978_v13 = vshll.u32 %v19381_v24, 16  ;;  %v22979_v52 = vshrl.u32 %v19381_v24, 16  ;;  %6537 = vst.msk [vmem:[#allocation3 + $0x68] sm:$0x2] %vm6528_vm11, %v23564_v62  ;;  %6538 = vst.msk [vmem:[#allocation3 + $0x74] sm:$0x2] %vm6528_vm11, %v23564_v62 }
 0x2c5   : > { %v7052_v38 = vld [vmem:[#allocation3] sm:$0xf]  ;;  %6539 = vst.msk [vmem:[#allocation3 + $0x80] sm:$0x2] %vm6528_vm11, %v23564_v62  ;;  %6540 = vst.msk [vmem:[#allocation3 + $0x8c] sm:$0x2] %vm6528_vm11, %v23564_v62 }
 0x2c6   : > { %v7101_v3 = vshrl.u32 %v7052_v38, 16  ;;  %v7104_v20 = vshll.u32 %v7052_v38, 16  ;;  %v7112_v18 = vrot.slane %v22978_v13, 5  ;;  %v7116_v35 = vrot.slane %v22979_v52, 4  ;;  %v7054_v57 = vld [vmem:[#allocation3 + $0x8] sm:$0x1] }
 0x2c7   : > { %14597 = vmatmul.mubr.msk.bf16.gmra.mrb[24].mxu0 %vm1351_vm8, %v13462_v32  ;;  %v7120_v47 = vshll.u32 %v7054_v57, 16  ;;  %6541 = vst.msk [vmem:[#allocation3 + $0x98] sm:$0x2] %vm6528_vm11, %v23564_v62  ;;  %6542 = vst.msk [vmem:[#allocation3 + $0xa4] sm:$0x2] %vm6528_vm11, %v23564_v62 }
 0x2c8   : > { %14600 = vmatprep.mubr.msk.bf16.mxu0 %vm1351_vm8, %v13463_v40  ;;  %v7103_v8 = vrot.slane %v7101_v3, 4  ;;  %v7106_v56 = vrot.slane %v7104_v20, 5  ;;  %v7117_v15 = vor.u32 %v7116_v35, %v7112_v18  ;;  %6543 = vst.msk [vmem:[#allocation3 + $0xb0] sm:$0x2] %vm6528_vm11, %v23564_v62  ;;  %6544 = vst.msk [vmem:[#allocation3 + $0xbc] sm:$0x2] %vm6528_vm11, %v23564_v62 }
 0x2c9   : > { %v7122_v28 = vrot.slane %v7120_v47, 5  ;;  %6545 = vst.msk [vmem:[#allocation3 + $0xc8] sm:$0x2] %vm6528_vm11, %v23564_v62  ;;  %6546 = vst.msk [vmem:[#allocation3 + $0xd4] sm:$0x2] %vm6528_vm11, %v23564_v62 }
 0x2ca   : > { %v7107_v41 = vor.u32 %v7106_v56, %v7103_v8  ;;  %v7118_v29 = vrot.slane %v7117_v15, 4 }
 0x2cc   : > { %v7108_v9 = vrot.slane %v7107_v41, 4  ;;  %v7123_v39 = vsel %vm16091_vm7, %v7118_v29, %v7122_v28 }
 0x2ce   : > { %v7113_v25 = vsel %vm16091_vm7, %v7108_v9, %v7112_v18 }
 0x2cf   : > { %14601 = vmatmul.mubr.msk.bf16.gmra.mrb[28].mxu0 %vm1351_vm8, %v13464_v27  ;;  %v13546_v42 = vcombine.low %v7113_v25, %v7123_v39 }
 0x2d1   : > { %14606 = vmatprep.mubr.msk.bf16.mxu0 %vm7533_vm10, %v13546_v42 }
 0x36a   : > { %v14574_v31 = vpop.f32.mrb[0].mxu0 }
 0x36b   : > { %v19406_v60 = vadd.f32 %v14574_v31, %v19403_v4  ;;  %v6341_v44 = vpop.f32.mrb[1].mxu0 }
 0x36c   : > { %v19409_v34 = vadd.f32 %v19403_v4, %v6341_v44  ;;  %v14575_v53 = vpop.f32.mrb[2].mxu0 }
 0x36d   : > { %v13483_v14 = vmul.f32 -1.442695, %v19406_v60  ;;  %v19413_v10 = vadd.f32 %v14575_v53, %v19403_v4  ;;  %v6344_v45 = vpop.f32.mrb[3].mxu0 }
 0x36e   : > { %v13481_v16 = vmul.f32 -1.442695, %v19409_v34  ;;  %v19417_v61 = vadd.f32 %v19403_v4, %v6344_v45 }
 0x36f   : > { %15743 = vpow2.f32 %v13483_v14  ;;  %v13484_v63 = vmul.f32 -1.442695, %v19413_v10 }
 0x370   : > { %15745 = vpow2.f32 %v13481_v16  ;;  %v13482_v58 = vmul.f32 -1.442695, %v19417_v61 }
 0x371   : > { %15747 = vpow2.f32 %v13484_v63 }
 0x372   : > { %15749 = vpow2.f32 %v13482_v58  ;;  %v14578_v49 = vpop.f32.mrb[4].mxu0 }
 0x373   : > { %v19426_v55 = vadd.f32 %v14578_v49, %v19403_v4  ;;  %v6357_v21 = vpop.f32.mrb[5].mxu0 }
 0x374   : > { %v19429_v50 = vadd.f32 %v19403_v4, %v6357_v21  ;;  %v14579_v43 = vpop.f32.mrb[6].mxu0 }
 0x375   : > { %v13487_v26 = vmul.f32 -1.442695, %v19426_v55  ;;  %v19433_v2 = vadd.f32 %v14579_v43, %v19403_v4  ;;  %v6360_v1 = vpop.f32.mrb[7].mxu0 }
 0x376   : > { %v13485_v48 = vmul.f32 -1.442695, %v19429_v50  ;;  %v19437_v22 = vadd.f32 %v19403_v4, %v6360_v1 }
 0x377   : > { %15751 = vpow2.f32 %v13487_v26  ;;  %v13488_v33 = vmul.f32 -1.442695, %v19433_v2 }
 0x378   : > { %15753 = vpow2.f32 %v13485_v48  ;;  %v13486_v23 = vmul.f32 -1.442695, %v19437_v22 }
 0x379   : > { %v15744_v5 = vpop.eup %15743  ;;  %15755 = vpow2.f32 %v13488_v33 }
 0x37a   : > { %v15746_v12 = vpop.eup %15745  ;;  %v6645_v30 = vadd.f32 1.0, %v15744_v5  ;;  %15757 = vpow2.f32 %v13486_v23  ;;  %v14582_v46 = vpop.f32.mrb[8].mxu0 }
 0x37b   : > { %v15748_v32 = vpop.eup %15747  ;;  %v6643_v40 = vadd.f32 1.0, %v15746_v12  ;;  %v19442_v0 = vadd.f32 %v14582_v46, %v19403_v4  ;;  %v6373_v17 = vpop.f32.mrb[9].mxu0 }
 0x37c   : > { %v15750_v11 = vpop.eup %15749  ;;  %15759 = vrcp.f32 %v6645_v30  ;;  %v6646_v19 = vadd.f32 1.0, %v15748_v32  ;;  %v19445_v7 = vadd.f32 %v19403_v4, %v6373_v17  ;;  %v14583_v27 = vpop.f32.mrb[10].mxu0 }
 0x37d   : > { %15761 = vrcp.f32 %v6643_v40  ;;  %v6644_v38 = vadd.f32 1.0, %v15750_v11  ;;  %v13491_v3 = vmul.f32 -1.442695, %v19442_v0  ;;  %v19449_v20 = vadd.f32 %v14583_v27, %v19403_v4  ;;  %v6376_v8 = vpop.f32.mrb[11].mxu0 }
 0x37e   : > { %15763 = vrcp.f32 %v6646_v19  ;;  %v13489_v56 = vmul.f32 -1.442695, %v19445_v7  ;;  %v19453_v18 = vadd.f32 %v19403_v4, %v6376_v8 }
 0x37f   : > { %15765 = vrcp.f32 %v6644_v38  ;;  %v13492_v35 = vmul.f32 -1.442695, %v19449_v20 }
 0x380   : > { %15767 = vpow2.f32 %v13491_v3  ;;  %v13490_v57 = vmul.f32 -1.442695, %v19453_v18 }
 0x381   : > { %v15752_v41 = vpop.eup %15751  ;;  %15769 = vpow2.f32 %v13489_v56 }
 0x382   : > { %v15754_v15 = vpop.eup %15753  ;;  %v6649_v47 = vadd.f32 1.0, %v15752_v41  ;;  %15771 = vpow2.f32 %v13492_v35  ;;  %v14586_v9 = vpop.f32.mrb[12].mxu0 }
 0x383   : > { %v15756_v29 = vpop.eup %15755  ;;  %v6647_v28 = vadd.f32 1.0, %v15754_v15  ;;  %15773 = vpow2.f32 %v13490_v57  ;;  %v19458_v54 = vadd.f32 %v14586_v9, %v19403_v4  ;;  %v6389_v51 = vpop.f32.mrb[13].mxu0 }
 0x384   : > { %v15758_v25 = vpop.eup %15757  ;;  %15775 = vrcp.f32 %v6649_v47  ;;  %v6650_v39 = vadd.f32 1.0, %v15756_v29  ;;  %v19461_v42 = vadd.f32 %v19403_v4, %v6389_v51  ;;  %v14587_v31 = vpop.f32.mrb[14].mxu0 }
 0x385   : > { %15777 = vrcp.f32 %v6647_v28  ;;  %v6648_v44 = vadd.f32 1.0, %v15758_v25  ;;  %v13495_v53 = vmul.f32 -1.442695, %v19458_v54  ;;  %v19501_v14 = vadd.f32 %v14587_v31, %v19403_v4  ;;  %v6392_v45 = vpop.f32.mrb[15].mxu0 }
 0x386   : > { %v15760_v16 = vpop.eup %15759  ;;  %15779 = vrcp.f32 %v6650_v39  ;;  %v13493_v63 = vmul.f32 -1.442695, %v19461_v42  ;;  %v19505_v59 = vadd.f32 %v19403_v4, %v6392_v45 }
 0x387   : > { %v15762_v58 = vpop.eup %15761  ;;  %v6741_v49 = vmul.f32 %v15760_v16, %v19406_v60  ;;  %15781 = vrcp.f32 %v6648_v44  ;;  %v13496_v62 = vmul.f32 -1.442695, %v19501_v14 }
 0x388   : > { %v15764_v21 = vpop.eup %15763  ;;  %v6739_v43 = vmul.f32 %v15762_v58, %v19409_v34  ;;  %15783 = vpow2.f32 %v13495_v53  ;;  %v13494_v26 = vmul.f32 -1.442695, %v19505_v59 }
 0x389   : > { %v15766_v1 = vpop.eup %15765  ;;  %v13945_v48 = vpack.c.bf16 %v6741_v49, %v6741_v49  ;;  %v6742_v33 = vmul.f32 %v15764_v21, %v19413_v10  ;;  %15785 = vpow2.f32 %v13493_v63 }
 0x38a   : > { %v15768_v23 = vpop.eup %15767  ;;  %v13943_v5 = vpack.c.bf16 %v6739_v43, %v6739_v43  ;;  %v6740_v12 = vmul.f32 %v15766_v1, %v19417_v61  ;;  %15787 = vpow2.f32 %v13496_v62  ;;  %v14590_v60 = vpop.f32.mrb[16].mxu0 }
 0x38b   : > { %v15770_v30 = vpop.eup %15769  ;;  %v6872_v46 = vrot.slane %v13945_v48, 7  ;;  %v13946_v32 = vpack.c.bf16 %v6742_v33, %v6742_v33  ;;  %v6653_v40 = vadd.f32 1.0, %v15768_v23  ;;  %15789 = vpow2.f32 %v13494_v26  ;;  %v6405_v34 = vpop.f32.mrb[17].mxu0 }
 0x38c   : > { %v15772_v17 = vpop.eup %15771  ;;  %v6867_v11 = vrot.slane %v13943_v5, 7  ;;  %v13944_v19 = vpack.c.bf16 %v6740_v12, %v6740_v12  ;;  %v6651_v27 = vadd.f32 1.0, %v15770_v30  ;;  %v19514_v10 = vadd.f32 %v14590_v60, %v19403_v4  ;;  %v14591_v38 = vpop.f32.mrb[18].mxu0 }
 0x38d   : > { %v15774_v3 = vpop.eup %15773  ;;  %v6873_v8 = vrot.slane %v6872_v46, 4  ;;  %7000 = vst.msk [vmem:[#allocation3 + $0x18] sm:$0xe] %vm6996_vm13, %v6872_v46  ;;  %v6874_v61 = vrot.slane %v13946_v32, 7  ;;  %15791 = vrcp.f32 %v6653_v40  ;;  %v6654_v56 = vadd.f32 1.0, %v15772_v17  ;;  %v6408_v35 = vpop.f32.mrb[19].mxu0 }
 0x38e   : > { %v15776_v57 = vpop.eup %15775  ;;  %v6868_v41 = vrot.slane %v6867_v11, 4  ;;  %6997 = vst.msk [vmem:[#allocation3 + $0xc] sm:$0xe] %vm6996_vm13, %v6867_v11  ;;  %v6869_v15 = vrot.slane %v13944_v19, 7  ;;  %15793 = vrcp.f32 %v6651_v27  ;;  %v6652_v47 = vadd.f32 1.0, %v15774_v3 }
 0x38f   : > { %v15778_v9 = vpop.eup %15777  ;;  %v6875_v28 = vsel %vm16197_vm12, %v6873_v8, %v6874_v61  ;;  %v6876_v51 = vrot.slane %v6874_v61, 4  ;;  %v6745_v25 = vmul.f32 %v15776_v57, %v19426_v55  ;;  %15795 = vrcp.f32 %v6654_v56 }
 0x390   : > { %v15780_v39 = vpop.eup %15779  ;;  %7001 = vst.msk [vmem:[#allocation3 + $0x1c] sm:$0xf] %vm6500_vm3, %v6875_v28  ;;  %v6870_v31 = vsel %vm16197_vm12, %v6868_v41, %v6869_v15  ;;  %v6871_v44 = vrot.slane %v6869_v15, 4  ;;  %v6743_v53 = vmul.f32 %v15778_v9, %v19429_v50  ;;  %15797 = vrcp.f32 %v6652_v47 }
 0x391   : > { %v15782_v45 = vpop.eup %15781  ;;  %7002 = vst.msk [vmem:[#allocation3 + $0x20] sm:$0x1] %vm6509_vm1, %v6876_v51  ;;  %v13949_v16 = vpack.c.bf16 %v6745_v25, %v6745_v25  ;;  %v6746_v63 = vmul.f32 %v15780_v39, %v19433_v2  ;;  %v13499_v55 = vmul.f32 -1.442695, %v19514_v10  ;;  %v19530_v58 = vadd.f32 %v19403_v4, %v6405_v34 }
 0x392   : > { %6998 = vst.msk [vmem:[#allocation3 + $0x10] sm:$0xf] %vm6500_vm3, %v6870_v31  ;;  %v15784_v49 = vpop.eup %15783  ;;  %v13947_v62 = vpack.c.bf16 %v6743_v53, %v6743_v53  ;;  %v6744_v50 = vmul.f32 %v15782_v45, %v19437_v22  ;;  %v19535_v21 = vadd.f32 %v14591_v38, %v19403_v4  ;;  %v19538_v43 = vadd.f32 %v19403_v4, %v6408_v35  ;;  %v14594_v26 = vpop.f32.mrb[20].mxu0 }
 0x393   : > { %6999 = vst.msk [vmem:[#allocation3 + $0x14] sm:$0x1] %vm6509_vm1, %v6871_v44  ;;  %v15786_v1 = vpop.eup %15785  ;;  %v6882_v2 = vrot.slane %v13949_v16, 7  ;;  %v13950_v48 = vpack.c.bf16 %v6746_v63, %v6746_v63  ;;  %v6657_v33 = vadd.f32 1.0, %v15784_v49  ;;  %15799 = vpow2.f32 %v13499_v55  ;;  %v6421_v23 = vpop.f32.mrb[21].mxu0 }
 0x394   : > { %v15788_v5 = vpop.eup %15787  ;;  %v6877_v12 = vrot.slane %v13947_v62, 7  ;;  %v13948_v60 = vpack.c.bf16 %v6744_v50, %v6744_v50  ;;  %v6655_v30 = vadd.f32 1.0, %v15786_v1  ;;  %v13497_v46 = vmul.f32 -1.442695, %v19530_v58  ;;  %v14595_v22 = vpop.f32.mrb[22].mxu0 }
 0x395   : > { %v15790_v32 = vpop.eup %15789  ;;  %v6883_v40 = vrot.slane %v6882_v2, 4  ;;  %7006 = vst.msk [vmem:[#allocation3 + $0x30] sm:$0xe] %vm6996_vm13, %v6882_v2  ;;  %v6884_v34 = vrot.slane %v13950_v48, 7  ;;  %15801 = vrcp.f32 %v6657_v33  ;;  %v6658_v17 = vadd.f32 1.0, %v15788_v5  ;;  %v6424_v11 = vpop.f32.mrb[23].mxu0 }
 0x396   : > { %v6878_v19 = vrot.slane %v6877_v12, 4  ;;  %7003 = vst.msk [vmem:[#allocation3 + $0x24] sm:$0xe] %vm6996_vm13, %v6877_v12  ;;  %v6879_v27 = vrot.slane %v13948_v60, 7  ;;  %15803 = vrcp.f32 %v6655_v30  ;;  %v6656_v38 = vadd.f32 1.0, %v15790_v32 }
 0x397   : > { %v15792_v3 = vpop.eup %15791  ;;  %v6885_v8 = vsel %vm16197_vm12, %v6883_v40, %v6884_v34  ;;  %v6886_v61 = vrot.slane %v6884_v34, 4  ;;  %15805 = vrcp.f32 %v6658_v17  ;;  %v13500_v56 = vmul.f32 -1.442695, %v19535_v21 }
 0x398   : > { %v15794_v35 = vpop.eup %15793  ;;  %7007 = vst.msk [vmem:[#allocation3 + $0x34] sm:$0xf] %vm6500_vm3, %v6885_v8  ;;  %v6880_v57 = vsel %vm16197_vm12, %v6878_v19, %v6879_v27  ;;  %v6881_v41 = vrot.slane %v6879_v27, 4  ;;  %v6749_v15 = vmul.f32 %v15792_v3, %v19442_v0  ;;  %15807 = vrcp.f32 %v6656_v38 }
 0x399   : > { %v15796_v47 = vpop.eup %15795  ;;  %7008 = vst.msk [vmem:[#allocation3 + $0x38] sm:$0x1] %vm6509_vm1, %v6886_v61  ;;  %v6747_v9 = vmul.f32 %v15794_v35, %v19445_v7  ;;  %15809 = vpow2.f32 %v13497_v46  ;;  %v13498_v28 = vmul.f32 -1.442695, %v19538_v43  ;;  %v19555_v51 = vadd.f32 %v14594_v26, %v19403_v4 }
 0x39a   : > { %7004 = vst.msk [vmem:[#allocation3 + $0x28] sm:$0xf] %vm6500_vm3, %v6880_v57  ;;  %v15798_v25 = vpop.eup %15797  ;;  %v13953_v39 = vpack.c.bf16 %v6749_v15, %v6749_v15  ;;  %v6750_v0 = vmul.f32 %v15796_v47, %v19449_v20  ;;  %15811 = vpow2.f32 %v13500_v56  ;;  %v19560_v31 = vadd.f32 %v19403_v4, %v6421_v23  ;;  %v14598_v44 = vpop.f32.mrb[24].mxu0 }
 0x39b   : > { %7005 = vst.msk [vmem:[#allocation3 + $0x2c] sm:$0x1] %vm6509_vm1, %v6881_v41  ;;  %v13951_v53 = vpack.c.bf16 %v6747_v9, %v6747_v9  ;;  %v6748_v7 = vmul.f32 %v15798_v25, %v19453_v18  ;;  %15813 = vpow2.f32 %v13498_v28  ;;  %v13503_v45 = vmul.f32 -1.442695, %v19555_v51  ;;  %v6437_v16 = vpop.f32.mrb[25].mxu0 }
 0x39c   : > { %v6892_v63 = vrot.slane %v13953_v39, 7  ;;  %v13954_v55 = vpack.c.bf16 %v6750_v0, %v6750_v0  ;;  %v13501_v49 = vmul.f32 -1.442695, %v19560_v31  ;;  %v19566_v62 = vadd.f32 %v14595_v22, %v19403_v4  ;;  %v14599_v20 = vpop.f32.mrb[26].mxu0 }
 0x39d   : > { %v15800_v50 = vpop.eup %15799  ;;  %v6887_v26 = vrot.slane %v13951_v53, 7  ;;  %v13952_v1 = vpack.c.bf16 %v6748_v7, %v6748_v7  ;;  %15815 = vpow2.f32 %v13503_v45  ;;  %v19569_v2 = vadd.f32 %v19403_v4, %v6424_v11  ;;  %v19571_v18 = vpop.f32.mrb[27].mxu0 }
 0x39e   : > { %v6893_v48 = vrot.slane %v6892_v63, 4  ;;  %7012 = vst.msk [vmem:[#allocation3 + $0x48] sm:$0xe] %vm6996_vm13, %v6892_v63  ;;  %v6894_v33 = vrot.slane %v13954_v55, 7  ;;  %v6661_v23 = vadd.f32 1.0, %v15800_v50  ;;  %15817 = vpow2.f32 %v13501_v49 }
 0x39f   : > { %v15802_v5 = vpop.eup %15801  ;;  %v6888_v12 = vrot.slane %v6887_v26, 4  ;;  %7009 = vst.msk [vmem:[#allocation3 + $0x3c] sm:$0xe] %vm6996_vm13, %v6887_v26  ;;  %v6889_v60 = vrot.slane %v13952_v1, 7  ;;  %v13504_v30 = vmul.f32 -1.442695, %v19566_v62  ;;  %v19593_v57 = vadd.f32 %v19403_v4, %v6437_v16 }
 0x3a0   : > { %v13502_v46 = vmul.f32 -1.442695, %v19569_v2  ;;  %v15804_v22 = vpop.eup %15803  ;;  %v6895_v32 = vsel %vm16197_vm12, %v6893_v48, %v6894_v33  ;;  %v6896_v40 = vrot.slane %v6894_v33, 4  ;;  %v6753_v34 = vmul.f32 %v15802_v5, %v19458_v54  ;;  %v7055_v5 = vld [vmem:[#allocation3 + $0xc] sm:$0xf] }
 0x3a1   : > { %15819 = vrcp.f32 %v6661_v23  ;;  %v15806_v17 = vpop.eup %15805  ;;  %7013 = vst.msk [vmem:[#allocation3 + $0x4c] sm:$0xf] %vm6500_vm3, %v6895_v32  ;;  %v6890_v11 = vsel %vm16197_vm12, %v6888_v12, %v6889_v60  ;;  %v6891_v19 = vrot.slane %v6889_v60, 4  ;;  %v6751_v27 = vmul.f32 %v15804_v22, %v19461_v42 }
 0x3a2   : > { %15821 = vpow2.f32 %v13504_v30  ;;  %v15808_v38 = vpop.eup %15807  ;;  %7014 = vst.msk [vmem:[#allocation3 + $0x50] sm:$0x1] %vm6509_vm1, %v6896_v40  ;;  %v13957_v3 = vpack.c.bf16 %v6753_v34, %v6753_v34  ;;  %v6754_v8 = vmul.f32 %v15806_v17, %v19501_v14  ;;  %v19588_v54 = vadd.f32 %v14598_v44, %v19403_v4  ;;  %v14602_v61 = vpop.f32.mrb[28].mxu0 }
 0x3a3   : > { %7010 = vst.msk [vmem:[#allocation3 + $0x40] sm:$0xf] %vm6500_vm3, %v6890_v11  ;;  %15823 = vpow2.f32 %v13502_v46  ;;  %v15810_v56 = vpop.eup %15809  ;;  %v13955_v35 = vpack.c.bf16 %v6751_v27, %v6751_v27  ;;  %v6752_v42 = vmul.f32 %v15808_v38, %v19505_v59  ;;  %v19596_v41 = vadd.f32 %v14599_v20, %v19403_v4  ;;  %v6453_v15 = vpop.f32.mrb[29].mxu0 }
 0x3a4   : > { %7011 = vst.msk [vmem:[#allocation3 + $0x44] sm:$0x1] %vm6509_vm1, %v6891_v19  ;;  %v15812_v47 = vpop.eup %15811  ;;  %v6902_v14 = vrot.slane %v13957_v3, 7  ;;  %v13958_v9 = vpack.c.bf16 %v6754_v8, %v6754_v8  ;;  %v6659_v28 = vadd.f32 1.0, %v15810_v56  ;;  %v13507_v25 = vmul.f32 -1.442695, %v19588_v54 }
 0x3a5   : > { %v14603_v39 = vpop.f32.mrb[30].mxu0  ;;  %v15814_v0 = vpop.eup %15813  ;;  %v6897_v44 = vrot.slane %v13955_v35, 7  ;;  %v13956_v53 = vpack.c.bf16 %v6752_v42, %v6752_v42  ;;  %v6662_v7 = vadd.f32 1.0, %v15812_v47  ;;  %v13505_v59 = vmul.f32 -1.442695, %v19593_v57 }
 0x3a6   : > { %v6456_v45 = vpop.f32.mrb[31].mxu0  ;;  %v6903_v16 = vrot.slane %v6902_v14, 4  ;;  %7018 = vst.msk [vmem:[#allocation3 + $0x60] sm:$0xe] %vm6996_vm13, %v6902_v14  ;;  %v6904_v63 = vrot.slane %v13958_v9, 7  ;;  %15825 = vrcp.f32 %v6659_v28  ;;  %v6660_v55 = vadd.f32 1.0, %v15814_v0 }
 0x3a7   : > { %v15816_v49 = vpop.eup %15815  ;;  %v6898_v20 = vrot.slane %v6897_v44, 4  ;;  %7015 = vst.msk [vmem:[#allocation3 + $0x54] sm:$0xe] %vm6996_vm13, %v6897_v44  ;;  %v6899_v50 = vrot.slane %v13956_v53, 7  ;;  %15827 = vrcp.f32 %v6662_v7  ;;  %v13508_v26 = vmul.f32 -1.442695, %v19596_v41 }
 0x3a8   : > { %v15818_v1 = vpop.eup %15817  ;;  %v6905_v48 = vsel %vm16197_vm12, %v6903_v16, %v6904_v63  ;;  %v6906_v33 = vrot.slane %v6904_v63, 4  ;;  %15829 = vrcp.f32 %v6660_v55  ;;  %v6665_v23 = vadd.f32 1.0, %v15816_v49  ;;  %v19625_v19 = vld [vmem:[#allocation3 + $0x10] sm:$0xf] }
 0x3a9   : > { %7019 = vst.msk [vmem:[#allocation3 + $0x64] sm:$0xf] %vm6500_vm3, %v6905_v48  ;;  %v6900_v12 = vsel %vm16197_vm12, %v6898_v20, %v6899_v50  ;;  %v6901_v60 = vrot.slane %v6899_v50, 4  ;;  %v6663_v30 = vadd.f32 1.0, %v15818_v1  ;;  %15831 = vpow2.f32 %v13507_v25 }
 0x3aa   : > { %7020 = vst.msk [vmem:[#allocation3 + $0x68] sm:$0x1] %vm6509_vm1, %v6906_v33  ;;  %15833 = vrcp.f32 %v6665_v23  ;;  %v19612_v22 = vadd.f32 %v19403_v4, %v19571_v18  ;;  %v19615_v32 = vadd.f32 %v14602_v61, %v19403_v4  ;;  %v19618_v40 = vadd.f32 %v19403_v4, %v6453_v15 }
 0x3ab   : > { %v15820_v46 = vpop.eup %15819  ;;  %7016 = vst.msk [vmem:[#allocation3 + $0x58] sm:$0xf] %vm6500_vm3, %v6900_v12  ;;  %15835 = vrcp.f32 %v6663_v30  ;;  %v19623_v11 = vadd.f32 %v14603_v39, %v19403_v4  ;;  %v7125_v27 = vshrl.u32 %v7055_v5, 16  ;;  %v7128_v47 = vshll.u32 %v7055_v5, 16 }
 0x3ac   : > { %v15822_v34 = vpop.eup %15821  ;;  %7017 = vst.msk [vmem:[#allocation3 + $0x5c] sm:$0x1] %vm6509_vm1, %v6901_v60  ;;  %v6757_v17 = vmul.f32 %v15820_v46, %v19514_v10  ;;  %15837 = vpow2.f32 %v13505_v59  ;;  %v13506_v3 = vmul.f32 -1.442695, %v19612_v22  ;;  %v13511_v8 = vmul.f32 -1.442695, %v19615_v32 }
 0x3ad   : > { %v15824_v18 = vpop.eup %15823  ;;  %v6666_v38 = vadd.f32 1.0, %v15822_v34  ;;  %15839 = vpow2.f32 %v13508_v26  ;;  %v13509_v35 = vmul.f32 -1.442695, %v19618_v40  ;;  %v19630_v10 = vld [vmem:[#allocation3 + $0x14] sm:$0x1]  ;;  %v7127_v15 = vrot.slane %v7125_v27, 4 }
 0x3ae   : > { %v13961_v61 = vpack.c.bf16 %v6757_v17, %v6757_v17  ;;  %v6664_v56 = vadd.f32 1.0, %v15824_v18  ;;  %v13512_v42 = vmul.f32 -1.442695, %v19623_v11  ;;  %v22976_v9 = vshll.u32 %v19625_v19, 16 }
 0x3af   : > { %15841 = vrcp.f32 %v6666_v38  ;;  %v22977_v28 = vshrl.u32 %v19625_v19, 16  ;;  %v7130_v39 = vrot.slane %v7128_v47, 5  ;;  %v7144_v0 = vshll.u32 %v19630_v10, 16 }
 0x3b0   : > { %v6912_v14 = vrot.slane %v13961_v61, 7  ;;  %15843 = vrcp.f32 %v6664_v56  ;;  %v15826_v25 = vpop.eup %15825  ;;  %v19637_v44 = vadd.f32 %v19403_v4, %v6456_v45  ;;  %v19643_v16 = vrot.slane %v22976_v9, 5  ;;  %v20015_v9 = vld [vmem:[#allocation3 + $0x60] sm:$0xe] }
 0x3b1   : > { %15845 = vpow2.f32 %v13506_v3  ;;  %v15828_v53 = vpop.eup %15827  ;;  %v6755_v59 = vmul.f32 %v15826_v25, %v19530_v58  ;;  %v7131_v49 = vor.u32 %v7130_v39, %v7127_v15  ;;  %v7140_v4 = vrot.slane %v22977_v28, 4 }
 0x3b2   : > { %v6913_v7 = vrot.slane %v6912_v14, 4  ;;  %7024 = vst.msk [vmem:[#allocation3 + $0x78] sm:$0xe] %vm6996_vm13, %v6912_v14  ;;  %15847 = vpow2.f32 %v13511_v8  ;;  %v15830_v63 = vpop.eup %15829  ;;  %v6758_v55 = vmul.f32 %v15828_v53, %v19535_v21  ;;  %v7146_v26 = vrot.slane %v7144_v0, 5 }
 0x3b3   : > { %15849 = vpow2.f32 %v13509_v35  ;;  %v15832_v45 = vpop.eup %15831  ;;  %v13959_v20 = vpack.c.bf16 %v6755_v59, %v6755_v59  ;;  %v6756_v50 = vmul.f32 %v15830_v63, %v19538_v43  ;;  %v7132_v33 = vrot.slane %v7131_v49, 4 }
 0x3b4   : > { %15851 = vpow2.f32 %v13512_v42  ;;  %v15834_v58 = vpop.eup %15833  ;;  %v13962_v1 = vpack.c.bf16 %v6758_v55, %v6758_v55  ;;  %v6669_v48 = vadd.f32 1.0, %v15832_v45  ;;  %v7141_v23 = vor.u32 %v7140_v4, %v19643_v16 }
 0x3b5   : > { %v15836_v5 = vpop.eup %15835  ;;  %v6907_v12 = vrot.slane %v13959_v20, 7  ;;  %v13960_v21 = vpack.c.bf16 %v6756_v50, %v6756_v50  ;;  %v6761_v60 = vmul.f32 %v15834_v58, %v19555_v51  ;;  %v19652_v30 = vmul.f32 -1.442695, %v19637_v44 }
 0x3b6   : > { %v15838_v46 = vpop.eup %15837  ;;  %v6914_v34 = vrot.slane %v13962_v1, 7  ;;  %v6759_v43 = vmul.f32 %v15836_v5, %v19560_v31  ;;  %15853 = vrcp.f32 %v6669_v48  ;;  %v7137_v17 = vsel %vm16091_vm7, %v7132_v33, %v19643_v16  ;;  %v19673_v5 = vld [vmem:[#allocation3 + $0x1c] sm:$0xf] }
 0x3b7   : > { %v15840_v27 = vpop.eup %15839  ;;  %v6908_v18 = vrot.slane %v6907_v12, 4  ;;  %7021 = vst.msk [vmem:[#allocation3 + $0x6c] sm:$0xe] %vm6996_vm13, %v6907_v12  ;;  %v6909_v38 = vrot.slane %v13960_v21, 7  ;;  %v13965_v3 = vpack.c.bf16 %v6761_v60, %v6761_v60  ;;  %v6667_v8 = vadd.f32 1.0, %v15838_v46 }
 0x3b8   : > { %v6915_v61 = vsel %vm16197_vm12, %v6913_v7, %v6914_v34  ;;  %v6916_v56 = vrot.slane %v6914_v34, 4  ;;  %v13963_v35 = vpack.c.bf16 %v6759_v43, %v6759_v43  ;;  %v6670_v42 = vadd.f32 1.0, %v15840_v27  ;;  %v19678_v46 = vld [vmem:[#allocation3 + $0x20] sm:$0x1]  ;;  %v7061_v34 = vld [vmem:[#allocation3 + $0x24] sm:$0xf] }
 0x3b9   : > { %v15842_v51 = vpop.eup %15841  ;;  %7025 = vst.msk [vmem:[#allocation3 + $0x7c] sm:$0xf] %vm6500_vm3, %v6915_v61  ;;  %v6910_v15 = vsel %vm16197_vm12, %v6908_v18, %v6909_v38  ;;  %v6911_v47 = vrot.slane %v6909_v38, 4  ;;  %v6922_v14 = vrot.slane %v13965_v3, 7  ;;  %15855 = vrcp.f32 %v6667_v8  ;;  %v19683_v38 = vld [vmem:[#allocation3 + $0x28] sm:$0xf] }
 0x3ba   : > { %v15844_v31 = vpop.eup %15843  ;;  %v6762_v25 = vmul.f32 %v15842_v51, %v19566_v62  ;;  %7026 = vst.msk [vmem:[#allocation3 + $0x80] sm:$0x1] %vm6509_vm1, %v6916_v56  ;;  %v6917_v0 = vrot.slane %v13963_v35, 7  ;;  %v7142_v7 = vrot.slane %v7141_v23, 4  ;;  %15857 = vrcp.f32 %v6670_v42  ;;  %v7058_v62 = vld [vmem:[#allocation3 + $0x18] sm:$0xf] }
 0x3bb   : > { %v15846_v39 = vpop.eup %15845  ;;  %7022 = vst.msk [vmem:[#allocation3 + $0x70] sm:$0xf] %vm6500_vm3, %v6910_v15  ;;  %v6760_v53 = vmul.f32 %v15844_v31, %v19569_v2  ;;  %v6923_v16 = vrot.slane %v6922_v14, 4  ;;  %v7149_v12 = vshrl.u32 %v7058_v62, 16  ;;  %v22974_v51 = vshll.u32 %v19673_v5, 16 }
 0x3bc   : > { %v15848_v59 = vpop.eup %15847  ;;  %7023 = vst.msk [vmem:[#allocation3 + $0x74] sm:$0x1] %vm6509_vm1, %v6911_v47  ;;  %v13966_v63 = vpack.c.bf16 %v6762_v25, %v6762_v25  ;;  %v6668_v55 = vadd.f32 1.0, %v15846_v39  ;;  %v6918_v4 = vrot.slane %v6917_v0, 4  ;;  %v7147_v2 = vsel %vm16091_vm7, %v7142_v7, %v7146_v26  ;;  %v19698_v39 = vld [vmem:[#allocation3 + $0x2c] sm:$0x1] }
 0x3bd   : > { %7030 = vst.msk [vmem:[#allocation3 + $0x90] sm:$0xe] %vm6996_vm13, %v6922_v14  ;;  %v15850_v49 = vpop.eup %15849  ;;  %7027 = vst.msk [vmem:[#allocation3 + $0x84] sm:$0xe] %vm6996_vm13, %v6917_v0  ;;  %v13964_v45 = vpack.c.bf16 %v6760_v53, %v6760_v53  ;;  %v6673_v20 = vadd.f32 1.0, %v15848_v59  ;;  %v13547_v48 = vcombine.low %v7137_v17, %v7147_v2  ;;  %v7152_v26 = vshll.u32 %v7058_v62, 16 }
 0x3be   : > { %v15852_v50 = vpop.eup %15851  ;;  %v6924_v58 = vrot.slane %v13966_v63, 7  ;;  %15859 = vrcp.f32 %v6668_v55  ;;  %v6671_v1 = vadd.f32 1.0, %v15850_v49  ;;  %v7151_v18 = vrot.slane %v7149_v12, 4 }
 0x3bf   : > { %v6919_v33 = vrot.slane %v13964_v45, 7  ;;  %15861 = vrcp.f32 %v6673_v20  ;;  %v6674_v23 = vadd.f32 1.0, %v15852_v50  ;;  %14607 = vmatmul.mubr.msk.bf16.vlgmr.msra.gmra.mrb[32].mxu0 %vm7533_vm10, %v13547_v48  ;;  %v7154_v8 = vrot.slane %v7152_v26, 5 }
 0x3c0   : > { %v6925_v21 = vsel %vm16197_vm12, %v6923_v16, %v6924_v58  ;;  %v6926_v60 = vrot.slane %v6924_v58, 4  ;;  %15863 = vrcp.f32 %v6671_v1  ;;  %v15854_v43 = vpop.eup %15853  ;;  %v22975_v61 = vshrl.u32 %v19673_v5, 16 }
 0x3c1   : > { %7031 = vst.msk [vmem:[#allocation3 + $0x94] sm:$0xf] %vm6500_vm3, %v6925_v21  ;;  %v6920_v17 = vsel %vm16197_vm12, %v6918_v4, %v6919_v33  ;;  %v6921_v27 = vrot.slane %v6919_v33, 4  ;;  %15865 = vrcp.f32 %v6674_v23  ;;  %v6765_v3 = vmul.f32 %v15854_v43, %v19588_v54 }
 0x3c2   : > { %7032 = vst.msk [vmem:[#allocation3 + $0x98] sm:$0x1] %vm6509_vm1, %v6926_v60  ;;  %15867 = vpow2.f32 %v19652_v30  ;;  %v7168_v56 = vshll.u32 %v19678_v46, 16  ;;  %v7173_v35 = vshrl.u32 %v7061_v34, 16  ;;  %v7176_v42 = vshll.u32 %v7061_v34, 16 }
 0x3c3   : > { %7028 = vst.msk [vmem:[#allocation3 + $0x88] sm:$0xf] %vm6500_vm3, %v6920_v17  ;;  %v13969_v31 = vpack.c.bf16 %v6765_v3, %v6765_v3  ;;  %v7155_v15 = vor.u32 %v7154_v8, %v7151_v18  ;;  %v7160_v47 = vrot.slane %v22974_v51, 5  ;;  %v22970_v54 = vshll.u32 %v19683_v38, 16  ;;  %v15856_v14 = vpop.eup %15855 }
 0x3c4   : > { %7029 = vst.msk [vmem:[#allocation3 + $0x8c] sm:$0x1] %vm6509_vm1, %v6921_v27  ;;  %v7164_v30 = vrot.slane %v22975_v61, 4  ;;  %v7170_v25 = vrot.slane %v7168_v56, 5  ;;  %v7175_v0 = vrot.slane %v7173_v35, 4  ;;  %v7178_v53 = vrot.slane %v7176_v42, 5  ;;  %v15858_v7 = vpop.eup %15857 }
 0x3c5   : > { %v6932_v59 = vrot.slane %v13969_v31, 7  ;;  %v6763_v16 = vmul.f32 %v15856_v14, %v19593_v57  ;;  %v7156_v63 = vrot.slane %v7155_v15, 4  ;;  %v19703_v55 = vrot.slane %v22970_v54, 5  ;;  %v7064_v14 = vld [vmem:[#allocation3 + $0x30] sm:$0xf] }
 0x3c6   : > { %v6766_v62 = vmul.f32 %v15858_v7, %v19596_v41  ;;  %v7165_v49 = vor.u32 %v7164_v30, %v7160_v47  ;;  %v7179_v4 = vor.u32 %v7178_v53, %v7175_v0  ;;  %v22971_v45 = vshrl.u32 %v19683_v38, 16 }
 0x3c7   : > { %v6933_v2 = vrot.slane %v6932_v59, 4  ;;  %7036 = vst.msk [vmem:[#allocation3 + $0xa8] sm:$0xe] %vm6996_vm13, %v6932_v59  ;;  %v13967_v50 = vpack.c.bf16 %v6763_v16, %v6763_v16  ;;  %v7161_v58 = vsel %vm16091_vm7, %v7156_v63, %v7160_v47  ;;  %v7192_v57 = vshll.u32 %v19698_v39, 16 }
 0x3c8   : > { %v15860_v20 = vpop.eup %15859  ;;  %v13970_v48 = vpack.c.bf16 %v6766_v62, %v6766_v62  ;;  %v7166_v23 = vrot.slane %v7165_v49, 4  ;;  %v7180_v41 = vrot.slane %v7179_v4, 4  ;;  %v7188_v26 = vrot.slane %v22971_v45, 4  ;;  %v19737_v49 = vld [vmem:[#allocation3 + $0x38] sm:$0x1] }
 0x3c9   : > { %v15862_v1 = vpop.eup %15861  ;;  %v6764_v33 = vmul.f32 %v15860_v20, %v19612_v22  ;;  %v6927_v21 = vrot.slane %v13967_v50, 7  ;;  %v7194_v34 = vrot.slane %v7192_v57, 5  ;;  %v7197_v4 = vshrl.u32 %v7064_v14, 16 }
 0x3ca   : > { %v15864_v12 = vpop.eup %15863  ;;  %v6769_v60 = vmul.f32 %v15862_v1, %v19615_v32  ;;  %v6934_v17 = vrot.slane %v13970_v48, 7  ;;  %v7171_v3 = vsel %vm16091_vm7, %v7166_v23, %v7170_v25  ;;  %v7185_v0 = vsel %vm16091_vm7, %v7180_v41, %v19703_v55  ;;  %v19747_v23 = vld [vmem:[#allocation3 + $0x40] sm:$0xf] }
 0x3cb   : > { %v15866_v43 = vpop.eup %15865  ;;  %v13968_v27 = vpack.c.bf16 %v6764_v33, %v6764_v33  ;;  %v6767_v18 = vmul.f32 %v15864_v12, %v19618_v40  ;;  %v6928_v22 = vrot.slane %v6927_v21, 4  ;;  %7033 = vst.msk [vmem:[#allocation3 + $0x9c] sm:$0xe] %vm6996_vm13, %v6927_v21  ;;  %v13548_v32 = vcombine.low %v7161_v58, %v7171_v3  ;;  %v7067_v58 = vld [vmem:[#allocation3 + $0x3c] sm:$0xf] }
 0x3cc   : > { %v15868_v8 = vpop.eup %15867  ;;  %v13973_v56 = vpack.c.bf16 %v6769_v60, %v6769_v60  ;;  %v6770_v35 = vmul.f32 %v15866_v43, %v19623_v11  ;;  %v6935_v42 = vsel %vm16197_vm12, %v6933_v2, %v6934_v17  ;;  %v6936_v31 = vrot.slane %v6934_v17, 4  ;;  %v19727_v11 = vld [vmem:[#allocation3 + $0x34] sm:$0xf]  ;;  %v7070_v3 = vld [vmem:[#allocation3 + $0x48] sm:$0xf] }
 0x3cd   : > { %v6929_v15 = vrot.slane %v13968_v27, 7  ;;  %v13971_v47 = vpack.c.bf16 %v6767_v18, %v6767_v18  ;;  %7037 = vst.msk [vmem:[#allocation3 + $0xac] sm:$0xf] %vm6500_vm3, %v6935_v42  ;;  %v6672_v25 = vadd.f32 1.0, %v15868_v8  ;;  %14610 = vmatprep.mubr.msk.bf16.mxu0 %vm7533_vm10, %v13548_v32  ;;  %v7189_v16 = vor.u32 %v7188_v26, %v19703_v55  ;;  %v19755_v26 = vld [vmem:[#allocation3 + $0x44] sm:$0x1] }
 0x3ce   : > { %v6942_v40 = vrot.slane %v13973_v56, 7  ;;  %v13974_v30 = vpack.c.bf16 %v6770_v35, %v6770_v35  ;;  %7038 = vst.msk [vmem:[#allocation3 + $0xb0] sm:$0x1] %vm6509_vm1, %v6936_v31  ;;  %v7200_v50 = vshll.u32 %v7064_v14, 16  ;;  %v22966_v55 = vshll.u32 %v19727_v11, 16 }
 0x3cf   : > { %v6930_v53 = vsel %vm16197_vm12, %v6928_v22, %v6929_v15  ;;  %v6931_v7 = vrot.slane %v6929_v15, 4  ;;  %v19732_v59 = vrot.slane %v13971_v47, 7  ;;  %15869 = vrcp.f32 %v6672_v25  ;;  %v19764_v15 = vld [vmem:[#allocation3 + $0x4c] sm:$0xf] }
 0x3d0   : > { %7034 = vst.msk [vmem:[#allocation3 + $0xa0] sm:$0xf] %vm6500_vm3, %v6930_v53  ;;  %v6943_v63 = vrot.slane %v6942_v40, 4  ;;  %v6944_v62 = vrot.slane %v13974_v30, 7  ;;  %v7190_v2 = vrot.slane %v7189_v16, 4  ;;  %v7199_v48 = vrot.slane %v7197_v4, 4 }
 0x3d1   : > { %7042 = vst.msk [vmem:[#allocation3 + $0xc0] sm:$0xe] %vm6996_vm13, %v6942_v40  ;;  %v6938_v20 = vrot.slane %v19732_v59, 4  ;;  %7039 = vst.msk [vmem:[#allocation3 + $0xb4] sm:$0xe] %vm6996_vm13, %v19732_v59  ;;  %v22968_v33 = vshrl.u32 %v19727_v11, 16 }
 0x3d2   : > { %7035 = vst.msk [vmem:[#allocation3 + $0xa4] sm:$0x1] %vm6509_vm1, %v6931_v7  ;;  %v6945_v57 = vsel %vm16197_vm12, %v6943_v63, %v6944_v62  ;;  %v6946_v1 = vrot.slane %v6944_v62, 4  ;;  %v7195_v41 = vsel %vm16091_vm7, %v7190_v2, %v7194_v34  ;;  %v7202_v12 = vrot.slane %v7200_v50, 5  ;;  %v19772_v62 = vld [vmem:[#allocation3 + $0x50] sm:$0x1] }
 0x3d3   : > { %7043 = vst.msk [vmem:[#allocation3 + $0xc4] sm:$0xf] %vm6500_vm3, %v6945_v57  ;;  %v7208_v21 = vrot.slane %v22966_v55, 5  ;;  %v7216_v60 = vshll.u32 %v19737_v49, 16  ;;  %v13549_v43 = vcombine.low %v7185_v0, %v7195_v41  ;;  %v7212_v17 = vrot.slane %v22968_v33, 4 }
 0x3d4   : > { %7044 = vst.msk [vmem:[#allocation3 + $0xc8] sm:$0x1] %vm6509_vm1, %v6946_v1  ;;  %v7221_v27 = vshrl.u32 %v7067_v58, 16  ;;  %v7224_v18 = vshll.u32 %v7067_v58, 16  ;;  %v7203_v8 = vor.u32 %v7202_v12, %v7199_v48  ;;  %v22957_v34 = vshll.u32 %v19747_v23, 16 }
 0x3d5   : > { %v7218_v22 = vrot.slane %v7216_v60, 5  ;;  %v22959_v56 = vshrl.u32 %v19747_v23, 16  ;;  %14611 = vmatmul.mubr.msk.bf16.gmra.mrb[36].mxu0 %vm7533_vm10, %v13549_v43  ;;  %v7213_v35 = vor.u32 %v7212_v17, %v7208_v21  ;;  %v7240_v31 = vshll.u32 %v19755_v26, 16  ;;  %v7076_v41 = vld [vmem:[#allocation3 + $0x60] sm:$0xf] }
 0x3d6   : > { %v7223_v32 = vrot.slane %v7221_v27, 4  ;;  %v7226_v42 = vrot.slane %v7224_v18, 5  ;;  %v7204_v47 = vrot.slane %v7203_v8, 4  ;;  %v7232_v14 = vrot.slane %v22957_v34, 5  ;;  %v19786_v8 = vld [vmem:[#allocation3 + $0x64] sm:$0xf] }
 0x3d7   : > { %v7236_v40 = vrot.slane %v22959_v56, 4  ;;  %v7245_v30 = vshrl.u32 %v7070_v3, 16  ;;  %v7214_v25 = vrot.slane %v7213_v35, 4  ;;  %v7242_v53 = vrot.slane %v7240_v31, 5  ;;  %v19791_v35 = vld [vmem:[#allocation3 + $0x68] sm:$0x1] }
 0x3d8   : > { %v7227_v0 = vor.u32 %v7226_v42, %v7223_v32  ;;  %v7248_v7 = vshll.u32 %v7070_v3, 16  ;;  %v7209_v16 = vsel %vm16091_vm7, %v7204_v47, %v7208_v21  ;;  %v22952_v2 = vshll.u32 %v19764_v15, 16  ;;  %v19812_v59 = vld [vmem:[#allocation3 + $0x5c] sm:$0x1]  ;;  %v19940_v33 = vld [vmem:[#allocation3] sm:$0xe] }
 0x3d9   : > { %v7237_v63 = vor.u32 %v7236_v40, %v7232_v14  ;;  %v7247_v4 = vrot.slane %v7245_v30, 4  ;;  %v15870_v50 = vpop.eup %15869  ;;  %v7219_v58 = vsel %vm16091_vm7, %v7214_v25, %v7218_v22  ;;  %v22955_v48 = vshrl.u32 %v19764_v15, 16  ;;  %v19905_v56 = vld [vmem:[#allocation3 + $0xa4] sm:$0x1]  ;;  %v20096_v13 = vld [vmem:[#allocation3 + $0x9c] sm:$0xe] }
 0x3da   : > { %v7228_v57 = vrot.slane %v7227_v0, 4  ;;  %v7250_v1 = vrot.slane %v7248_v7, 5  ;;  %v6768_v12 = vmul.f32 %v15870_v50, %v19637_v44  ;;  %v13550_v60 = vcombine.low %v7209_v16, %v7219_v58  ;;  %23575 = vst [vmem:[#allocation12_spill] sm:$0xff] %v20096_v13 }
 0x3db   : > { %v7238_v43 = vrot.slane %v7237_v63, 4  ;;  %v7256_v21 = vrot.slane %v22952_v2, 5  ;;  %v7260_v18 = vrot.slane %v22955_v48, 4  ;;  %v7264_v3 = vshll.u32 %v19772_v62, 16 }
 0x3dc   : > { %v7233_v17 = vsel %vm16091_vm7, %v7228_v57, %v7232_v14  ;;  %v7251_v27 = vor.u32 %v7250_v1, %v7247_v4  ;;  %v13972_v22 = vpack.c.bf16 %v6768_v12, %v6768_v12  ;;  %14614 = vmatprep.mubr.msk.bf16.mxu0 %vm7533_vm10, %v13550_v60  ;;  %v7293_v32 = vshrl.u32 %v7076_v41, 16  ;;  %v7073_v1 = vld [vmem:[#allocation3 + $0x54] sm:$0xf] }
 0x3dd   : > { %v7243_v44 = vsel %vm16091_vm7, %v7238_v43, %v7242_v53  ;;  %v7296_v42 = vshll.u32 %v7076_v41, 16  ;;  %v7261_v14 = vor.u32 %v7260_v18, %v7256_v21  ;;  %v22962_v0 = vshll.u32 %v19786_v8, 16  ;;  %v19803_v41 = vld [vmem:[#allocation3 + $0x58] sm:$0xf]  ;;  %v15879_v18 = vld [vmem:[%s22690_s3 + $0x4] sm:$0xf] }
 0x3de   : > { %v13551_v31 = vcombine.low %v7233_v17, %v7243_v44  ;;  %v7252_v47 = vrot.slane %v7251_v27, 4  ;;  %v6939_v40 = vrot.slane %v13972_v22, 7  ;;  %v7295_v30 = vrot.slane %v7293_v32, 4 }
 0x3df   : > { %v7298_v25 = vrot.slane %v7296_v42, 5  ;;  %v7262_v7 = vrot.slane %v7261_v14, 4  ;;  %v7266_v16 = vrot.slane %v7264_v3, 5  ;;  %v22964_v63 = vshrl.u32 %v19786_v8, 16  ;;  %v19827_v14 = vld [vmem:[#allocation3 + $0x70] sm:$0xf] }
 0x3e0   : > { %14615 = vmatmul.mubr.msk.bf16.gmra.mrb[40].mxu0 %vm7533_vm10, %v13551_v31  ;;  %v7312_v53 = vshll.u32 %v19791_v35, 16  ;;  %v6940_v4 = vsel %vm16197_vm12, %v6938_v20, %v6939_v40  ;;  %v6941_v50 = vrot.slane %v6939_v40, 4  ;;  %v7304_v57 = vrot.slane %v22962_v0, 5  ;;  %v7079_v20 = vld [vmem:[#allocation3 + $0x6c] sm:$0xf] }
 0x3e1   : > { %v7299_v58 = vor.u32 %v7298_v25, %v7295_v30  ;;  %7040 = vst.msk [vmem:[#allocation3 + $0xb8] sm:$0xf] %vm6500_vm3, %v6940_v4  ;;  %v7257_v12 = vsel %vm16091_vm7, %v7252_v47, %v7256_v21  ;;  %v7267_v60 = vsel %vm16091_vm7, %v7262_v7, %v7266_v16  ;;  %v7308_v29 = vrot.slane %v22964_v63, 4 }
 0x3e2   : > { %7041 = vst.msk [vmem:[#allocation3 + $0xbc] sm:$0x1] %vm6509_vm1, %v6941_v50  ;;  %v13552_v43 = vcombine.low %v7257_v12, %v7267_v60  ;;  %v7314_v27 = vrot.slane %v7312_v53, 5  ;;  %v19819_v21 = vsel %vm7582_vm9, %v15879_v18, 0  ;;  %v7269_v22 = vshrl.u32 %v7073_v1, 16 }
 0x3e3   : > { %v7300_v17 = vrot.slane %v7299_v58, 4  ;;  %v7309_v3 = vor.u32 %v7308_v29, %v7304_v57  ;;  %v7272_v44 = vshll.u32 %v7073_v1, 16  ;;  %v22948_v32 = vshll.u32 %v19803_v41, 16  ;;  %v19831_v53 = vld [vmem:[#allocation3 + $0x74] sm:$0x1] }
 0x3e4   : > { %14618 = vmatprep.mubr.msk.bf16.mxu0 %vm7533_vm10, %v13552_v43  ;;  %v22951_v31 = vshrl.u32 %v19803_v41, 16  ;;  %v7288_v47 = vshll.u32 %v19812_v59, 16  ;;  %v7317_v40 = vshrl.u32 %v7079_v20, 16  ;;  %v7271_v25 = vrot.slane %v7269_v22, 4  ;;  %v7082_v1 = vld [vmem:[#allocation3 + $0x78] sm:$0xf] }
 0x3e5   : > { %v7305_v42 = vsel %vm16091_vm7, %v7300_v17, %v7304_v57  ;;  %v7310_v30 = vrot.slane %v7309_v3, 4  ;;  %v7274_v7 = vrot.slane %v7272_v44, 5  ;;  %v7280_v16 = vrot.slane %v22948_v32, 5  ;;  %v19840_v44 = vld [vmem:[#allocation3 + $0x7c] sm:$0xf] }
 0x3e6   : > { %v7284_v4 = vrot.slane %v22951_v31, 4  ;;  %v7290_v50 = vrot.slane %v7288_v47, 5  ;;  %v7319_v58 = vrot.slane %v7317_v40, 4  ;;  %v7320_v57 = vshll.u32 %v7079_v20, 16  ;;  %23566 = vst [vmem:[#allocation26_spill] sm:$0xff] %v19840_v44 }
 0x3e7   : > { %v7315_v12 = vsel %vm16091_vm7, %v7310_v30, %v7314_v27  ;;  %v7275_v60 = vor.u32 %v7274_v7, %v7271_v25  ;;  %v22949_v29 = vshll.u32 %v19827_v14, 16  ;;  %v22950_v43 = vshrl.u32 %v19827_v14, 16 }
 0x3e8   : > { %v13554_v17 = vcombine.low %v7305_v42, %v7315_v12  ;;  %v7285_v18 = vor.u32 %v7284_v4, %v7280_v16  ;;  %v7322_v3 = vrot.slane %v7320_v57, 5  ;;  %v7336_v22 = vshll.u32 %v19831_v53, 16  ;;  %v19847_v42 = vld [vmem:[#allocation3 + $0x80] sm:$0x1] }
 0x3e9   : > { %v7276_v32 = vrot.slane %v7275_v60, 4  ;;  %v7328_v20 = vrot.slane %v22949_v29, 5  ;;  %v7332_v47 = vrot.slane %v22950_v43, 4  ;;  %v7341_v27 = vshrl.u32 %v7082_v1, 16  ;;  %v7085_v29 = vld [vmem:[#allocation3 + $0x84] sm:$0xf] }
 0x3ea   : > { %14622 = vmatprep.mubr.msk.bf16.mxu1 %vm7533_vm10, %v13554_v17  ;;  %v7286_v40 = vrot.slane %v7285_v18, 4  ;;  %v7323_v30 = vor.u32 %v7322_v3, %v7319_v58  ;;  %v7338_v25 = vrot.slane %v7336_v22, 5  ;;  %v7344_v7 = vshll.u32 %v7082_v1, 16  ;;  %v19855_v58 = vld [vmem:[#allocation3 + $0x88] sm:$0xf] }
 0x3eb   : > { %v7281_v4 = vsel %vm16091_vm7, %v7276_v32, %v7280_v16  ;;  %v7333_v57 = vor.u32 %v7332_v47, %v7328_v20  ;;  %v7343_v12 = vrot.slane %v7341_v27, 4  ;;  %v22953_v60 = vshll.u32 %v19840_v44, 16  ;;  %23567 = vst [vmem:[#allocation27_spill] sm:$0xff] %v19855_v58  ;;  %v19864_v47 = vld [vmem:[#allocation3 + $0x8c] sm:$0x1] }
 0x3ec   : > { %v7291_v43 = vsel %vm16091_vm7, %v7286_v40, %v7290_v50  ;;  %v7324_v31 = vrot.slane %v7323_v30, 4  ;;  %v7346_v2 = vrot.slane %v7344_v7, 5  ;;  %v22954_v17 = vshrl.u32 %v19840_v44, 16 }
 0x3ed   : > { %v13553_v18 = vcombine.low %v7281_v4, %v7291_v43  ;;  %v7334_v3 = vrot.slane %v7333_v57, 4  ;;  %v7352_v1 = vrot.slane %v22953_v60, 5  ;;  %v7360_v32 = vshll.u32 %v19847_v42, 16  ;;  %v7088_v4 = vld [vmem:[#allocation3 + $0x90] sm:$0xf] }
 0x3ee   : > { %v7329_v16 = vsel %vm16091_vm7, %v7324_v31, %v7328_v20  ;;  %v7347_v22 = vor.u32 %v7346_v2, %v7343_v12  ;;  %v7356_v50 = vrot.slane %v22954_v17, 4  ;;  %v7365_v27 = vshrl.u32 %v7085_v29, 16  ;;  %v19870_v20 = vld [vmem:[#allocation3 + $0x94] sm:$0xf] }
 0x3ef   : > { %14619 = vmatmul.mubr.msk.bf16.gmra.mrb[44].mxu0 %vm7533_vm10, %v13553_v18  ;;  %v7339_v43 = vsel %vm16091_vm7, %v7334_v3, %v7338_v25  ;;  %v7362_v40 = vrot.slane %v7360_v32, 5  ;;  %v7368_v30 = vshll.u32 %v7085_v29, 16  ;;  %v22956_v7 = vshll.u32 %v19855_v58, 16  ;;  %23568 = vst [vmem:[#allocation5_spill] sm:$0xff] %v19870_v20  ;;  %v19879_v29 = vld [vmem:[%s22690_s3 + $0x8] sm:$0xf] }
 0x3f0   : > { %v13555_v57 = vcombine.low %v7329_v16, %v7339_v43  ;;  %v7348_v60 = vrot.slane %v7347_v22, 4  ;;  %v7357_v31 = vor.u32 %v7356_v50, %v7352_v1  ;;  %v7367_v2 = vrot.slane %v7365_v27, 4  ;;  %v19884_v32 = vld [vmem:[#allocation3 + $0x98] sm:$0x1] }
 0x3f1   : > { %v7370_v12 = vrot.slane %v7368_v30, 5  ;;  %v7376_v17 = vrot.slane %v22956_v7, 5  ;;  %v22958_v18 = vshrl.u32 %v19855_v58, 16  ;;  %v7384_v48 = vshll.u32 %v19864_v47, 16  ;;  %v7091_v7 = vld [vmem:[#allocation3 + $0x9c] sm:$0xf] }
 0x3f2   : > { %14623 = vmatmul.mubr.msk.bf16.vlgmr.msra.gmra.mrb[0].mxu1 %vm7533_vm10, %v13555_v57  ;;  %v7353_v25 = vsel %vm16091_vm7, %v7348_v60, %v7352_v1  ;;  %v7358_v3 = vrot.slane %v7357_v31, 4  ;;  %v7389_v16 = vshrl.u32 %v7088_v4, 16  ;;  %v7392_v22 = vshll.u32 %v7088_v4, 16  ;;  %v19893_v31 = vld [vmem:[#allocation3 + $0xa0] sm:$0xf] }
 0x3f3   : > { %14639 = vmatpush3.bf16.msra.mxu1 %v19819_v21  ;;  %v7371_v50 = vor.u32 %v7370_v12, %v7367_v2  ;;  %v7380_v27 = vrot.slane %v22958_v18, 4  ;;  %v7386_v43 = vrot.slane %v7384_v48, 5  ;;  %v22960_v30 = vshll.u32 %v19870_v20, 16  ;;  %23569 = vst [vmem:[#allocation33_spill] sm:$0xff] %v19893_v31 }
 0x3f4   : > { %v7363_v57 = vsel %vm16091_vm7, %v7358_v3, %v7362_v40  ;;  %v7391_v34 = vrot.slane %v7389_v16, 4  ;;  %v7394_v60 = vrot.slane %v7392_v22, 5  ;;  %v22961_v1 = vshrl.u32 %v19870_v20, 16  ;;  %15598 = vmatprep.subr.msk.bf16.mxu1 %vm7582_vm9, %v19879_v29 }
 0x3f5   : > { %v13556_v21 = vcombine.low %v7353_v25, %v7363_v57  ;;  %v7372_v4 = vrot.slane %v7371_v50, 4  ;;  %v7381_v2 = vor.u32 %v7380_v27, %v7376_v17  ;;  %v7400_v48 = vrot.slane %v22960_v30, 5  ;;  %v7094_v30 = vld [vmem:[#allocation3 + $0xa8] sm:$0xf] }
 0x3f6   : > { %v7395_v12 = vor.u32 %v7394_v60, %v7391_v34  ;;  %v7404_v18 = vrot.slane %v22961_v1, 4  ;;  %v7408_v40 = vshll.u32 %v19884_v32, 16  ;;  %v7413_v3 = vshrl.u32 %v7091_v7, 16 }
 0x3f7   : > { %14626 = vmatprep.mubr.msk.bf16.mxu1 %vm7533_vm10, %v13556_v21  ;;  %v7377_v16 = vsel %vm16091_vm7, %v7372_v4, %v7376_v17  ;;  %v7382_v22 = vrot.slane %v7381_v2, 4  ;;  %v7416_v25 = vshll.u32 %v7091_v7, 16  ;;  %v22963_v50 = vshll.u32 %v19893_v31, 16  ;;  %v19913_v4 = vld [vmem:[#allocation3 + $0xac] sm:$0xf] }
 0x3f8   : > { %v7396_v27 = vrot.slane %v7395_v12, 4  ;;  %v7405_v57 = vor.u32 %v7404_v18, %v7400_v48  ;;  %v7410_v34 = vrot.slane %v7408_v40, 5  ;;  %v7415_v60 = vrot.slane %v7413_v3, 4  ;;  %23570 = vst [vmem:[#allocation25_spill] sm:$0xff] %v19913_v4 }
 0x3f9   : > { %v7387_v1 = vsel %vm16091_vm7, %v7382_v22, %v7386_v43  ;;  %v7418_v0 = vrot.slane %v7416_v25, 5  ;;  %v7424_v21 = vrot.slane %v22963_v50, 5  ;;  %v22965_v17 = vshrl.u32 %v19893_v31, 16  ;;  %v19920_v43 = vld [vmem:[#allocation3 + $0xb0] sm:$0x1] }
 0x3fa   : > { %v13557_v2 = vcombine.low %v7377_v16, %v7387_v1  ;;  %v7401_v7 = vsel %vm16091_vm7, %v7396_v27, %v7400_v48  ;;  %v7406_v12 = vrot.slane %v7405_v57, 4  ;;  %v7432_v18 = vshll.u32 %v19905_v56, 16  ;;  %v7097_v27 = vld [vmem:[#allocation3 + $0xb4] sm:$0xf] }
 0x3fb   : > { %v7419_v40 = vor.u32 %v7418_v0, %v7415_v60  ;;  %v7428_v3 = vrot.slane %v22965_v17, 4  ;;  %v7437_v22 = vshrl.u32 %v7094_v30, 16  ;;  %v7440_v25 = vshll.u32 %v7094_v30, 16  ;;  %v19927_v17 = vld [vmem:[#allocation3 + $0xb8] sm:$0xf] }
 0x3fc   : > { %14627 = vmatmul.mubr.msk.bf16.gmra.mrb[4].mxu1 %vm7533_vm10, %v13557_v2  ;;  %v7411_v50 = vsel %vm16091_vm7, %v7406_v12, %v7410_v34  ;;  %v7434_v1 = vrot.slane %v7432_v18, 5  ;;  %v22967_v16 = vshll.u32 %v19913_v4, 16  ;;  %v22969_v48 = vshrl.u32 %v19913_v4, 16  ;;  %23571 = vst [vmem:[#allocation31_spill] sm:$0xff] %v19927_v17 }
 0x3fd   : > { %v13558_v57 = vcombine.low %v7401_v7, %v7411_v50  ;;  %v7420_v0 = vrot.slane %v7419_v40, 4  ;;  %v7429_v60 = vor.u32 %v7428_v3, %v7424_v21  ;;  %v7439_v63 = vrot.slane %v7437_v22, 4 }
 0x3fe   : > { %v7442_v55 = vrot.slane %v7440_v25, 5  ;;  %v7448_v30 = vrot.slane %v22967_v16, 5  ;;  %v7452_v2 = vrot.slane %v22969_v48, 4  ;;  %v7456_v34 = vshll.u32 %v19920_v43, 16  ;;  %v19937_v25 = vld [vmem:[#allocation3 + $0xbc] sm:$0x1] }
 0x3ff   : > { %14630 = vmatprep.mubr.msk.bf16.mxu1 %vm7533_vm10, %v13558_v57  ;;  %v7425_v12 = vsel %vm16091_vm7, %v7420_v0, %v7424_v21  ;;  %v7430_v50 = vrot.slane %v7429_v60, 4  ;;  %v7461_v7 = vshrl.u32 %v7097_v27, 16  ;;  %v7464_v18 = vshll.u32 %v7097_v27, 16 }
 0x400   : > { %v7443_v40 = vor.u32 %v7442_v55, %v7439_v63  ;;  %v7453_v3 = vor.u32 %v7452_v2, %v7448_v30  ;;  %v7458_v22 = vrot.slane %v7456_v34, 5  ;;  %v22972_v16 = vshll.u32 %v19927_v17, 16 }
 0x401   : > { %v7435_v48 = vsel %vm16091_vm7, %v7430_v50, %v7434_v1  ;;  %v7463_v54 = vrot.slane %v7461_v7, 4  ;;  %v7466_v57 = vrot.slane %v7464_v18, 5  ;;  %v22973_v45 = vshrl.u32 %v19927_v17, 16  ;;  %v15881_v7 = vld [vmem:[#allocation3 + $0x8] sm:$0x1] }
 0x402   : > { %v13559_v21 = vcombine.low %v7425_v12, %v7435_v48  ;;  %v7444_v0 = vrot.slane %v7443_v40, 4  ;;  %v7454_v60 = vrot.slane %v7453_v3, 4  ;;  %v7472_v55 = vrot.slane %v22972_v16, 5  ;;  %v15880_v12 = vld [vmem:[#allocation3 + $0x4] sm:$0xf] }
 0x403   : > { %v7467_v63 = vor.u32 %v7466_v57, %v7463_v54  ;;  %v7476_v27 = vrot.slane %v22973_v45, 4  ;;  %v7480_v2 = vshll.u32 %v19937_v25, 16  ;;  %v13578_v34 = vrot.slane %v19940_v33, 9 }
 0x404   : > { %14631 = vmatmul.mubr.msk.bf16.gmra.mrb[8].mxu1 %vm7533_vm10, %v13559_v21  ;;  %v7449_v1 = vsel %vm16091_vm7, %v7444_v0, %v7448_v30  ;;  %v7459_v48 = vsel %vm16091_vm7, %v7454_v60, %v7458_v22  ;;  %v7845_v50 = vrot.slane %v15880_v12, 5  ;;  %v7848_v18 = vrot.slane %v15881_v7, 5  ;;  %v19960_v0 = vld [vmem:[#allocation3 + $0xc] sm:$0xe]  ;;  %v19973_v7 = vld [vmem:[#allocation3 + $0x24] sm:$0xe] }
 0x405   : > { %v13560_v54 = vcombine.low %v7449_v1, %v7459_v48  ;;  %v7468_v40 = vrot.slane %v7467_v63, 4  ;;  %v7477_v3 = vor.u32 %v7476_v27, %v7472_v55  ;;  %v7852_v45 = vrot.slane %v19625_v19, 5  ;;  %v19965_v63 = vld [vmem:[#allocation3 + $0x18] sm:$0xe] }
 0x406   : > { %v7846_v57 = vsel %vm16402_vm15, %v13578_v34, %v7845_v50  ;;  %v7847_v16 = vrot.slane %v7845_v50, 4  ;;  %v7482_v30 = vrot.slane %v7480_v2, 5  ;;  %v7855_v1 = vrot.slane %v19630_v10, 5 }
 0x407   : > { %14634 = vmatprep.mubr.msk.bf16.mxu1 %vm7533_vm10, %v13560_v54  ;;  %v7478_v21 = vrot.slane %v7477_v3, 4  ;;  %v7854_v60 = vrot.slane %v7852_v45, 4  ;;  %v7473_v27 = vsel %vm16091_vm7, %v7468_v40, %v7472_v55  ;;  %v7859_v12 = vrot.slane %v19673_v5, 5  ;;  %v19979_v40 = vld [vmem:[#allocation3 + $0x30] sm:$0xe] }
 0x408   : > { %v7849_v22 = vsel %vm16402_vm15, %v7847_v16, %v7848_v18  ;;  %v13579_v50 = vrot.slane %v19960_v0, 9  ;;  %v7866_v16 = vrot.slane %v19683_v38, 5  ;;  %v7904_v10 = vrot.slane %v19791_v35, 5 }
 0x409   : > { %v7483_v34 = vsel %vm16091_vm7, %v7478_v21, %v7482_v30  ;;  %v13595_v48 = vcombine.low %v7846_v57, %v7849_v22  ;;  %v13580_v18 = vrot.slane %v19965_v63, 9  ;;  %v7861_v54 = vrot.slane %v7859_v12, 4  ;;  %v19989_v30 = vld [vmem:[#allocation3 + $0x3c] sm:$0xe] }
 0x40a   : > { %v13561_v2 = vcombine.low %v7473_v27, %v7483_v34  ;;  %v7862_v55 = vrot.slane %v19678_v46, 5  ;;  %v7853_v3 = vsel %vm16402_vm15, %v13579_v50, %v7852_v45  ;;  %v7856_v57 = vsel %vm16402_vm15, %v7854_v60, %v7855_v1 }
 0x40b   : > { %v8732_v21 = vsel %vm7582_vm9, %v19879_v29, 0  ;;  %v7873_v35 = vrot.slane %v19727_v11, 5  ;;  %v7860_v46 = vsel %vm16402_vm15, %v13580_v18, %v7859_v12  ;;  %v13581_v22 = vrot.slane %v19973_v7, 9 }
 0x40c   : > { %14635 = vmatmul.mubr.msk.bf16.gmra.mrb[12].mxu1 %vm7533_vm10, %v13561_v2  ;;  %v7876_v27 = vrot.slane %v19737_v49, 5  ;;  %v7880_v45 = vrot.slane %v19747_v23, 5  ;;  %v7868_v34 = vrot.slane %v7866_v16, 4  ;;  %v7869_v60 = vrot.slane %v19698_v39, 5  ;;  %v19999_v2 = vld [vmem:[#allocation3 + $0x48] sm:$0xe] }
 0x40d   : > { %14640 = vmatprep.mubr.msk.bf16.mxu1 %vm7533_vm10, %v13595_v48  ;;  %v13582_v29 = vrot.slane %v19979_v40, 9  ;;  %v7875_v1 = vrot.slane %v7873_v35, 4  ;;  %v7863_v48 = vsel %vm16402_vm15, %v7861_v54, %v7862_v55  ;;  %v13583_v50 = vrot.slane %v19989_v30, 9 }
 0x40e   : > { %v7882_v12 = vrot.slane %v7880_v45, 4  ;;  %v7883_v18 = vrot.slane %v19755_v26, 5  ;;  %v7887_v51 = vrot.slane %v19764_v15, 5  ;;  %v7890_v61 = vrot.slane %v19772_v62, 5 }
 0x40f   : > { %v20007_v49 = vsel %vm16402_vm15, %v13582_v29, %v7873_v35  ;;  %v20011_v39 = vsel %vm16402_vm15, %v7875_v1, %v7876_v27  ;;  %v20021_v26 = vsel %vm16402_vm15, %v13583_v50, %v7880_v45  ;;  %v13584_v35 = vrot.slane %v19999_v2, 9  ;;  %v20028_v27 = vld [vmem:[#allocation3 + $0x6c] sm:$0xe] }
 0x410   : > { %v13599_v54 = vcombine.low %v20007_v49, %v20011_v39  ;;  %v20025_v55 = vsel %vm16402_vm15, %v7882_v12, %v7883_v18  ;;  %v13596_v29 = vcombine.low %v7853_v3, %v7856_v57  ;;  %v13597_v1 = vcombine.low %v7860_v46, %v7863_v48  ;;  %v20043_v3 = vld [vmem:[%s22690_s3 + $0xc] sm:$0xf] }
 0x411   : > { %v7889_v28 = vrot.slane %v7887_v51, 4  ;;  %v7870_v49 = vsel %vm16402_vm15, %v7868_v34, %v7869_v60  ;;  %v20036_v45 = vsel %vm16402_vm15, %v13584_v35, %v7887_v51  ;;  %v13586_v50 = vrot.slane %v20015_v9, 9  ;;  %v20053_v60 = vld [vmem:[#allocation3 + $0x78] sm:$0xe] }
 0x412   : > { %v7901_v12 = vrot.slane %v19786_v8, 5  ;;  %v13587_v46 = vrot.slane %v20028_v27, 9  ;;  %v7908_v51 = vrot.slane %v19827_v14, 5  ;;  %v7911_v34 = vrot.slane %v19831_v53, 5  ;;  %23572 = vst [vmem:[#allocation14_spill] sm:$0xff] %v20053_v60 }
 0x413   : > { %v20048_v57 = vsel %vm16402_vm15, %v7889_v28, %v7890_v61  ;;  %v7867_v48 = vsel %vm16402_vm15, %v13581_v22, %v7866_v16  ;;  %v13588_v22 = vrot.slane %v20053_v60, 9  ;;  %v7932_v52 = vrot.slane %v19884_v32, 5 }
 0x414   : > { %14641 = vmatmul.mubr.msk.bf16.vlgmr.msra.gmra.mrb[16].mxu1 %vm7533_vm10, %v13596_v29  ;;  %v7903_v39 = vrot.slane %v7901_v12, 4  ;;  %v13598_v28 = vcombine.low %v7867_v48, %v7870_v49  ;;  %v20062_v61 = vsel %vm16402_vm15, %v13586_v50, %v7901_v12  ;;  %v20066_v53 = vsel %vm16402_vm15, %v13587_v46, %v7908_v51  ;;  %v20079_v49 = vld [vmem:[#allocation3 + $0x90] sm:$0xe] }
 0x415   : > { %14673 = vmatpush3.bf16.msra.mxu1 %v8732_v21  ;;  %14644 = vmatprep.mubr.msk.bf16.mxu1 %vm7533_vm10, %v13597_v1  ;;  %v7910_v35 = vrot.slane %v7908_v51, 4  ;;  %v20068_v21 = vld [vmem:[#allocation3 + $0x84] sm:$0xe]  ;;  %v7915_v29 = vrot.slane %v19840_v44, 5  ;;  %v7918_v1 = vrot.slane %v19847_v42, 5  ;;  %23574 = vst [vmem:[#allocation11_spill] sm:$0xff] %v20079_v49 }
 0x416   : > { %23573 = vst [vmem:[#allocation41_spill] sm:$0xff] %v20068_v21  ;;  %15599 = vmatprep.subr.msk.bf16.mxu1 %vm7582_vm9, %v20043_v3  ;;  %v20074_v16 = vsel %vm16402_vm15, %v7903_v39, %v7904_v10  ;;  %v7922_v46 = vrot.slane %v19855_v58, 5  ;;  %v7925_v10 = vrot.slane %v19864_v47, 5  ;;  %v13589_v39 = vrot.slane %v20068_v21, 9 }
 0x417   : > { %v20085_v12 = vsel %vm16402_vm15, %v7910_v35, %v7911_v34  ;;  %v20093_v48 = vsel %vm16402_vm15, %v13588_v22, %v7915_v29  ;;  %v7917_v42 = vrot.slane %v7915_v29, 4  ;;  %v13590_v34 = vrot.slane %v20079_v49, 9 }
 0x418   : > { %v7924_v50 = vrot.slane %v7922_v46, 4  ;;  %v7929_v35 = vrot.slane %v19870_v20, 5  ;;  %v20107_v22 = vsel %vm16402_vm15, %v13589_v39, %v7922_v46  ;;  %v7936_v29 = vrot.slane %v19893_v31, 5  ;;  %v20127_v39 = vld [vmem:[#allocation3 + $0xa8] sm:$0xe] }
 0x419   : > { %v20103_v47 = vsel %vm16402_vm15, %v7917_v42, %v7918_v1  ;;  %v7939_v51 = vrot.slane %v19905_v56, 5  ;;  %v13591_v1 = vrot.slane %v20096_v13, 9  ;;  %v7894_v46 = vrot.slane %v19803_v41, 5  ;;  %23576 = vst [vmem:[#allocation37_spill] sm:$0xff] %v20127_v39  ;;  %v20139_v42 = vld [vmem:[#allocation3 + $0xb4] sm:$0xe] }
 0x41a   : > { %v20116_v32 = vsel %vm16402_vm15, %v7924_v50, %v7925_v10  ;;  %v7931_v62 = vrot.slane %v7929_v35, 4  ;;  %v20125_v56 = vsel %vm16402_vm15, %v13590_v34, %v7929_v35  ;;  %v7946_v18 = vrot.slane %v19920_v43, 5  ;;  %23577 = vst [vmem:[#allocation17_spill] sm:$0xff] %v20139_v42 }
 0x41b   : > { %v20135_v10 = vsel %vm16402_vm15, %v13591_v1, %v7936_v29  ;;  %v13592_v1 = vrot.slane %v20127_v39, 9  ;;  %v13593_v43 = vrot.slane %v20139_v42, 9  ;;  %v8266_v31 = vshrl.u32 %v19940_v33, 16 }
 0x41c   : > { %14645 = vmatmul.mubr.msk.bf16.gmra.mrb[20].mxu1 %vm7533_vm10, %v13598_v28  ;;  %v7938_v28 = vrot.slane %v7936_v29, 4  ;;  %v20131_v50 = vsel %vm16402_vm15, %v7931_v62, %v7932_v52  ;;  %v7950_v52 = vrot.slane %v19927_v17, 5  ;;  %v7953_v62 = vrot.slane %v19937_v25, 5  ;;  %v20164_v29 = vld [vmem:[#allocation3 + $0x54] sm:$0xe] }
 0x41d   : > { %14648 = vmatprep.mubr.msk.bf16.mxu1 %vm7533_vm10, %v13599_v54  ;;  %v7943_v54 = vrot.slane %v19913_v4, 5  ;;  %v8269_v34 = vshll.u32 %v19940_v33, 16  ;;  %v7896_v17 = vrot.slane %v7894_v46, 4 }
 0x41e   : > { %v20145_v35 = vsel %vm16402_vm15, %v7938_v28, %v7939_v51  ;;  %v7952_v4 = vrot.slane %v7950_v52, 4  ;;  %v7897_v51 = vrot.slane %v19812_v59, 5  ;;  %v20170_v39 = vsel %vm16402_vm15, %v13593_v43, %v7950_v52 }
 0x41f   : > { %v7945_v36 = vrot.slane %v7943_v54, 4  ;;  %v20158_v28 = vsel %vm16402_vm15, %v13592_v1, %v7943_v54  ;;  %v23578_v59 = vcombine.low %v20021_v26, %v20025_v55  ;;  %v23579_v54 = vcombine.low %v20036_v45, %v20048_v57 }
 0x420   : > { %v20174_v33 = vsel %vm16402_vm15, %v7952_v4, %v7953_v62  ;;  %v8268_v52 = vrot.slane %v8266_v31, 5  ;;  %v8271_v1 = vrot.slane %v8269_v34, 6  ;;  %v13585_v43 = vrot.slane %v20164_v29, 9 }
 0x421   : > { %v20162_v25 = vsel %vm16402_vm15, %v7945_v36, %v7946_v18  ;;  %v8249_v18 = vld [vmem:[#allocation3 + $0x8] sm:$0x3]  ;;  %v7898_v4 = vsel %vm16402_vm15, %v7896_v17, %v7897_v51  ;;  %v23580_v26 = vshrl.u32 %v19381_v24, 16  ;;  %v23581_v62 = vshll.u32 %v19381_v24, 16 }
 0x422   : > { %v8280_v36 = vshrl.u32 %v8249_v18, 16  ;;  %v8283_v42 = vshll.u32 %v8249_v18, 16  ;;  %v7895_v45 = vsel %vm16402_vm15, %v13585_v43, %v7894_v46  ;;  %v8272_v57 = vor.u32 %v8271_v1, %v8268_v52 }
 0x423   : > { %v8274_v55 = vrot.slane %v23580_v26, 5  ;;  %v8289_v31 = vshrl.u32 %v19960_v0, 16  ;;  %v8292_v34 = vshll.u32 %v19960_v0, 16  ;;  %v13602_v13 = vcombine.low %v7895_v45, %v7898_v4 }
 0x424   : > { %14649 = vmatmul.mubr.msk.bf16.gmra.mrb[24].mxu1 %vm7533_vm10, %v23578_v59  ;;  %v8275_v59 = vrot.slane %v23581_v62, 6  ;;  %v8282_v17 = vrot.slane %v8280_v36, 5  ;;  %v8285_v51 = vrot.slane %v8283_v42, 6  ;;  %v23582_v24 = vshrl.u32 %v19625_v19, 16  ;;  %v8251_v42 = vld [vmem:[#allocation3 + $0x20] sm:$0x3] }
 0x425   : > { %14652 = vmatprep.mubr.msk.bf16.mxu1 %vm7533_vm10, %v23579_v54  ;;  %v8250_v54 = vld [vmem:[#allocation3 + $0x14] sm:$0x3]  ;;  %v23583_v18 = vshll.u32 %v19625_v19, 16  ;;  %v23584_v52 = vcombine.low %v20062_v61, %v20074_v16  ;;  %v20208_v0 = vrot.slane %v8272_v57, 4  ;;  %v8291_v1 = vrot.slane %v8289_v31, 5 }
 0x426   : > { %v20197_v20 = vor.u32 %v8275_v59, %v8274_v55  ;;  %v8297_v26 = vrot.slane %v23582_v24, 5  ;;  %v8303_v46 = vshrl.u32 %v8250_v54, 16  ;;  %v8294_v43 = vrot.slane %v8292_v34, 6  ;;  %v8252_v31 = vld [vmem:[#allocation3 + $0x2c] sm:$0x3] }
 0x427   : > { %v8298_v62 = vrot.slane %v23583_v18, 6  ;;  %v8306_v36 = vshll.u32 %v8250_v54, 16  ;;  %v8286_v4 = vor.u32 %v8285_v51, %v8282_v17  ;;  %v8312_v19 = vshrl.u32 %v19965_v63, 16 }
 0x428   : > { %v8305_v59 = vrot.slane %v8303_v46, 5  ;;  %v8295_v16 = vor.u32 %v8294_v43, %v8291_v1  ;;  %v8315_v57 = vshll.u32 %v19965_v63, 16  ;;  %v23585_v54 = vshrl.u32 %v19673_v5, 16  ;;  %v8253_v63 = vld [vmem:[#allocation3 + $0x38] sm:$0x3] }
 0x429   : > { %v20211_v55 = vor.u32 %v8298_v62, %v8297_v26  ;;  %v8308_v45 = vrot.slane %v8306_v36, 6  ;;  %v23586_v17 = vshll.u32 %v19673_v5, 16  ;;  %v8326_v24 = vshrl.u32 %v8251_v42, 16 }
 0x42a   : > { %v8320_v34 = vrot.slane %v23585_v54, 5  ;;  %v8329_v26 = vshll.u32 %v8251_v42, 16  ;;  %v8335_v18 = vshrl.u32 %v19973_v7, 16  ;;  %v8338_v62 = vshll.u32 %v19973_v7, 16 }
 0x42b   : > { %v8321_v51 = vrot.slane %v23586_v17, 6  ;;  %v23587_v46 = vshrl.u32 %v19683_v38, 16  ;;  %v23588_v1 = vshll.u32 %v19683_v38, 16  ;;  %v23589_v36 = vcombine.low %v20066_v53, %v20085_v12 }
 0x42c   : > { %14653 = vmatmul.mubr.msk.bf16.gmra.mrb[28].mxu1 %vm7533_vm10, %v13602_v13  ;;  %v8278_v13 = vrot.slane %v20197_v20, 4  ;;  %v8349_v5 = vshrl.u32 %v8252_v31, 16  ;;  %v8352_v54 = vshll.u32 %v8252_v31, 16  ;;  %v8358_v42 = vshrl.u32 %v19979_v40, 16 }
 0x42d   : > { %14656 = vmatprep.mubr.msk.bf16.mxu1 %vm7533_vm10, %v23584_v52  ;;  %v8343_v52 = vrot.slane %v23587_v46, 5  ;;  %v8344_v43 = vrot.slane %v23588_v1, 6  ;;  %v8361_v17 = vshll.u32 %v19979_v40, 16  ;;  %v23590_v7 = vcombine.low %v20093_v48, %v20103_v47 }
 0x42e   : > { %v8314_v46 = vrot.slane %v8312_v19, 5  ;;  %v8317_v38 = vrot.slane %v8315_v57, 6  ;;  %v23591_v1 = vshrl.u32 %v19727_v11, 16  ;;  %v23592_v53 = vshll.u32 %v19727_v11, 16 }
 0x42f   : > { %v8328_v6 = vrot.slane %v8326_v24, 5  ;;  %v8372_v31 = vshrl.u32 %v8253_v63, 16  ;;  %v8375_v49 = vshll.u32 %v8253_v63, 16  ;;  %v8331_v58 = vrot.slane %v8329_v26, 6 }
 0x430   : > { %v8366_v61 = vrot.slane %v23591_v1, 5  ;;  %v8367_v12 = vrot.slane %v23592_v53, 6  ;;  %v8337_v21 = vrot.slane %v8335_v18, 5  ;;  %v8340_v40 = vrot.slane %v8338_v62, 6 }
 0x431   : > { %v8345_v44 = vor.u32 %v8344_v43, %v8343_v52  ;;  %v8351_v60 = vrot.slane %v8349_v5, 5  ;;  %v8354_v48 = vrot.slane %v8352_v54, 6  ;;  %v8360_v47 = vrot.slane %v8358_v42, 5 }
 0x432   : > { %v8287_v19 = vsel %vm16922_vm5, %v8278_v13, %v8286_v4  ;;  %v8301_v57 = vrot.slane %v20211_v55, 4  ;;  %v8309_v1 = vor.u32 %v8308_v45, %v8305_v59  ;;  %v8368_v11 = vor.u32 %v8367_v12, %v8366_v61 }
 0x433   : > { %v8374_v53 = vrot.slane %v8372_v31, 5  ;;  %v8384_v24 = vshll.u32 %v19989_v30, 16  ;;  %v8296_v26 = vrot.slane %v8295_v16, 4  ;;  %v8318_v18 = vor.u32 %v8317_v38, %v8314_v46 }
 0x434   : > { %14657 = vmatmul.mubr.msk.bf16.gmra.mrb[0].mxu1 %vm7533_vm10, %v23589_v36  ;;  %v8322_v36 = vor.u32 %v8321_v51, %v8320_v34  ;;  %v8377_v34 = vrot.slane %v8375_v49, 6  ;;  %v8381_v51 = vshrl.u32 %v19989_v30, 16  ;;  %v8341_v52 = vor.u32 %v8340_v40, %v8337_v21 }
 0x435   : > { %14660 = vmatprep.mubr.msk.bf16.mxu1 %vm7533_vm10, %v23590_v7  ;;  %v8363_v7 = vrot.slane %v8361_v17, 6  ;;  %v23593_v43 = vcombine.low %v20107_v22, %v20116_v32  ;;  %v8332_v13 = vor.u32 %v8331_v58, %v8328_v6  ;;  %v8347_v4 = vrot.slane %v8345_v44, 4  ;;  %v8254_v22 = vld [vmem:[#allocation3 + $0x44] sm:$0x3] }
 0x436   : > { %v8324_v62 = vrot.slane %v8322_v36, 4  ;;  %v8355_v63 = vor.u32 %v8354_v48, %v8351_v60  ;;  %v23594_v61 = vshrl.u32 %v19786_v8, 16  ;;  %v23595_v45 = vshll.u32 %v19786_v8, 16 }
 0x437   : > { %v8364_v59 = vor.u32 %v8363_v7, %v8360_v47  ;;  %v23596_v30 = vcombine.low %v20125_v56, %v20131_v50  ;;  %v8310_v21 = vsel %vm16922_vm5, %v8301_v57, %v8309_v1  ;;  %v20264_v6 = vsel %vm7582_vm9, %v20043_v3, 0 }
 0x438   : > { %v8458_v49 = vrot.slane %v23594_v61, 5  ;;  %v8459_v5 = vrot.slane %v23595_v45, 6  ;;  %v8370_v58 = vrot.slane %v8368_v11, 4  ;;  %v8378_v60 = vor.u32 %v8377_v34, %v8374_v53  ;;  %v8255_v53 = vld [vmem:[#allocation3 + $0x50] sm:$0x3] }
 0x439   : > { %v8383_v32 = vrot.slane %v8381_v51, 5  ;;  %v8386_v16 = vrot.slane %v8384_v24, 6  ;;  %v23597_v8 = vsel %vm16922_vm5, %v20208_v0, %v20197_v20  ;;  %v8300_v50 = vsel %vm16922_vm5, %v8296_v26, %v20211_v55 }
 0x43a   : > { %v20271_v56 = vcombine.low %v23597_v8, %v8287_v19  ;;  %v8319_v54 = vrot.slane %v8318_v18, 4  ;;  %v8342_v42 = vrot.slane %v8341_v52, 4  ;;  %v20276_v3 = vcombine.low %v8300_v50, %v8310_v21 }
 0x43b   : > { %v8333_v17 = vsel %vm16922_vm5, %v8324_v62, %v8332_v13  ;;  %v8356_v46 = vsel %vm16922_vm5, %v8347_v4, %v8355_v63  ;;  %v8365_v38 = vrot.slane %v8364_v59, 4  ;;  %v23598_v12 = vshrl.u32 %v19747_v23, 16  ;;  %v8257_v59 = vld [vmem:[#allocation3 + $0x68] sm:$0x3] }
 0x43c   : > { %14661 = vmatmul.mubr.msk.bf16.gmra.mrb[4].mxu1 %vm7533_vm10, %v23593_v43  ;;  %v23599_v0 = vshll.u32 %v19747_v23, 16  ;;  %v8395_v40 = vshrl.u32 %v8254_v22, 16  ;;  %v8398_v48 = vshll.u32 %v8254_v22, 16  ;;  %v8379_v55 = vsel %vm16922_vm5, %v8370_v58, %v8378_v60  ;;  %v8256_v43 = vld [vmem:[#allocation3 + $0x5c] sm:$0x3] }
 0x43d   : > { %14664 = vmatprep.mubr.msk.bf16.mxu1 %vm7533_vm10, %v23596_v30  ;;  %v8389_v20 = vrot.slane %v23598_v12, 5  ;;  %v8387_v47 = vor.u32 %v8386_v16, %v8383_v32  ;;  %v8404_v7 = vshrl.u32 %v19999_v2, 16  ;;  %v8407_v19 = vshll.u32 %v19999_v2, 16  ;;  %v8258_v22 = vld [vmem:[#allocation3 + $0x74] sm:$0x3] }
 0x43e   : > { %v8390_v31 = vrot.slane %v23599_v0, 6  ;;  %v8323_v57 = vsel %vm16922_vm5, %v8319_v54, %v8322_v36  ;;  %v8346_v1 = vsel %vm16922_vm5, %v8342_v42, %v8345_v44  ;;  %v23600_v23 = vshrl.u32 %v19764_v15, 16 }
 0x43f   : > { %v23601_v51 = vshll.u32 %v19764_v15, 16  ;;  %v23602_v26 = vcombine.low %v20135_v10, %v20145_v35  ;;  %v20302_v18 = vcombine.low %v8323_v57, %v8333_v17  ;;  %v20304_v2 = vcombine.low %v8346_v1, %v8356_v46 }
 0x440   : > { %v8412_v34 = vrot.slane %v23600_v23, 5  ;;  %v8369_v36 = vsel %vm16922_vm5, %v8365_v38, %v8368_v11  ;;  %v20308_v44 = vor.u32 %v8459_v5, %v8458_v49  ;;  %v23603_v62 = vcombine.low %v20158_v28, %v20162_v25 }
 0x441   : > { %v8413_v24 = vrot.slane %v23601_v51, 6  ;;  %v20314_v15 = vcombine.low %v8369_v36, %v8379_v55  ;;  %v20316_v52 = vor.u32 %v8390_v31, %v8389_v20  ;;  %v20318_v10 = vrot.slane %v8395_v40, 5 }
 0x442   : > { %v20320_v35 = vrot.slane %v8398_v48, 6  ;;  %v20322_v13 = vrot.slane %v8387_v47, 4  ;;  %v20324_v4 = vrot.slane %v8404_v7, 5  ;;  %v20326_v11 = vrot.slane %v8407_v19, 6 }
 0x443   : > { %v8418_v63 = vshrl.u32 %v8255_v53, 16  ;;  %v20328_v28 = vor.u32 %v8413_v24, %v8412_v34  ;;  %v8421_v25 = vshll.u32 %v8255_v53, 16  ;;  %v8427_v61 = vshrl.u32 %v20164_v29, 16 }
 0x444   : > { %14665 = vmatmul.mubr.msk.bf16.gmra.mrb[8].mxu1 %vm7533_vm10, %v23602_v26  ;;  %v8430_v49 = vshll.u32 %v20164_v29, 16  ;;  %v23604_v45 = vshrl.u32 %v19803_v41, 16  ;;  %v23605_v30 = vshll.u32 %v19803_v41, 16  ;;  %v8441_v58 = vshrl.u32 %v8256_v43, 16 }
 0x445   : > { %14668 = vmatprep.mubr.msk.bf16.mxu1 %vm7533_vm10, %v23603_v62  ;;  %v8444_v60 = vshll.u32 %v8256_v43, 16  ;;  %v8450_v32 = vshrl.u32 %v20015_v9, 16  ;;  %v8453_v16 = vshll.u32 %v20015_v9, 16  ;;  %v8464_v8 = vshrl.u32 %v8257_v59, 16 }
 0x446   : > { %v8435_v5 = vrot.slane %v23604_v45, 5  ;;  %v8436_v21 = vrot.slane %v23605_v30, 6  ;;  %v8467_v50 = vshll.u32 %v8257_v59, 16  ;;  %v8473_v54 = vshrl.u32 %v20028_v27, 16 }
 0x447   : > { %v8476_v42 = vshll.u32 %v20028_v27, 16  ;;  %v23606_v29 = vshrl.u32 %v19827_v14, 16  ;;  %v23607_v46 = vshll.u32 %v19827_v14, 16  ;;  %v8420_v38 = vrot.slane %v8418_v63, 5 }
 0x448   : > { %v8423_v12 = vrot.slane %v8421_v25, 6  ;;  %v8487_v20 = vshrl.u32 %v8258_v22, 16  ;;  %v8490_v0 = vshll.u32 %v8258_v22, 16  ;;  %v23608_v31 = vcombine.low %v20170_v39, %v20174_v33  ;;  %v23609_v33 = vld [vmem:[#allocation14_spill] sm:$0xff]  ;;  %v8259_v25 = vld [vmem:[#allocation3 + $0x80] sm:$0x3] }
 0x449   : > { %v8481_v17 = vrot.slane %v23606_v29, 5  ;;  %v8482_v41 = vrot.slane %v23607_v46, 6  ;;  %v8429_v9 = vrot.slane %v8427_v61, 5  ;;  %v8432_v40 = vrot.slane %v8430_v49, 6 }
 0x44a   : > { %v20348_v48 = vor.u32 %v8436_v21, %v8435_v5  ;;  %v8443_v27 = vrot.slane %v8441_v58, 5  ;;  %v8446_v55 = vrot.slane %v8444_v60, 6  ;;  %v8452_v14 = vrot.slane %v8450_v32, 5 }
 0x44b   : > { %v8455_v47 = vrot.slane %v8453_v16, 6  ;;  %v8466_v7 = vrot.slane %v8464_v8, 5  ;;  %v8469_v19 = vrot.slane %v8467_v50, 6  ;;  %v8475_v57 = vrot.slane %v8473_v54, 5  ;;  %v23613_v54 = vld [vmem:[#allocation41_spill] sm:$0xff] }
 0x44c   : > { %14669 = vmatmul.mubr.msk.bf16.gmra.mrb[12].mxu1 %vm7533_vm10, %v23608_v31  ;;  %v8478_v1 = vrot.slane %v8476_v42, 6  ;;  %v8483_v53 = vor.u32 %v8482_v41, %v8481_v17  ;;  %v8489_v23 = vrot.slane %v8487_v20, 5  ;;  %v8492_v39 = vrot.slane %v8490_v0, 6 }
 0x44d   : > { %14674 = vmatprep.mubr.msk.bf16.mxu1 %vm7533_vm10, %v20271_v56  ;;  %v8496_v34 = vshrl.u32 %v23609_v33, 16  ;;  %v8499_v51 = vshll.u32 %v23609_v33, 16  ;;  %v8393_v24 = vrot.slane %v20316_v52, 4  ;;  %v8401_v26 = vor.u32 %v20320_v35, %v20318_v10  ;;  %v20365_v35 = vld [vmem:[%s22690_s3 + $0x10] sm:$0xf] }
 0x44e   : > { %v8410_v56 = vor.u32 %v20326_v11, %v20324_v4  ;;  %v8416_v36 = vrot.slane %v20328_v28, 4  ;;  %v8424_v62 = vor.u32 %v8423_v12, %v8420_v38  ;;  %v8433_v43 = vor.u32 %v8432_v40, %v8429_v9  ;;  %v23610_v4 = vld [vmem:[#allocation26_spill] sm:$0xff] }
 0x44f   : > { %v8439_v63 = vrot.slane %v20348_v48, 4  ;;  %v8462_v59 = vrot.slane %v20308_v44, 4  ;;  %v8447_v61 = vor.u32 %v8446_v55, %v8443_v27  ;;  %v8456_v49 = vor.u32 %v8455_v47, %v8452_v14  ;;  %v23614_v27 = vld [vmem:[#allocation27_spill] sm:$0xff] }
 0x450   : > { %v8470_v45 = vor.u32 %v8469_v19, %v8466_v7  ;;  %v8479_v5 = vor.u32 %v8478_v1, %v8475_v57  ;;  %v8485_v30 = vrot.slane %v8483_v53, 4  ;;  %v8493_v21 = vor.u32 %v8492_v39, %v8489_v23  ;;  %v8260_v39 = vld [vmem:[#allocation3 + $0x8c] sm:$0x3] }
 0x451   : > { %v8498_v58 = vrot.slane %v8496_v34, 5  ;;  %v8501_v10 = vrot.slane %v8499_v51, 6  ;;  %v23611_v11 = vshrl.u32 %v23610_v4, 16  ;;  %v23612_v22 = vshll.u32 %v23610_v4, 16 }
 0x452   : > { %v8510_v16 = vshrl.u32 %v8259_v25, 16  ;;  %v8513_v8 = vshll.u32 %v8259_v25, 16  ;;  %v8392_v50 = vsel %vm16922_vm5, %v20322_v13, %v20316_v52  ;;  %v8519_v42 = vshrl.u32 %v23613_v54, 16 }
 0x453   : > { %v8504_v60 = vrot.slane %v23611_v11, 5  ;;  %v8505_v32 = vrot.slane %v23612_v22, 6  ;;  %v8522_v29 = vshll.u32 %v23613_v54, 16  ;;  %v8411_v17 = vrot.slane %v8410_v56, 4  ;;  %v23622_v11 = vld [vmem:[#allocation33_spill] sm:$0xff] }
 0x454   : > { %14675 = vmatmul.mubr.msk.bf16.vlgmr.msra.gmra.mrb[16].mxu1 %vm7533_vm10, %v20276_v3  ;;  %v8402_v3 = vsel %vm16922_vm5, %v8393_v24, %v8401_v26  ;;  %v8425_v46 = vsel %vm16922_vm5, %v8416_v36, %v8424_v62  ;;  %v8457_v41 = vrot.slane %v8456_v49, 4  ;;  %v8471_v52 = vsel %vm16922_vm5, %v8462_v59, %v8470_v45  ;;  %v23617_v59 = vld [vmem:[#allocation11_spill] sm:$0xff] }
 0x455   : > { %14707 = vmatpush3.bf16.msra.mxu1 %v20264_v6  ;;  %14678 = vmatprep.mubr.msk.bf16.mxu1 %vm7533_vm10, %v20302_v18  ;;  %v8434_v6 = vrot.slane %v8433_v43, 4  ;;  %v8448_v18 = vsel %vm16922_vm5, %v8439_v63, %v8447_v61  ;;  %v8480_v13 = vrot.slane %v8479_v5, 4  ;;  %v8502_v38 = vor.u32 %v8501_v10, %v8498_v58  ;;  %v23618_v61 = vld [vmem:[#allocation5_spill] sm:$0xff]  ;;  %v23621_v10 = vld [vmem:[#allocation12_spill] sm:$0xff] }
 0x456   : > { %15600 = vmatprep.subr.msk.bf16.mxu1 %vm7582_vm9, %v20365_v35  ;;  %v8494_v12 = vsel %vm16922_vm5, %v8485_v30, %v8493_v21  ;;  %v20394_v20 = vor.u32 %v8505_v32, %v8504_v60  ;;  %v8512_v0 = vrot.slane %v8510_v16, 5  ;;  %v8515_v31 = vrot.slane %v8513_v8, 6 }
 0x457   : > { %v8521_v9 = vrot.slane %v8519_v42, 5  ;;  %v8524_v40 = vrot.slane %v8522_v29, 6  ;;  %v23615_v55 = vshrl.u32 %v23614_v27, 16  ;;  %v23616_v47 = vshll.u32 %v23614_v27, 16  ;;  %v23625_v42 = vld [vmem:[#allocation37_spill] sm:$0xff] }
 0x458   : > { %v13633_v19 = vcombine.low %v8392_v50, %v8402_v3  ;;  %v8415_v57 = vsel %vm16922_vm5, %v8411_v17, %v20328_v28  ;;  %v8438_v1 = vsel %vm16922_vm5, %v8434_v6, %v20348_v48  ;;  %v8461_v23 = vsel %vm16922_vm5, %v8457_v41, %v20308_v44  ;;  %v8261_v44 = vld [vmem:[#allocation3 + $0x98] sm:$0x3] }
 0x459   : > { %v8527_v14 = vrot.slane %v23615_v55, 5  ;;  %v8528_v7 = vrot.slane %v23616_v47, 6  ;;  %v13634_v33 = vcombine.low %v8415_v57, %v8425_v46  ;;  %v20409_v34 = vcombine.low %v8438_v1, %v8448_v18  ;;  %v23626_v57 = vld [vmem:[#allocation25_spill] sm:$0xff] }
 0x45a   : > { %v20411_v51 = vcombine.low %v8461_v23, %v8471_v52  ;;  %v8484_v24 = vsel %vm16922_vm5, %v8480_v13, %v8483_v53  ;;  %v20419_v26 = vrot.slane %v8502_v38, 4  ;;  %v8508_v48 = vrot.slane %v20394_v20, 4  ;;  %v8262_v53 = vld [vmem:[#allocation3 + $0xa4] sm:$0x3] }
 0x45b   : > { %v20417_v28 = vcombine.low %v8484_v24, %v8494_v12  ;;  %v8516_v56 = vor.u32 %v8515_v31, %v8512_v0  ;;  %v8525_v36 = vor.u32 %v8524_v40, %v8521_v9  ;;  %v20424_v62 = vor.u32 %v8528_v7, %v8527_v14  ;;  %v8263_v0 = vld [vmem:[#allocation3 + $0xb0] sm:$0x3] }
 0x45c   : > { %14679 = vmatmul.mubr.msk.bf16.gmra.mrb[20].mxu1 %vm7533_vm10, %v20304_v2  ;;  %v8533_v43 = vshrl.u32 %v8260_v39, 16  ;;  %v8536_v63 = vshll.u32 %v8260_v39, 16  ;;  %v8542_v25 = vshrl.u32 %v23617_v59, 16  ;;  %v8545_v2 = vshll.u32 %v23617_v59, 16 }
 0x45d   : > { %14682 = vmatprep.mubr.msk.bf16.mxu1 %vm7533_vm10, %v20314_v15  ;;  %v23619_v49 = vshrl.u32 %v23618_v61, 16  ;;  %v23620_v5 = vshll.u32 %v23618_v61, 16  ;;  %v8556_v21 = vshrl.u32 %v8261_v44, 16  ;;  %v8559_v58 = vshll.u32 %v8261_v44, 16  ;;  %v23630_v61 = vld [vmem:[#allocation31_spill] sm:$0xff] }
 0x45e   : > { %v8565_v15 = vshrl.u32 %v23621_v10, 16  ;;  %v8568_v4 = vshll.u32 %v23621_v10, 16  ;;  %v23623_v60 = vshrl.u32 %v23622_v11, 16  ;;  %v23624_v32 = vshll.u32 %v23622_v11, 16 }
 0x45f   : > { %v8550_v45 = vrot.slane %v23619_v49, 5  ;;  %v8551_v30 = vrot.slane %v23620_v5, 6  ;;  %v8579_v8 = vshrl.u32 %v8262_v53, 16  ;;  %v8582_v50 = vshll.u32 %v8262_v53, 16 }
 0x460   : > { %v8573_v22 = vrot.slane %v23623_v60, 5  ;;  %v8574_v16 = vrot.slane %v23624_v32, 6  ;;  %v8535_v3 = vrot.slane %v8533_v43, 5  ;;  %v8538_v54 = vrot.slane %v8536_v63, 6  ;;  %v23629_v43 = vld [vmem:[#allocation17_spill] sm:$0xff] }
 0x461   : > { %v8588_v29 = vshrl.u32 %v23625_v42, 16  ;;  %v8591_v17 = vshll.u32 %v23625_v42, 16  ;;  %v8517_v46 = vsel %vm16922_vm5, %v8508_v48, %v8516_v56  ;;  %v8526_v6 = vrot.slane %v8525_v36, 4  ;;  %v8927_v42 = vld [vmem:[#allocation3 + $0xc] sm:$0xf] }
 0x462   : > { %v8544_v41 = vrot.slane %v8542_v25, 5  ;;  %v8547_v18 = vrot.slane %v8545_v2, 6  ;;  %v8552_v52 = vor.u32 %v8551_v30, %v8550_v45  ;;  %v8558_v13 = vrot.slane %v8556_v21, 5 }
 0x463   : > { %v8561_v38 = vrot.slane %v8559_v58, 6  ;;  %v8567_v12 = vrot.slane %v8565_v15, 5  ;;  %v8570_v31 = vrot.slane %v8568_v4, 6  ;;  %v8575_v9 = vor.u32 %v8574_v16, %v8573_v22 }
 0x464   : > { %14683 = vmatmul.mubr.msk.bf16.gmra.mrb[24].mxu1 %vm7533_vm10, %v13633_v19  ;;  %v8581_v40 = vrot.slane %v8579_v8, 5  ;;  %v8584_v27 = vrot.slane %v8582_v50, 6  ;;  %v8531_v55 = vrot.slane %v20424_v62, 4  ;;  %v8539_v14 = vor.u32 %v8538_v54, %v8535_v3  ;;  %v8264_v19 = vld [vmem:[#allocation3 + $0xbc] sm:$0x3] }
 0x465   : > { %14686 = vmatprep.mubr.msk.bf16.mxu1 %vm7533_vm10, %v13634_v33  ;;  %v8590_v47 = vrot.slane %v8588_v29, 5  ;;  %v8593_v7 = vrot.slane %v8591_v17, 6  ;;  %v23627_v1 = vshrl.u32 %v23626_v57, 16  ;;  %v23628_v39 = vshll.u32 %v23626_v57, 16  ;;  %v20474_v17 = vld [vmem:[#allocation3 + $0x10] sm:$0xf] }
 0x466   : > { %v8602_v48 = vshrl.u32 %v8263_v0, 16  ;;  %v8605_v56 = vshll.u32 %v8263_v0, 16  ;;  %v8548_v44 = vor.u32 %v8547_v18, %v8544_v41  ;;  %v8554_v36 = vrot.slane %v8552_v52, 4  ;;  %v20494_v57 = vld [vmem:[#allocation3 + $0x28] sm:$0xf] }
 0x467   : > { %v8596_v23 = vrot.slane %v23627_v1, 5  ;;  %v8597_v24 = vrot.slane %v23628_v39, 6  ;;  %v8611_v63 = vshrl.u32 %v23629_v43, 16  ;;  %v8614_v33 = vshll.u32 %v23629_v43, 16  ;;  %23633 = vst [vmem:[#allocation13_spill] sm:$0xff] %v20494_v57 }
 0x468   : > { %v8562_v53 = vor.u32 %v8561_v38, %v8558_v13  ;;  %v8571_v59 = vor.u32 %v8570_v31, %v8567_v12  ;;  %v8577_v25 = vrot.slane %v8575_v9, 4  ;;  %v8585_v2 = vor.u32 %v8584_v27, %v8581_v40  ;;  %v8930_v12 = vld [vmem:[#allocation3 + $0x18] sm:$0xf] }
 0x469   : > { %v23631_v49 = vshrl.u32 %v23630_v61, 16  ;;  %v23632_v5 = vshll.u32 %v23630_v61, 16  ;;  %v8625_v21 = vshrl.u32 %v8264_v19, 16  ;;  %v8628_v58 = vshll.u32 %v8264_v19, 16 }
 0x46a   : > { %v8594_v10 = vor.u32 %v8593_v7, %v8590_v47  ;;  %v20455_v15 = vor.u32 %v8597_v24, %v8596_v23  ;;  %v8604_v4 = vrot.slane %v8602_v48, 5  ;;  %v8607_v11 = vrot.slane %v8605_v56, 6  ;;  %v20501_v24 = vld [vmem:[#allocation3 + $0x34] sm:$0xf] }
 0x46b   : > { %v8619_v45 = vrot.slane %v23631_v49, 5  ;;  %v8620_v30 = vrot.slane %v23632_v5, 6  ;;  %v8507_v60 = vsel %vm16922_vm5, %v20419_v26, %v20394_v20  ;;  %v8549_v22 = vrot.slane %v8548_v44, 4  ;;  %23634 = vst [vmem:[#allocation42_spill] sm:$0xff] %v20501_v24  ;;  %v20520_v49 = vld [vmem:[#allocation3 + $0x14] sm:$0x1] }
 0x46c   : > { %v8613_v32 = vrot.slane %v8611_v63, 5  ;;  %v8616_v16 = vrot.slane %v8614_v33, 6  ;;  %14687 = vmatmul.mubr.msk.bf16.gmra.mrb[28].mxu1 %vm7533_vm10, %v20409_v34  ;;  %v13638_v8 = vcombine.low %v8507_v60, %v8517_v46  ;;  %v8530_v50 = vsel %vm16922_vm5, %v8526_v6, %v20424_v62 }
 0x46d   : > { %v8540_v3 = vsel %vm16922_vm5, %v8531_v55, %v8539_v14  ;;  %v8572_v54 = vrot.slane %v8571_v59, 4  ;;  %14690 = vmatprep.mubr.msk.bf16.mxu1 %vm7533_vm10, %v20411_v51  ;;  %v8563_v20 = vsel %vm16922_vm5, %v8554_v36, %v8562_v53  ;;  %v20472_v26 = vor.u32 %v8620_v30, %v8619_v45  ;;  %v20489_v55 = vld [vmem:[#allocation3 + $0x1c] sm:$0xf]  ;;  %v8933_v36 = vld [vmem:[#allocation3 + $0x24] sm:$0xf] }
 0x46e   : > { %v8627_v29 = vrot.slane %v8625_v21, 5  ;;  %v8630_v34 = vrot.slane %v8628_v58, 6  ;;  %v8586_v62 = vsel %vm16922_vm5, %v8577_v25, %v8585_v2  ;;  %v8595_v46 = vrot.slane %v8594_v10, 4  ;;  %v8936_v59 = vld [vmem:[#allocation3 + $0x30] sm:$0xf] }
 0x46f   : > { %v8600_v6 = vrot.slane %v20455_v15, 4  ;;  %v8608_v41 = vor.u32 %v8607_v11, %v8604_v4  ;;  %v20479_v18 = vcombine.low %v8530_v50, %v8540_v3  ;;  %v8553_v51 = vsel %vm16922_vm5, %v8549_v22, %v8552_v52 }
 0x470   : > { %v8617_v13 = vor.u32 %v8616_v16, %v8613_v32  ;;  %v8976_v38 = vshrl.u32 %v8927_v42, 16  ;;  %v20483_v0 = vcombine.low %v8553_v51, %v8563_v20  ;;  %v8576_v31 = vsel %vm16922_vm5, %v8572_v54, %v8575_v9  ;;  %v8939_v54 = vld [vmem:[#allocation3 + $0x3c] sm:$0xf] }
 0x471   : > { %v23024_v40 = vshll.u32 %v20474_v17, 16  ;;  %v23025_v27 = vshrl.u32 %v20474_v17, 16  ;;  %v20491_v14 = vcombine.low %v8576_v31, %v8586_v62  ;;  %v8623_v47 = vrot.slane %v20472_v26, 4  ;;  %v20559_v31 = vld [vmem:[#allocation3 + $0x38] sm:$0x1] }
 0x472   : > { %v8631_v7 = vor.u32 %v8630_v34, %v8627_v29  ;;  %v8979_v52 = vshll.u32 %v8927_v42, 16  ;;  %v8599_v1 = vsel %vm16922_vm5, %v8595_v46, %v20455_v15  ;;  %v8609_v9 = vsel %vm16922_vm5, %v8600_v6, %v8608_v41  ;;  %v20549_v29 = vld [vmem:[#allocation3 + $0x20] sm:$0x1]  ;;  %v20554_v41 = vld [vmem:[#allocation3 + $0x2c] sm:$0x1]  ;;  %23636 = vst [vmem:[#allocation28_spill] sm:$0xff] %v20559_v31 }
 0x473   : > { %v9000_v23 = vshrl.u32 %v8930_v12, 16  ;;  %v9003_v39 = vshll.u32 %v8930_v12, 16  ;;  %v8618_v48 = vrot.slane %v8617_v13, 4  ;;  %v8978_v56 = vrot.slane %v8976_v38, 4  ;;  %v20551_v46 = vld [vmem:[#allocation3 + $0x40] sm:$0xf] }
 0x474   : > { %v23021_v19 = vshll.u32 %v20489_v55, 16  ;;  %v23023_v44 = vshrl.u32 %v20489_v55, 16  ;;  %14691 = vmatmul.mubr.msk.bf16.gmra.mrb[0].mxu1 %vm7533_vm10, %v20417_v28  ;;  %v20509_v43 = vrot.slane %v23024_v40, 5  ;;  %v8991_v63 = vrot.slane %v23025_v27, 4  ;;  %23635 = vst [vmem:[#allocation18_spill] sm:$0xff] %v20554_v41 }
 0x475   : > { %v23018_v33 = vshll.u32 %v20494_v57, 16  ;;  %v23019_v53 = vshrl.u32 %v20494_v57, 16  ;;  %14694 = vmatprep.mubr.msk.bf16.mxu1 %vm7533_vm10, %v13638_v8  ;;  %v8632_v25 = vsel %vm16922_vm5, %v8623_v47, %v8631_v7  ;;  %v8981_v2 = vrot.slane %v8979_v52, 5  ;;  %v8960_v27 = vld [vmem:[#allocation3 + $0x90] sm:$0xf] }
 0x476   : > { %v23015_v28 = vshll.u32 %v20501_v24, 16  ;;  %v23016_v61 = vshrl.u32 %v20501_v24, 16  ;;  %v9002_v45 = vrot.slane %v9000_v23, 4  ;;  %v9005_v5 = vrot.slane %v9003_v39, 5 }
 0x477   : > { %v9024_v30 = vshrl.u32 %v8933_v36, 16  ;;  %v9027_v21 = vshll.u32 %v8933_v36, 16  ;;  %v20524_v58 = vrot.slane %v23021_v19, 5  ;;  %v9015_v10 = vrot.slane %v23023_v44, 4  ;;  %v20723_v44 = vld [vmem:[#allocation3 + $0x80] sm:$0x1] }
 0x478   : > { %v9048_v15 = vshrl.u32 %v8936_v59, 16  ;;  %v9051_v4 = vshll.u32 %v8936_v59, 16  ;;  %v20528_v11 = vcombine.low %v8599_v1, %v8609_v9  ;;  %v8992_v60 = vor.u32 %v8991_v63, %v20509_v43 }
 0x479   : > { %v20533_v22 = vrot.slane %v23018_v33, 5  ;;  %v9039_v32 = vrot.slane %v23019_v53, 4  ;;  %v8622_v16 = vsel %vm16922_vm5, %v8618_v48, %v20472_v26  ;;  %v8995_v8 = vshll.u32 %v20520_v49, 16  ;;  %v20695_v33 = vld [vmem:[%s22690_s3 + $0x14] sm:$0xf] }
 0x47a   : > { %v20543_v50 = vrot.slane %v23015_v28, 5  ;;  %v9063_v3 = vrot.slane %v23016_v61, 4  ;;  %v20547_v42 = vcombine.low %v8622_v16, %v8632_v25  ;;  %v8982_v20 = vor.u32 %v8981_v2, %v8978_v56  ;;  %v8957_v28 = vld [vmem:[#allocation3 + $0x84] sm:$0xf]  ;;  %23641 = vst [vmem:[#allocation38_spill] sm:$0xff] %v20695_v33 }
 0x47b   : > { %v9026_v34 = vrot.slane %v9024_v30, 4  ;;  %v9029_v62 = vrot.slane %v9027_v21, 5  ;;  %v9006_v26 = vor.u32 %v9005_v5, %v9002_v45  ;;  %v9016_v6 = vor.u32 %v9015_v10, %v20524_v58  ;;  %v8942_v21 = vld [vmem:[#allocation3 + $0x48] sm:$0xf]  ;;  %v21096_v2 = vld [vmem:[#allocation3 + $0xb4] sm:$0xe] }
 0x47c   : > { %v9050_v51 = vrot.slane %v9048_v15, 4  ;;  %v9053_v13 = vrot.slane %v9051_v4, 5  ;;  %14695 = vmatmul.mubr.msk.bf16.gmra.mrb[4].mxu1 %vm7533_vm10, %v20479_v18  ;;  %v8993_v38 = vrot.slane %v8992_v60, 4  ;;  %v9040_v12 = vor.u32 %v9039_v32, %v20533_v22  ;;  %v20571_v4 = vld [vmem:[#allocation3 + $0x44] sm:$0x1]  ;;  %23686 = vst [vmem:[#allocation25_spill] sm:$0xff] %v21096_v2 }
 0x47d   : > { %v9072_v47 = vshrl.u32 %v8939_v54, 16  ;;  %v9075_v7 = vshll.u32 %v8939_v54, 16  ;;  %14698 = vmatprep.mubr.msk.bf16.mxu1 %vm7533_vm10, %v20483_v0  ;;  %v9019_v52 = vshll.u32 %v20549_v29, 16  ;;  %v9064_v1 = vor.u32 %v9063_v3, %v20543_v50 }
 0x47e   : > { %v23012_v9 = vshll.u32 %v20551_v46, 16  ;;  %v23014_v23 = vshrl.u32 %v20551_v46, 16  ;;  %v8983_v39 = vrot.slane %v8982_v20, 4  ;;  %v8997_v18 = vrot.slane %v8995_v8, 5 }
 0x47f   : > { %v9030_v48 = vor.u32 %v9029_v62, %v9026_v34  ;;  %v9043_v56 = vshll.u32 %v20554_v41, 16  ;;  %v9007_v36 = vrot.slane %v9006_v26, 4  ;;  %v9017_v63 = vrot.slane %v9016_v6, 4  ;;  %v20588_v6 = vld [vmem:[#allocation3 + $0x4c] sm:$0xf] }
 0x480   : > { %v9054_v59 = vor.u32 %v9053_v13, %v9050_v51  ;;  %v9067_v25 = vshll.u32 %v20559_v31, 16  ;;  %v8998_v0 = vsel %vm16091_vm7, %v8993_v38, %v8997_v18  ;;  %v9041_v45 = vrot.slane %v9040_v12, 4  ;;  %v20590_v51 = vld [vmem:[#allocation3 + $0x58] sm:$0xf]  ;;  %v8945_v18 = vld [vmem:[#allocation3 + $0x54] sm:$0xf] }
 0x481   : > { %v9074_v5 = vrot.slane %v9072_v47, 4  ;;  %v9077_v30 = vrot.slane %v9075_v7, 5  ;;  %v9021_v10 = vrot.slane %v9019_v52, 5  ;;  %v9065_v15 = vrot.slane %v9064_v1, 4 }
 0x482   : > { %v20575_v60 = vrot.slane %v23012_v9, 5  ;;  %v9087_v32 = vrot.slane %v23014_v23, 4  ;;  %v8988_v16 = vsel %vm16091_vm7, %v8983_v39, %v20509_v43  ;;  %v20584_v8 = vsel %vm7582_vm9, %v20365_v35, 0 }
 0x483   : > { %v9031_v3 = vrot.slane %v9030_v48, 4  ;;  %v9045_v54 = vrot.slane %v9043_v56, 5  ;;  %v13661_v20 = vcombine.low %v8988_v16, %v8998_v0  ;;  %v9022_v34 = vsel %vm16091_vm7, %v9017_v63, %v9021_v10 }
 0x484   : > { %v9055_v62 = vrot.slane %v9054_v59, 4  ;;  %v9069_v26 = vrot.slane %v9067_v25, 5  ;;  %14699 = vmatmul.mubr.msk.bf16.gmra.mrb[8].mxu1 %vm7533_vm10, %v20491_v14  ;;  %v9078_v35 = vor.u32 %v9077_v30, %v9074_v5  ;;  %v9091_v13 = vshll.u32 %v20571_v4, 16  ;;  %v20627_v5 = vld [vmem:[#allocation3 + $0x64] sm:$0xf] }
 0x485   : > { %v9046_v43 = vsel %vm16091_vm7, %v9041_v45, %v9045_v54  ;;  %v9096_v38 = vshrl.u32 %v8942_v21, 16  ;;  %14702 = vmatprep.mubr.msk.bf16.mxu1 %vm7533_vm10, %v20528_v11  ;;  %v9012_v12 = vsel %vm16091_vm7, %v9007_v36, %v20524_v58  ;;  %v9088_v7 = vor.u32 %v9087_v32, %v20575_v60  ;;  %v20618_v36 = vld [vmem:[#allocation3 + $0x50] sm:$0x1] }
 0x486   : > { %v9070_v47 = vsel %vm16091_vm7, %v9065_v15, %v9069_v26  ;;  %v9099_v14 = vshll.u32 %v8942_v21, 16  ;;  %v9036_v52 = vsel %vm16091_vm7, %v9031_v3, %v20533_v22  ;;  %v23008_v1 = vshll.u32 %v20588_v6, 16  ;;  %v8948_v22 = vld [vmem:[#allocation3 + $0x60] sm:$0xf] }
 0x487   : > { %v23009_v39 = vshrl.u32 %v20588_v6, 16  ;;  %v23006_v11 = vshll.u32 %v20590_v51, 16  ;;  %v20611_v48 = vcombine.low %v9012_v12, %v9022_v34  ;;  %v20613_v58 = vcombine.low %v9036_v52, %v9046_v43 }
 0x488   : > { %v9060_v56 = vsel %vm16091_vm7, %v9055_v62, %v20543_v50  ;;  %v23007_v63 = vshrl.u32 %v20590_v51, 16  ;;  %v20623_v25 = vrot.slane %v9078_v35, 4  ;;  %v20625_v0 = vrot.slane %v9091_v13, 5  ;;  %v20631_v50 = vld [vmem:[#allocation3 + $0x70] sm:$0xf] }
 0x489   : > { %v20621_v59 = vcombine.low %v9060_v56, %v9070_v47  ;;  %v9098_v45 = vrot.slane %v9096_v38, 4  ;;  %v20629_v30 = vrot.slane %v9088_v7, 4  ;;  %v9101_v21 = vrot.slane %v9099_v14, 5  ;;  %v8951_v35 = vld [vmem:[#allocation3 + $0x6c] sm:$0xf] }
 0x48a   : > { %v9120_v10 = vshrl.u32 %v8945_v18, 16  ;;  %v9123_v15 = vshll.u32 %v8945_v18, 16  ;;  %v20635_v32 = vrot.slane %v23008_v1, 5  ;;  %v9111_v16 = vrot.slane %v23009_v39, 4  ;;  %v8954_v18 = vld [vmem:[#allocation3 + $0x78] sm:$0xf] }
 0x48b   : > { %v20641_v3 = vrot.slane %v23006_v11, 5  ;;  %v9144_v54 = vshrl.u32 %v8948_v22, 16  ;;  %v9135_v34 = vrot.slane %v23007_v63, 4  ;;  %v9147_v62 = vshll.u32 %v8948_v22, 16  ;;  %v20662_v11 = vld [vmem:[#allocation3 + $0x7c] sm:$0xf] }
 0x48c   : > { %v23010_v26 = vshll.u32 %v20627_v5, 16  ;;  %v23011_v43 = vshrl.u32 %v20627_v5, 16  ;;  %14703 = vmatmul.mubr.msk.bf16.gmra.mrb[12].mxu1 %vm7533_vm10, %v20547_v42  ;;  %v9084_v13 = vsel %vm16091_vm7, %v20623_v25, %v20575_v60  ;;  %v9115_v38 = vshll.u32 %v20618_v36, 16  ;;  %23638 = vst [vmem:[#allocation29_spill] sm:$0xff] %v20662_v11  ;;  %v20664_v63 = vld [vmem:[#allocation3 + $0x5c] sm:$0x1] }
 0x48d   : > { %v23013_v12 = vshll.u32 %v20631_v50, 16  ;;  %v23017_v47 = vshrl.u32 %v20631_v50, 16  ;;  %14708 = vmatprep.mubr.msk.bf16.mxu1 %vm7533_vm10, %v13661_v20  ;;  %v9094_v7 = vsel %vm16091_vm7, %v20629_v30, %v20625_v0  ;;  %v9102_v14 = vor.u32 %v9101_v21, %v9098_v45  ;;  %v20673_v45 = vld [vmem:[#allocation3 + $0x68] sm:$0x1] }
 0x48e   : > { %v9122_v42 = vrot.slane %v9120_v10, 4  ;;  %v9125_v52 = vrot.slane %v9123_v15, 5  ;;  %v9112_v56 = vor.u32 %v9111_v16, %v20635_v32  ;;  %v9146_v60 = vrot.slane %v9144_v54, 4 }
 0x48f   : > { %v9168_v22 = vshrl.u32 %v8951_v35, 16  ;;  %v9171_v25 = vshll.u32 %v8951_v35, 16  ;;  %v9136_v20 = vor.u32 %v9135_v34, %v20641_v3  ;;  %v9149_v1 = vrot.slane %v9147_v62, 5  ;;  %v20681_v34 = vld [vmem:[#allocation3 + $0x74] sm:$0x1] }
 0x490   : > { %v20669_v39 = vrot.slane %v23010_v26, 5  ;;  %v9159_v0 = vrot.slane %v23011_v43, 4  ;;  %v20677_v30 = vrot.slane %v23013_v12, 5  ;;  %v9183_v21 = vrot.slane %v23017_v47, 4 }
 0x491   : > { %v9192_v10 = vshrl.u32 %v8954_v18, 16  ;;  %v9195_v15 = vshll.u32 %v8954_v18, 16  ;;  %v9103_v16 = vrot.slane %v9102_v14, 4  ;;  %v9117_v54 = vrot.slane %v9115_v38, 5 }
 0x492   : > { %v23020_v62 = vshll.u32 %v20662_v11, 16  ;;  %v23022_v35 = vshrl.u32 %v20662_v11, 16  ;;  %v9126_v26 = vor.u32 %v9125_v52, %v9122_v42  ;;  %v9139_v43 = vshll.u32 %v20664_v63, 16  ;;  %v20686_v9 = vpop.f32.mrb[32].mxu0 }
 0x493   : > { %23639 = vst [vmem:[#allocation8_spill] sm:$0xff] %v20686_v9  ;;  %v9170_v12 = vrot.slane %v9168_v22, 4  ;;  %v9173_v23 = vrot.slane %v9171_v25, 5  ;;  %v9113_v61 = vrot.slane %v9112_v56, 4  ;;  %v20688_v47 = vpop.f32.mrb[33].mxu0  ;;  %v9150_v18 = vor.u32 %v9149_v1, %v9146_v60 }
 0x494   : > { %23640 = vst [vmem:[#allocation43_spill] sm:$0xff] %v20688_v47  ;;  %v9160_v38 = vor.u32 %v9159_v0, %v20669_v39  ;;  %v9163_v14 = vshll.u32 %v20673_v45, 16  ;;  %14709 = vmatmul.mubr.msk.bf16.vlgmr.msra.gmra.mrb[16].mxu1 %vm7533_vm10, %v20611_v48  ;;  %v9137_v42 = vrot.slane %v9136_v20, 4  ;;  %v20699_v52 = vpop.f32.mrb[34].mxu0  ;;  %v9184_v56 = vor.u32 %v9183_v21, %v20677_v30 }
 0x495   : > { %23642 = vst [vmem:[#allocation44_spill] sm:$0xff] %v20699_v52  ;;  %v9194_v22 = vrot.slane %v9192_v10, 4  ;;  %v9197_v25 = vrot.slane %v9195_v15, 5  ;;  %14741 = vmatpush3.bf16.msra.mxu1 %v20584_v8  ;;  %14712 = vmatprep.mubr.msk.bf16.mxu1 %vm7533_vm10, %v20613_v58  ;;  %v20705_v1 = vpop.f32.mrb[35].mxu0  ;;  %v20709_v60 = vrot.slane %v23020_v62, 5  ;;  %v9207_v48 = vrot.slane %v23022_v35, 4 }
 0x496   : > { %23643 = vst [vmem:[#allocation15_spill] sm:$0xff] %v20705_v1  ;;  %v9216_v20 = vshrl.u32 %v8957_v28, 16  ;;  %v9219_v0 = vshll.u32 %v8957_v28, 16  ;;  %v13665_v53 = vcombine.low %v9084_v13, %v9094_v7  ;;  %v9108_v21 = vsel %vm16091_vm7, %v9103_v16, %v20635_v32  ;;  %15601 = vmatprep.subr.msk.bf16.mxu1 %vm7582_vm9, %v20695_v33  ;;  %v20721_v35 = vld [vmem:[#allocation3 + $0x88] sm:$0xf] }
 0x497   : > { %v9174_v8 = vor.u32 %v9173_v23, %v9170_v12  ;;  %v9187_v10 = vshll.u32 %v20681_v34, 16  ;;  %v9118_v58 = vsel %vm16091_vm7, %v9113_v61, %v9117_v54  ;;  %v9127_v15 = vrot.slane %v9126_v26, 4  ;;  %23644 = vst [vmem:[#allocation39_spill] sm:$0xff] %v20721_v35  ;;  %v20814_v1 = vld [vmem:[#allocation3 + $0xb0] sm:$0x1] }
 0x498   : > { %v9141_v62 = vrot.slane %v9139_v43, 5  ;;  %v9161_v19 = vrot.slane %v9160_v38, 4  ;;  %v9151_v28 = vrot.slane %v9150_v18, 4  ;;  %v9165_v13 = vrot.slane %v9163_v14, 5  ;;  %v20728_v43 = vld [vmem:[#allocation3 + $0x8c] sm:$0x1] }
 0x499   : > { %v9185_v7 = vrot.slane %v9184_v56, 4  ;;  %v9198_v32 = vor.u32 %v9197_v25, %v9194_v22  ;;  %v9208_v12 = vor.u32 %v9207_v48, %v20709_v60  ;;  %v9218_v16 = vrot.slane %v9216_v20, 4  ;;  %23645 = vst [vmem:[#allocation22_spill] sm:$0xff] %v20728_v43  ;;  %v20747_v20 = vld [vmem:[#allocation3 + $0x94] sm:$0xf] }
 0x49a   : > { %v9142_v23 = vsel %vm16091_vm7, %v9137_v42, %v9141_v62  ;;  %v9221_v40 = vrot.slane %v9219_v0, 5  ;;  %v9175_v61 = vrot.slane %v9174_v8, 4  ;;  %v9189_v26 = vrot.slane %v9187_v10, 5  ;;  %23646 = vst [vmem:[#allocation20_spill] sm:$0xff] %v20747_v20 }
 0x49b   : > { %v23026_v54 = vshll.u32 %v20721_v35, 16  ;;  %v23027_v18 = vshrl.u32 %v20721_v35, 16  ;;  %v13666_v38 = vcombine.low %v9108_v21, %v9118_v58  ;;  %v9132_v14 = vsel %vm16091_vm7, %v9127_v15, %v20641_v3  ;;  %v20753_v21 = vld [vmem:[#allocation3 + $0xa0] sm:$0xf]  ;;  %v8963_v58 = vld [vmem:[#allocation3 + $0x9c] sm:$0xf] }
 0x49c   : > { %v9166_v62 = vsel %vm16091_vm7, %v9161_v19, %v9165_v13  ;;  %v9211_v42 = vshll.u32 %v20723_v44, 16  ;;  %14713 = vmatmul.mubr.msk.bf16.gmra.mrb[20].mxu1 %vm7533_vm10, %v20621_v59  ;;  %v13667_v56 = vcombine.low %v9132_v14, %v9142_v23  ;;  %v9156_v22 = vsel %vm16091_vm7, %v9151_v28, %v20669_v39  ;;  %23647 = vst [vmem:[#allocation30_spill] sm:$0xff] %v20753_v21 }
 0x49d   : > { %v9190_v25 = vsel %vm16091_vm7, %v9185_v7, %v9189_v26  ;;  %v20745_v48 = vrot.slane %v9198_v32, 4  ;;  %14716 = vmatprep.mubr.msk.bf16.mxu1 %vm7533_vm10, %v13665_v53  ;;  %v20750_v19 = vrot.slane %v9208_v12, 4  ;;  %v9222_v3 = vor.u32 %v9221_v40, %v9218_v16  ;;  %v20770_v7 = vld [vmem:[#allocation3 + $0xac] sm:$0xf]  ;;  %v8966_v16 = vld [vmem:[#allocation3 + $0xa8] sm:$0xf] }
 0x49e   : > { %v9235_v0 = vshll.u32 %v20728_v43, 16  ;;  %v9240_v59 = vshrl.u32 %v8960_v27, 16  ;;  %v20755_v8 = vcombine.low %v9156_v22, %v9166_v62  ;;  %v9180_v39 = vsel %vm16091_vm7, %v9175_v61, %v20677_v30  ;;  %23648 = vst [vmem:[#allocation24_spill] sm:$0xff] %v20770_v7  ;;  %v8969_v62 = vld [vmem:[#allocation3 + $0xb4] sm:$0xf] }
 0x49f   : > { %v20762_v10 = vrot.slane %v23026_v54, 5  ;;  %v9231_v53 = vrot.slane %v23027_v18, 4  ;;  %v20766_v40 = vrot.slane %v9211_v42, 5  ;;  %v9243_v15 = vshll.u32 %v8960_v27, 16  ;;  %v20793_v54 = vld [vmem:[#allocation3 + $0xb8] sm:$0xf] }
 0x4a0   : > { %v23028_v28 = vshll.u32 %v20747_v20, 16  ;;  %v23029_v13 = vshrl.u32 %v20747_v20, 16  ;;  %v20772_v32 = vcombine.low %v9180_v39, %v9190_v25  ;;  %v23030_v23 = vshll.u32 %v20753_v21, 16  ;;  %23649 = vst [vmem:[#allocation23_spill] sm:$0xff] %v20793_v54  ;;  %v20795_v18 = vld [vmem:[#allocation3 + $0x98] sm:$0x1] }
 0x4a1   : > { %v23031_v12 = vshrl.u32 %v20753_v21, 16  ;;  %v20784_v61 = vrot.slane %v9222_v3, 4  ;;  %v20786_v26 = vrot.slane %v9235_v0, 5  ;;  %v20788_v14 = vrot.slane %v9240_v59, 4  ;;  %23650 = vst [vmem:[#allocation34_spill] sm:$0xff] %v20795_v18 }
 0x4a2   : > { %v9232_v42 = vor.u32 %v9231_v53, %v20762_v10  ;;  %v9264_v22 = vshrl.u32 %v8963_v58, 16  ;;  %v9245_v30 = vrot.slane %v9243_v15, 5  ;;  %v20799_v3 = vrot.slane %v23028_v28, 5 }
 0x4a3   : > { %v9255_v0 = vrot.slane %v23029_v13, 4  ;;  %v9267_v59 = vshll.u32 %v8963_v58, 16  ;;  %v20806_v53 = vrot.slane %v23030_v23, 5  ;;  %v9279_v27 = vrot.slane %v23031_v12, 4  ;;  %v8972_v58 = vld [vmem:[#allocation3 + $0xc0] sm:$0xf] }
 0x4a4   : > { %14717 = vmatmul.mubr.msk.bf16.gmra.mrb[24].mxu1 %vm7533_vm10, %v13666_v38  ;;  %v9288_v39 = vshrl.u32 %v8966_v16, 16  ;;  %v9291_v25 = vshll.u32 %v8966_v16, 16  ;;  %v9312_v15 = vshrl.u32 %v8969_v62, 16  ;;  %v9315_v28 = vshll.u32 %v8969_v62, 16  ;;  %v20823_v62 = vld [vmem:[#allocation3 + $0xa4] sm:$0x1] }
 0x4a5   : > { %14720 = vmatprep.mubr.msk.bf16.mxu1 %vm7533_vm10, %v13667_v56  ;;  %v9259_v38 = vshll.u32 %v20795_v18, 16  ;;  %v9266_v9 = vrot.slane %v9264_v22, 4  ;;  %v23651_v23 = vshll.u32 %v20770_v7, 16  ;;  %v23652_v16 = vshrl.u32 %v20770_v7, 16  ;;  %v20834_v7 = vld [vmem:[#allocation3 + $0xc4] sm:$0xf] }
 0x4a6   : > { %v9256_v56 = vor.u32 %v9255_v0, %v20799_v3  ;;  %v9269_v47 = vrot.slane %v9267_v59, 5  ;;  %v23653_v13 = vshll.u32 %v20793_v54, 16  ;;  %v23654_v22 = vshrl.u32 %v20793_v54, 16  ;;  %23656 = vst [vmem:[#allocation36_spill] sm:$0xff] %v20834_v7 }
 0x4a7   : > { %v20818_v52 = vrot.slane %v23651_v23, 5  ;;  %v9303_v12 = vrot.slane %v23652_v16, 4  ;;  %v9280_v23 = vor.u32 %v9279_v27, %v20806_v53  ;;  %v9290_v24 = vrot.slane %v9288_v39, 4  ;;  %v20843_v39 = vld [vmem:[#allocation3 + $0xbc] sm:$0x1] }
 0x4a8   : > { %v20827_v37 = vrot.slane %v23653_v13, 5  ;;  %v9327_v31 = vrot.slane %v23654_v22, 4  ;;  %v20831_v33 = vpop.f32.mrb[36].mxu0  ;;  %v9293_v21 = vrot.slane %v9291_v25, 5  ;;  %v9336_v16 = vshrl.u32 %v8972_v58, 16 }
 0x4a9   : > { %23655 = vst [vmem:[#allocation16_spill] sm:$0xff] %v20831_v33  ;;  %v20836_v0 = vpop.f32.mrb[37].mxu0  ;;  %v9233_v18 = vrot.slane %v9232_v42, 4  ;;  %v9314_v59 = vrot.slane %v9312_v15, 4  ;;  %v9317_v20 = vrot.slane %v9315_v28, 5  ;;  %v9339_v41 = vshll.u32 %v8972_v58, 16 }
 0x4aa   : > { %23657 = vst [vmem:[#allocation32_spill] sm:$0xff] %v20836_v0  ;;  %v20838_v13 = vpop.f32.mrb[38].mxu0  ;;  %v9246_v54 = vor.u32 %v9245_v30, %v20788_v14  ;;  %v9261_v22 = vrot.slane %v9259_v38, 5  ;;  %v9283_v33 = vshll.u32 %v20823_v62, 16  ;;  %v9304_v27 = vor.u32 %v9303_v12, %v20818_v52 }
 0x4ab   : > { %23658 = vst [vmem:[#allocation40_spill] sm:$0xff] %v20838_v13  ;;  %v20845_v25 = vpop.f32.mrb[39].mxu0  ;;  %v9257_v57 = vrot.slane %v9256_v56, 4  ;;  %v9270_v43 = vor.u32 %v9269_v47, %v9266_v9  ;;  %v9307_v42 = vshll.u32 %v20814_v1, 16  ;;  %v9328_v28 = vor.u32 %v9327_v31, %v20827_v37  ;;  %v20867_v9 = vld [vmem:[#allocation3 + $0xc8] sm:$0x1] }
 0x4ac   : > { %23659 = vst [vmem:[#allocation19_spill] sm:$0xff] %v20845_v25  ;;  %14721 = vmatmul.mubr.msk.bf16.gmra.mrb[28].mxu1 %vm7533_vm10, %v20755_v8  ;;  %v9281_v15 = vrot.slane %v9280_v23, 4  ;;  %v9294_v30 = vor.u32 %v9293_v21, %v9290_v24  ;;  %v9338_v14 = vrot.slane %v9336_v16, 4  ;;  %v9341_v58 = vrot.slane %v9339_v41, 5  ;;  %v21080_v13 = vld [vmem:[#allocation3 + $0xa8] sm:$0xe] }
 0x4ad   : > { %14724 = vmatprep.mubr.msk.bf16.mxu1 %vm7533_vm10, %v20772_v32  ;;  %v9318_v12 = vor.u32 %v9317_v20, %v9314_v59  ;;  %v9331_v38 = vshll.u32 %v20843_v39, 16  ;;  %v9228_v31 = vsel %vm16091_vm7, %v20784_v61, %v20762_v10  ;;  %v9238_v24 = vsel %vm16091_vm7, %v9233_v18, %v20786_v26  ;;  %23683 = vst [vmem:[#allocation37_spill] sm:$0xff] %v21080_v13 }
 0x4ae   : > { %v9285_v41 = vrot.slane %v9283_v33, 5  ;;  %v9305_v47 = vrot.slane %v9304_v27, 4  ;;  %v9247_v21 = vrot.slane %v9246_v54, 4  ;;  %v9262_v20 = vsel %vm16091_vm7, %v9257_v57, %v9261_v22 }
 0x4af   : > { %v9271_v8 = vrot.slane %v9270_v43, 4  ;;  %v9329_v32 = vrot.slane %v9328_v28, 4  ;;  %v9295_v16 = vrot.slane %v9294_v30, 4  ;;  %v9309_v59 = vrot.slane %v9307_v42, 5 }
 0x4b0   : > { %v9286_v23 = vsel %vm16091_vm7, %v9281_v15, %v9285_v41  ;;  %v9342_v10 = vor.u32 %v9341_v58, %v9338_v14  ;;  %v9319_v61 = vrot.slane %v9318_v12, 4  ;;  %v9333_v56 = vrot.slane %v9331_v38, 5  ;;  %v20889_v15 = vld [vmem:[#allocation3 + $0xc] sm:$0xe] }
 0x4b1   : > { %v23660_v18 = vshll.u32 %v20834_v7, 16  ;;  %v23661_v54 = vshrl.u32 %v20834_v7, 16  ;;  %v23662_v57 = vsel %vm16091_vm7, %v20750_v19, %v20766_v40  ;;  %v23663_v43 = vsel %vm16091_vm7, %v20745_v48, %v20709_v60 }
 0x4b2   : > { %v13670_v22 = vcombine.low %v23663_v43, %v23662_v57  ;;  %v13671_v27 = vcombine.low %v9228_v31, %v9238_v24  ;;  %v9310_v28 = vsel %vm16091_vm7, %v9305_v47, %v9309_v59  ;;  %v9719_v30 = vrot.slane %v20474_v17, 5  ;;  %v10125_v59 = vld [vmem:[#allocation3 + $0x2c] sm:$0x3] }
 0x4b3   : > { %v20871_v33 = vrot.slane %v23660_v18, 5  ;;  %v9351_v26 = vrot.slane %v23661_v54, 4  ;;  %v20885_v42 = vpop.f32.mrb[40].mxu0  ;;  %v9252_v19 = vsel %vm16091_vm7, %v9247_v21, %v20799_v3  ;;  %v9276_v60 = vsel %vm16091_vm7, %v9271_v8, %v20806_v53  ;;  %v20921_v21 = vld [vmem:[#allocation3 + $0x3c] sm:$0xe] }
 0x4b4   : > { %23664 = vst [vmem:[#allocation35_spill] sm:$0xff] %v20885_v42  ;;  %v20892_v14 = vpop.f32.mrb[41].mxu0  ;;  %v9334_v48 = vsel %vm16091_vm7, %v9329_v32, %v9333_v56  ;;  %v9355_v40 = vshll.u32 %v20867_v9, 16  ;;  %14725 = vmatmul.mubr.msk.bf16.gmra.mrb[0].mxu1 %vm7533_vm10, %v13670_v22  ;;  %v13672_v12 = vcombine.low %v9252_v19, %v9262_v20  ;;  %v13673_v38 = vcombine.low %v9276_v60, %v9286_v23  ;;  %v20927_v23 = vld [vmem:[#allocation3 + $0x48] sm:$0xe] }
 0x4b5   : > { %23665 = vst [vmem:[#allocation9_spill] sm:$0xff] %v20892_v14  ;;  %v20904_v58 = vpop.f32.mrb[42].mxu0  ;;  %v9300_v31 = vsel %vm16091_vm7, %v9295_v16, %v20818_v52  ;;  %v20909_v3 = vrot.slane %v9342_v10, 4  ;;  %14728 = vmatprep.mubr.msk.bf16.mxu1 %vm7533_vm10, %v13671_v27  ;;  %v9324_v56 = vsel %vm16091_vm7, %v9319_v61, %v20827_v37  ;;  %v9352_v41 = vor.u32 %v9351_v26, %v20871_v33 }
 0x4b6   : > { %23666 = vst [vmem:[#allocation21_spill] sm:$0xff] %v20904_v58  ;;  %v20912_v53 = vpop.f32.mrb[43].mxu0  ;;  %v20914_v24 = vcombine.low %v9300_v31, %v9310_v28  ;;  %v13693_v47 = vrot.slane %v20889_v15, 9  ;;  %v20923_v20 = vcombine.low %v9324_v56, %v9334_v48  ;;  %v9721_v52 = vrot.slane %v9719_v30, 4  ;;  %v20948_v28 = vld [vmem:[#allocation3 + $0x54] sm:$0xe] }
 0x4b7   : > { %23667 = vst [vmem:[#allocation6_spill] sm:$0xff] %v20912_v53  ;;  %v9722_v8 = vrot.slane %v20520_v49, 5  ;;  %v23050_v32 = vrot.slane %v20489_v55, 5  ;;  %v20929_v16 = vrot.slane %v9355_v40, 5  ;;  %v9747_v10 = vrot.slane %v20551_v46, 5 }
 0x4b8   : > { %v20933_v37 = vsel %vm16402_vm15, %v13693_v47, %v9719_v30  ;;  %v9750_v61 = vrot.slane %v20571_v4, 5  ;;  %v13697_v54 = vrot.slane %v20921_v21, 9  ;;  %v9754_v26 = vrot.slane %v20588_v6, 5  ;;  %v20962_v48 = vld [vmem:[#allocation3 + $0x60] sm:$0xe] }
 0x4b9   : > { %v20944_v57 = vrot.slane %v9352_v41, 4  ;;  %v9749_v43 = vrot.slane %v9747_v10, 4  ;;  %v13698_v22 = vrot.slane %v20927_v23, 9  ;;  %v9757_v27 = vrot.slane %v20618_v36, 5  ;;  %v21034_v53 = vld [vmem:[#allocation3 + $0x90] sm:$0xe] }
 0x4ba   : > { %v20952_v4 = vsel %vm16402_vm15, %v9721_v52, %v9722_v8  ;;  %v20956_v30 = vrot.slane %v23050_v32, 4  ;;  %v20960_v19 = vsel %vm16402_vm15, %v13697_v54, %v9747_v10  ;;  %v9756_v60 = vrot.slane %v9754_v26, 4  ;;  %v20988_v54 = vld [vmem:[#allocation3 + $0x6c] sm:$0xe]  ;;  %23673 = vst [vmem:[#allocation27_spill] sm:$0xff] %v21034_v53 }
 0x4bb   : > { %v20966_v36 = vsel %vm16402_vm15, %v9749_v43, %v9750_v61  ;;  %v20970_v40 = vsel %vm16402_vm15, %v13698_v22, %v9754_v26  ;;  %v9761_v31 = vrot.slane %v20590_v51, 5  ;;  %v9764_v56 = vrot.slane %v20664_v63, 5 }
 0x4bc   : > { %14729 = vmatmul.mubr.msk.bf16.gmra.mrb[4].mxu1 %vm7533_vm10, %v13672_v12  ;;  %v20979_v47 = vsel %vm16402_vm15, %v9756_v60, %v9757_v27  ;;  %v13699_v52 = vrot.slane %v20948_v28, 9  ;;  %v9768_v8 = vrot.slane %v20627_v5, 5  ;;  %v13700_v63 = vrot.slane %v20962_v48, 9  ;;  %v20997_v27 = vld [vmem:[#allocation3 + $0x78] sm:$0xe] }
 0x4bd   : > { %14732 = vmatprep.mubr.msk.bf16.mxu1 %vm7533_vm10, %v13673_v38  ;;  %v9763_v61 = vrot.slane %v9761_v31, 4  ;;  %v9771_v12 = vrot.slane %v20673_v45, 5  ;;  %v9775_v38 = vrot.slane %v20631_v50, 5  ;;  %23669 = vst [vmem:[#allocation14_spill] sm:$0xff] %v20997_v27  ;;  %v9778_v10 = vrot.slane %v20681_v34, 5 }
 0x4be   : > { %v20994_v43 = vsel %vm16402_vm15, %v13699_v52, %v9761_v31  ;;  %v9770_v22 = vrot.slane %v9768_v8, 4  ;;  %v21005_v45 = vsel %vm16402_vm15, %v13700_v63, %v9768_v8  ;;  %v9782_v41 = vrot.slane %v20662_v11, 5  ;;  %v21020_v63 = vld [vmem:[#allocation3 + $0x84] sm:$0xe] }
 0x4bf   : > { %v21001_v60 = vsel %vm16402_vm15, %v9763_v61, %v9764_v56  ;;  %v13701_v32 = vrot.slane %v20988_v54, 9  ;;  %v9777_v49 = vrot.slane %v9775_v38, 4  ;;  %v13702_v8 = vrot.slane %v20997_v27, 9  ;;  %23670 = vst [vmem:[#allocation26_spill] sm:$0xff] %v21020_v63  ;;  %v23672_v56 = vld [vmem:[#allocation22_spill] sm:$0xff] }
 0x4c0   : > { %v21013_v52 = vsel %vm16402_vm15, %v9770_v22, %v9771_v12  ;;  %v9784_v61 = vrot.slane %v9782_v41, 4  ;;  %v9785_v34 = vrot.slane %v20723_v44, 5  ;;  %v9789_v22 = vrot.slane %v20721_v35, 5  ;;  %v23675_v44 = vld [vmem:[#allocation13_spill] sm:$0xff] }
 0x4c1   : > { %v21026_v31 = vsel %vm16402_vm15, %v13701_v32, %v9775_v38  ;;  %v21030_v12 = vsel %vm16402_vm15, %v9777_v49, %v9778_v10  ;;  %v9792_v18 = vrot.slane %v23672_v56, 5  ;;  %v21043_v32 = vsel %vm16402_vm15, %v13702_v8, %v9782_v41 }
 0x4c2   : > { %v21022_v26 = vpop.f32.mrb[44].mxu0  ;;  %v21047_v49 = vsel %vm16402_vm15, %v9784_v61, %v9785_v34  ;;  %v9358_v38 = vsel %vm16091_vm7, %v20944_v57, %v20929_v16  ;;  %v13703_v41 = vrot.slane %v21020_v63, 9  ;;  %v9791_v8 = vrot.slane %v9789_v22, 4  ;;  %v23679_v34 = vld [vmem:[#allocation18_spill] sm:$0xff] }
 0x4c3   : > { %23671 = vst [vmem:[#allocation41_spill] sm:$0xff] %v21022_v26  ;;  %v21036_v58 = vpop.f32.mrb[45].mxu0  ;;  %v21060_v26 = vld [vmem:[#allocation3 + $0x9c] sm:$0xe]  ;;  %v13704_v14 = vrot.slane %v21034_v53, 9  ;;  %v23681_v16 = vld [vmem:[#allocation34_spill] sm:$0xff] }
 0x4c4   : > { %23674 = vst [vmem:[#allocation11_spill] sm:$0xff] %v21036_v58  ;;  %v21049_v10 = vpop.f32.mrb[46].mxu0  ;;  %14733 = vmatmul.mubr.msk.bf16.gmra.mrb[8].mxu1 %vm7533_vm10, %v20914_v24  ;;  %23677 = vst [vmem:[#allocation12_spill] sm:$0xff] %v21060_v26  ;;  %v9736_v24 = vrot.slane %v23679_v34, 5  ;;  %v9799_v57 = vrot.slane %v23681_v16, 5  ;;  %v21072_v56 = vsel %vm16402_vm15, %v13703_v41, %v9789_v22  ;;  %v21076_v42 = vsel %vm16402_vm15, %v9791_v8, %v9792_v18 }
 0x4c5   : > { %23676 = vst [vmem:[#allocation5_spill] sm:$0xff] %v21049_v10  ;;  %v21062_v61 = vpop.f32.mrb[47].mxu0  ;;  %14736 = vmatprep.mubr.msk.bf16.mxu1 %vm7533_vm10, %v20923_v20  ;;  %v23680_v10 = vld [vmem:[#allocation20_spill] sm:$0xff]  ;;  %v9806_v20 = vrot.slane %v20823_v62, 5  ;;  %v23684_v34 = vsel %vm16091_vm7, %v20909_v3, %v20871_v33  ;;  %v13705_v0 = vrot.slane %v21060_v26, 9  ;;  %v13706_v3 = vrot.slane %v21080_v13, 9 }
 0x4c6   : > { %23678 = vst [vmem:[#allocation33_spill] sm:$0xff] %v21062_v61  ;;  %v9796_v58 = vrot.slane %v23680_v10, 5  ;;  %v23682_v61 = vld [vmem:[#allocation30_spill] sm:$0xff]  ;;  %v13676_v16 = vcombine.low %v23684_v34, %v9358_v38  ;;  %v23685_v62 = vld [vmem:[#allocation24_spill] sm:$0xff]  ;;  %v9813_v10 = vrot.slane %v20814_v1, 5  ;;  %v23687_v38 = vld [vmem:[#allocation23_spill] sm:$0xff] }
 0x4c7   : > { %v9803_v25 = vrot.slane %v23682_v61, 5  ;;  %v9810_v61 = vrot.slane %v23685_v62, 5  ;;  %v9817_v34 = vrot.slane %v23687_v38, 5  ;;  %v9820_v22 = vrot.slane %v20843_v39, 5  ;;  %v21120_v26 = vld [vmem:[#allocation3 + $0xc0] sm:$0xe] }
 0x4c8   : > { %v9798_v41 = vrot.slane %v9796_v58, 4  ;;  %v21092_v18 = vsel %vm16402_vm15, %v13704_v14, %v9796_v58  ;;  %v13707_v39 = vrot.slane %v21096_v2, 9  ;;  %23690 = vst [vmem:[#allocation31_spill] sm:$0xff] %v21120_v26  ;;  %v23693_v38 = vcombine.low %v20933_v37, %v20952_v4  ;;  %v21137_v14 = vld [vmem:[#allocation3 + $0x24] sm:$0xe]  ;;  %v23703_v2 = vld [vmem:[#allocation28_spill] sm:$0xff] }
 0x4c9   : > { %v9805_v8 = vrot.slane %v9803_v25, 4  ;;  %v21109_v58 = vsel %vm16402_vm15, %v13705_v0, %v9803_v25  ;;  %v9812_v62 = vrot.slane %v9810_v61, 4  ;;  %v9819_v13 = vrot.slane %v9817_v34, 4  ;;  %v9654_v0 = vld [vmem:[#allocation3 + $0x18] sm:$0xe] }
 0x4ca   : > { %v21100_v33 = vsel %vm16402_vm15, %v9798_v41, %v9799_v57  ;;  %v23689_v57 = vrot.slane %v23675_v44, 5  ;;  %v21125_v25 = vsel %vm16402_vm15, %v13706_v3, %v9810_v61  ;;  %v21143_v61 = vsel %vm16402_vm15, %v13707_v39, %v9817_v34 }
 0x4cb   : > { %v21113_v1 = vsel %vm16402_vm15, %v9805_v8, %v9806_v20  ;;  %23691 = vst [vmem:[#allocation22_spill] sm:$0xff] %v21125_v25  ;;  %v21129_v20 = vsel %vm16402_vm15, %v9812_v62, %v9813_v10  ;;  %v9824_v8 = vrot.slane %v20834_v7, 5  ;;  %23694 = vst [vmem:[#allocation18_spill] sm:$0xff] %v21143_v61  ;;  %v21147_v10 = vsel %vm16402_vm15, %v9819_v13, %v9820_v22 }
 0x4cc   : > { %23688 = vst [vmem:[#allocation17_spill] sm:$0xff] %v21113_v1  ;;  %v9735_v41 = vrot.slane %v23689_v57, 4  ;;  %14737 = vmatmul.mubr.msk.bf16.gmra.mrb[12].mxu1 %vm7533_vm10, %v13676_v16  ;;  %23692 = vst [vmem:[#allocation13_spill] sm:$0xff] %v21129_v20  ;;  %v9827_v57 = vrot.slane %v20867_v9, 5  ;;  %v13708_v37 = vrot.slane %v21120_v26, 9  ;;  %v13694_v62 = vrot.slane %v9654_v0, 9 }
 0x4cd   : > { %14742 = vmatprep.mubr.msk.bf16.mxu1 %vm7533_vm10, %v23693_v38  ;;  %23695 = vst [vmem:[#allocation34_spill] sm:$0xff] %v21147_v10  ;;  %v9826_v4 = vrot.slane %v9824_v8, 4  ;;  %v23696_v3 = vrot.slane %v20549_v29, 5  ;;  %v23697_v16 = vld [vmem:[#allocation42_spill] sm:$0xff]  ;;  %v13695_v39 = vrot.slane %v21137_v14, 9  ;;  %v23700_v29 = vrot.slane %v20489_v55, 5 }
 0x4ce   : > { %v9740_v34 = vrot.slane %v23697_v16, 5  ;;  %v9737_v13 = vsel %vm16402_vm15, %v9735_v41, %v9736_v24  ;;  %v21163_v22 = vsel %vm16402_vm15, %v13708_v37, %v9824_v8  ;;  %v23701_v26 = vld [vmem:[#allocation38_spill] sm:$0xff]  ;;  %v23702_v41 = vrot.slane %v23675_v44, 5 }
 0x4cf   : > { %v9730_v38 = vsel %vm16402_vm15, %v20956_v30, %v23696_v3  ;;  %23698 = vst [vmem:[#allocation42_spill] sm:$0xff] %v21163_v22  ;;  %v21167_v9 = vsel %vm16402_vm15, %v9826_v4, %v9827_v57  ;;  %v9727_v30 = vsel %vm16402_vm15, %v13694_v62, %v23700_v29  ;;  %v10606_v24 = vsel %vm7582_vm9, %v23701_v26, 0  ;;  %v9656_v57 = vld [vmem:[#allocation3 + $0x30] sm:$0xe]  ;;  %v21185_v62 = vld [vmem:[%s22690_s3 + $0x18] sm:$0xf] }
 0x4d0   : > { %23699 = vst [vmem:[#allocation45_spill] sm:$0xff] %v21167_v9  ;;  %v13711_v7 = vcombine.low %v9727_v30, %v9730_v38  ;;  %v9734_v8 = vsel %vm16402_vm15, %v13695_v39, %v23702_v41  ;;  %v9742_v4 = vrot.slane %v9740_v34, 4  ;;  %v9743_v53 = vrot.slane %v23703_v2, 5  ;;  %v10123_v38 = vld [vmem:[#allocation3 + $0x14] sm:$0x3] }
 0x4d1   : > { %v13712_v37 = vcombine.low %v9734_v8, %v9737_v13  ;;  %v13696_v26 = vrot.slane %v9656_v57, 9  ;;  %v10140_v13 = vshrl.u32 %v20889_v15, 16  ;;  %v10143_v29 = vshll.u32 %v20889_v15, 16 }
 0x4d2   : > { %v9744_v39 = vsel %vm16402_vm15, %v9742_v4, %v9743_v53  ;;  %v10154_v8 = vshrl.u32 %v10123_v38, 16  ;;  %v10163_v3 = vshrl.u32 %v9654_v0, 16  ;;  %v10166_v9 = vshll.u32 %v9654_v0, 16 }
 0x4d3   : > { %v9741_v2 = vsel %vm16402_vm15, %v13696_v26, %v9740_v34  ;;  %v10157_v35 = vshll.u32 %v10123_v38, 16  ;;  %v23706_v53 = vshrl.u32 %v20489_v55, 16  ;;  %v23707_v34 = vshll.u32 %v20489_v55, 16 }
 0x4d4   : > { %14743 = vmatmul.mubr.msk.bf16.vlgmr.msra.gmra.mrb[16].mxu1 %vm7533_vm10, %v13711_v7  ;;  %v23704_v7 = vshrl.u32 %v20474_v17, 16  ;;  %v13713_v22 = vcombine.low %v9741_v2, %v9744_v39  ;;  %v10186_v15 = vshrl.u32 %v21137_v14, 16  ;;  %v23708_v0 = vcombine.low %v20960_v19, %v20966_v36 }
 0x4d5   : > { %14775 = vmatpush3.bf16.msra.mxu1 %v10606_v24  ;;  %14746 = vmatprep.mubr.msk.bf16.mxu1 %vm7533_vm10, %v13712_v37  ;;  %v23705_v24 = vshll.u32 %v20474_v17, 16  ;;  %v10124_v37 = vld [vmem:[#allocation3 + $0x20] sm:$0x3]  ;;  %v10171_v4 = vrot.slane %v23706_v53, 5  ;;  %v10172_v26 = vrot.slane %v23707_v34, 6  ;;  %v10142_v17 = vrot.slane %v10140_v13, 5 }
 0x4d6   : > { %15602 = vmatprep.subr.msk.bf16.mxu1 %vm7582_vm9, %v21185_v62  ;;  %v10148_v30 = vrot.slane %v23704_v7, 5  ;;  %v10189_v7 = vshll.u32 %v21137_v14, 16  ;;  %v10177_v63 = vshrl.u32 %v10124_v37, 16  ;;  %v10180_v10 = vshll.u32 %v10124_v37, 16 }
 0x4d7   : > { %v10149_v41 = vrot.slane %v23705_v24, 6  ;;  %v10145_v24 = vrot.slane %v10143_v29, 6  ;;  %v10156_v39 = vrot.slane %v10154_v8, 5  ;;  %v10165_v55 = vrot.slane %v10163_v3, 5 }
 0x4d8   : > { %v10168_v2 = vrot.slane %v10166_v9, 6  ;;  %v23709_v53 = vshrl.u32 %v23675_v44, 16  ;;  %v23710_v14 = vshll.u32 %v23675_v44, 16  ;;  %v10203_v13 = vshll.u32 %v10125_v59, 16 }
 0x4d9   : > { %v10150_v38 = vor.u32 %v10149_v41, %v10148_v30  ;;  %v10159_v29 = vrot.slane %v10157_v35, 6  ;;  %v10173_v20 = vor.u32 %v10172_v26, %v10171_v4  ;;  %v10188_v37 = vrot.slane %v10186_v15, 5  ;;  %v10126_v4 = vld [vmem:[#allocation3 + $0x38] sm:$0x3] }
 0x4da   : > { %v10194_v34 = vrot.slane %v23709_v53, 5  ;;  %v10195_v61 = vrot.slane %v23710_v14, 6  ;;  %v10191_v25 = vrot.slane %v10189_v7, 6  ;;  %v10179_v11 = vrot.slane %v10177_v63, 5 }
 0x4db   : > { %v10182_v19 = vrot.slane %v10180_v10, 6  ;;  %v10209_v36 = vshrl.u32 %v9656_v57, 16  ;;  %v10146_v30 = vor.u32 %v10145_v24, %v10142_v17  ;;  %v10169_v41 = vor.u32 %v10168_v2, %v10165_v55 }
 0x4dc   : > { %14747 = vmatmul.mubr.msk.bf16.gmra.mrb[20].mxu1 %vm7533_vm10, %v13713_v22  ;;  %v10200_v22 = vshrl.u32 %v10125_v59, 16  ;;  %v10196_v3 = vor.u32 %v10195_v61, %v10194_v34  ;;  %v10205_v8 = vrot.slane %v10203_v13, 6  ;;  %v10152_v27 = vrot.slane %v10150_v38, 4 }
 0x4dd   : > { %14750 = vmatprep.mubr.msk.bf16.mxu1 %vm7533_vm10, %v23708_v0  ;;  %v10212_v0 = vshll.u32 %v9656_v57, 16  ;;  %v10160_v53 = vor.u32 %v10159_v29, %v10156_v39  ;;  %v10192_v1 = vor.u32 %v10191_v25, %v10188_v37  ;;  %v23711_v44 = vcombine.low %v20970_v40, %v20979_v47 }
 0x4de   : > { %v10202_v9 = vrot.slane %v10200_v22, 5  ;;  %v10175_v35 = vrot.slane %v10173_v20, 4  ;;  %v10183_v59 = vor.u32 %v10182_v19, %v10179_v11  ;;  %v10211_v63 = vrot.slane %v10209_v36, 5 }
 0x4df   : > { %v10214_v10 = vrot.slane %v10212_v0, 6  ;;  %v23712_v57 = vcombine.low %v20994_v43, %v21001_v60  ;;  %v23713_v61 = vshrl.u32 %v23697_v16, 16  ;;  %v23714_v25 = vshll.u32 %v23697_v16, 16 }
 0x4e0   : > { %v10147_v7 = vrot.slane %v10146_v30, 4  ;;  %v10170_v40 = vrot.slane %v10169_v41, 4  ;;  %v10198_v47 = vrot.slane %v10196_v3, 4  ;;  %v10206_v17 = vor.u32 %v10205_v8, %v10202_v9  ;;  %v10128_v41 = vld [vmem:[#allocation3 + $0x50] sm:$0x3] }
 0x4e1   : > { %v10217_v26 = vrot.slane %v23713_v61, 5  ;;  %v10218_v15 = vrot.slane %v23714_v25, 6  ;;  %v10161_v11 = vsel %vm16922_vm5, %v10152_v27, %v10160_v53  ;;  %v10193_v39 = vrot.slane %v10192_v1, 4 }
 0x4e2   : > { %v10223_v55 = vshrl.u32 %v10126_v4, 16  ;;  %v10184_v43 = vsel %vm16922_vm5, %v10175_v35, %v10183_v59  ;;  %v10215_v60 = vor.u32 %v10214_v10, %v10211_v63  ;;  %v10226_v2 = vshll.u32 %v10126_v4, 16  ;;  %v10129_v63 = vld [vmem:[#allocation3 + $0x5c] sm:$0x3] }
 0x4e3   : > { %v10232_v34 = vshrl.u32 %v20921_v21, 16  ;;  %v21233_v14 = vor.u32 %v10218_v15, %v10217_v26  ;;  %v10151_v16 = vsel %vm16922_vm5, %v10147_v7, %v10150_v38  ;;  %v10174_v22 = vsel %vm16922_vm5, %v10170_v40, %v10173_v20  ;;  %v10127_v38 = vld [vmem:[#allocation3 + $0x44] sm:$0x3] }
 0x4e4   : > { %14751 = vmatmul.mubr.msk.bf16.gmra.mrb[24].mxu1 %vm7533_vm10, %v23711_v44  ;;  %v21241_v27 = vsel %vm7582_vm9, %v21185_v62, 0  ;;  %v10207_v1 = vsel %vm16922_vm5, %v10198_v47, %v10206_v17  ;;  %v21245_v13 = vcombine.low %v10151_v16, %v10161_v11  ;;  %v21247_v29 = vcombine.low %v10174_v22, %v10184_v43  ;;  %v10130_v22 = vld [vmem:[#allocation3 + $0x68] sm:$0x3] }
 0x4e5   : > { %14754 = vmatprep.mubr.msk.bf16.mxu1 %vm7533_vm10, %v23712_v57  ;;  %v10197_v37 = vsel %vm16922_vm5, %v10193_v39, %v10196_v3  ;;  %v21251_v19 = vrot.slane %v10223_v55, 5  ;;  %v23716_v20 = vcombine.low %v21005_v45, %v21013_v52  ;;  %v21257_v62 = vrot.slane %v10215_v60, 4 }
 0x4e6   : > { %v21259_v36 = vrot.slane %v10226_v2, 6  ;;  %v21261_v0 = vrot.slane %v10232_v34, 5  ;;  %v10235_v30 = vshll.u32 %v20921_v21, 16  ;;  %v23717_v3 = vcombine.low %v21026_v31, %v21030_v12 }
 0x4e7   : > { %v21268_v9 = vcombine.low %v10197_v37, %v10207_v1  ;;  %v10221_v45 = vrot.slane %v21233_v14, 4  ;;  %v23718_v52 = vshrl.u32 %v20551_v46, 16  ;;  %v23719_v53 = vshll.u32 %v20551_v46, 16 }
 0x4e8   : > { %v10246_v35 = vshrl.u32 %v10127_v38, 16  ;;  %v10249_v59 = vshll.u32 %v10127_v38, 16  ;;  %v10255_v21 = vshrl.u32 %v20927_v23, 16  ;;  %v10258_v4 = vshll.u32 %v20927_v23, 16 }
 0x4e9   : > { %v10240_v8 = vrot.slane %v23718_v52, 5  ;;  %v10241_v44 = vrot.slane %v23719_v53, 6  ;;  %v23720_v31 = vshrl.u32 %v20588_v6, 16  ;;  %v23721_v10 = vshll.u32 %v20588_v6, 16 }
 0x4ea   : > { %v10269_v61 = vshrl.u32 %v10128_v41, 16  ;;  %v10272_v26 = vshll.u32 %v10128_v41, 16  ;;  %v10278_v25 = vshrl.u32 %v20948_v28, 16  ;;  %v10281_v46 = vshll.u32 %v20948_v28, 16 }
 0x4eb   : > { %v10263_v12 = vrot.slane %v23720_v31, 5  ;;  %v10264_v57 = vrot.slane %v23721_v10, 6  ;;  %v23722_v15 = vshrl.u32 %v20590_v51, 16  ;;  %v23723_v40 = vshll.u32 %v20590_v51, 16 }
 0x4ec   : > { %14755 = vmatmul.mubr.msk.bf16.gmra.mrb[28].mxu1 %vm7533_vm10, %v23716_v20  ;;  %v10292_v23 = vshrl.u32 %v10129_v63, 16  ;;  %v10295_v17 = vshll.u32 %v10129_v63, 16  ;;  %v10301_v11 = vshrl.u32 %v20962_v48, 16  ;;  %v10304_v39 = vshll.u32 %v20962_v48, 16 }
 0x4ed   : > { %14758 = vmatprep.mubr.msk.bf16.mxu1 %vm7533_vm10, %v23717_v3  ;;  %v10286_v7 = vrot.slane %v23722_v15, 5  ;;  %v10287_v47 = vrot.slane %v23723_v40, 6  ;;  %v10237_v6 = vrot.slane %v10235_v30, 6  ;;  %v21289_v55 = vor.u32 %v10241_v44, %v10240_v8 }
 0x4ee   : > { %v10248_v43 = vrot.slane %v10246_v35, 5  ;;  %v10251_v60 = vrot.slane %v10249_v59, 6  ;;  %v10257_v2 = vrot.slane %v10255_v21, 5  ;;  %v10260_v34 = vrot.slane %v10258_v4, 6 }
 0x4ef   : > { %v21291_v28 = vor.u32 %v10264_v57, %v10263_v12  ;;  %v10271_v16 = vrot.slane %v10269_v61, 5  ;;  %v23724_v51 = vcombine.low %v21043_v32, %v21047_v49  ;;  %v10274_v1 = vrot.slane %v10272_v26, 6 }
 0x4f0   : > { %v10280_v37 = vrot.slane %v10278_v25, 5  ;;  %v10283_v38 = vrot.slane %v10281_v46, 6  ;;  %v10288_v48 = vor.u32 %v10287_v47, %v10286_v7  ;;  %v23725_v20 = vcombine.low %v21072_v56, %v21076_v42 }
 0x4f1   : > { %v10294_v30 = vrot.slane %v10292_v23, 5  ;;  %v10297_v41 = vrot.slane %v10295_v17, 6  ;;  %v10303_v3 = vrot.slane %v10301_v11, 5  ;;  %v10306_v52 = vrot.slane %v10304_v39, 6 }
 0x4f2   : > { %v23726_v8 = vshrl.u32 %v20627_v5, 16  ;;  %v23727_v32 = vshll.u32 %v20627_v5, 16  ;;  %v10315_v44 = vshrl.u32 %v10130_v22, 16  ;;  %v10318_v35 = vshll.u32 %v10130_v22, 16 }
 0x4f3   : > { %v10229_v59 = vor.u32 %v21259_v36, %v21251_v19  ;;  %v10238_v21 = vor.u32 %v10237_v6, %v21261_v0  ;;  %v10324_v42 = vshrl.u32 %v20988_v54, 16  ;;  %v10327_v56 = vshll.u32 %v20988_v54, 16  ;;  %v10131_v0 = vld [vmem:[#allocation3 + $0x74] sm:$0x3] }
 0x4f4   : > { %14759 = vmatmul.mubr.msk.bf16.gmra.mrb[0].mxu1 %vm7533_vm10, %v23724_v51  ;;  %v10309_v53 = vrot.slane %v23726_v8, 5  ;;  %v10310_v49 = vrot.slane %v23727_v32, 6  ;;  %v10244_v4 = vrot.slane %v21289_v55, 4  ;;  %v10252_v63 = vor.u32 %v10251_v60, %v10248_v43  ;;  %v23731_v43 = vld [vmem:[#allocation17_spill] sm:$0xff] }
 0x4f5   : > { %14762 = vmatprep.mubr.msk.bf16.mxu1 %vm7533_vm10, %v23725_v20  ;;  %v10261_v31 = vor.u32 %v10260_v34, %v10257_v2  ;;  %v10284_v12 = vor.u32 %v10283_v38, %v10280_v37  ;;  %v10267_v10 = vrot.slane %v21291_v28, 4  ;;  %v10275_v5 = vor.u32 %v10274_v1, %v10271_v16  ;;  %v23734_v32 = vld [vmem:[#allocation29_spill] sm:$0xff] }
 0x4f6   : > { %v10290_v57 = vrot.slane %v10288_v48, 4  ;;  %v10298_v61 = vor.u32 %v10297_v41, %v10294_v30  ;;  %v10307_v26 = vor.u32 %v10306_v52, %v10303_v3  ;;  %v21312_v25 = vor.u32 %v10310_v49, %v10309_v53  ;;  %v10132_v53 = vld [vmem:[#allocation3 + $0x80] sm:$0x3] }
 0x4f7   : > { %v10317_v19 = vrot.slane %v10315_v44, 5  ;;  %v10320_v36 = vrot.slane %v10318_v35, 6  ;;  %v10326_v46 = vrot.slane %v10324_v42, 5  ;;  %v10329_v15 = vrot.slane %v10327_v56, 6  ;;  %v10133_v56 = vld [vmem:[#allocation3 + $0x8c] sm:$0x3] }
 0x4f8   : > { %v23728_v54 = vshrl.u32 %v20631_v50, 16  ;;  %v23729_v40 = vshll.u32 %v20631_v50, 16  ;;  %v23730_v23 = vcombine.low %v21092_v18, %v21100_v33  ;;  %v10220_v17 = vsel %vm16922_vm5, %v21257_v62, %v21233_v14 }
 0x4f9   : > { %v10239_v11 = vrot.slane %v10238_v21, 4  ;;  %v10262_v39 = vrot.slane %v10261_v31, 4  ;;  %v10285_v6 = vrot.slane %v10284_v12, 4  ;;  %v23732_v60 = vcombine.low %v21109_v58, %v23731_v43 }
 0x4fa   : > { %v10332_v7 = vrot.slane %v23728_v54, 5  ;;  %v10333_v47 = vrot.slane %v23729_v40, 6  ;;  %v10230_v50 = vsel %vm16922_vm5, %v10221_v45, %v10229_v59  ;;  %v10253_v18 = vsel %vm16922_vm5, %v10244_v4, %v10252_v63  ;;  %v23733_v45 = vld [vmem:[#allocation14_spill] sm:$0xff]  ;;  %v23737_v63 = vld [vmem:[#allocation13_spill] sm:$0xff] }
 0x4fb   : > { %v10276_v33 = vsel %vm16922_vm5, %v10267_v10, %v10275_v5  ;;  %v10299_v62 = vsel %vm16922_vm5, %v10290_v57, %v10298_v61  ;;  %v21340_v2 = vrot.slane %v10307_v26, 4  ;;  %v10313_v58 = vrot.slane %v21312_v25, 4  ;;  %v23736_v4 = vld [vmem:[#allocation22_spill] sm:$0xff]  ;;  %v10134_v26 = vld [vmem:[#allocation3 + $0x98] sm:$0x3] }
 0x4fc   : > { %14763 = vmatmul.mubr.msk.bf16.gmra.mrb[4].mxu1 %vm7533_vm10, %v23730_v23  ;;  %v10321_v34 = vor.u32 %v10320_v36, %v10317_v19  ;;  %v10338_v16 = vshrl.u32 %v10131_v0, 16  ;;  %v10330_v22 = vor.u32 %v10329_v15, %v10326_v46  ;;  %v21343_v14 = vor.u32 %v10333_v47, %v10332_v7  ;;  %v23740_v19 = vld [vmem:[#allocation18_spill] sm:$0xff]  ;;  %v23744_v7 = vld [vmem:[#allocation39_spill] sm:$0xff] }
 0x4fd   : > { %14766 = vmatprep.mubr.msk.bf16.mxu1 %vm7533_vm10, %v23732_v60  ;;  %v10341_v51 = vshll.u32 %v10131_v0, 16  ;;  %v10347_v1 = vshrl.u32 %v23733_v45, 16  ;;  %v10243_v37 = vsel %vm16922_vm5, %v10239_v11, %v21289_v55  ;;  %v10266_v38 = vsel %vm16922_vm5, %v10262_v39, %v21291_v28  ;;  %v23741_v36 = vld [vmem:[#allocation34_spill] sm:$0xff] }
 0x4fe   : > { %v10289_v20 = vsel %vm16922_vm5, %v10285_v6, %v10288_v48  ;;  %v10350_v30 = vshll.u32 %v23733_v45, 16  ;;  %v21355_v41 = vcombine.low %v10220_v17, %v10230_v50  ;;  %v21357_v3 = vcombine.low %v10243_v37, %v10253_v18  ;;  %v23743_v46 = vld [vmem:[#allocation26_spill] sm:$0xff]  ;;  %v23747_v6 = vld [vmem:[#allocation27_spill] sm:$0xff]  ;;  %v23748_v50 = vld [vmem:[#allocation20_spill] sm:$0xff] }
 0x4ff   : > { %v21359_v52 = vcombine.low %v10266_v38, %v10276_v33  ;;  %v21361_v8 = vcombine.low %v10289_v20, %v10299_v62  ;;  %v10312_v55 = vsel %vm16922_vm5, %v21340_v2, %v21312_v25  ;;  %v21369_v28 = vsel %vm16922_vm5, %v10313_v58, %v10321_v34  ;;  %v23751_v45 = vld [vmem:[#allocation12_spill] sm:$0xff] }
 0x500   : > { %v10340_v48 = vrot.slane %v10338_v16, 5  ;;  %v23735_v49 = vshrl.u32 %v23734_v32, 16  ;;  %v21373_v35 = vrot.slane %v10330_v22, 4  ;;  %v10336_v59 = vrot.slane %v21343_v14, 4 }
 0x501   : > { %v10343_v21 = vrot.slane %v10341_v51, 6  ;;  %v21376_v42 = vrot.slane %v10347_v1, 5  ;;  %v23738_v31 = vcombine.low %v23736_v4, %v23737_v63  ;;  %v10352_v12 = vrot.slane %v10350_v30, 6  ;;  %v10135_v63 = vld [vmem:[#allocation3 + $0xa4] sm:$0x3] }
 0x502   : > { %v10355_v44 = vrot.slane %v23735_v49, 5  ;;  %v23739_v10 = vshll.u32 %v23734_v32, 16  ;;  %v10361_v57 = vshrl.u32 %v10132_v53, 16  ;;  %v10364_v61 = vshll.u32 %v10132_v53, 16 }
 0x503   : > { %v23742_v0 = vcombine.low %v23740_v19, %v23741_v36  ;;  %v10370_v15 = vshrl.u32 %v23743_v46, 16  ;;  %v10373_v54 = vshll.u32 %v23743_v46, 16  ;;  %v23745_v40 = vshrl.u32 %v23744_v7, 16 }
 0x504   : > { %14767 = vmatmul.mubr.msk.bf16.gmra.mrb[8].mxu1 %vm7533_vm10, %v23738_v31  ;;  %v10356_v5 = vrot.slane %v23739_v10, 6  ;;  %v23746_v23 = vshll.u32 %v23744_v7, 16  ;;  %v10384_v11 = vshrl.u32 %v10133_v56, 16  ;;  %v10387_v39 = vshll.u32 %v10133_v56, 16 }
 0x505   : > { %14770 = vmatprep.mubr.msk.bf16.mxu1 %vm7533_vm10, %v23742_v0  ;;  %v10378_v47 = vrot.slane %v23745_v40, 5  ;;  %v10393_v43 = vshrl.u32 %v23747_v6, 16  ;;  %v10396_v60 = vshll.u32 %v23747_v6, 16  ;;  %v23749_v18 = vshrl.u32 %v23748_v50, 16 }
 0x506   : > { %v10379_v17 = vrot.slane %v23746_v23, 6  ;;  %v23750_v62 = vshll.u32 %v23748_v50, 16  ;;  %v10407_v34 = vshrl.u32 %v10134_v26, 16  ;;  %v10410_v16 = vshll.u32 %v10134_v26, 16 }
 0x507   : > { %v10401_v33 = vrot.slane %v23749_v18, 5  ;;  %v10344_v22 = vor.u32 %v10343_v21, %v10340_v48  ;;  %v21400_v51 = vor.u32 %v10356_v5, %v10355_v44  ;;  %v10416_v1 = vshrl.u32 %v23751_v45, 16  ;;  %v23752_v44 = vld [vmem:[#allocation42_spill] sm:$0xff]  ;;  %v23753_v21 = vld [vmem:[#allocation45_spill] sm:$0xff] }
 0x508   : > { %v10402_v58 = vrot.slane %v23750_v62, 6  ;;  %v10419_v37 = vshll.u32 %v23751_v45, 16  ;;  %v10363_v38 = vrot.slane %v10361_v57, 5  ;;  %v10366_v20 = vrot.slane %v10364_v61, 6  ;;  %v23755_v61 = vld [vmem:[#allocation30_spill] sm:$0xff] }
 0x509   : > { %v10372_v30 = vrot.slane %v10370_v15, 5  ;;  %v10375_v53 = vrot.slane %v10373_v54, 6  ;;  %v21404_v32 = vor.u32 %v10379_v17, %v10378_v47  ;;  %v10386_v49 = vrot.slane %v10384_v11, 5 }
 0x50a   : > { %v10395_v56 = vrot.slane %v10393_v43, 5  ;;  %v10398_v4 = vrot.slane %v10396_v60, 6  ;;  %v10389_v31 = vrot.slane %v10387_v39, 6  ;;  %v10403_v10 = vor.u32 %v10402_v58, %v10401_v33 }
 0x50b   : > { %v10409_v26 = vrot.slane %v10407_v34, 5  ;;  %v10412_v48 = vrot.slane %v10410_v16, 6  ;;  %v23754_v5 = vcombine.low %v23752_v44, %v23753_v21  ;;  %v10418_v19 = vrot.slane %v10416_v1, 5 }
 0x50c   : > { %v10421_v57 = vrot.slane %v10419_v37, 6  ;;  %v23756_v36 = vshrl.u32 %v23755_v61, 16  ;;  %v23757_v46 = vshll.u32 %v23755_v61, 16  ;;  %v10345_v54 = vsel %vm16922_vm5, %v10336_v59, %v10344_v22  ;;  %v10136_v37 = vld [vmem:[#allocation3 + $0xb0] sm:$0x3] }
 0x50d   : > { %14771 = vmatmul.mubr.msk.bf16.gmra.mrb[12].mxu1 %vm7533_vm10, %v23754_v5  ;;  %v10353_v7 = vor.u32 %v10352_v12, %v21376_v42  ;;  %v10430_v40 = vshrl.u32 %v10135_v63, 16  ;;  %v10433_v47 = vshll.u32 %v10135_v63, 16  ;;  %v10359_v23 = vrot.slane %v21400_v51, 4 }
 0x50e   : > { %v10424_v0 = vrot.slane %v23756_v36, 5  ;;  %v10425_v15 = vrot.slane %v23757_v46, 6  ;;  %14776 = vmatprep.mubr.msk.bf16.mxu1 %vm7533_vm10, %v21245_v13  ;;  %v10367_v17 = vor.u32 %v10366_v20, %v10363_v38  ;;  %v10376_v11 = vor.u32 %v10375_v53, %v10372_v30  ;;  %v23758_v13 = vld [vmem:[#allocation37_spill] sm:$0xff]  ;;  %v21489_v46 = vld [vmem:[#allocation3 + $0x1c] sm:$0xf] }
 0x50f   : > { %v10399_v39 = vor.u32 %v10398_v4, %v10395_v56  ;;  %v10382_v6 = vrot.slane %v21404_v32, 4  ;;  %v10390_v43 = vor.u32 %v10389_v31, %v10386_v49  ;;  %v10405_v60 = vrot.slane %v10403_v10, 4 }
 0x510   : > { %v10413_v50 = vor.u32 %v10412_v48, %v10409_v26  ;;  %v10422_v18 = vor.u32 %v10421_v57, %v10418_v19  ;;  %v21421_v33 = vor.u32 %v10425_v15, %v10424_v0  ;;  %v10439_v62 = vshrl.u32 %v23758_v13, 16  ;;  %v23762_v26 = vld [vmem:[#allocation25_spill] sm:$0xff]  ;;  %v10137_v57 = vld [vmem:[#allocation3 + $0xbc] sm:$0x3] }
 0x511   : > { %v10442_v59 = vshll.u32 %v23758_v13, 16  ;;  %v21431_v42 = vcombine.low %v10312_v55, %v21369_v28  ;;  %v10335_v12 = vsel %vm16922_vm5, %v21373_v35, %v21343_v14  ;;  %v10432_v58 = vrot.slane %v10430_v40, 5  ;;  %v23759_v55 = vld [vmem:[#allocation24_spill] sm:$0xff]  ;;  %v21450_v35 = vld [vmem:[%s22690_s3 + $0x1c] sm:$0xf] }
 0x512   : > { %v10435_v34 = vrot.slane %v10433_v47, 6  ;;  %v21437_v16 = vcombine.low %v10335_v12, %v10345_v54  ;;  %v10354_v22 = vrot.slane %v10353_v7, 4  ;;  %v10377_v45 = vrot.slane %v10376_v11, 4  ;;  %v10138_v47 = vld [vmem:[#allocation3 + $0xc8] sm:$0x3] }
 0x513   : > { %v10400_v1 = vrot.slane %v10399_v39, 4  ;;  %v10368_v38 = vsel %vm16922_vm5, %v10359_v23, %v10367_v17  ;;  %v10391_v25 = vsel %vm16922_vm5, %v10382_v6, %v10390_v43  ;;  %v10414_v2 = vsel %vm16922_vm5, %v10405_v60, %v10413_v50  ;;  %v23764_v17 = vld [vmem:[#allocation23_spill] sm:$0xff]  ;;  %v10802_v50 = vld [vmem:[#allocation3 + $0x18] sm:$0xf] }
 0x514   : > { %v23760_v28 = vshrl.u32 %v23759_v55, 16  ;;  %v10423_v20 = vrot.slane %v10422_v18, 4  ;;  %v10428_v30 = vrot.slane %v21421_v33, 4  ;;  %v21455_v53 = vrot.slane %v10439_v62, 5 }
 0x515   : > { %14777 = vmatmul.mubr.msk.bf16.vlgmr.msra.gmra.mrb[16].mxu1 %vm7533_vm10, %v21247_v29  ;;  %v21457_v49 = vrot.slane %v10442_v59, 6  ;;  %v10436_v56 = vor.u32 %v10435_v34, %v10432_v58  ;;  %v23761_v4 = vshll.u32 %v23759_v55, 16  ;;  %v10453_v31 = vshrl.u32 %v10136_v37, 16  ;;  %v10805_v59 = vld [vmem:[#allocation3 + $0x24] sm:$0xf]  ;;  %v23767_v58 = vld [vmem:[#allocation36_spill] sm:$0xff] }
 0x516   : > { %v10447_v14 = vrot.slane %v23760_v28, 5  ;;  %14809 = vmatpush3.bf16.msra.mxu1 %v21241_v27  ;;  %14780 = vmatprep.mubr.msk.bf16.mxu1 %vm7533_vm10, %v21268_v9  ;;  %v10462_v48 = vshrl.u32 %v23762_v26, 16  ;;  %v10358_v29 = vsel %vm16922_vm5, %v10354_v22, %v21400_v51  ;;  %v10381_v44 = vsel %vm16922_vm5, %v10377_v45, %v21404_v32  ;;  %v23763_v51 = vld [vmem:[#allocation31_spill] sm:$0xff] }
 0x517   : > { %v10448_v63 = vrot.slane %v23761_v4, 6  ;;  %v10404_v27 = vsel %vm16922_vm5, %v10400_v1, %v10403_v10  ;;  %v10465_v9 = vshll.u32 %v23762_v26, 16  ;;  %15603 = vmatprep.subr.msk.bf16.mxu1 %vm7582_vm9, %v21450_v35  ;;  %v21476_v21 = vcombine.low %v10358_v29, %v10368_v38 }
 0x518   : > { %v21478_v5 = vcombine.low %v10381_v44, %v10391_v25  ;;  %v21480_v19 = vcombine.low %v10404_v27, %v10414_v2  ;;  %v10485_v61 = vshrl.u32 %v23763_v51, 16  ;;  %v10427_v32 = vsel %vm16922_vm5, %v10423_v20, %v21421_v33  ;;  %v21513_v20 = vld [vmem:[#allocation3 + $0x28] sm:$0xf] }
 0x519   : > { %v10445_v10 = vor.u32 %v21457_v49, %v21455_v53  ;;  %v10456_v36 = vshll.u32 %v10136_v37, 16  ;;  %v10488_v0 = vshll.u32 %v23763_v51, 16  ;;  %v10437_v15 = vsel %vm16922_vm5, %v10428_v30, %v10436_v56  ;;  %23770 = vst [vmem:[#allocation38_spill] sm:$0xff] %v21513_v20 }
 0x51a   : > { %v21493_v54 = vor.u32 %v10448_v63, %v10447_v14  ;;  %v21495_v7 = vrot.slane %v10453_v31, 5  ;;  %v10464_v40 = vrot.slane %v10462_v48, 5  ;;  %v10467_v23 = vrot.slane %v10465_v9, 6 }
 0x51b   : > { %v23765_v11 = vshrl.u32 %v23764_v17, 16  ;;  %v23766_v6 = vshll.u32 %v23764_v17, 16  ;;  %v10476_v60 = vshrl.u32 %v10137_v57, 16  ;;  %v10479_v18 = vshll.u32 %v10137_v57, 16  ;;  %v21524_v57 = vld [vmem:[#allocation3 + $0x20] sm:$0x1] }
 0x51c   : > { %v10487_v33 = vrot.slane %v10485_v61, 5  ;;  %v23094_v13 = vshll.u32 %v21489_v46, 16  ;;  %v23101_v62 = vshrl.u32 %v21489_v46, 16  ;;  %v10490_v12 = vrot.slane %v10488_v0, 6 }
 0x51d   : > { %v10470_v39 = vrot.slane %v23765_v11, 5  ;;  %v10471_v43 = vrot.slane %v23766_v6, 6  ;;  %14781 = vmatmul.mubr.msk.bf16.gmra.mrb[20].mxu1 %vm7533_vm10, %v21355_v41  ;;  %v23768_v34 = vshrl.u32 %v23767_v58, 16  ;;  %v23769_v45 = vshll.u32 %v23767_v58, 16 }
 0x51e   : > { %v10499_v37 = vshrl.u32 %v10138_v47, 16  ;;  %14784 = vmatprep.mubr.msk.bf16.mxu1 %vm7533_vm10, %v21357_v3  ;;  %v10458_v38 = vrot.slane %v10456_v36, 6  ;;  %v10502_v25 = vshll.u32 %v10138_v47, 16  ;;  %v10851_v2 = vshrl.u32 %v10802_v50, 16  ;;  %v10808_v47 = vld [vmem:[#allocation3 + $0x30] sm:$0xf] }
 0x51f   : > { %v10493_v22 = vrot.slane %v23768_v34, 5  ;;  %v10494_v1 = vrot.slane %v23769_v45, 6  ;;  %v10854_v55 = vshll.u32 %v10802_v50, 16  ;;  %v21511_v28 = vcombine.low %v10427_v32, %v10437_v15  ;;  %v21542_v50 = vld [vmem:[#allocation3 + $0x2c] sm:$0x1] }
 0x520   : > { %v10468_v14 = vor.u32 %v10467_v23, %v10464_v40  ;;  %v10875_v41 = vshrl.u32 %v10805_v59, 16  ;;  %v10878_v30 = vshll.u32 %v10805_v59, 16  ;;  %v21515_v53 = vor.u32 %v10471_v43, %v10470_v39  ;;  %v21533_v39 = vld [vmem:[#allocation3 + $0x34] sm:$0xf]  ;;  %23772 = vst [vmem:[#allocation17_spill] sm:$0xff] %v21542_v50 }
 0x521   : > { %v10478_v49 = vrot.slane %v10476_v60, 5  ;;  %v21519_v56 = vrot.slane %v23094_v13, 5  ;;  %v10866_v3 = vrot.slane %v23101_v62, 4  ;;  %v10481_v4 = vrot.slane %v10479_v18, 6  ;;  %23771 = vst [vmem:[#allocation28_spill] sm:$0xff] %v21533_v39 }
 0x522   : > { %v10491_v63 = vor.u32 %v10490_v12, %v10487_v33  ;;  %v10495_v31 = vor.u32 %v10494_v1, %v10493_v22  ;;  %v10501_v26 = vrot.slane %v10499_v37, 5  ;;  %v10504_v48 = vrot.slane %v10502_v25, 6 }
 0x523   : > { %v10853_v29 = vrot.slane %v10851_v2, 4  ;;  %v10856_v44 = vrot.slane %v10854_v55, 5  ;;  %v23092_v27 = vshll.u32 %v21513_v20, 16  ;;  %v10446_v9 = vrot.slane %v10445_v10, 4 }
 0x524   : > { %v10877_v51 = vrot.slane %v10875_v41, 4  ;;  %v10880_v61 = vrot.slane %v10878_v30, 5  ;;  %v23093_v32 = vshrl.u32 %v21513_v20, 16  ;;  %v10451_v36 = vrot.slane %v21493_v54, 4  ;;  %v21568_v30 = vld [vmem:[#allocation3 + $0x38] sm:$0x1] }
 0x525   : > { %v10459_v0 = vor.u32 %v10458_v38, %v21495_v7  ;;  %v10469_v15 = vrot.slane %v10468_v14, 4  ;;  %v10867_v40 = vor.u32 %v10866_v3, %v21519_v56  ;;  %14785 = vmatmul.mubr.msk.bf16.gmra.mrb[24].mxu1 %vm7533_vm10, %v21359_v52  ;;  %v10474_v23 = vrot.slane %v21515_v53, 4  ;;  %v21560_v38 = vld [vmem:[#allocation3 + $0x40] sm:$0xf] }
 0x526   : > { %v10482_v10 = vor.u32 %v10481_v4, %v10478_v49  ;;  %v10492_v17 = vrot.slane %v10491_v63, 4  ;;  %v10497_v11 = vrot.slane %v10495_v31, 4  ;;  %14788 = vmatprep.mubr.msk.bf16.mxu1 %vm7533_vm10, %v21361_v8  ;;  %v10505_v6 = vor.u32 %v10504_v48, %v10501_v26  ;;  %23773 = vst [vmem:[#allocation14_spill] sm:$0xff] %v21560_v38 }
 0x527   : > { %v10857_v43 = vor.u32 %v10856_v44, %v10853_v29  ;;  %v10870_v7 = vshll.u32 %v21524_v57, 16  ;;  %v21540_v60 = vrot.slane %v23092_v27, 5  ;;  %v10881_v52 = vor.u32 %v10880_v61, %v10877_v51  ;;  %v10814_v61 = vld [vmem:[#allocation3 + $0x48] sm:$0xf]  ;;  %v21758_v27 = vld [vmem:[#allocation3 + $0xa0] sm:$0xf] }
 0x528   : > { %v10890_v18 = vrot.slane %v23093_v32, 4  ;;  %v10899_v33 = vshrl.u32 %v10808_v47, 16  ;;  %v10902_v59 = vshll.u32 %v10808_v47, 16  ;;  %v10450_v8 = vsel %vm16922_vm5, %v10446_v9, %v21493_v54  ;;  %v10811_v9 = vld [vmem:[#allocation3 + $0x3c] sm:$0xf]  ;;  %23782 = vst [vmem:[#allocation27_spill] sm:$0xff] %v21758_v27 }
 0x529   : > { %v10868_v12 = vrot.slane %v10867_v40, 4  ;;  %v23090_v58 = vshll.u32 %v21533_v39, 16  ;;  %v23091_v34 = vshrl.u32 %v21533_v39, 16  ;;  %v10460_v22 = vsel %vm16922_vm5, %v10451_v36, %v10459_v0  ;;  %v21598_v40 = vld [vmem:[#allocation3 + $0x4c] sm:$0xf] }
 0x52a   : > { %v10473_v45 = vsel %vm16922_vm5, %v10469_v15, %v21515_v53  ;;  %v10483_v1 = vsel %vm16922_vm5, %v10474_v23, %v10482_v10  ;;  %v10496_v37 = vsel %vm16922_vm5, %v10492_v17, %v10495_v31  ;;  %v10506_v54 = vsel %vm16922_vm5, %v10497_v11, %v10505_v6  ;;  %23775 = vst [vmem:[#allocation29_spill] sm:$0xff] %v21598_v40  ;;  %v10817_v17 = vld [vmem:[#allocation3 + $0x54] sm:$0xf] }
 0x52b   : > { %v10858_v25 = vrot.slane %v10857_v43, 4  ;;  %v10872_v2 = vrot.slane %v10870_v7, 5  ;;  %v10894_v55 = vshll.u32 %v21542_v50, 16  ;;  %v21565_v14 = vrot.slane %v10881_v52, 4  ;;  %v10820_v7 = vld [vmem:[#allocation3 + $0x60] sm:$0xf] }
 0x52c   : > { %v10891_v41 = vor.u32 %v10890_v18, %v21540_v60  ;;  %v10901_v53 = vrot.slane %v10899_v33, 4  ;;  %v10904_v49 = vrot.slane %v10902_v59, 5  ;;  %v21574_v63 = vrot.slane %v23090_v58, 5  ;;  %v21613_v52 = vld [vmem:[#allocation3 + $0x44] sm:$0x1] }
 0x52d   : > { %v10873_v4 = vsel %vm16091_vm7, %v10868_v12, %v10872_v2  ;;  %v10914_v31 = vrot.slane %v23091_v34, 4  ;;  %v23084_v26 = vshll.u32 %v21560_v38, 16  ;;  %14789 = vmatmul.mubr.msk.bf16.gmra.mrb[28].mxu1 %vm7533_vm10, %v21431_v42  ;;  %v21581_v48 = vcombine.low %v10450_v8, %v10460_v22 }
 0x52e   : > { %v21583_v29 = vcombine.low %v10473_v45, %v10483_v1  ;;  %v21585_v44 = vcombine.low %v10496_v37, %v10506_v54  ;;  %v23089_v51 = vshrl.u32 %v21560_v38, 16  ;;  %14792 = vmatprep.mubr.msk.bf16.mxu1 %vm7533_vm10, %v21437_v16  ;;  %v10863_v36 = vsel %vm16091_vm7, %v10858_v25, %v21519_v56  ;;  %v21606_v56 = vld [vmem:[#allocation3 + $0x58] sm:$0xf] }
 0x52f   : > { %v10896_v0 = vrot.slane %v10894_v55, 5  ;;  %v21595_v42 = vsel %vm7582_vm9, %v21450_v35, 0  ;;  %v10918_v15 = vshll.u32 %v21568_v30, 16  ;;  %v21600_v47 = vcombine.low %v10863_v36, %v10873_v4  ;;  %23776 = vst [vmem:[#allocation22_spill] sm:$0xff] %v21606_v56 }
 0x530   : > { %v10887_v16 = vsel %vm16091_vm7, %v21565_v14, %v21540_v60  ;;  %v10892_v23 = vrot.slane %v10891_v41, 4  ;;  %v10905_v10 = vor.u32 %v10904_v49, %v10901_v53  ;;  %v10915_v11 = vor.u32 %v10914_v31, %v21574_v63  ;;  %v21626_v53 = vld [vmem:[#allocation3 + $0x64] sm:$0xf] }
 0x531   : > { %v10923_v35 = vshrl.u32 %v10811_v9, 16  ;;  %v10926_v6 = vshll.u32 %v10811_v9, 16  ;;  %v21611_v43 = vrot.slane %v23084_v26, 5  ;;  %v10938_v18 = vrot.slane %v23089_v51, 4  ;;  %23777 = vst [vmem:[#allocation13_spill] sm:$0xff] %v21626_v53 }
 0x532   : > { %v10947_v60 = vshrl.u32 %v10814_v61, 16  ;;  %v10950_v33 = vshll.u32 %v10814_v61, 16  ;;  %v23082_v59 = vshll.u32 %v21598_v40, 16  ;;  %v23083_v8 = vshrl.u32 %v21598_v40, 16  ;;  %v21637_v61 = vld [vmem:[#allocation3 + $0x50] sm:$0x1] }
 0x533   : > { %v10971_v12 = vshrl.u32 %v10817_v17, 16  ;;  %v10974_v22 = vshll.u32 %v10817_v17, 16  ;;  %v23080_v45 = vshll.u32 %v21606_v56, 16  ;;  %v10897_v1 = vsel %vm16091_vm7, %v10892_v23, %v10896_v0  ;;  %v10835_v51 = vld [vmem:[#allocation3 + $0x9c] sm:$0xf] }
 0x534   : > { %v23081_v37 = vshrl.u32 %v21606_v56, 16  ;;  %v10995_v54 = vshrl.u32 %v10820_v7, 16  ;;  %v10998_v25 = vshll.u32 %v10820_v7, 16  ;;  %v21623_v2 = vrot.slane %v10905_v10, 4 }
 0x535   : > { %v10925_v55 = vrot.slane %v10923_v35, 4  ;;  %v10928_v14 = vrot.slane %v10926_v6, 5  ;;  %v10942_v41 = vshll.u32 %v21613_v52, 16  ;;  %14793 = vmatmul.mubr.msk.bf16.gmra.mrb[0].mxu1 %vm7533_vm10, %v21476_v21  ;;  %v10939_v49 = vor.u32 %v10938_v18, %v21611_v43 }
 0x536   : > { %v10949_v4 = vrot.slane %v10947_v60, 4  ;;  %v10952_v31 = vrot.slane %v10950_v33, 5  ;;  %v21633_v9 = vrot.slane %v23082_v59, 5  ;;  %14796 = vmatprep.mubr.msk.bf16.mxu1 %vm7533_vm10, %v21478_v5  ;;  %v10962_v36 = vrot.slane %v23083_v8, 4  ;;  %v10823_v33 = vld [vmem:[#allocation3 + $0x6c] sm:$0xf] }
 0x537   : > { %v10973_v0 = vrot.slane %v10971_v12, 4  ;;  %v10976_v23 = vrot.slane %v10974_v22, 5  ;;  %v21643_v21 = vrot.slane %v23080_v45, 5  ;;  %v10986_v10 = vrot.slane %v23081_v37, 4 }
 0x538   : > { %v10997_v17 = vrot.slane %v10995_v54, 4  ;;  %v11000_v35 = vrot.slane %v10998_v25, 5  ;;  %v23085_v6 = vshll.u32 %v21626_v53, 16  ;;  %v21648_v7 = vcombine.low %v10887_v16, %v10897_v1  ;;  %v21656_v54 = vld [vmem:[#allocation3 + $0x70] sm:$0xf] }
 0x539   : > { %v10916_v5 = vrot.slane %v10915_v11, 4  ;;  %v10920_v18 = vrot.slane %v10918_v15, 5  ;;  %v23088_v60 = vshrl.u32 %v21626_v53, 16  ;;  %v10911_v12 = vsel %vm16091_vm7, %v21623_v2, %v21574_v63  ;;  %23778 = vst [vmem:[#allocation18_spill] sm:$0xff] %v21656_v54  ;;  %v21659_v11 = vld [vmem:[#allocation3 + $0x5c] sm:$0x1] }
 0x53a   : > { %v10929_v22 = vor.u32 %v10928_v14, %v10925_v55  ;;  %v10944_v45 = vrot.slane %v10942_v41, 5  ;;  %v10966_v37 = vshll.u32 %v21637_v61, 16  ;;  %v10940_v25 = vrot.slane %v10939_v49, 4  ;;  %v21666_v2 = vld [vmem:[#allocation3 + $0x68] sm:$0x1] }
 0x53b   : > { %v10953_v59 = vor.u32 %v10952_v31, %v10949_v4  ;;  %v10963_v16 = vor.u32 %v10962_v36, %v21633_v9  ;;  %v10977_v15 = vor.u32 %v10976_v23, %v10973_v0  ;;  %v10987_v1 = vor.u32 %v10986_v10, %v21643_v21 }
 0x53c   : > { %v11001_v8 = vor.u32 %v11000_v35, %v10997_v17  ;;  %v21664_v26 = vrot.slane %v23085_v6, 5  ;;  %v11019_v63 = vshrl.u32 %v10823_v33, 16  ;;  %v11010_v55 = vrot.slane %v23088_v60, 4 }
 0x53d   : > { %v11022_v14 = vshll.u32 %v10823_v33, 16  ;;  %v23086_v41 = vshll.u32 %v21656_v54, 16  ;;  %v23087_v49 = vshrl.u32 %v21656_v54, 16  ;;  %14797 = vmatmul.mubr.msk.bf16.gmra.mrb[4].mxu1 %vm7533_vm10, %v21480_v19  ;;  %v10921_v4 = vsel %vm16091_vm7, %v10916_v5, %v10920_v18  ;;  %v10826_v19 = vld [vmem:[#allocation3 + $0x78] sm:$0xf] }
 0x53e   : > { %v10930_v31 = vrot.slane %v10929_v22, 4  ;;  %v21676_v36 = vrot.slane %v10966_v37, 5  ;;  %v10990_v0 = vshll.u32 %v21659_v11, 16  ;;  %14800 = vmatprep.mubr.msk.bf16.mxu1 %vm7533_vm10, %v21511_v28  ;;  %v10945_v23 = vsel %vm16091_vm7, %v10940_v25, %v10944_v45  ;;  %v21695_v28 = vld [vmem:[#allocation3 + $0x74] sm:$0x1] }
 0x53f   : > { %v21683_v10 = vrot.slane %v10953_v59, 4  ;;  %v21685_v17 = vrot.slane %v10963_v16, 4  ;;  %v21687_v35 = vrot.slane %v10977_v15, 4  ;;  %v21689_v33 = vrot.slane %v10987_v1, 4 }
 0x540   : > { %v21691_v5 = vrot.slane %v11001_v8, 4  ;;  %v11014_v37 = vshll.u32 %v21666_v2, 16  ;;  %v11021_v18 = vrot.slane %v11019_v63, 4  ;;  %v11011_v22 = vor.u32 %v11010_v55, %v21664_v26 }
 0x541   : > { %v11024_v6 = vrot.slane %v11022_v14, 5  ;;  %v21699_v59 = vrot.slane %v23086_v41, 5  ;;  %v11034_v45 = vrot.slane %v23087_v49, 4  ;;  %v10935_v8 = vsel %vm16091_vm7, %v10930_v31, %v21611_v43  ;;  %v21718_v41 = vld [vmem:[#allocation3 + $0x7c] sm:$0xf] }
 0x542   : > { %v10992_v25 = vrot.slane %v10990_v0, 5  ;;  %v11043_v16 = vshrl.u32 %v10826_v19, 16  ;;  %v11046_v15 = vshll.u32 %v10826_v19, 16  ;;  %v21706_v1 = vcombine.low %v10911_v12, %v10921_v4  ;;  %23779 = vst [vmem:[#allocation34_spill] sm:$0xff] %v21718_v41  ;;  %v21728_v0 = vld [vmem:[#allocation3 + $0x88] sm:$0xf] }
 0x543   : > { %v21708_v63 = vcombine.low %v10935_v8, %v10945_v23  ;;  %v10959_v55 = vsel %vm16091_vm7, %v21683_v10, %v21633_v9  ;;  %v10969_v14 = vsel %vm16091_vm7, %v21685_v17, %v21676_v36  ;;  %v10983_v43 = vsel %vm16091_vm7, %v21687_v35, %v21643_v21  ;;  %v10829_v9 = vld [vmem:[#allocation3 + $0x84] sm:$0xf]  ;;  %23780 = vst [vmem:[#allocation26_spill] sm:$0xff] %v21728_v0  ;;  %v10832_v21 = vld [vmem:[#allocation3 + $0x90] sm:$0xf] }
 0x544   : > { %v10993_v12 = vsel %vm16091_vm7, %v21689_v33, %v10992_v25  ;;  %v11016_v4 = vrot.slane %v11014_v37, 5  ;;  %v11038_v31 = vshll.u32 %v21695_v28, 16  ;;  %v11007_v36 = vsel %vm16091_vm7, %v21691_v5, %v21664_v26  ;;  %v21735_v35 = vld [vmem:[#allocation3 + $0x94] sm:$0xf]  ;;  %v21743_v26 = vld [vmem:[#allocation3 + $0x80] sm:$0x1] }
 0x545   : > { %v11012_v23 = vrot.slane %v11011_v22, 4  ;;  %v11025_v10 = vor.u32 %v11024_v6, %v11021_v18  ;;  %v11035_v17 = vor.u32 %v11034_v45, %v21699_v59  ;;  %23781 = vst [vmem:[#allocation39_spill] sm:$0xff] %v21735_v35  ;;  %14801 = vmatmul.mubr.msk.bf16.gmra.mrb[8].mxu1 %vm7533_vm10, %v21581_v48  ;;  %v11045_v19 = vrot.slane %v11043_v16, 4 }
 0x546   : > { %v11048_v33 = vrot.slane %v11046_v15, 5  ;;  %v23095_v37 = vshll.u32 %v21718_v41, 16  ;;  %v23100_v8 = vshrl.u32 %v21718_v41, 16  ;;  %14804 = vmatprep.mubr.msk.bf16.mxu1 %vm7533_vm10, %v21583_v29  ;;  %v11067_v6 = vshrl.u32 %v10829_v9, 16 }
 0x547   : > { %v11070_v5 = vshll.u32 %v10829_v9, 16  ;;  %v23096_v18 = vshll.u32 %v21728_v0, 16  ;;  %v23099_v22 = vshrl.u32 %v21728_v0, 16  ;;  %v11091_v45 = vshrl.u32 %v10832_v21, 16 }
 0x548   : > { %v11094_v25 = vshll.u32 %v10832_v21, 16  ;;  %v23097_v48 = vshll.u32 %v21735_v35, 16  ;;  %v23098_v16 = vshrl.u32 %v21735_v35, 16  ;;  %v11017_v15 = vsel %vm16091_vm7, %v11012_v23, %v11016_v4 }
 0x549   : > { %v11026_v49 = vrot.slane %v11025_v10, 4  ;;  %v11036_v60 = vrot.slane %v11035_v17, 4  ;;  %v11040_v29 = vrot.slane %v11038_v31, 5  ;;  %v11049_v58 = vor.u32 %v11048_v33, %v11045_v19 }
 0x54a   : > { %v21753_v9 = vrot.slane %v23095_v37, 5  ;;  %v11058_v34 = vrot.slane %v23100_v8, 4  ;;  %v11062_v21 = vshll.u32 %v21743_v26, 16  ;;  %v11069_v32 = vrot.slane %v11067_v6, 4 }
 0x54b   : > { %v11072_v13 = vrot.slane %v11070_v5, 5  ;;  %v21762_v4 = vrot.slane %v23096_v18, 5  ;;  %v11082_v31 = vrot.slane %v23099_v22, 4  ;;  %v11093_v23 = vrot.slane %v11091_v45, 4  ;;  %v21798_v22 = vld [vmem:[#allocation3 + $0xac] sm:$0xf] }
 0x54c   : > { %v11096_v10 = vrot.slane %v11094_v25, 5  ;;  %v21768_v17 = vrot.slane %v23097_v48, 5  ;;  %v11106_v19 = vrot.slane %v23098_v16, 4  ;;  %v11115_v33 = vshrl.u32 %v10835_v51, 16  ;;  %v21785_v16 = vld [vmem:[#allocation3 + $0x98] sm:$0x1] }
 0x54d   : > { %v11118_v37 = vshll.u32 %v10835_v51, 16  ;;  %v23102_v6 = vshll.u32 %v21758_v27, 16  ;;  %v23104_v5 = vshrl.u32 %v21758_v27, 16  ;;  %14805 = vmatmul.mubr.msk.bf16.gmra.mrb[12].mxu1 %vm7533_vm10, %v21585_v44  ;;  %v21776_v18 = vcombine.low %v10959_v55, %v10969_v14  ;;  %v21794_v14 = vld [vmem:[#allocation3 + $0x8c] sm:$0x1]  ;;  %23783 = vst [vmem:[#allocation20_spill] sm:$0xff] %v21798_v22 }
 0x54e   : > { %v21778_v45 = vcombine.low %v10983_v43, %v10993_v12  ;;  %v21780_v25 = vcombine.low %v11007_v36, %v11017_v15  ;;  %v11031_v48 = vsel %vm16091_vm7, %v11026_v49, %v21699_v59  ;;  %14810 = vmatprep.mubr.msk.bf16.mxu1 %vm7533_vm10, %v21600_v47  ;;  %v11041_v51 = vsel %vm16091_vm7, %v11036_v60, %v11040_v29  ;;  %v10838_v12 = vld [vmem:[#allocation3 + $0xa8] sm:$0xf]  ;;  %v21800_v47 = vld [vmem:[#allocation3 + $0xa4] sm:$0x1] }
 0x54f   : > { %v11059_v44 = vor.u32 %v11058_v34, %v21753_v9  ;;  %v21792_v55 = vrot.slane %v11062_v21, 5  ;;  %v11073_v43 = vor.u32 %v11072_v13, %v11069_v32  ;;  %v11050_v36 = vrot.slane %v11049_v58, 4 }
 0x550   : > { %v11083_v15 = vor.u32 %v11082_v31, %v21762_v4  ;;  %v11097_v49 = vor.u32 %v11096_v10, %v11093_v23  ;;  %v11107_v59 = vor.u32 %v11106_v19, %v21768_v17  ;;  %v11117_v8 = vrot.slane %v11115_v33, 4 }
 0x551   : > { %v11120_v60 = vrot.slane %v11118_v37, 5  ;;  %v21804_v34 = vrot.slane %v23102_v6, 5  ;;  %v11130_v13 = vrot.slane %v23104_v5, 4  ;;  %v11086_v32 = vshll.u32 %v21794_v14, 16 }
 0x552   : > { %v11110_v58 = vshll.u32 %v21785_v16, 16  ;;  %v11139_v29 = vshrl.u32 %v10838_v12, 16  ;;  %v11142_v21 = vshll.u32 %v10838_v12, 16  ;;  %v11060_v31 = vrot.slane %v11059_v44, 4  ;;  %v21819_v44 = vld [vmem:[#allocation3 + $0xb0] sm:$0x1] }
 0x553   : > { %v11074_v23 = vrot.slane %v11073_v43, 4  ;;  %v23106_v10 = vshll.u32 %v21798_v22, 16  ;;  %v23107_v19 = vshrl.u32 %v21798_v22, 16  ;;  %v11084_v37 = vrot.slane %v11083_v15, 4  ;;  %v21824_v43 = vld [vmem:[%s22690_s3 + $0x20] sm:$0xf] }
 0x554   : > { %v11098_v33 = vrot.slane %v11097_v49, 4  ;;  %v11108_v62 = vrot.slane %v11107_v59, 4  ;;  %v11134_v6 = vshll.u32 %v21800_v47, 16  ;;  %v21813_v24 = vcombine.low %v11031_v48, %v11041_v51  ;;  %23784 = vst [vmem:[#allocation12_spill] sm:$0xff] %v21824_v43  ;;  %v10841_v59 = vld [vmem:[#allocation3 + $0xb4] sm:$0xf] }
 0x555   : > { %v11055_v5 = vsel %vm16091_vm7, %v11050_v36, %v21753_v9  ;;  %v11121_v50 = vor.u32 %v11120_v60, %v11117_v8  ;;  %v11131_v12 = vor.u32 %v11130_v13, %v21804_v34  ;;  %14811 = vmatmul.mubr.msk.bf16.vlgmr.msra.gmra.mrb[16].mxu1 %vm7533_vm10, %v21648_v7  ;;  %v11088_v15 = vrot.slane %v11086_v32, 5  ;;  %v21843_v60 = vld [vmem:[#allocation3 + $0xb8] sm:$0xf]  ;;  %v10844_v13 = vld [vmem:[#allocation3 + $0xc0] sm:$0xf] }
 0x556   : > { %v11112_v48 = vrot.slane %v11110_v58, 5  ;;  %v11141_v51 = vrot.slane %v11139_v29, 4  ;;  %v11144_v49 = vrot.slane %v11142_v21, 5  ;;  %14843 = vmatpush3.bf16.msra.mxu1 %v21595_v42  ;;  %14814 = vmatprep.mubr.msk.bf16.mxu1 %vm7533_vm10, %v21706_v1  ;;  %v11065_v8 = vsel %vm16091_vm7, %v11060_v31, %v21792_v55  ;;  %23785 = vst [vmem:[#allocation42_spill] sm:$0xff] %v21843_v60  ;;  %v21854_v32 = vld [vmem:[#allocation3 + $0xc4] sm:$0xf] }
 0x557   : > { %v11079_v9 = vsel %vm16091_vm7, %v11074_v23, %v21762_v4  ;;  %v21839_v7 = vrot.slane %v23106_v10, 5  ;;  %v11154_v36 = vrot.slane %v23107_v19, 4  ;;  %v11089_v42 = vsel %vm16091_vm7, %v11084_v37, %v11088_v15  ;;  %23786 = vst [vmem:[#allocation45_spill] sm:$0xff] %v21854_v32  ;;  %15604 = vmatprep.subr.msk.bf16.mxu1 %vm7582_vm9, %v21824_v43 }
 0x558   : > { %v11103_v1 = vsel %vm16091_vm7, %v11098_v33, %v21768_v17  ;;  %v11113_v55 = vsel %vm16091_vm7, %v11108_v62, %v11112_v48  ;;  %v21852_v4 = vrot.slane %v11134_v6, 5  ;;  %v21858_v58 = vrot.slane %v11121_v50, 4 }
 0x559   : > { %v21860_v29 = vrot.slane %v11131_v12, 4  ;;  %v11158_v21 = vshll.u32 %v21819_v44, 16  ;;  %v11163_v31 = vshrl.u32 %v10841_v59, 16  ;;  %v11145_v23 = vor.u32 %v11144_v49, %v11141_v51  ;;  %v21931_v49 = vld [vmem:[#allocation3 + $0x54] sm:$0xe] }
 0x55a   : > { %v11166_v17 = vshll.u32 %v10841_v59, 16  ;;  %v23108_v37 = vshll.u32 %v21843_v60, 16  ;;  %v23109_v62 = vshrl.u32 %v21843_v60, 16  ;;  %v11155_v6 = vor.u32 %v11154_v36, %v21839_v7  ;;  %23790 = vst [vmem:[#allocation25_spill] sm:$0xff] %v21931_v49 }
 0x55b   : > { %v11187_v33 = vshrl.u32 %v10844_v13, 16  ;;  %v11190_v15 = vshll.u32 %v10844_v13, 16  ;;  %v23110_v48 = vshll.u32 %v21854_v32, 16  ;;  %v21867_v10 = vcombine.low %v11055_v5, %v11065_v8  ;;  %v21886_v8 = vld [vmem:[#allocation3 + $0xcc] sm:$0xf] }
 0x55c   : > { %v21869_v50 = vcombine.low %v11079_v9, %v11089_v42  ;;  %v21871_v12 = vcombine.low %v11103_v1, %v11113_v55  ;;  %v23112_v19 = vshrl.u32 %v21854_v32, 16  ;;  %v21882_v59 = vrot.slane %v11158_v21, 5  ;;  %v21888_v9 = vld [vmem:[#allocation3 + $0x30] sm:$0xe]  ;;  %v21904_v13 = vld [vmem:[#allocation3 + $0x3c] sm:$0xe] }
 0x55d   : > { %v21884_v5 = vrot.slane %v11163_v31, 4  ;;  %23787 = vst [vmem:[#allocation30_spill] sm:$0xff] %v21888_v9  ;;  %14815 = vmatmul.mubr.msk.bf16.gmra.mrb[20].mxu1 %vm7533_vm10, %v21708_v63  ;;  %v21892_v36 = vrot.slane %v11145_v23, 4  ;;  %v21894_v42 = vrot.slane %v11166_v17, 5  ;;  %v21898_v1 = vrot.slane %v23108_v37, 5  ;;  %23788 = vst [vmem:[#allocation37_spill] sm:$0xff] %v21904_v13 }
 0x55e   : > { %v21902_v55 = vrot.slane %v23109_v62, 4  ;;  %14818 = vmatprep.mubr.msk.bf16.mxu1 %vm7533_vm10, %v21776_v18  ;;  %v21908_v21 = vrot.slane %v11155_v6, 4  ;;  %v21910_v63 = vrot.slane %v11187_v33, 4  ;;  %v21912_v31 = vrot.slane %v11190_v15, 5  ;;  %v21918_v17 = vld [vmem:[#allocation3 + $0x48] sm:$0xe] }
 0x55f   : > { %v21916_v23 = vrot.slane %v23110_v48, 5  ;;  %23789 = vst [vmem:[#allocation24_spill] sm:$0xff] %v21918_v17  ;;  %v21922_v37 = vrot.slane %v23112_v19, 4  ;;  %v11608_v18 = vrot.slane %v21533_v39, 5  ;;  %v11611_v6 = vrot.slane %v21568_v30, 5 }
 0x560   : > { %v13810_v33 = vrot.slane %v21888_v9, 9  ;;  %v13811_v15 = vrot.slane %v21904_v13, 9  ;;  %v11615_v51 = vrot.slane %v21560_v38, 5  ;;  %v11618_v48 = vrot.slane %v21613_v52, 5  ;;  %v21945_v9 = vld [vmem:[#allocation3 + $0x60] sm:$0xe] }
 0x561   : > { %v11610_v19 = vrot.slane %v11608_v18, 4  ;;  %v13812_v20 = vrot.slane %v21918_v17, 9  ;;  %v11622_v62 = vrot.slane %v21598_v40, 5  ;;  %v11625_v52 = vrot.slane %v21637_v61, 5  ;;  %23792 = vst [vmem:[#allocation31_spill] sm:$0xff] %v21945_v9 }
 0x562   : > { %v21938_v30 = vsel %vm16402_vm15, %v13810_v33, %v11608_v18  ;;  %v21942_v13 = vsel %vm16402_vm15, %v13811_v15, %v11615_v51  ;;  %v11617_v38 = vrot.slane %v11615_v51, 4  ;;  %v13813_v18 = vrot.slane %v21931_v49, 9  ;;  %v10849_v49 = vld [vmem:[#allocation3 + $0xd4] sm:$0x1] }
 0x563   : > { %v21949_v43 = vsel %vm16402_vm15, %v11610_v19, %v11611_v6  ;;  %v21953_v40 = vsel %vm16402_vm15, %v13812_v20, %v11622_v62  ;;  %v11624_v17 = vrot.slane %v11622_v62, 4  ;;  %v11629_v61 = vrot.slane %v21606_v56, 5  ;;  %v21964_v19 = vld [vmem:[#allocation3 + $0x6c] sm:$0xe]  ;;  %v22038_v56 = vld [vmem:[#allocation3 + $0x9c] sm:$0xe] }
 0x564   : > { %v21960_v51 = vsel %vm16402_vm15, %v11617_v38, %v11618_v48  ;;  %v11632_v15 = vrot.slane %v21659_v11, 5  ;;  %23793 = vst [vmem:[#allocation23_spill] sm:$0xff] %v21964_v19  ;;  %v13814_v6 = vrot.slane %v21945_v9, 9  ;;  %v11636_v38 = vrot.slane %v21626_v53, 5  ;;  %v21976_v48 = vld [vmem:[#allocation3 + $0x78] sm:$0xe] }
 0x565   : > { %14819 = vmatmul.mubr.msk.bf16.gmra.mrb[24].mxu1 %vm7533_vm10, %v21778_v45  ;;  %v21972_v62 = vsel %vm16402_vm15, %v11624_v17, %v11625_v52  ;;  %23794 = vst [vmem:[#allocation36_spill] sm:$0xff] %v21976_v48  ;;  %v21984_v45 = vsel %vm16402_vm15, %v13813_v18, %v11629_v61  ;;  %v11631_v20 = vrot.slane %v11629_v61, 4  ;;  %v11639_v17 = vrot.slane %v21666_v2, 5  ;;  %v22000_v2 = vld [vmem:[#allocation3 + $0x84] sm:$0xe]  ;;  %23797 = vst [vmem:[#allocation46_spill] sm:$0xff] %v22038_v56 }
 0x566   : > { %14822 = vmatprep.mubr.msk.bf16.mxu1 %vm7533_vm10, %v21780_v25  ;;  %v21989_v52 = vsel %vm16402_vm15, %v13814_v6, %v11636_v38  ;;  %v11638_v33 = vrot.slane %v11636_v38, 4  ;;  %v13815_v53 = vrot.slane %v21964_v19, 9  ;;  %v11643_v9 = vrot.slane %v21656_v54, 5  ;;  %23795 = vst [vmem:[#allocation4_spill] sm:$0xff] %v22000_v2 }
 0x567   : > { %v21995_v25 = vsel %vm16402_vm15, %v11631_v20, %v11632_v15  ;;  %v11646_v11 = vrot.slane %v21695_v28, 5  ;;  %v13816_v18 = vrot.slane %v21976_v48, 9  ;;  %v11650_v61 = vrot.slane %v21718_v41, 5  ;;  %v22012_v20 = vld [vmem:[#allocation3 + $0x90] sm:$0xe] }
 0x568   : > { %v22006_v38 = vsel %vm16402_vm15, %v11638_v33, %v11639_v17  ;;  %v22010_v54 = vsel %vm16402_vm15, %v13815_v53, %v11643_v9  ;;  %v11645_v15 = vrot.slane %v11643_v9, 4  ;;  %23796 = vst [vmem:[#allocation10_spill] sm:$0xff] %v22012_v20  ;;  %v22014_v28 = vld [vmem:[#allocation3 + $0xd0] sm:$0xf]  ;;  %v11653_v33 = vrot.slane %v21743_v26, 5 }
 0x569   : > { %v22020_v48 = vsel %vm16402_vm15, %v13816_v18, %v11650_v61  ;;  %v11652_v6 = vrot.slane %v11650_v61, 4  ;;  %v13817_v53 = vrot.slane %v22000_v2, 9  ;;  %v11657_v9 = vrot.slane %v21728_v0, 5  ;;  %v22046_v0 = vld [vmem:[#allocation3 + $0xa8] sm:$0xe] }
 0x56a   : > { %v22025_v17 = vsel %vm16402_vm15, %v11645_v15, %v11646_v11  ;;  %v11660_v19 = vrot.slane %v21794_v14, 5  ;;  %v13818_v61 = vrot.slane %v22012_v20, 9  ;;  %v11664_v26 = vrot.slane %v21735_v35, 5  ;;  %23798 = vst [vmem:[#allocation47_spill] sm:$0xff] %v22046_v0  ;;  %v22059_v14 = vld [vmem:[#allocation3 + $0xbc] sm:$0x1] }
 0x56b   : > { %v22034_v18 = vsel %vm16402_vm15, %v11652_v6, %v11653_v33  ;;  %v11659_v15 = vrot.slane %v11657_v9, 4  ;;  %v11667_v41 = vrot.slane %v21785_v16, 5  ;;  %v22052_v6 = vsel %vm16402_vm15, %v13817_v53, %v11657_v9  ;;  %v22075_v20 = vld [vmem:[#allocation3 + $0xb4] sm:$0xe]  ;;  %v22096_v2 = vld [vmem:[#allocation3 + $0xcc] sm:$0xe] }
 0x56c   : > { %v11666_v33 = vrot.slane %v11664_v26, 4  ;;  %v11671_v11 = vrot.slane %v21758_v27, 5  ;;  %v13819_v35 = vrot.slane %v22038_v56, 9  ;;  %v11678_v53 = vrot.slane %v21798_v22, 5  ;;  %v22084_v56 = vld [vmem:[#allocation3 + $0xc0] sm:$0xe] }
 0x56d   : > { %14823 = vmatmul.mubr.msk.bf16.gmra.mrb[28].mxu1 %vm7533_vm10, %v21813_v24  ;;  %v22056_v24 = vsel %vm16402_vm15, %v13818_v61, %v11664_v26  ;;  %v22063_v16 = vsel %vm16402_vm15, %v11659_v15, %v11660_v19  ;;  %v13820_v27 = vrot.slane %v22046_v0, 9  ;;  %v10846_v19 = vld [vmem:[#allocation3 + $0xc8] sm:$0x1]  ;;  %v11681_v9 = vrot.slane %v21819_v44, 5  ;;  %23799 = vst [vmem:[#allocation48_spill] sm:$0xff] %v22084_v56  ;;  %23801 = vst [vmem:[#allocation50_spill] sm:$0xff] %v22096_v2 }
 0x56e   : > { %14826 = vmatprep.mubr.msk.bf16.mxu1 %vm7533_vm10, %v21867_v10  ;;  %v11674_v10 = vrot.slane %v21800_v47, 5  ;;  %v22072_v61 = vsel %vm16402_vm15, %v11666_v33, %v11667_v41  ;;  %v11673_v26 = vrot.slane %v11671_v11, 4  ;;  %v22081_v47 = vsel %vm16402_vm15, %v13819_v35, %v11671_v11 }
 0x56f   : > { %v11680_v22 = vrot.slane %v11678_v53, 4  ;;  %v22092_v33 = vsel %vm16402_vm15, %v13820_v27, %v11678_v53  ;;  %v11685_v0 = vrot.slane %v21843_v60, 5  ;;  %v11688_v15 = vrot.slane %v22059_v14, 5 }
 0x570   : > { %v22088_v41 = vsel %vm16402_vm15, %v11673_v26, %v11674_v10  ;;  %v13821_v11 = vrot.slane %v22075_v20, 9  ;;  %v11692_v10 = vrot.slane %v21854_v32, 5  ;;  %v13822_v26 = vrot.slane %v22084_v56, 9 }
 0x571   : > { %23800 = vst [vmem:[#allocation49_spill] sm:$0xff] %v22088_v41  ;;  %v22102_v44 = vsel %vm16402_vm15, %v11680_v22, %v11681_v9  ;;  %v11687_v53 = vrot.slane %v11685_v0, 4  ;;  %v11695_v60 = vrot.slane %v10846_v19, 5  ;;  %v13823_v22 = vrot.slane %v22096_v2, 9 }
 0x572   : > { %v11694_v41 = vrot.slane %v11692_v10, 4  ;;  %v11699_v9 = vrot.slane %v22014_v28, 5  ;;  %v22118_v27 = vsel %vm16402_vm15, %v13821_v11, %v11685_v0  ;;  %v11702_v35 = vrot.slane %v10849_v49, 5 }
 0x573   : > { %v22122_v32 = vsel %vm16402_vm15, %v11687_v53, %v11688_v15  ;;  %v11169_v15 = vor.u32 %v21894_v42, %v21884_v5  ;;  %v11179_v11 = vor.u32 %v21902_v55, %v21898_v1  ;;  %v23803_v42 = vshll.u32 %v21886_v8, 16 }
 0x574   : > { %v22132_v56 = vsel %vm16402_vm15, %v11694_v41, %v11695_v60  ;;  %v22136_v0 = vsel %vm16402_vm15, %v13823_v22, %v11699_v9  ;;  %v11161_v60 = vsel %vm16091_vm7, %v21908_v21, %v21882_v59  ;;  %v11203_v41 = vor.u32 %v21922_v37, %v21916_v23 }
 0x575   : > { %14827 = vmatmul.mubr.msk.bf16.gmra.mrb[0].mxu1 %vm7533_vm10, %v21869_v50  ;;  %v22126_v50 = vsel %vm16402_vm15, %v13822_v26, %v11692_v10  ;;  %v11182_v10 = vshll.u32 %v22059_v14, 16  ;;  %v23802_v26 = vshrl.u32 %v21886_v8, 16  ;;  %v11216_v55 = vrot.slane %v23803_v42, 5 }
 0x576   : > { %14830 = vmatprep.mubr.msk.bf16.mxu1 %vm7533_vm10, %v21871_v12  ;;  %v11701_v12 = vrot.slane %v11699_v9, 4  ;;  %v23804_v14 = vshll.u32 %v22014_v28, 16  ;;  %v23805_v53 = vshrl.u32 %v22014_v28, 16  ;;  %v23806_v37 = vsel %vm16091_vm7, %v21860_v29, %v21852_v4 }
 0x577   : > { %v11213_v22 = vrot.slane %v23802_v26, 4  ;;  %v23807_v8 = vsel %vm16091_vm7, %v21858_v58, %v21804_v34  ;;  %v11180_v42 = vrot.slane %v11179_v11, 4  ;;  %v11170_v4 = vrot.slane %v11169_v15, 4 }
 0x578   : > { %v22155_v5 = vsel %vm16402_vm15, %v11701_v12, %v11702_v35  ;;  %v11222_v9 = vrot.slane %v23804_v14, 5  ;;  %v11226_v2 = vrot.slane %v23805_v53, 4  ;;  %v13787_v21 = vcombine.low %v23807_v8, %v23806_v37 }
 0x579   : > { %v11151_v35 = vsel %vm16091_vm7, %v21892_v36, %v21839_v7  ;;  %v11193_v12 = vor.u32 %v21912_v31, %v21910_v63  ;;  %v11206_v53 = vshll.u32 %v10846_v19, 16  ;;  %v11204_v29 = vrot.slane %v11203_v41, 4 }
 0x57a   : > { %v13788_v26 = vcombine.low %v11151_v35, %v11161_v60  ;;  %v11184_v14 = vrot.slane %v11182_v10, 5  ;;  %v11217_v34 = vor.u32 %v11216_v55, %v11213_v22  ;;  %v11227_v58 = vor.u32 %v11226_v2, %v11222_v9  ;;  %v11528_v55 = vld [vmem:[#allocation3 + $0x18] sm:$0xe] }
 0x57b   : > { %v11230_v37 = vshll.u32 %v10849_v49, 16  ;;  %v11194_v8 = vrot.slane %v11193_v12, 4  ;;  %v11208_v59 = vrot.slane %v11206_v53, 5  ;;  %v11594_v63 = vrot.slane %v21489_v46, 5 }
 0x57c   : > { %v11185_v7 = vsel %vm16091_vm7, %v11180_v42, %v11184_v14  ;;  %v11175_v31 = vsel %vm16091_vm7, %v11170_v4, %v21898_v1  ;;  %v11218_v19 = vrot.slane %v11217_v34, 4  ;;  %v11228_v15 = vrot.slane %v11227_v58, 4  ;;  %v23809_v42 = vld [vmem:[#allocation17_spill] sm:$0xff]  ;;  %v23810_v58 = vld [vmem:[#allocation12_spill] sm:$0xff] }
 0x57d   : > { %14831 = vmatmul.mubr.msk.bf16.gmra.mrb[4].mxu1 %vm7533_vm10, %v13787_v21  ;;  %v11209_v36 = vsel %vm16091_vm7, %v11204_v29, %v11208_v59  ;;  %v11232_v11 = vrot.slane %v11230_v37, 5  ;;  %v13789_v10 = vcombine.low %v11175_v31, %v11185_v7  ;;  %v11199_v49 = vsel %vm16091_vm7, %v11194_v8, %v21916_v23  ;;  %v23808_v59 = vld [vmem:[#allocation38_spill] sm:$0xff] }
 0x57e   : > { %14834 = vmatprep.mubr.msk.bf16.mxu1 %vm7533_vm10, %v13788_v26  ;;  %v13790_v2 = vcombine.low %v11199_v49, %v11209_v36  ;;  %v11596_v60 = vrot.slane %v11594_v63, 4  ;;  %v11597_v41 = vrot.slane %v21524_v57, 5  ;;  %v11223_v22 = vsel %vm16091_vm7, %v11218_v19, %v11222_v9  ;;  %v11529_v9 = vld [vmem:[#allocation3 + $0x24] sm:$0xe]  ;;  %v22218_v8 = vld [vmem:[%s22692_s5] sm:$0x3] }
 0x57f   : > { %v11233_v1 = vsel %vm16091_vm7, %v11228_v15, %v11232_v11  ;;  %v11601_v21 = vrot.slane %v23808_v59, 5  ;;  %v13808_v12 = vrot.slane %v11528_v55, 9  ;;  %v11604_v4 = vrot.slane %v23809_v42, 5 }
 0x580   : > { %v13791_v35 = vcombine.low %v11223_v22, %v11233_v1  ;;  %v11598_v23 = vsel %vm16402_vm15, %v11596_v60, %v11597_v41  ;;  %v13809_v3 = vrot.slane %v11529_v9, 9  ;;  %v12481_v37 = vsel %vm7582_vm9, %v23810_v58, 0  ;;  %v23828_v58 = vld [vmem:[#allocation49_spill] sm:$0xff] }
 0x581   : > { %v11595_v53 = vsel %vm16402_vm15, %v13808_v12, %v11594_v63  ;;  %v11603_v26 = vrot.slane %v11601_v21, 4  ;;  %v23811_v7 = vcombine.low %v21938_v30, %v21949_v43  ;;  %v23812_v39 = vcombine.low %v21942_v13, %v21960_v51  ;;  %v11998_v30 = vld [vmem:[#allocation3 + $0x20] sm:$0x3] }
 0x582   : > { %v13825_v57 = vcombine.low %v11595_v53, %v11598_v23  ;;  %v11602_v14 = vsel %vm16402_vm15, %v13809_v3, %v11601_v21  ;;  %v23813_v36 = vcombine.low %v21953_v40, %v21972_v62  ;;  %v23814_v63 = vcombine.low %v21984_v45, %v21995_v25  ;;  %v12000_v23 = vld [vmem:[#allocation3 + $0x38] sm:$0x3] }
 0x583   : > { %v11605_v29 = vsel %vm16402_vm15, %v11603_v26, %v11604_v4  ;;  %v23815_v43 = vcombine.low %v21989_v52, %v22006_v38  ;;  %v23816_v13 = vcombine.low %v22010_v54, %v22025_v17  ;;  %v23817_v40 = vcombine.low %v22020_v48, %v22034_v18  ;;  %v11999_v18 = vld [vmem:[#allocation3 + $0x2c] sm:$0x3]  ;;  %v23825_v3 = vld [vmem:[#allocation28_spill] sm:$0xff] }
 0x584   : > { %v13826_v34 = vcombine.low %v11602_v14, %v11605_v29  ;;  %v12015_v51 = vshrl.u32 %v11528_v55, 16  ;;  %v12018_v62 = vshll.u32 %v11528_v55, 16  ;;  %v23818_v45 = vshrl.u32 %v21489_v46, 16 }
 0x585   : > { %14835 = vmatmul.mubr.msk.bf16.gmra.mrb[8].mxu1 %vm7533_vm10, %v13789_v10  ;;  %v23819_v52 = vshll.u32 %v21489_v46, 16  ;;  %v12029_v31 = vshrl.u32 %v11998_v30, 16  ;;  %v12032_v19 = vshll.u32 %v11998_v30, 16  ;;  %v12038_v15 = vshrl.u32 %v11529_v9, 16 }
 0x586   : > { %14838 = vmatprep.mubr.msk.bf16.mxu1 %vm7533_vm10, %v13790_v2  ;;  %v12023_v25 = vrot.slane %v23818_v45, 5  ;;  %v12041_v54 = vshll.u32 %v11529_v9, 16  ;;  %v23820_v17 = vcombine.low %v22052_v6, %v22063_v16  ;;  %v12017_v48 = vrot.slane %v12015_v51, 5 }
 0x587   : > { %v12024_v38 = vrot.slane %v23819_v52, 6  ;;  %v23821_v11 = vcombine.low %v22056_v24, %v22072_v61  ;;  %v12020_v10 = vrot.slane %v12018_v62, 6  ;;  %v12031_v46 = vrot.slane %v12029_v31, 5  ;;  %v12681_v62 = vld [vmem:[%s16051_s11 + $0x28] sm:$0xff] }
 0x588   : > { %v12034_v2 = vrot.slane %v12032_v19, 6  ;;  %v12040_v60 = vrot.slane %v12038_v15, 5  ;;  %v12043_v41 = vrot.slane %v12041_v54, 6  ;;  %v23822_v22 = vshrl.u32 %v23808_v59, 16  ;;  %v12001_v15 = vld [vmem:[#allocation3 + $0x44] sm:$0x3] }
 0x589   : > { %v12025_v49 = vor.u32 %v12024_v38, %v12023_v25  ;;  %v23823_v6 = vshll.u32 %v23808_v59, 16  ;;  %v12052_v55 = vshrl.u32 %v11999_v18, 16  ;;  %v12055_v21 = vshll.u32 %v11999_v18, 16 }
 0x58a   : > { %v12046_v1 = vrot.slane %v23822_v22, 5  ;;  %v12021_v61 = vor.u32 %v12020_v10, %v12017_v48  ;;  %v12044_v26 = vor.u32 %v12043_v41, %v12040_v60  ;;  %v23826_v29 = vshrl.u32 %v23825_v3, 16  ;;  %v12002_v41 = vld [vmem:[#allocation3 + $0x50] sm:$0x3] }
 0x58b   : > { %v12047_v16 = vrot.slane %v23823_v6, 6  ;;  %v12027_v53 = vrot.slane %v12025_v49, 4  ;;  %v12054_v4 = vrot.slane %v12052_v55, 5  ;;  %v12057_v9 = vrot.slane %v12055_v21, 6 }
 0x58c   : > { %v12069_v14 = vrot.slane %v23826_v29, 5  ;;  %v23827_v59 = vshll.u32 %v23825_v3, 16  ;;  %v22296_v18 = vsel %vm1400_vm0, %v22218_v8, 0  ;;  %v23835_v22 = vcombine.low %v22118_v27, %v22122_v32  ;;  %v12003_v27 = vld [vmem:[#allocation3 + $0x5c] sm:$0x3]  ;;  %v23842_v29 = vld [vmem:[#allocation25_spill] sm:$0xff] }
 0x58d   : > { %14839 = vmatmul.mubr.msk.bf16.gmra.mrb[12].mxu1 %vm7533_vm10, %v13791_v35  ;;  %v23824_v35 = vld [vmem:[#allocation30_spill] sm:$0xff]  ;;  %v22269_v42 = vor.u32 %v12047_v16, %v12046_v1  ;;  %v12058_v52 = vor.u32 %v12057_v9, %v12054_v4  ;;  %v12098_v55 = vshrl.u32 %v12001_v15, 16  ;;  %v23837_v21 = vcombine.low %v22126_v50, %v22132_v56 }
 0x58e   : > { %14844 = vmatprep.mubr.msk.bf16.mxu1 %vm7533_vm10, %v13825_v57  ;;  %v12061_v12 = vshrl.u32 %v23824_v35, 16  ;;  %v12064_v24 = vshll.u32 %v23824_v35, 16  ;;  %v12035_v57 = vor.u32 %v12034_v2, %v12031_v46  ;;  %v12121_v9 = vshrl.u32 %v12002_v41, 16  ;;  %v23843_v50 = vld [vmem:[#allocation22_spill] sm:$0xff] }
 0x58f   : > { %v12050_v25 = vrot.slane %v22269_v42, 4  ;;  %v12124_v3 = vshll.u32 %v12002_v41, 16  ;;  %v12133_v56 = vshll.u32 %v23842_v29, 16  ;;  %v23848_v41 = vld [vmem:[#allocation13_spill] sm:$0xff] }
 0x590   : > { %v12036_v45 = vsel %vm16922_vm5, %v12027_v53, %v12035_v57 }
 0x591   : > { %v22304_v10 = vsel %vm16922_vm5, %v12050_v25, %v12058_v52 }
 0x595   : > { %14845 = vmatmul.mubr.msk.bf16.vlgmr.msra.gmra.mrb[16].mxu1 %vm7533_vm10, %v13826_v34  ;;  %v12070_v34 = vrot.slane %v23827_v59, 6  ;;  %v23844_v59 = vshrl.u32 %v23843_v50, 16 }
 0x596   : > { %14877 = vmatpush3.bf16.msra.mxu1 %v12481_v37  ;;  %14848 = vmatprep.mubr.msk.bf16.mxu1 %vm7533_vm10, %v23811_v7  ;;  %v23829_v37 = vcombine.low %v22081_v47, %v23828_v58  ;;  %v12063_v7 = vrot.slane %v12061_v12, 5  ;;  %v22287_v47 = vrot.slane %v12044_v26, 4  ;;  %v12101_v12 = vshll.u32 %v12001_v15, 16 }
 0x597   : > { %15605 = vmatprep.subr.msk.bf16.mxu1 %vm1400_vm0, %v22218_v8  ;;  %v22290_v38 = vor.u32 %v12070_v34, %v12069_v14  ;;  %v12130_v14 = vshrl.u32 %v23842_v29, 16  ;;  %v12138_v34 = vrot.slane %v23844_v59, 5  ;;  %v23845_v58 = vshll.u32 %v23843_v50, 16 }
 0x598   : > { %v12135_v15 = vrot.slane %v12133_v56, 6 }
 0x599   : > { %v12073_v46 = vrot.slane %v22290_v38, 4 }
 0x59d   : > { %14849 = vmatmul.mubr.msk.bf16.gmra.mrb[20].mxu1 %vm7533_vm10, %v23812_v39  ;;  %v12066_v39 = vrot.slane %v12064_v24, 6  ;;  %v23838_v24 = vld [vmem:[#allocation24_spill] sm:$0xff] }
 0x59e   : > { %14852 = vmatprep.mubr.msk.bf16.mxu1 %vm7533_vm10, %v23813_v36  ;;  %v12075_v36 = vshrl.u32 %v12000_v23, 16  ;;  %v12110_v32 = vshll.u32 %v23838_v24, 16 }
 0x59f   : > { %v12067_v31 = vor.u32 %v12066_v39, %v12063_v7  ;;  %v12144_v7 = vshrl.u32 %v12003_v27, 16  ;;  %v12147_v39 = vshll.u32 %v12003_v27, 16 }
 0x5a0   : > { %v12077_v19 = vrot.slane %v12075_v36, 5  ;;  %v23846_v36 = vld [vmem:[#allocation31_spill] sm:$0xff]  ;;  %v12112_v25 = vrot.slane %v12110_v32, 6 }
 0x5a1   : > { %v22313_v8 = vrot.slane %v12067_v31, 4  ;;  %v12123_v31 = vrot.slane %v12121_v9, 5 }
 0x5a5   : > { %14853 = vmatmul.mubr.msk.bf16.gmra.mrb[24].mxu1 %vm7533_vm10, %v23814_v63  ;;  %v12078_v63 = vshll.u32 %v12000_v23, 16  ;;  %v23839_v23 = vld [vmem:[#allocation29_spill] sm:$0xff] }
 0x5a6   : > { %14856 = vmatprep.mubr.msk.bf16.mxu1 %vm7533_vm10, %v23815_v43  ;;  %v23830_v43 = vcombine.low %v22092_v33, %v22102_v44  ;;  %v23840_v53 = vshrl.u32 %v23839_v23, 16  ;;  %v23841_v26 = vshll.u32 %v23839_v23, 16 }
 0x5a7   : > { %v12080_v33 = vrot.slane %v12078_v63, 6  ;;  %v12153_v63 = vshrl.u32 %v23846_v36, 16 }
 0x5a8   : > { %v12115_v57 = vrot.slane %v23840_v53, 5  ;;  %v12116_v4 = vrot.slane %v23841_v26, 6 }
 0x5a9   : > { %v12081_v1 = vor.u32 %v12080_v33, %v12077_v19  ;;  %v12004_v19 = vld [vmem:[#allocation3 + $0x68] sm:$0x3]  ;;  %v12126_v33 = vrot.slane %v12124_v3, 6 }
 0x5aa   : > { %v22341_v52 = vor.u32 %v12116_v4, %v12115_v57 }
 0x5ab   : > { %v12127_v53 = vor.u32 %v12126_v33, %v12123_v31 }
 0x5ac   : > { %v12119_v23 = vrot.slane %v22341_v52, 4 }
 0x5ad   : > { %14857 = vmatmul.mubr.msk.bf16.gmra.mrb[28].mxu1 %vm7533_vm10, %v23816_v13  ;;  %v12022_v13 = vrot.slane %v12021_v61, 4  ;;  %v12107_v61 = vshrl.u32 %v23838_v24, 16 }
 0x5ae   : > { %14860 = vmatprep.mubr.msk.bf16.mxu1 %vm7533_vm10, %v23817_v40  ;;  %v23831_v40 = vld [vmem:[#allocation37_spill] sm:$0xff] }
 0x5af   : > { %v12084_v30 = vshrl.u32 %v23831_v40, 16  ;;  %v12087_v51 = vshll.u32 %v23831_v40, 16  ;;  %v12026_v44 = vsel %vm16922_vm5, %v12022_v13, %v12025_v49  ;;  %v23833_v49 = vld [vmem:[#allocation14_spill] sm:$0xff]  ;;  %v12072_v13 = vsel %vm16922_vm5, %v22313_v8, %v22290_v38 }
 0x5b0   : > { %v13858_v48 = vcombine.low %v12026_v44, %v12036_v45  ;;  %v23834_v2 = vshrl.u32 %v23833_v49, 16  ;;  %v23836_v6 = vshll.u32 %v23833_v49, 16  ;;  %v12109_v45 = vrot.slane %v12107_v61, 5 }
 0x5b1   : > { %v12086_v54 = vrot.slane %v12084_v30, 5  ;;  %v12100_v30 = vrot.slane %v12098_v55, 5  ;;  %v12132_v44 = vrot.slane %v12130_v14, 5  ;;  %v12146_v38 = vrot.slane %v12144_v7, 5 }
 0x5b2   : > { %v12092_v60 = vrot.slane %v23834_v2, 5  ;;  %v12093_v16 = vrot.slane %v23836_v6, 6  ;;  %v12149_v49 = vrot.slane %v12147_v39, 6  ;;  %v12155_v2 = vrot.slane %v12153_v63, 5 }
 0x5b3   : > { %v23850_v6 = vshll.u32 %v23848_v41, 16  ;;  %v12167_v55 = vshrl.u32 %v12004_v19, 16  ;;  %v12136_v57 = vor.u32 %v12135_v15, %v12132_v44  ;;  %v23856_v15 = vld [vmem:[#allocation34_spill] sm:$0xff] }
 0x5b4   : > { %v22339_v40 = vor.u32 %v12093_v16, %v12092_v60  ;;  %v12150_v4 = vor.u32 %v12149_v49, %v12146_v38  ;;  %v23858_v38 = vshll.u32 %v23856_v15, 16 }
 0x5b5   : > { %14861 = vmatmul.mubr.msk.bf16.gmra.mrb[0].mxu1 %vm7533_vm10, %v23820_v17  ;;  %v12089_v17 = vrot.slane %v12087_v51, 6  ;;  %v12103_v51 = vrot.slane %v12101_v12, 6  ;;  %v12162_v16 = vrot.slane %v23850_v6, 6  ;;  %v12082_v12 = vsel %vm16922_vm5, %v12073_v46, %v12081_v1 }
 0x5b6   : > { %14864 = vmatprep.mubr.msk.bf16.mxu1 %vm7533_vm10, %v23821_v11  ;;  %v12049_v11 = vsel %vm16922_vm5, %v22287_v47, %v22269_v42  ;;  %v12096_v32 = vrot.slane %v22339_v40, 4  ;;  %v12169_v46 = vrot.slane %v12167_v55, 5  ;;  %v13860_v29 = vcombine.low %v12072_v13, %v12082_v12 }
 0x5b7   : > { %v12090_v35 = vor.u32 %v12089_v17, %v12086_v54  ;;  %v23847_v17 = vcombine.low %v22136_v0, %v22155_v5  ;;  %v23851_v5 = vld [vmem:[#allocation23_spill] sm:$0xff]  ;;  %v12104_v27 = vor.u32 %v12103_v51, %v12100_v30  ;;  %v12128_v42 = vsel %vm16922_vm5, %v12119_v23, %v12127_v53  ;;  %v12006_v30 = vld [vmem:[#allocation3 + $0x80] sm:$0x3] }
 0x5b8   : > { %v12176_v24 = vshrl.u32 %v23851_v5, 16  ;;  %v12179_v61 = vshll.u32 %v23851_v5, 16  ;;  %v12137_v47 = vrot.slane %v12136_v57, 4  ;;  %v12208_v49 = vrot.slane %v23858_v38, 6  ;;  %v12008_v57 = vld [vmem:[#allocation3 + $0x98] sm:$0x3] }
 0x5b9   : > { %v12091_v0 = vrot.slane %v12090_v35, 4  ;;  %v13859_v35 = vcombine.low %v12049_v11, %v22304_v10  ;;  %v12105_v59 = vsel %vm16922_vm5, %v12096_v32, %v12104_v27 }
 0x5ba   : > { %v12178_v14 = vrot.slane %v12176_v24, 5  ;;  %v12181_v56 = vrot.slane %v12179_v61, 6 }
 0x5bb   : > { %v12095_v50 = vsel %vm16922_vm5, %v12091_v0, %v22339_v40 }
 0x5bc   : > { %v12182_v51 = vor.u32 %v12181_v56, %v12178_v14 }
 0x5bd   : > { %14865 = vmatmul.mubr.msk.bf16.gmra.mrb[4].mxu1 %vm7533_vm10, %v23829_v37  ;;  %v12139_v37 = vrot.slane %v23845_v58, 6  ;;  %v23852_v58 = vld [vmem:[#allocation36_spill] sm:$0xff] }
 0x5be   : > { %14868 = vmatprep.mubr.msk.bf16.mxu1 %vm7533_vm10, %v23830_v43  ;;  %v12156_v43 = vshll.u32 %v23846_v36, 16  ;;  %v12202_v7 = vshll.u32 %v23852_v58, 16  ;;  %v22403_v12 = vrot.slane %v12182_v51, 4 }
 0x5bf   : > { %v22343_v54 = vor.u32 %v12139_v37, %v12138_v34  ;;  %v12005_v34 = vld [vmem:[#allocation3 + $0x74] sm:$0x3]  ;;  %v12199_v37 = vshrl.u32 %v23852_v58, 16 }
 0x5c0   : > { %v12158_v60 = vrot.slane %v12156_v43, 6  ;;  %v23853_v43 = vld [vmem:[#allocation18_spill] sm:$0xff]  ;;  %v12190_v31 = vshrl.u32 %v12005_v34, 16  ;;  %v12204_v44 = vrot.slane %v12202_v7, 6 }
 0x5c1   : > { %v12142_v26 = vrot.slane %v22343_v54, 4  ;;  %v23854_v13 = vshrl.u32 %v23853_v43, 16  ;;  %v12201_v33 = vrot.slane %v12199_v37, 5 }
 0x5c2   : > { %v12159_v9 = vor.u32 %v12158_v60, %v12155_v2  ;;  %v12141_v60 = vsel %vm16922_vm5, %v12137_v47, %v22343_v54  ;;  %v12192_v5 = vrot.slane %v12190_v31, 5  ;;  %v12262_v47 = vshll.u32 %v12008_v57, 16  ;;  %v23867_v31 = vld [vmem:[#allocation46_spill] sm:$0xff] }
 0x5c3   : > { %v12151_v11 = vsel %vm16922_vm5, %v12142_v26, %v12150_v4  ;;  %v12184_v40 = vrot.slane %v23854_v13, 5  ;;  %v12205_v54 = vor.u32 %v12204_v44, %v12201_v33  ;;  %v23860_v26 = vld [vmem:[#allocation26_spill] sm:$0xff] }
 0x5c4   : > { %v12160_v10 = vrot.slane %v12159_v9, 4  ;;  %v23861_v4 = vshrl.u32 %v23860_v26, 16 }
 0x5c5   : > { %14869 = vmatmul.mubr.msk.bf16.gmra.mrb[8].mxu1 %vm7533_vm10, %v23835_v22  ;;  %v23849_v22 = vshrl.u32 %v23848_v41, 16  ;;  %v12213_v41 = vshrl.u32 %v12006_v30, 16 }
 0x5c6   : > { %14872 = vmatprep.mubr.msk.bf16.mxu1 %vm7533_vm10, %v23837_v21  ;;  %v12170_v21 = vshll.u32 %v12004_v19, 16  ;;  %v12193_v19 = vshll.u32 %v12005_v34, 16  ;;  %v12230_v9 = vrot.slane %v23861_v4, 5 }
 0x5c7   : > { %v12161_v8 = vrot.slane %v23849_v22, 5  ;;  %v12216_v22 = vshll.u32 %v12006_v30, 16  ;;  %v12215_v32 = vrot.slane %v12213_v41, 5 }
 0x5c8   : > { %v12172_v1 = vrot.slane %v12170_v21, 6  ;;  %v12195_v24 = vrot.slane %v12193_v19, 6  ;;  %v12268_v19 = vshrl.u32 %v23867_v31, 16 }
 0x5c9   : > { %v22361_v3 = vor.u32 %v12162_v16, %v12161_v8  ;;  %v13861_v8 = vcombine.low %v12095_v50, %v12105_v59  ;;  %v13863_v16 = vcombine.low %v12141_v60, %v12151_v11  ;;  %v12218_v27 = vrot.slane %v12216_v22, 6  ;;  %v23864_v50 = vld [vmem:[#allocation39_spill] sm:$0xff]  ;;  %v12009_v22 = vld [vmem:[#allocation3 + $0xa4] sm:$0x3] }
 0x5ca   : > { %v12173_v63 = vor.u32 %v12172_v1, %v12169_v46  ;;  %v23865_v59 = vshrl.u32 %v23864_v50, 16  ;;  %v23866_v58 = vshll.u32 %v23864_v50, 16  ;;  %v12206_v11 = vrot.slane %v12205_v54, 4 }
 0x5cb   : > { %v12165_v36 = vrot.slane %v22361_v3, 4  ;;  %v12164_v55 = vsel %vm16922_vm5, %v12160_v10, %v22361_v3  ;;  %v23862_v3 = vshll.u32 %v23860_v26, 16 }
 0x5cc   : > { %v12253_v34 = vrot.slane %v23865_v59, 5  ;;  %v12254_v37 = vrot.slane %v23866_v58, 6 }
 0x5cd   : > { %14873 = vmatmul.mubr.msk.bf16.gmra.mrb[12].mxu1 %vm7533_vm10, %v23847_v17  ;;  %v12174_v21 = vsel %vm16922_vm5, %v12165_v36, %v12173_v63  ;;  %v12231_v46 = vrot.slane %v23862_v3, 6  ;;  %v12219_v36 = vor.u32 %v12218_v27, %v12215_v32  ;;  %v12285_v27 = vshll.u32 %v12009_v22, 16 }
 0x5ce   : > { %14878 = vmatprep.mubr.msk.bf16.mxu1 %vm7533_vm10, %v13858_v48  ;;  %v12113_v48 = vor.u32 %v12112_v25, %v12109_v45  ;;  %v23855_v45 = vshll.u32 %v23853_v43, 16  ;;  %v13864_v33 = vcombine.low %v12164_v55, %v12174_v21  ;;  %v12270_v55 = vrot.slane %v12268_v19, 5  ;;  %v12010_v21 = vld [vmem:[#allocation3 + $0xb0] sm:$0x3] }
 0x5cf   : > { %v12232_v13 = vor.u32 %v12231_v46, %v12230_v9  ;;  %v12305_v46 = vshrl.u32 %v12010_v21, 16 }
 0x5d0   : > { %v12114_v39 = vrot.slane %v12113_v48, 4  ;;  %v12185_v25 = vrot.slane %v23855_v45, 6  ;;  %v23859_v48 = vld [vmem:[#allocation4_spill] sm:$0xff] }
 0x5d1   : > { %v12222_v23 = vshrl.u32 %v23859_v48, 16  ;;  %v12225_v53 = vshll.u32 %v23859_v48, 16  ;;  %v12234_v41 = vrot.slane %v12232_v13, 4  ;;  %v23871_v48 = vld [vmem:[#allocation47_spill] sm:$0xff] }
 0x5d2   : > { %v12118_v2 = vsel %vm16922_vm5, %v12114_v39, %v22341_v52  ;;  %v22405_v0 = vor.u32 %v12185_v25, %v12184_v40  ;;  %v12007_v52 = vld [vmem:[#allocation3 + $0x8c] sm:$0x3]  ;;  %v12196_v39 = vor.u32 %v12195_v24, %v12192_v5  ;;  %v12255_v25 = vor.u32 %v12254_v37, %v12253_v34 }
 0x5d3   : > { %v13862_v6 = vcombine.low %v12118_v2, %v12128_v42  ;;  %v12236_v1 = vshrl.u32 %v12007_v52, 16  ;;  %v12259_v42 = vshrl.u32 %v12008_v57, 16  ;;  %v12224_v63 = vrot.slane %v12222_v23, 5  ;;  %v23872_v57 = vld [vmem:[#allocation20_spill] sm:$0xff] }
 0x5d4   : > { %v12188_v7 = vrot.slane %v22405_v0, 4  ;;  %v12227_v43 = vrot.slane %v12225_v53, 6  ;;  %v12291_v23 = vshrl.u32 %v23871_v48, 16  ;;  %v12294_v53 = vshll.u32 %v23871_v48, 16 }
 0x5d5   : > { %14879 = vmatmul.mubr.msk.bf16.vlgmr.msra.gmra.mrb[16].mxu1 %vm7533_vm10, %v13859_v35  ;;  %v12239_v35 = vshll.u32 %v12007_v52, 16  ;;  %v12238_v40 = vrot.slane %v12236_v1, 5  ;;  %v12261_v44 = vrot.slane %v12259_v42, 5  ;;  %v23868_v52 = vld [vmem:[#allocation27_spill] sm:$0xff]  ;;  %v23873_v26 = vshrl.u32 %v23872_v57, 16 }
 0x5d6   : > { %14911 = vmatpush3.bf16.msra.mxu1 %v22296_v18  ;;  %14882 = vmatprep.mubr.msk.bf16.mxu1 %vm7533_vm10, %v13860_v29  ;;  %v23857_v18 = vshrl.u32 %v23856_v15, 16  ;;  %v23863_v29 = vld [vmem:[#allocation10_spill] sm:$0xff]  ;;  %v12264_v15 = vrot.slane %v12262_v47, 6  ;;  %v12197_v38 = vsel %vm16922_vm5, %v12188_v7, %v12196_v39  ;;  %v12228_v60 = vor.u32 %v12227_v43, %v12224_v63 }
 0x5d7   : > { %v12245_v14 = vshrl.u32 %v23863_v29, 16  ;;  %v12248_v56 = vshll.u32 %v23863_v29, 16  ;;  %v12241_v30 = vrot.slane %v12239_v35, 6  ;;  %v23869_v5 = vshrl.u32 %v23868_v52, 16 }
 0x5d8   : > { %v12207_v17 = vrot.slane %v23857_v18, 5  ;;  %v12271_v18 = vshll.u32 %v23867_v31, 16  ;;  %v23870_v54 = vshll.u32 %v23868_v52, 16  ;;  %v12299_v4 = vrot.slane %v23873_v26, 5 }
 0x5d9   : > { %v12247_v51 = vrot.slane %v12245_v14, 5  ;;  %v12250_v45 = vrot.slane %v12248_v56, 6  ;;  %v12276_v24 = vrot.slane %v23869_v5, 5  ;;  %v23874_v9 = vshll.u32 %v23872_v57, 16 }
 0x5da   : > { %v22407_v61 = vor.u32 %v12208_v49, %v12207_v17  ;;  %v12187_v17 = vsel %vm16922_vm5, %v22403_v12, %v22405_v0  ;;  %v12265_v12 = vor.u32 %v12264_v15, %v12261_v44  ;;  %v12273_v0 = vrot.slane %v12271_v18, 6  ;;  %v12011_v44 = vld [vmem:[#allocation3 + $0xbc] sm:$0x3] }
 0x5db   : > { %v12277_v32 = vrot.slane %v23870_v54, 6  ;;  %v12300_v3 = vrot.slane %v23874_v9, 6  ;;  %v12308_v1 = vshll.u32 %v12010_v21, 16  ;;  %v13865_v35 = vcombine.low %v12187_v17, %v12197_v38  ;;  %v23875_v38 = vld [vmem:[#allocation42_spill] sm:$0xff]  ;;  %v12013_v9 = vld [vmem:[#allocation3 + $0xd4] sm:$0x3] }
 0x5dc   : > { %v12211_v10 = vrot.slane %v22407_v61, 4  ;;  %v12210_v49 = vsel %vm16922_vm5, %v12206_v11, %v22407_v61  ;;  %v12282_v61 = vshrl.u32 %v12009_v22, 16  ;;  %v12229_v14 = vrot.slane %v12228_v60, 4  ;;  %v12012_v60 = vld [vmem:[#allocation3 + $0xc8] sm:$0x3]  ;;  %v23878_v22 = vld [vmem:[#allocation48_spill] sm:$0xff] }
 0x5dd   : > { %14883 = vmatmul.mubr.msk.bf16.gmra.mrb[20].mxu1 %vm7533_vm10, %v13861_v8  ;;  %v12242_v8 = vor.u32 %v12241_v30, %v12238_v40  ;;  %v12274_v34 = vor.u32 %v12273_v0, %v12270_v55  ;;  %v12278_v58 = vor.u32 %v12277_v32, %v12276_v24  ;;  %v12287_v7 = vrot.slane %v12285_v27, 6  ;;  %v23879_v55 = vld [vmem:[#allocation45_spill] sm:$0xff]  ;;  %v23882_v54 = vld [vmem:[#allocation50_spill] sm:$0xff] }
 0x5de   : > { %14886 = vmatprep.mubr.msk.bf16.mxu1 %vm7533_vm10, %v13862_v6  ;;  %v12220_v2 = vsel %vm16922_vm5, %v12211_v10, %v12219_v36  ;;  %v12251_v6 = vor.u32 %v12250_v45, %v12247_v51  ;;  %v12284_v37 = vrot.slane %v12282_v61, 5  ;;  %v12293_v39 = vrot.slane %v12291_v23, 5 }
 0x5df   : > { %v13866_v29 = vcombine.low %v12210_v49, %v12220_v2  ;;  %v12243_v50 = vsel %vm16922_vm5, %v12234_v41, %v12242_v8  ;;  %v12296_v42 = vrot.slane %v12294_v53, 6  ;;  %v12301_v47 = vor.u32 %v12300_v3, %v12299_v4 }
 0x5e0   : > { %v12252_v56 = vrot.slane %v12251_v6, 4  ;;  %v12307_v11 = vrot.slane %v12305_v46, 5  ;;  %v12310_v10 = vrot.slane %v12308_v1, 6  ;;  %v12314_v36 = vshrl.u32 %v22075_v20, 16 }
 0x5e1   : > { %v12233_v63 = vsel %vm16922_vm5, %v12229_v14, %v12232_v13  ;;  %v12317_v40 = vshll.u32 %v22075_v20, 16  ;;  %v12275_v45 = vrot.slane %v12274_v34, 4  ;;  %v12280_v31 = vrot.slane %v12278_v58, 4 }
 0x5e2   : > { %v12256_v43 = vsel %vm16922_vm5, %v12252_v56, %v12255_v25  ;;  %v13867_v30 = vcombine.low %v12233_v63, %v12243_v50  ;;  %v12288_v19 = vor.u32 %v12287_v7, %v12284_v37  ;;  %v12303_v15 = vrot.slane %v12301_v47, 4 }
 0x5e3   : > { %v12311_v18 = vor.u32 %v12310_v10, %v12307_v11  ;;  %v12316_v17 = vrot.slane %v12314_v36, 5  ;;  %v23876_v49 = vshrl.u32 %v23875_v38, 16  ;;  %v12319_v13 = vrot.slane %v12317_v40, 6 }
 0x5e4   : > { %v23877_v41 = vshll.u32 %v23875_v38, 16  ;;  %v12337_v20 = vshrl.u32 %v23878_v22, 16  ;;  %v12340_v8 = vshll.u32 %v23878_v22, 16  ;;  %v12328_v6 = vshrl.u32 %v12011_v44, 16  ;;  %v12677_v22 = vld [vmem:[%s16051_s11 + $0x8] sm:$0xff] }
 0x5e5   : > { %14887 = vmatmul.mubr.msk.bf16.gmra.mrb[24].mxu1 %vm7533_vm10, %v13863_v16  ;;  %v12257_v16 = vrot.slane %v12255_v25, 4  ;;  %v12322_v2 = vrot.slane %v23876_v49, 5  ;;  %v23880_v21 = vshrl.u32 %v23879_v55, 16  ;;  %v23881_v0 = vshll.u32 %v23879_v55, 16  ;;  %v12680_v55 = vld [vmem:[%s16051_s11 + $0x20] sm:$0xff] }
 0x5e6   : > { %14890 = vmatprep.mubr.msk.bf16.mxu1 %vm7533_vm10, %v13864_v33  ;;  %v12297_v33 = vor.u32 %v12296_v42, %v12293_v39  ;;  %v12323_v25 = vrot.slane %v23877_v41, 6  ;;  %v12351_v5 = vshrl.u32 %v12012_v60, 16  ;;  %v12354_v24 = vshll.u32 %v12012_v60, 16 }
 0x5e7   : > { %v12266_v59 = vsel %vm16922_vm5, %v12257_v16, %v12265_v12  ;;  %v12331_v16 = vshll.u32 %v12011_v44, 16  ;;  %v12345_v12 = vrot.slane %v23880_v21, 5  ;;  %v12346_v52 = vrot.slane %v23881_v0, 6  ;;  %v12682_v0 = vld [vmem:[%s16051_s11 + $0x30] sm:$0xff] }
 0x5e8   : > { %v13868_v51 = vcombine.low %v12256_v43, %v12266_v59  ;;  %v12360_v32 = vshrl.u32 %v23882_v54, 16  ;;  %v12363_v61 = vshll.u32 %v23882_v54, 16  ;;  %v12279_v27 = vsel %vm16922_vm5, %v12275_v45, %v12278_v58 }
 0x5e9   : > { %v12289_v48 = vsel %vm16922_vm5, %v12280_v31, %v12288_v19  ;;  %v12298_v23 = vrot.slane %v12297_v33, 4  ;;  %v12312_v53 = vsel %vm16922_vm5, %v12303_v15, %v12311_v18  ;;  %v12320_v57 = vor.u32 %v12319_v13, %v12316_v17 }
 0x5ea   : > { %v12339_v26 = vrot.slane %v12337_v20, 5  ;;  %v12342_v4 = vrot.slane %v12340_v8, 6  ;;  %v12324_v3 = vor.u32 %v12323_v25, %v12322_v2  ;;  %v12330_v46 = vrot.slane %v12328_v6, 5  ;;  %v12676_v25 = vld [vmem:[%s16051_s11] sm:$0xff]  ;;  %v12678_v6 = vld [vmem:[%s16051_s11 + $0x10] sm:$0xff] }
 0x5eb   : > { %v12333_v1 = vrot.slane %v12331_v16, 6  ;;  %v12356_v14 = vrot.slane %v12354_v24, 6  ;;  %v12362_v56 = vrot.slane %v12360_v32, 5  ;;  %v12365_v50 = vrot.slane %v12363_v61, 6  ;;  %v12679_v16 = vld [vmem:[%s16051_s11 + $0x18] sm:$0xff]  ;;  %v12685_v24 = vld [vmem:[%s16051_s11 + $0x48] sm:$0xff] }
 0x5ec   : > { %v23883_v59 = vshrl.u32 %v22014_v28, 16  ;;  %v23884_v58 = vshll.u32 %v22014_v28, 16  ;;  %v12374_v7 = vshrl.u32 %v12013_v9, 16  ;;  %v12377_v39 = vshll.u32 %v12013_v9, 16  ;;  %v12686_v61 = vld [vmem:[%s16051_s11 + $0x50] sm:$0xff]  ;;  %v12692_v9 = vld [vmem:[%s16051_s11 + $0x80] sm:$0xff] }
 0x5ed   : > { %14891 = vmatmul.mubr.msk.bf16.gmra.mrb[28].mxu1 %vm7533_vm10, %v13865_v35  ;;  %v12347_v35 = vor.u32 %v12346_v52, %v12345_v12  ;;  %v13869_v42 = vcombine.low %v12279_v27, %v12289_v48  ;;  %v12302_v11 = vsel %vm16922_vm5, %v12298_v23, %v12301_v47  ;;  %v12343_v10 = vor.u32 %v12342_v4, %v12339_v26  ;;  %v12683_v52 = vld [vmem:[%s16051_s11 + $0x38] sm:$0xff]  ;;  %v12688_v48 = vld [vmem:[%s16051_s11 + $0x60] sm:$0xff]  ;;  %v12689_v23 = vld [vmem:[%s16051_s11 + $0x68] sm:$0xff] }
 0x5ee   : > { %14894 = vmatprep.mubr.msk.bf16.mxu1 %vm7533_vm10, %v13866_v29  ;;  %v12353_v29 = vrot.slane %v12351_v5, 5  ;;  %v12368_v34 = vrot.slane %v23883_v59, 5  ;;  %v12369_v37 = vrot.slane %v23884_v58, 6  ;;  %v13870_v36 = vcombine.low %v12302_v11, %v12312_v53  ;;  %v12684_v5 = vld [vmem:[%s16051_s11 + $0x40] sm:$0xff]  ;;  %v12687_v27 = vld [vmem:[%s16051_s11 + $0x58] sm:$0xff]  ;;  %v12690_v26 = vld [vmem:[%s16051_s11 + $0x70] sm:$0xff] }
 0x5ef   : > { %v12326_v63 = vrot.slane %v12324_v3, 4  ;;  %v12334_v43 = vor.u32 %v12333_v1, %v12330_v46  ;;  %v12321_v40 = vrot.slane %v12320_v57, 4  ;;  %v12366_v45 = vor.u32 %v12365_v50, %v12362_v56  ;;  %v12691_v4 = vld [vmem:[%s16051_s11 + $0x78] sm:$0xff]  ;;  %v12697_v56 = vld [vmem:[%s16051_s11 + $0xa8] sm:$0xff]  ;;  %v12702_v11 = vld [vmem:[%s16051_s11 + $0xd0] sm:$0xff] }
 0x5f0   : > { %v12370_v28 = vor.u32 %v12369_v37, %v12368_v34  ;;  %v12376_v31 = vrot.slane %v12374_v7, 5  ;;  %v12379_v19 = vrot.slane %v12377_v39, 6  ;;  %v12344_v33 = vrot.slane %v12343_v10, 4  ;;  %v12698_v34 = vld [vmem:[%s16051_s11 + $0xb0] sm:$0xff]  ;;  %v12699_v58 = vld [vmem:[%s16051_s11 + $0xb8] sm:$0xff]  ;;  %v12700_v37 = vld [vmem:[%s16051_s11 + $0xc0] sm:$0xff] }
 0x5f1   : > { %v12335_v47 = vsel %vm16922_vm5, %v12326_v63, %v12334_v43  ;;  %v12325_v15 = vsel %vm16922_vm5, %v12321_v40, %v12324_v3  ;;  %v12367_v18 = vrot.slane %v12366_v45, 4  ;;  %v12708_v8 = vpack.c.bf16 %v12677_v22, %v12676_v25  ;;  %v12693_v3 = vld [vmem:[%s16051_s11 + $0x88] sm:$0xff]  ;;  %v12703_v10 = vld [vmem:[%s16051_s11 + $0xd8] sm:$0xff] }
 0x5f2   : > { %v12372_v17 = vrot.slane %v12370_v28, 4  ;;  %v12380_v38 = vor.u32 %v12379_v19, %v12376_v31  ;;  %v13871_v49 = vcombine.low %v12325_v15, %v12335_v47  ;;  %v12348_v2 = vsel %vm16922_vm5, %v12344_v33, %v12347_v35  ;;  %v12701_v7 = vld [vmem:[%s16051_s11 + $0xc8] sm:$0xff]  ;;  %v23885_v31 = vld [vmem:[#allocation44_spill] sm:$0xff] }
 0x5f3   : > { %v12371_v13 = vsel %vm16922_vm5, %v12367_v18, %v12370_v28  ;;  %v12709_v21 = vpack.c.bf16 %v12679_v16, %v12678_v6  ;;  %v12710_v12 = vpack.c.bf16 %v12681_v62, %v12680_v55  ;;  %v12711_v54 = vpack.c.bf16 %v12683_v52, %v12682_v0  ;;  %v12705_v63 = vld [vmem:[%s16051_s11 + $0xe8] sm:$0xff]  ;;  %v22556_v28 = vld [vmem:[%s22691_s4] ss:$0 sm:$0xff]  ;;  %v23887_v15 = vld [vmem:[#allocation8_spill] sm:$0xff] }
 0x5f4   : > { %v12381_v41 = vsel %vm16922_vm5, %v12372_v17, %v12380_v38  ;;  %v12712_v32 = vpack.c.bf16 %v12685_v24, %v12684_v5  ;;  %v12713_v53 = vpack.c.bf16 %v12687_v27, %v12686_v61  ;;  %v12714_v57 = vpack.c.bf16 %v12689_v23, %v12688_v48  ;;  %v23886_v33 = vld [vmem:[#allocation15_spill] sm:$0xff]  ;;  %v23890_v62 = vld [vmem:[#allocation32_spill] sm:$0xff] }
 0x5f5   : > { %14895 = vmatmul.mubr.msk.bf16.gmra.mrb[0].mxu1 %vm7533_vm10, %v13867_v30  ;;  %v12349_v30 = vrot.slane %v12347_v35, 4  ;;  %v13873_v20 = vcombine.low %v12371_v13, %v12381_v41  ;;  %v12715_v46 = vpack.c.bf16 %v12691_v4, %v12690_v26  ;;  %v12716_v1 = vpack.c.bf16 %v12693_v3, %v12692_v9  ;;  %v12694_v35 = vld [vmem:[%s16051_s11 + $0x90] sm:$0xff]  ;;  %v23888_v17 = vld [vmem:[#allocation43_spill] sm:$0xff] }
 0x5f6   : > { %14898 = vmatprep.mubr.msk.bf16.mxu1 %vm7533_vm10, %v13868_v51  ;;  %v12357_v51 = vor.u32 %v12356_v14, %v12353_v29  ;;  %v12695_v29 = vld [vmem:[%s16051_s11 + $0x98] sm:$0xff]  ;;  %v12696_v14 = vld [vmem:[%s16051_s11 + $0xa0] sm:$0xff]  ;;  %v12719_v39 = vpack.c.bf16 %v12699_v58, %v12698_v34  ;;  %v12721_v43 = vpack.c.bf16 %v12703_v10, %v12702_v11  ;;  %v7750_v19 = vadd.f32 %v23885_v31, %v22556_v28  ;;  %v23891_v52 = vld [vmem:[#allocation40_spill] sm:$0xff] }
 0x5f7   : > { %v12717_v50 = vpack.c.bf16 %v12695_v29, %v12694_v35  ;;  %v12718_v59 = vpack.c.bf16 %v12697_v56, %v12696_v14  ;;  %v7748_v47 = vadd.f32 %v22556_v28, %v23886_v33  ;;  %v7749_v18 = vadd.f32 %v23887_v15, %v22556_v28  ;;  %v23892_v24 = vld [vmem:[#allocation19_spill] sm:$0xff]  ;;  %v23894_v35 = vld [vmem:[#allocation9_spill] sm:$0xff] }
 0x5f8   : > { %v12358_v44 = vsel %vm16922_vm5, %v12349_v30, %v12357_v51  ;;  %v12706_v30 = vld [vmem:[%s16051_s11 + $0xf0] sm:$0xff]  ;;  %v12707_v51 = vld [vmem:[%s16051_s11 + $0xf8] sm:$0xff]  ;;  %v7747_v38 = vadd.f32 %v22556_v28, %v23888_v17  ;;  %v7754_v5 = vadd.f32 %v23891_v52, %v22556_v28  ;;  %v23893_v9 = vld [vmem:[#allocation35_spill] sm:$0xff]  ;;  %v7755_v29 = vadd.f32 %v22556_v28, %v23894_v35 }
 0x5f9   : > { %v13872_v60 = vcombine.low %v12348_v2, %v12358_v44  ;;  %v12723_v45 = vpack.c.bf16 %v12707_v51, %v12706_v30  ;;  %v22565_v44 = vld [vmem:[%s22693_s6] ss:$0 sm:$0xff]  ;;  %v7757_v3 = vadd.f32 %v23893_v9, %v22556_v28  ;;  %v23895_v56 = vld [vmem:[#allocation21_spill] sm:$0xff] }
 0x5fa   : > { %v14985_v13 = vadd.f32 %v22565_v44, %v7750_v19  ;;  %v14988_v22 = vadd.f32 %v22565_v44, %v7748_v47  ;;  %v23899_v33 = vld [vmem:[#allocation5_spill] sm:$0xff] }
 0x5fb   : > { %v15003_v58 = vadd.f32 %v22565_v44, %v7757_v3  ;;  %v7762_v47 = vadd.f32 %v23899_v33, %v22556_v28  ;;  %v23900_v15 = vld [vmem:[#allocation33_spill] sm:$0xff] }
 0x5fd   : > { %14899 = vmatmul.mubr.msk.bf16.gmra.mrb[4].mxu1 %vm7533_vm10, %v13869_v42  ;;  %v12720_v42 = vpack.c.bf16 %v12701_v7, %v12700_v37  ;;  %v15006_v7 = vadd.f32 %v22565_v44, %v7755_v29 }
 0x5fe   : > { %14902 = vmatprep.mubr.msk.bf16.mxu1 %vm7533_vm10, %v13870_v36  ;;  %v12704_v36 = vld [vmem:[%s16051_s11 + $0xe0] sm:$0xff] }
 0x5ff   : > { %v12722_v40 = vpack.c.bf16 %v12705_v63, %v12704_v36 }
 0x605   : > { %14903 = vmatmul.mubr.msk.bf16.gmra.mrb[8].mxu1 %vm7533_vm10, %v13871_v49 }
 0x606   : > { %14906 = vmatprep.mubr.msk.bf16.mxu1 %vm7533_vm10, %v13872_v60 }
 0x60d   : > { %14907 = vmatmul.mubr.msk.bf16.gmra.mrb[12].mxu1 %vm7533_vm10, %v13873_v20  ;;  %v23889_v20 = vld [vmem:[#allocation16_spill] sm:$0xff] }
 0x60e   : > { %14912 = vmatprep.mubr.msk.bf16.mxu1 %vm1351_vm8, %v12708_v8  ;;  %v7753_v8 = vadd.f32 %v23889_v20, %v22556_v28 }
 0x615   : > { %14913 = vmatmul.mubr.msk.bf16.vlgmr.msra.gmra.mrb[16].mxu1 %vm1351_vm8, %v12709_v21  ;;  %v7751_v21 = vadd.f32 %v22556_v28, %v23890_v62 }
 0x616   : > { %14916 = vmatprep.mubr.msk.bf16.mxu1 %vm1351_vm8, %v12710_v12 }
 0x617   : > { %v14994_v27 = vadd.f32 %v22565_v44, %v7751_v21 }
 0x61d   : > { %14917 = vmatmul.mubr.msk.bf16.gmra.mrb[20].mxu1 %vm1351_vm8, %v12711_v54  ;;  %v7752_v54 = vadd.f32 %v22556_v28, %v23892_v24 }
 0x61e   : > { %14920 = vmatprep.mubr.msk.bf16.mxu1 %vm1351_vm8, %v12712_v32  ;;  %v14991_v32 = vadd.f32 %v22565_v44, %v7753_v8 }
 0x61f   : > { %v15000_v4 = vadd.f32 %v22565_v44, %v7752_v54 }
 0x625   : > { %14921 = vmatmul.mubr.msk.bf16.gmra.mrb[24].mxu1 %vm1351_vm8, %v12713_v53  ;;  %v14997_v53 = vadd.f32 %v22565_v44, %v7754_v5 }
 0x626   : > { %14924 = vmatprep.mubr.msk.bf16.mxu1 %vm1351_vm8, %v12714_v57 }
 0x62d   : > { %14925 = vmatmul.mubr.msk.bf16.gmra.mrb[28].mxu1 %vm1351_vm8, %v12715_v46 }
 0x62e   : > { %14928 = vmatprep.mubr.msk.bf16.mxu1 %vm1351_vm8, %v12716_v1 }
 0x635   : > { %14929 = vmatmul.mubr.msk.bf16.gmra.mrb[0].mxu1 %vm1351_vm8, %v12717_v50  ;;  %v7758_v50 = vadd.f32 %v23895_v56, %v22556_v28 }
 0x636   : > { %14932 = vmatprep.mubr.msk.bf16.mxu1 %vm1351_vm8, %v12718_v59  ;;  %v23896_v59 = vld [vmem:[#allocation6_spill] sm:$0xff] }
 0x637   : > { %v7756_v34 = vadd.f32 %v22556_v28, %v23896_v59  ;;  %v15009_v11 = vadd.f32 %v22565_v44, %v7758_v50 }
 0x639   : > { %v15012_v63 = vadd.f32 %v22565_v44, %v7756_v34 }
 0x63d   : > { %14933 = vmatmul.mubr.msk.bf16.gmra.mrb[4].mxu1 %vm1351_vm8, %v12719_v39 }
 0x63e   : > { %14936 = vmatprep.mubr.msk.bf16.mxu1 %vm1351_vm8, %v12720_v42 }
 0x645   : > { %14937 = vmatmul.mubr.msk.bf16.gmra.mrb[8].mxu1 %vm1351_vm8, %v12721_v43  ;;  %v23897_v43 = vld [vmem:[#allocation41_spill] sm:$0xff] }
 0x646   : > { %14940 = vmatprep.mubr.msk.bf16.mxu1 %vm1351_vm8, %v12722_v40  ;;  %v7761_v40 = vadd.f32 %v23897_v43, %v22556_v28 }
 0x648   : > { %v15015_v17 = vadd.f32 %v22565_v44, %v7761_v40 }
 0x64d   : > { %14941 = vmatmul.mubr.msk.bf16.gmra.mrb[12].mxu1 %vm1351_vm8, %v12723_v45  ;;  %v23898_v45 = vld [vmem:[#allocation11_spill] sm:$0xff] }
 0x64e   : > { %v7759_v31 = vadd.f32 %v22556_v28, %v23898_v45 }
 0x6e8   : > { %v14914_v49 = vpop.f32.mrb[16].mxu1 }
 0x6e9   : > { %v14979_v2 = vadd.f32 %v14914_v49, %v7749_v18  ;;  %v12817_v60 = vpop.f32.mrb[17].mxu1  ;;  %v7760_v18 = vadd.f32 %v22556_v28, %v23900_v15  ;;  %v15018_v49 = vadd.f32 %v22565_v44, %v7759_v31 }
 0x6ea   : > { %v14982_v41 = vadd.f32 %v12817_v60, %v7747_v38  ;;  %v14915_v25 = vpop.f32.mrb[18].mxu1 }
 0x6eb   : > { %v14980_v6 = vadd.f32 %v14979_v2, %v22565_v44  ;;  %v14986_v16 = vadd.f32 %v14985_v13, %v14915_v25  ;;  %v12820_v55 = vpop.f32.mrb[19].mxu1  ;;  %v15021_v13 = vadd.f32 %v22565_v44, %v7762_v47 }
 0x6ec   : > { %v14983_v12 = vadd.f32 %v14982_v41, %v22565_v44  ;;  %v14989_v0 = vadd.f32 %v14988_v22, %v12820_v55  ;;  %v15024_v22 = vadd.f32 %v22565_v44, %v7760_v18 }
 0x6ed   : > { %12978 = vst.msk [vmem:[%s22577_s19 + $0x10] sm:$0xff] %vm7533_vm10, %v14980_v6  ;;  %12979 = vst.msk [vmem:[%s22577_s19 + $0x18] sm:$0xff] %vm7533_vm10, %v14986_v16  ;;  %v15028_v16 = vadd.f32 %v22565_v44, %v22556_v28 }
 0x6ee   : > { %12976 = vst.msk [vmem:[%s22577_s19] sm:$0xff] %vm7533_vm10, %v14983_v12  ;;  %12977 = vst.msk [vmem:[%s22577_s19 + $0x8] sm:$0xff] %vm7533_vm10, %v14989_v0 }
 0x6f0   : > { %v14918_v61 = vpop.f32.mrb[20].mxu1 }
 0x6f1   : > { %v14992_v48 = vadd.f32 %v14991_v32, %v14918_v61  ;;  %v12833_v23 = vpop.f32.mrb[21].mxu1 }
 0x6f2   : > { %v14995_v57 = vadd.f32 %v14994_v27, %v12833_v23  ;;  %v14919_v26 = vpop.f32.mrb[22].mxu1 }
 0x6f3   : > { %12982 = vst.msk [vmem:[%s22577_s19 + $0x30] sm:$0xff] %vm7533_vm10, %v14992_v48  ;;  %v14998_v46 = vadd.f32 %v14997_v53, %v14919_v26  ;;  %v12836_v1 = vpop.f32.mrb[23].mxu1 }
 0x6f4   : > { %12980 = vst.msk [vmem:[%s22577_s19 + $0x20] sm:$0xff] %vm7533_vm10, %v14995_v57  ;;  %v15001_v14 = vadd.f32 %v15000_v4, %v12836_v1 }
 0x6f5   : > { %12983 = vst.msk [vmem:[%s22577_s19 + $0x38] sm:$0xff] %vm7533_vm10, %v14998_v46 }
 0x6f6   : > { %12981 = vst.msk [vmem:[%s22577_s19 + $0x28] sm:$0xff] %vm7533_vm10, %v15001_v14 }
 0x6f8   : > { %v14922_v37 = vpop.f32.mrb[24].mxu1 }
 0x6f9   : > { %v15004_v39 = vadd.f32 %v15003_v58, %v14922_v37  ;;  %v12849_v42 = vpop.f32.mrb[25].mxu1 }
 0x6fa   : > { %v15007_v10 = vadd.f32 %v15006_v7, %v12849_v42  ;;  %v14923_v36 = vpop.f32.mrb[26].mxu1 }
 0x6fb   : > { %12986 = vst.msk [vmem:[%s22577_s19 + $0x50] sm:$0xff] %vm7533_vm10, %v15004_v39  ;;  %v15010_v30 = vadd.f32 %v15009_v11, %v14923_v36  ;;  %v12852_v51 = vpop.f32.mrb[27].mxu1 }
 0x6fc   : > { %12984 = vst.msk [vmem:[%s22577_s19 + $0x40] sm:$0xff] %vm7533_vm10, %v15007_v10  ;;  %v15013_v19 = vadd.f32 %v15012_v63, %v12852_v51 }
 0x6fd   : > { %12987 = vst.msk [vmem:[%s22577_s19 + $0x58] sm:$0xff] %vm7533_vm10, %v15010_v30 }
 0x6fe   : > { %12985 = vst.msk [vmem:[%s22577_s19 + $0x48] sm:$0xff] %vm7533_vm10, %v15013_v19 }
 0x700   : > { %v14926_v38 = vpop.f32.mrb[28].mxu1 }
 0x701   : > { %v15016_v2 = vadd.f32 %v15015_v17, %v14926_v38  ;;  %v12865_v60 = vpop.f32.mrb[29].mxu1 }
 0x702   : > { %v15019_v41 = vadd.f32 %v15018_v49, %v12865_v60  ;;  %v14927_v25 = vpop.f32.mrb[30].mxu1 }
 0x703   : > { %12990 = vst.msk [vmem:[%s22577_s19 + $0x70] sm:$0xff] %vm7533_vm10, %v15016_v2  ;;  %v15022_v20 = vadd.f32 %v15021_v13, %v14927_v25  ;;  %v12868_v8 = vpop.f32.mrb[31].mxu1 }
 0x704   : > { %12988 = vst.msk [vmem:[%s22577_s19 + $0x60] sm:$0xff] %vm7533_vm10, %v15019_v41  ;;  %v15025_v6 = vadd.f32 %v15024_v22, %v12868_v8 }
 0x705   : > { %12991 = vst.msk [vmem:[%s22577_s19 + $0x78] sm:$0xff] %vm7533_vm10, %v15022_v20 }
 0x706   : > { %12989 = vst.msk [vmem:[%s22577_s19 + $0x68] sm:$0xff] %vm7533_vm10, %v15025_v6 }
 0x708   : > { %v14930_v55 = vpop.f32.mrb[0].mxu1 }
 0x709   : > { %v15027_v62 = vadd.f32 %v15028_v16, %v14930_v55  ;;  %v12881_v21 = vpop.f32.mrb[1].mxu1 }
 0x70a   : > { %v15029_v12 = vadd.f32 %v15028_v16, %v12881_v21  ;;  %v14931_v0 = vpop.f32.mrb[2].mxu1 }
 0x70b   : > { %12994 = vst.msk [vmem:[%s22577_s19 + $0x90] sm:$0xff] %vm7533_vm10, %v15027_v62  ;;  %v15031_v52 = vadd.f32 %v15028_v16, %v14931_v0  ;;  %v12884_v5 = vpop.f32.mrb[3].mxu1 }
 0x70c   : > { %12992 = vst.msk [vmem:[%s22577_s19 + $0x80] sm:$0xff] %vm7533_vm10, %v15029_v12  ;;  %v15033_v24 = vadd.f32 %v15028_v16, %v12884_v5 }
 0x70d   : > { %12995 = vst.msk [vmem:[%s22577_s19 + $0x98] sm:$0xff] %vm7533_vm10, %v15031_v52 }
 0x70e   : > { %12993 = vst.msk [vmem:[%s22577_s19 + $0x88] sm:$0xff] %vm7533_vm10, %v15033_v24 }
 0x710   : > { %v14934_v28 = vpop.f32.mrb[4].mxu1 }
 0x711   : > { %v15035_v44 = vadd.f32 %v15028_v16, %v14934_v28  ;;  %v12897_v54 = vpop.f32.mrb[5].mxu1 }
 0x712   : > { %v15037_v32 = vadd.f32 %v15028_v16, %v12897_v54  ;;  %v14935_v61 = vpop.f32.mrb[6].mxu1 }
 0x713   : > { %12998 = vst.msk [vmem:[%s22577_s19 + $0xb0] sm:$0xff] %vm7533_vm10, %v15035_v44  ;;  %v15039_v27 = vadd.f32 %v15028_v16, %v14935_v61  ;;  %v12900_v48 = vpop.f32.mrb[7].mxu1 }
 0x714   : > { %12996 = vst.msk [vmem:[%s22577_s19 + $0xa0] sm:$0xff] %vm7533_vm10, %v15037_v32  ;;  %v15041_v23 = vadd.f32 %v15028_v16, %v12900_v48 }
 0x715   : > { %12999 = vst.msk [vmem:[%s22577_s19 + $0xb8] sm:$0xff] %vm7533_vm10, %v15039_v27 }
 0x716   : > { %12997 = vst.msk [vmem:[%s22577_s19 + $0xa8] sm:$0xff] %vm7533_vm10, %v15041_v23 }
 0x718   : > { %v14938_v53 = vpop.f32.mrb[8].mxu1 }
 0x719   : > { %v15043_v57 = vadd.f32 %v15028_v16, %v14938_v53  ;;  %v12913_v26 = vpop.f32.mrb[9].mxu1 }
 0x71a   : > { %v15045_v4 = vadd.f32 %v15028_v16, %v12913_v26  ;;  %v14939_v9 = vpop.f32.mrb[10].mxu1 }
 0x71b   : > { %13002 = vst.msk [vmem:[%s22577_s19 + $0xd0] sm:$0xff] %vm7533_vm10, %v15043_v57  ;;  %v15047_v3 = vadd.f32 %v15028_v16, %v14939_v9  ;;  %v12916_v46 = vpop.f32.mrb[11].mxu1 }
 0x71c   : > { %13000 = vst.msk [vmem:[%s22577_s19 + $0xc0] sm:$0xff] %vm7533_vm10, %v15045_v4  ;;  %v15049_v1 = vadd.f32 %v15028_v16, %v12916_v46 }
 0x71d   : > { %13003 = vst.msk [vmem:[%s22577_s19 + $0xd8] sm:$0xff] %vm7533_vm10, %v15047_v3 }
 0x71e   : > { %13001 = vst.msk [vmem:[%s22577_s19 + $0xc8] sm:$0xff] %vm7533_vm10, %v15049_v1 }
 0x720   : > { %v14942_v35 = vpop.f32.mrb[12].mxu1 }
 0x721   : > { %v15051_v29 = vadd.f32 %v15028_v16, %v14942_v35  ;;  %v12929_v14 = vpop.f32.mrb[13].mxu1 }
 0x722   : > { %v15053_v56 = vadd.f32 %v15028_v16, %v12929_v14  ;;  %v14943_v50 = vpop.f32.mrb[14].mxu1 }
 0x723   : > { %13006 = vst.msk [vmem:[%s22577_s19 + $0xf0] sm:$0xff] %vm7533_vm10, %v15051_v29  ;;  %v15055_v59 = vadd.f32 %v15028_v16, %v14943_v50  ;;  %v12932_v34 = vpop.f32.mrb[15].mxu1 }
 0x724   : > { %13004 = vst.msk [vmem:[%s22577_s19 + $0xe0] sm:$0xff] %vm7533_vm10, %v15053_v56  ;;  %v15057_v58 = vadd.f32 %v15028_v16, %v12932_v34 }
 0x725   : > { %13007 = vst.msk [vmem:[%s22577_s19 + $0xf8] sm:$0xff] %vm7533_vm10, %v15055_v59 }
 0x726   : > { %13005 = vst.msk [vmem:[%s22577_s19 + $0xe8] sm:$0xff] %vm7533_vm10, %v15057_v58 }
 0x727 PF: > { %s17_s24 = sadd.s32 1, %s15888_s24  }
 0x728   : > { %p14_p4 = scmp.ge.s32.totalorder %s17_s24, 4  }
 0x72a   :  { %16 = sbr.rel (!%p14_p4) target bundleno = 1 (0x1), region = 100 }

</bundles_post_ra>
